<compile_context>
chip_gen: v7x
topology: tpu7x:2x2x1
jax: 0.10.0
libtpu: 0.0.40
codegen_flags: <defaults>
</compile_context>

<pallas_src>
import functools
import numpy as np
import jax
import jax.numpy as jnp
from jax.experimental import pallas as pl
from jax.experimental.pallas import tpu as pltpu

LIN_TM = 8           # M = batch = 2 -> pad to sublane minimum, not 128
LIN_TILE_CAP = 1024  # cap for TK/TN of the big linear weight tiles
CONV_TM = 256        # conv matmuls: M = B*OH*OW is large; fill the MXU rows


# ----------------------------------------------------------------------------
# helpers
# ----------------------------------------------------------------------------
def _ceil_mult(x, m):
    return ((x + m - 1) // m) * m


def _pick_tile(padded, align, cap):
    """Largest tile <= cap that divides `padded` and is a multiple of `align`.
    Falls back to the full extent when cap >= padded."""
    if cap >= padded:
        return padded
    best = align
    t = align
    while t <= cap:
        if padded % t == 0:
            best = t
        t += align
    return best


# ----------------------------------------------------------------------------
# Pallas kernel 1: fused tiled matmul + bias + (ReLU | masked softmax) epilogue
# ----------------------------------------------------------------------------
def _matmul_kernel(a_ref, b_ref, bias_ref, o_ref, acc_ref, *, relu, softmax_cols):
    k = pl.program_id(2)

    @pl.when(k == 0)
    def _():
        acc_ref[...] = jnp.zeros_like(acc_ref)

    acc_ref[...] += jnp.dot(a_ref[...], b_ref[...],
                            preferred_element_type=jnp.float32)

    @pl.when(k == pl.num_programs(2) - 1)
    def _():
        out = acc_ref[...] + bias_ref[...]
        if relu:
            out = jnp.maximum(out, 0.0)
        if softmax_cols is not None:
            # softmax over the (single) N block, masking padded lanes >= softmax_cols
            col = jax.lax.broadcasted_iota(jnp.int32, out.shape, 1)
            valid = col < softmax_cols
            masked = jnp.where(valid, out, -jnp.inf)
            m = jnp.max(masked, axis=1, keepdims=True)
            e = jnp.where(valid, jnp.exp(out - m), 0.0)
            s = jnp.sum(e, axis=1, keepdims=True)
            out = e / s
        o_ref[...] = out.astype(o_ref.dtype)


def matmul_prepadded(a, wp, bp, n_out, *, tm, tk_cap, tn_cap,
                     relu=False, softmax_cols=None):
    """C[:M, :n_out] = A @ W + bias, with optional fused ReLU / softmax.

    `wp` is a pre-padded (Kp, Np) bf16 weight matrix (Kp, Np multiples of 128)
    and `bp` a pre-padded (1, Np) f32 bias -- prepared once at init, never
    re-padded inside the forward.  Only the (cheap) activation A is padded/cast
    here."""
    M, K = a.shape
    Kp, Np = wp.shape
    tm = min(tm, _ceil_mult(M, 8))
    Mp = _ceil_mult(M, tm)
    a_p = jnp.zeros((Mp, Kp), jnp.bfloat16).at[:M, :K].set(a.astype(jnp.bfloat16))
    tk = _pick_tile(Kp, 128, tk_cap)
    tn = Np if softmax_cols is not None else _pick_tile(Np, 128, tn_cap)
    grid = (Mp // tm, Np // tn, Kp // tk)
    out = pl.pallas_call(
        functools.partial(_matmul_kernel, relu=relu, softmax_cols=softmax_cols),
        out_shape=jax.ShapeDtypeStruct((Mp, Np), jnp.float32),
        grid_spec=pltpu.PrefetchScalarGridSpec(
            num_scalar_prefetch=0,
            grid=grid,
            in_specs=[
                pl.BlockSpec((tm, tk), lambda i, j, k: (i, k)),
                pl.BlockSpec((tk, tn), lambda i, j, k: (k, j)),
                pl.BlockSpec((1, tn), lambda i, j, k: (0, j)),
            ],
            out_specs=pl.BlockSpec((tm, tn), lambda i, j, k: (i, j)),
            scratch_shapes=[pltpu.VMEM((tm, tn), jnp.float32)],
        ),
        compiler_params=pltpu.CompilerParams(
            dimension_semantics=("parallel", "parallel", "arbitrary")),
    )(a_p, wp, bp)
    return out[:M, :n_out]


# ----------------------------------------------------------------------------
# Pallas kernel 2: MaxPool2d(2) with PyTorch-style flat indices
# ----------------------------------------------------------------------------
def _maxpool_kernel(w_ref, base_ref, v_ref, i_ref, *, in_w):
    c0 = w_ref[0]   # window offset (dh=0, dw=0)
    c1 = w_ref[1]   # (0, 1)
    c2 = w_ref[2]   # (1, 0)
    c3 = w_ref[3]   # (1, 1)
    m = jnp.maximum(jnp.maximum(c0, c1), jnp.maximum(c2, c3))
    is0 = c0 == m
    is1 = jnp.logical_and(c1 == m, jnp.logical_not(is0))
    is2 = jnp.logical_and(c2 == m, jnp.logical_not(jnp.logical_or(is0, is1)))
    is3 = jnp.logical_not(jnp.logical_or(jnp.logical_or(is0, is1), is2))
    dh = jnp.where(jnp.logical_or(is2, is3), 1, 0).astype(jnp.int32)
    dw = jnp.where(jnp.logical_or(is1, is3), 1, 0).astype(jnp.int32)
    v_ref[...] = m
    i_ref[...] = base_ref[...] + dh * in_w + dw


def maxpool2x2_with_indices(x):
    """PyTorch MaxPool2d(2, return_indices=True) on NCHW input.

    Returns (values, indices) already in Flatten(1) order: col = c*OH*OW+oh*OW+ow.
    Indices are flat into the H*W plane of the *input* (PyTorch convention)."""
    B, C, H, W = x.shape
    OH, OW = H // 2, W // 2
    xc = x[:, :, :2 * OH, :2 * OW]
    # (dh*2+dw, B, C*OH*OW) window tensor
    w4 = (xc.reshape(B, C, OH, 2, OW, 2)
            .transpose(3, 5, 0, 1, 2, 4)
            .reshape(4, B, C * OH * OW))
    r = np.arange(C * OH * OW)
    oh = (r % (OH * OW)) // OW
    ow = r % OW
    base = ((2 * oh) * W + 2 * ow).astype(np.int32)
    base = jnp.broadcast_to(jnp.asarray(base), (B, C * OH * OW))
    vals, idx = pl.pallas_call(
        functools.partial(_maxpool_kernel, in_w=W),
        out_shape=(jax.ShapeDtypeStruct((B, C * OH * OW), jnp.float32),
                   jax.ShapeDtypeStruct((B, C * OH * OW), jnp.int32)),
    )(w4.astype(jnp.float32), base)
    return vals, idx


# ----------------------------------------------------------------------------
# Conv / ConvTranspose / Linear wrappers (JAX glue) -> Pallas matmul (compute)
# ----------------------------------------------------------------------------
def linear(a, lw, lb, n_out, relu=False, softmax_cols=None):
    return matmul_prepadded(a, lw, lb, n_out, tm=LIN_TM,
                            tk_cap=LIN_TILE_CAP, tn_cap=LIN_TILE_CAP,
                            relu=relu, softmax_cols=softmax_cols)


def conv2d(x, lw, lb, cout, kh, kw, stride, relu=False):
    B, C, H, W = x.shape
    OH = (H - kh) // stride + 1
    OW = (W - kw) // stride + 1
    cols = []
    for i in range(kh):
        for j in range(kw):
            cols.append(x[:, :, i:i + stride * OH:stride, j:j + stride * OW:stride])
    patches = jnp.stack(cols, axis=2)                    # (B, C, kh*kw, OH, OW)
    a = (patches.reshape(B, C * kh * kw, OH * OW)
                .transpose(0, 2, 1)
                .reshape(B * OH * OW, C * kh * kw))      # (M, K), K ordered (c,i,j)
    # full-K / full-N tiles -> 1-D grid over M only (no reduction axis).
    y = matmul_prepadded(a, lw, lb, cout, tm=CONV_TM,
                         tk_cap=1 << 30, tn_cap=1 << 30, relu=relu)
    return y.reshape(B, OH, OW, cout).transpose(0, 3, 1, 2)


def conv_transpose2d(x, lw, lb, cout, kh, kw, stride, relu=False):
    # TODO(synk): stride>1 path dilates with explicit zeros (4x wasted im2col /
    # MXU work); a sub-pixel decomposition would remove it but is omitted here.
    B, C, H, W = x.shape
    if stride > 1:
        xd = jnp.zeros((B, C, (H - 1) * stride + 1, (W - 1) * stride + 1), x.dtype)
        xd = xd.at[:, :, ::stride, ::stride].set(x)
    else:
        xd = x
    xp = jnp.pad(xd, ((0, 0), (0, 0), (kh - 1, kh - 1), (kw - 1, kw - 1)))
    return conv2d(xp, lw, lb, cout, kh, kw, stride=1, relu=relu)


def max_unpool2x2(x_flat, indices, B, C, H_out, W_out):
    # TODO(synk): MaxUnpool2d is a data-dependent scatter; kept as a JAX .at[]
    # scatter (tiny: B*C*70 elements) rather than a Pallas kernel.
    BC = B * C
    n_per_chan = x_flat.shape[1] // C
    vals = x_flat.reshape(BC, n_per_chan)
    idx = indices.reshape(BC, n_per_chan)
    out = jnp.zeros((BC, H_out * W_out), jnp.float32)
    rows = jnp.arange(BC)[:, None]
    out = out.at[rows, idx].set(vals)
    return out.reshape(B, C, H_out, W_out)


# ----------------------------------------------------------------------------
# Full forward pass (Dropout layers are inference-mode identity)
# ----------------------------------------------------------------------------
def autoencoder_forward(x, arrays, *, nc):
    B = x.shape[0]

    def a(name):
        return arrays[name]['w'], arrays[name]['b']

    # --- encoder ---
    h = conv2d(x, *a('enc_conv1'), 16, 3, 3, stride=2, relu=True)      # (B,16,47,33)
    h = conv2d(h, *a('enc_conv2'), 32, 3, 3, stride=2, relu=True)      # (B,32,23,16)
    h = conv2d(h, *a('enc_conv3'), 64, 3, 3, stride=1, relu=False)     # (B,64,21,14)
    pooled, indices = maxpool2x2_with_indices(h)                       # (B,4480) x2
    # --- encoder_linear (softmax fused into last matmul epilogue) ---
    z = linear(pooled, *a('enc_lin1'), 1028, relu=True)
    z = linear(z, *a('enc_lin2'), 512, relu=True)
    encoded = linear(z, *a('enc_lin3'), nc, relu=False, softmax_cols=nc)
    # --- decoder_linear ---
    d = linear(encoded, *a('dec_lin1'), 512, relu=True)
    d = linear(d, *a('dec_lin2'), 1028, relu=True)
    d = linear(d, *a('dec_lin3'), 4480, relu=False)
    # --- unpool + decoder ---
    up = max_unpool2x2(d, indices, B, 64, 21, 14)                      # (B,64,21,14)
    d = conv_transpose2d(up, *a('dec_ct1'), 32, 3, 3, stride=1, relu=True)   # (B,32,23,16)
    d = conv_transpose2d(d, *a('dec_ct2'), 16, 3, 3, stride=2, relu=True)    # (B,16,47,33)
    decoded = conv_transpose2d(d, *a('dec_ct3'), 3, 3, 3, stride=2, relu=False)  # (B,3,95,67)
    return encoded, decoded


# ----------------------------------------------------------------------------
# One-time weight preparation: transpose, pad to 128-multiples, cast to bf16
# ----------------------------------------------------------------------------
def prepare_params(p):
    def pad_mat(w2d, b):
        K, N = w2d.shape
        Kp, Np = _ceil_mult(K, 128), _ceil_mult(N, 128)
        wp = jnp.zeros((Kp, Np), jnp.bfloat16).at[:K, :N].set(w2d.astype(jnp.bfloat16))
        bp = jnp.zeros((1, Np), jnp.float32).at[0, :N].set(b.astype(jnp.float32))
        return {'w': wp, 'b': bp}

    def lin(w, b):                     # torch Linear weight (out, in)
        return pad_mat(w.T, b)

    def conv(w, b):                    # torch Conv2d weight (Cout, Cin, kh, kw)
        cout = w.shape[0]
        return pad_mat(w.reshape(cout, -1).T, b)

    def convT(w, b):                   # torch ConvTranspose2d weight (Cin, Cout, kh, kw)
        wf = jnp.flip(w, (2, 3)).transpose(1, 0, 2, 3)   # equivalent Conv2d weight
        return conv(wf, b)

    return {
        'enc_conv1': conv(p['enc_conv1_w'], p['enc_conv1_b']),
        'enc_conv2': conv(p['enc_conv2_w'], p['enc_conv2_b']),
        'enc_conv3': conv(p['enc_conv3_w'], p['enc_conv3_b']),
        'enc_lin1': lin(p['enc_lin1_w'], p['enc_lin1_b']),
        'enc_lin2': lin(p['enc_lin2_w'], p['enc_lin2_b']),
        'enc_lin3': lin(p['enc_lin3_w'], p['enc_lin3_b']),
        'dec_lin1': lin(p['dec_lin1_w'], p['dec_lin1_b']),
        'dec_lin2': lin(p['dec_lin2_w'], p['dec_lin2_b']),
        'dec_lin3': lin(p['dec_lin3_w'], p['dec_lin3_b']),
        'dec_ct1': convT(p['dec_ct1_w'], p['dec_ct1_b']),
        'dec_ct2': convT(p['dec_ct2_w'], p['dec_ct2_b']),
        'dec_ct3': convT(p['dec_ct3_w'], p['dec_ct3_b']),
    }


# ----------------------------------------------------------------------------
# Deterministic parameter init (matches PyTorch layer shapes)
# ----------------------------------------------------------------------------
def init_params(key, nc):
    def dense(k, out_f, in_f):
        kw, kb = jax.random.split(k)
        s = 1.0 / np.sqrt(in_f)
        return (jax.random.normal(kw, (out_f, in_f), jnp.float32) * s,
                jax.random.normal(kb, (out_f,), jnp.float32) * s)

    def conv(k, out_c, in_c, ks):
        kw, kb = jax.random.split(k)
        s = 1.0 / np.sqrt(in_c * ks * ks)
        return (jax.random.normal(kw, (out_c, in_c, ks, ks), jnp.float32) * s,
                jax.random.normal(kb, (out_c,), jnp.float32) * s)

    def convT(k, in_c, out_c, ks):
        kw, kb = jax.random.split(k)
        s = 1.0 / np.sqrt(in_c * ks * ks)
        return (jax.random.normal(kw, (in_c, out_c, ks, ks), jnp.float32) * s,
                jax.random.normal(kb, (out_c,), jnp.float32) * s)

    keys = jax.random.split(key, 12)
    p = {}
    p['enc_conv1_w'], p['enc_conv1_b'] = conv(keys[0], 16, 3, 3)
    p['enc_conv2_w'], p['enc_conv2_b'] = conv(keys[1], 32, 16, 3)
    p['enc_conv3_w'], p['enc_conv3_b'] = conv(keys[2], 64, 32, 3)
    p['enc_lin1_w'], p['enc_lin1_b'] = dense(keys[3], 1028, 4480)
    p['enc_lin2_w'], p['enc_lin2_b'] = dense(keys[4], 512, 1028)
    p['enc_lin3_w'], p['enc_lin3_b'] = dense(keys[5], nc, 512)
    p['dec_lin1_w'], p['dec_lin1_b'] = dense(keys[6], 512, nc)
    p['dec_lin2_w'], p['dec_lin2_b'] = dense(keys[7], 1028, 512)
    p['dec_lin3_w'], p['dec_lin3_b'] = dense(keys[8], 4480, 1028)
    p['dec_ct1_w'], p['dec_ct1_b'] = convT(keys[9], 64, 32, 3)
    p['dec_ct2_w'], p['dec_ct2_b'] = convT(keys[10], 32, 16, 3)
    p['dec_ct3_w'], p['dec_ct3_b'] = convT(keys[11], 16, 3, 3)
    return p


if __name__ == "__main__":
    B, NC, H, W = 2, 10, 95, 67   # spatial size forced by Linear(4480, ...) / unpool(21,14)
    key = jax.random.PRNGKey(0)
    kx, kp = jax.random.split(key)
    x = jax.random.normal(kx, (B, 3, H, W), jnp.float32)
    params = init_params(kp, NC)
    arrays = prepare_params(params)   # one-time weight transposition / padding / bf16 cast

    fwd = jax.jit(functools.partial(autoencoder_forward, nc=NC))
    encoded, decoded = fwd(x, arrays)
    jax.block_until_ready((encoded, decoded))

    assert encoded.shape == (B, NC), encoded.shape
    assert decoded.shape == (B, 3, H, W), decoded.shape
    assert bool(jnp.all(jnp.isfinite(encoded))) and bool(jnp.all(jnp.isfinite(decoded)))
    # softmax rows must sum to 1
    np.testing.assert_allclose(np.asarray(jnp.sum(encoded, axis=1)), np.ones(B), rtol=1e-4)
    print("KERNEL_OK")
</pallas_src>

<mosaic_0001>
module attributes {stable_mosaic.version = 11 : i64} {
  func.func @_matmul_kernel(%arg0: i32, %arg1: i32, %arg2: i32, %arg3: memref<256x128xbf16, #tpu.memory_space<vmem>>, %arg4: memref<128x128xbf16, #tpu.memory_space<vmem>>, %arg5: memref<1x128xf32, #tpu.memory_space<vmem>>, %arg6: memref<256x128xf32, #tpu.memory_space<vmem>>, %arg7: memref<256x128xf32, #tpu.memory_space<vmem>>) attributes {dimension_semantics = [#tpu.dimension_semantics<parallel>, #tpu.dimension_semantics<parallel>, #tpu.dimension_semantics<arbitrary>], iteration_bounds = array<i64: 13, 1, 1>, scalar_prefetch = 0 : i64, scratch_operands = 1 : i64, tpu.core_type = #tpu.core_type<tc>, window_params = [{transform_indices = @transform_0, window_bounds = array<i64: 256, 128>}, {transform_indices = @transform_1, window_bounds = array<i64: 128, 128>}, {transform_indices = @transform_2, window_bounds = array<i64: 1, 128>}, {transform_indices = @transform_3, window_bounds = array<i64: 256, 128>}]} {
    %c0_i32 = arith.constant 0 : i32
    %0 = arith.cmpi eq, %arg2, %c0_i32 : i32
    %1 = arith.extui %0 : i1 to i32
    %c0_i32_0 = arith.constant 0 : i32
    %2 = arith.cmpi ne, %1, %c0_i32_0 : i32
    scf.if %2 {
      %cst_10 = arith.constant 0.000000e+00 : f32
      %12 = vector.broadcast %cst_10 : f32 to vector<256x128xf32>
      %c0_11 = arith.constant 0 : index
      %c0_12 = arith.constant 0 : index
      %13 = vector.load %arg7[%c0_11, %c0_12] : memref<256x128xf32, #tpu.memory_space<vmem>>, vector<256x128xf32>
      tpu.vector_store %arg7[%c0_11, %c0_12], %12 {strides = array<i32>} : memref<256x128xf32, #tpu.memory_space<vmem>>, vector<256x128xf32>,
    } else {
    }
    %c0 = arith.constant 0 : index
    %c0_1 = arith.constant 0 : index
    %3 = vector.load %arg7[%c0, %c0_1] : memref<256x128xf32, #tpu.memory_space<vmem>>, vector<256x128xf32>
    %c0_2 = arith.constant 0 : index
    %c0_3 = arith.constant 0 : index
    %4 = vector.load %arg3[%c0_2, %c0_3] : memref<256x128xbf16, #tpu.memory_space<vmem>>, vector<256x128xbf16>
    %c0_4 = arith.constant 0 : index
    %c0_5 = arith.constant 0 : index
    %5 = vector.load %arg4[%c0_4, %c0_5] : memref<128x128xbf16, #tpu.memory_space<vmem>>, vector<128x128xbf16>
    %cst = arith.constant dense<0.000000e+00> : vector<256x128xf32>
    %6 = tpu.matmul %4, %5, %cst {dimension_numbers = #tpu.dot_dimension_numbers<[1], [0], [0], [1], [0, 0, 1, 1], [], []>} : vector<256x128xbf16>, vector<128x128xbf16>, vector<256x128xf32> -> vector<256x128xf32>
    %7 = arith.addf %3, %6 : vector<256x128xf32>
    %c0_6 = arith.constant 0 : index
    %c0_7 = arith.constant 0 : index
    %8 = vector.load %arg7[%c0_6, %c0_7] : memref<256x128xf32, #tpu.memory_space<vmem>>, vector<256x128xf32>
    tpu.vector_store %arg7[%c0_6, %c0_7], %7 {strides = array<i32>} : memref<256x128xf32, #tpu.memory_space<vmem>>, vector<256x128xf32>,
    %c0_i32_8 = arith.constant 0 : i32
    %9 = arith.cmpi eq, %arg2, %c0_i32_8 : i32
    %10 = arith.extui %9 : i1 to i32
    %c0_i32_9 = arith.constant 0 : i32
    %11 = arith.cmpi ne, %10, %c0_i32_9 : i32
    scf.if %11 {
      %c0_10 = arith.constant 0 : index
      %c0_11 = arith.constant 0 : index
      %12 = vector.load %arg7[%c0_10, %c0_11] : memref<256x128xf32, #tpu.memory_space<vmem>>, vector<256x128xf32>
      %c0_12 = arith.constant 0 : index
      %c0_13 = arith.constant 0 : index
      %13 = vector.load %arg5[%c0_12, %c0_13] : memref<1x128xf32, #tpu.memory_space<vmem>>, vector<1x128xf32>
      %14 = vector.broadcast %13 : vector<1x128xf32> to vector<256x128xf32>
      %15 = arith.addf %12, %14 : vector<256x128xf32>
      %cst_14 = arith.constant 0.000000e+00 : f32
      %16 = vector.broadcast %cst_14 : f32 to vector<256x128xf32>
      %17 = arith.maximumf %15, %16 : vector<256x128xf32>
      %c0_15 = arith.constant 0 : index
      %c0_16 = arith.constant 0 : index
      %18 = vector.load %arg6[%c0_15, %c0_16] : memref<256x128xf32, #tpu.memory_space<vmem>>, vector<256x128xf32>
      tpu.vector_store %arg6[%c0_15, %c0_16], %17 {strides = array<i32>} : memref<256x128xf32, #tpu.memory_space<vmem>>, vector<256x128xf32>,
    } else {
    }
    return
  }
  func.func @transform_0(%arg0: i32, %arg1: i32, %arg2: i32) -> (i32, i32) {
    %c0_i32 = arith.constant 0 : i32
    return %arg0, %arg2 : i32, i32
  }
  func.func @transform_1(%arg0: i32, %arg1: i32, %arg2: i32) -> (i32, i32) {
    %c0_i32 = arith.constant 0 : i32
    return %arg2, %arg1 : i32, i32
  }
  func.func @transform_2(%arg0: i32, %arg1: i32, %arg2: i32) -> (i32, i32) {
    %c0_i32 = arith.constant 0 : i32
    %c0_i32_0 = arith.constant 0 : i32
    return %c0_i32, %arg1 : i32, i32
  }
  func.func @transform_3(%arg0: i32, %arg1: i32, %arg2: i32) -> (i32, i32) {
    %c0_i32 = arith.constant 0 : i32
    return %arg0, %arg1 : i32, i32
  }
}

module attributes {stable_mosaic.version = 11 : i64} {
  func.func @_matmul_kernel(%arg0: i32, %arg1: i32, %arg2: i32, %arg3: memref<256x256xbf16, #tpu.memory_space<vmem>>, %arg4: memref<256x128xbf16, #tpu.memory_space<vmem>>, %arg5: memref<1x128xf32, #tpu.memory_space<vmem>>, %arg6: memref<256x128xf32, #tpu.memory_space<vmem>>, %arg7: memref<256x128xf32, #tpu.memory_space<vmem>>) attributes {dimension_semantics = [#tpu.dimension_semantics<parallel>, #tpu.dimension_semantics<parallel>, #tpu.dimension_semantics<arbitrary>], iteration_bounds = array<i64: 3, 1, 1>, scalar_prefetch = 0 : i64, scratch_operands = 1 : i64, tpu.core_type = #tpu.core_type<tc>, window_params = [{transform_indices = @transform_0, window_bounds = array<i64: 256, 256>}, {transform_indices = @transform_1, window_bounds = array<i64: 256, 128>}, {transform_indices = @transform_2, window_bounds = array<i64: 1, 128>}, {transform_indices = @transform_3, window_bounds = array<i64: 256, 128>}]} {
    %c0_i32 = arith.constant 0 : i32
    %0 = arith.cmpi eq, %arg2, %c0_i32 : i32
    %1 = arith.extui %0 : i1 to i32
    %c0_i32_0 = arith.constant 0 : i32
    %2 = arith.cmpi ne, %1, %c0_i32_0 : i32
    scf.if %2 {
      %cst_10 = arith.constant 0.000000e+00 : f32
      %12 = vector.broadcast %cst_10 : f32 to vector<256x128xf32>
      %c0_11 = arith.constant 0 : index
      %c0_12 = arith.constant 0 : index
      %13 = vector.load %arg7[%c0_11, %c0_12] : memref<256x128xf32, #tpu.memory_space<vmem>>, vector<256x128xf32>
      tpu.vector_store %arg7[%c0_11, %c0_12], %12 {strides = array<i32>} : memref<256x128xf32, #tpu.memory_space<vmem>>, vector<256x128xf32>,
    } else {
    }
    %c0 = arith.constant 0 : index
    %c0_1 = arith.constant 0 : index
    %3 = vector.load %arg7[%c0, %c0_1] : memref<256x128xf32, #tpu.memory_space<vmem>>, vector<256x128xf32>
    %c0_2 = arith.constant 0 : index
    %c0_3 = arith.constant 0 : index
    %4 = vector.load %arg3[%c0_2, %c0_3] : memref<256x256xbf16, #tpu.memory_space<vmem>>, vector<256x256xbf16>
    %c0_4 = arith.constant 0 : index
    %c0_5 = arith.constant 0 : index
    %5 = vector.load %arg4[%c0_4, %c0_5] : memref<256x128xbf16, #tpu.memory_space<vmem>>, vector<256x128xbf16>
    %cst = arith.constant dense<0.000000e+00> : vector<256x128xf32>
    %6 = tpu.matmul %4, %5, %cst {dimension_numbers = #tpu.dot_dimension_numbers<[1], [0], [0], [1], [0, 0, 1, 1], [], []>} : vector<256x256xbf16>, vector<256x128xbf16>, vector<256x128xf32> -> vector<256x128xf32>
    %7 = arith.addf %3, %6 : vector<256x128xf32>
    %c0_6 = arith.constant 0 : index
    %c0_7 = arith.constant 0 : index
    %8 = vector.load %arg7[%c0_6, %c0_7] : memref<256x128xf32, #tpu.memory_space<vmem>>, vector<256x128xf32>
    tpu.vector_store %arg7[%c0_6, %c0_7], %7 {strides = array<i32>} : memref<256x128xf32, #tpu.memory_space<vmem>>, vector<256x128xf32>,
    %c0_i32_8 = arith.constant 0 : i32
    %9 = arith.cmpi eq, %arg2, %c0_i32_8 : i32
    %10 = arith.extui %9 : i1 to i32
    %c0_i32_9 = arith.constant 0 : i32
    %11 = arith.cmpi ne, %10, %c0_i32_9 : i32
    scf.if %11 {
      %c0_10 = arith.constant 0 : index
      %c0_11 = arith.constant 0 : index
      %12 = vector.load %arg7[%c0_10, %c0_11] : memref<256x128xf32, #tpu.memory_space<vmem>>, vector<256x128xf32>
      %c0_12 = arith.constant 0 : index
      %c0_13 = arith.constant 0 : index
      %13 = vector.load %arg5[%c0_12, %c0_13] : memref<1x128xf32, #tpu.memory_space<vmem>>, vector<1x128xf32>
      %14 = vector.broadcast %13 : vector<1x128xf32> to vector<256x128xf32>
      %15 = arith.addf %12, %14 : vector<256x128xf32>
      %cst_14 = arith.constant 0.000000e+00 : f32
      %16 = vector.broadcast %cst_14 : f32 to vector<256x128xf32>
      %17 = arith.maximumf %15, %16 : vector<256x128xf32>
      %c0_15 = arith.constant 0 : index
      %c0_16 = arith.constant 0 : index
      %18 = vector.load %arg6[%c0_15, %c0_16] : memref<256x128xf32, #tpu.memory_space<vmem>>, vector<256x128xf32>
      tpu.vector_store %arg6[%c0_15, %c0_16], %17 {strides = array<i32>} : memref<256x128xf32, #tpu.memory_space<vmem>>, vector<256x128xf32>,
    } else {
    }
    return
  }
  func.func @transform_0(%arg0: i32, %arg1: i32, %arg2: i32) -> (i32, i32) {
    %c0_i32 = arith.constant 0 : i32
    return %arg0, %arg2 : i32, i32
  }
  func.func @transform_1(%arg0: i32, %arg1: i32, %arg2: i32) -> (i32, i32) {
    %c0_i32 = arith.constant 0 : i32
    return %arg2, %arg1 : i32, i32
  }
  func.func @transform_2(%arg0: i32, %arg1: i32, %arg2: i32) -> (i32, i32) {
    %c0_i32 = arith.constant 0 : i32
    %c0_i32_0 = arith.constant 0 : i32
    return %c0_i32, %arg1 : i32, i32
  }
  func.func @transform_3(%arg0: i32, %arg1: i32, %arg2: i32) -> (i32, i32) {
    %c0_i32 = arith.constant 0 : i32
    return %arg0, %arg1 : i32, i32
  }
}

module attributes {stable_mosaic.version = 11 : i64} {
  func.func @_matmul_kernel(%arg0: i32, %arg1: i32, %arg2: i32, %arg3: memref<256x384xbf16, #tpu.memory_space<vmem>>, %arg4: memref<384x128xbf16, #tpu.memory_space<vmem>>, %arg5: memref<1x128xf32, #tpu.memory_space<vmem>>, %arg6: memref<256x128xf32, #tpu.memory_space<vmem>>, %arg7: memref<256x128xf32, #tpu.memory_space<vmem>>) attributes {dimension_semantics = [#tpu.dimension_semantics<parallel>, #tpu.dimension_semantics<parallel>, #tpu.dimension_semantics<arbitrary>], iteration_bounds = array<i64: 3, 1, 1>, scalar_prefetch = 0 : i64, scratch_operands = 1 : i64, tpu.core_type = #tpu.core_type<tc>, window_params = [{transform_indices = @transform_0, window_bounds = array<i64: 256, 384>}, {transform_indices = @transform_1, window_bounds = array<i64: 384, 128>}, {transform_indices = @transform_2, window_bounds = array<i64: 1, 128>}, {transform_indices = @transform_3, window_bounds = array<i64: 256, 128>}]} {
    %c0_i32 = arith.constant 0 : i32
    %0 = arith.cmpi eq, %arg2, %c0_i32 : i32
    %1 = arith.extui %0 : i1 to i32
    %c0_i32_0 = arith.constant 0 : i32
    %2 = arith.cmpi ne, %1, %c0_i32_0 : i32
    scf.if %2 {
      %cst_10 = arith.constant 0.000000e+00 : f32
      %12 = vector.broadcast %cst_10 : f32 to vector<256x128xf32>
      %c0_11 = arith.constant 0 : index
      %c0_12 = arith.constant 0 : index
      %13 = vector.load %arg7[%c0_11, %c0_12] : memref<256x128xf32, #tpu.memory_space<vmem>>, vector<256x128xf32>
      tpu.vector_store %arg7[%c0_11, %c0_12], %12 {strides = array<i32>} : memref<256x128xf32, #tpu.memory_space<vmem>>, vector<256x128xf32>,
    } else {
    }
    %c0 = arith.constant 0 : index
    %c0_1 = arith.constant 0 : index
    %3 = vector.load %arg7[%c0, %c0_1] : memref<256x128xf32, #tpu.memory_space<vmem>>, vector<256x128xf32>
    %c0_2 = arith.constant 0 : index
    %c0_3 = arith.constant 0 : index
    %4 = vector.load %arg3[%c0_2, %c0_3] : memref<256x384xbf16, #tpu.memory_space<vmem>>, vector<256x384xbf16>
    %c0_4 = arith.constant 0 : index
    %c0_5 = arith.constant 0 : index
    %5 = vector.load %arg4[%c0_4, %c0_5] : memref<384x128xbf16, #tpu.memory_space<vmem>>, vector<384x128xbf16>
    %cst = arith.constant dense<0.000000e+00> : vector<256x128xf32>
    %6 = tpu.matmul %4, %5, %cst {dimension_numbers = #tpu.dot_dimension_numbers<[1], [0], [0], [1], [0, 0, 1, 1], [], []>} : vector<256x384xbf16>, vector<384x128xbf16>, vector<256x128xf32> -> vector<256x128xf32>
    %7 = arith.addf %3, %6 : vector<256x128xf32>
    %c0_6 = arith.constant 0 : index
    %c0_7 = arith.constant 0 : index
    %8 = vector.load %arg7[%c0_6, %c0_7] : memref<256x128xf32, #tpu.memory_space<vmem>>, vector<256x128xf32>
    tpu.vector_store %arg7[%c0_6, %c0_7], %7 {strides = array<i32>} : memref<256x128xf32, #tpu.memory_space<vmem>>, vector<256x128xf32>,
    %c0_i32_8 = arith.constant 0 : i32
    %9 = arith.cmpi eq, %arg2, %c0_i32_8 : i32
    %10 = arith.extui %9 : i1 to i32
    %c0_i32_9 = arith.constant 0 : i32
    %11 = arith.cmpi ne, %10, %c0_i32_9 : i32
    scf.if %11 {
      %c0_10 = arith.constant 0 : index
      %c0_11 = arith.constant 0 : index
      %12 = vector.load %arg7[%c0_10, %c0_11] : memref<256x128xf32, #tpu.memory_space<vmem>>, vector<256x128xf32>
      %c0_12 = arith.constant 0 : index
      %c0_13 = arith.constant 0 : index
      %13 = vector.load %arg5[%c0_12, %c0_13] : memref<1x128xf32, #tpu.memory_space<vmem>>, vector<1x128xf32>
      %14 = vector.broadcast %13 : vector<1x128xf32> to vector<256x128xf32>
      %15 = arith.addf %12, %14 : vector<256x128xf32>
      %c0_14 = arith.constant 0 : index
      %c0_15 = arith.constant 0 : index
      %16 = vector.load %arg6[%c0_14, %c0_15] : memref<256x128xf32, #tpu.memory_space<vmem>>, vector<256x128xf32>
      tpu.vector_store %arg6[%c0_14, %c0_15], %15 {strides = array<i32>} : memref<256x128xf32, #tpu.memory_space<vmem>>, vector<256x128xf32>,
    } else {
    }
    return
  }
  func.func @transform_0(%arg0: i32, %arg1: i32, %arg2: i32) -> (i32, i32) {
    %c0_i32 = arith.constant 0 : i32
    return %arg0, %arg2 : i32, i32
  }
  func.func @transform_1(%arg0: i32, %arg1: i32, %arg2: i32) -> (i32, i32) {
    %c0_i32 = arith.constant 0 : i32
    return %arg2, %arg1 : i32, i32
  }
  func.func @transform_2(%arg0: i32, %arg1: i32, %arg2: i32) -> (i32, i32) {
    %c0_i32 = arith.constant 0 : i32
    %c0_i32_0 = arith.constant 0 : i32
    return %c0_i32, %arg1 : i32, i32
  }
  func.func @transform_3(%arg0: i32, %arg1: i32, %arg2: i32) -> (i32, i32) {
    %c0_i32 = arith.constant 0 : i32
    return %arg0, %arg1 : i32, i32
  }
}

module attributes {stable_mosaic.version = 11 : i64} {
  func.func @_maxpool_kernel(%arg0: memref<4x2x4480xf32, #tpu.memory_space<vmem>>, %arg1: memref<2x4480xi32, #tpu.memory_space<vmem>>, %arg2: memref<2x4480xf32, #tpu.memory_space<vmem>>, %arg3: memref<2x4480xi32, #tpu.memory_space<vmem>>) attributes {dimension_semantics = [], scalar_prefetch = 0 : i64, scratch_operands = 0 : i64, tpu.core_type = #tpu.core_type<tc>} {
    %c0 = arith.constant 0 : index
    %c0_0 = arith.constant 0 : index
    %c0_1 = arith.constant 0 : index
    %0 = vector.load %arg0[%c0, %c0_0, %c0_1] : memref<4x2x4480xf32, #tpu.memory_space<vmem>>, vector<1x2x4480xf32>
    %1 = vector.shape_cast %0 : vector<1x2x4480xf32> to vector<2x4480xf32>
    %c1 = arith.constant 1 : index
    %c0_2 = arith.constant 0 : index
    %c0_3 = arith.constant 0 : index
    %2 = vector.load %arg0[%c1, %c0_2, %c0_3] : memref<4x2x4480xf32, #tpu.memory_space<vmem>>, vector<1x2x4480xf32>
    %3 = vector.shape_cast %2 : vector<1x2x4480xf32> to vector<2x4480xf32>
    %c2 = arith.constant 2 : index
    %c0_4 = arith.constant 0 : index
    %c0_5 = arith.constant 0 : index
    %4 = vector.load %arg0[%c2, %c0_4, %c0_5] : memref<4x2x4480xf32, #tpu.memory_space<vmem>>, vector<1x2x4480xf32>
    %5 = vector.shape_cast %4 : vector<1x2x4480xf32> to vector<2x4480xf32>
    %c3 = arith.constant 3 : index
    %c0_6 = arith.constant 0 : index
    %c0_7 = arith.constant 0 : index
    %6 = vector.load %arg0[%c3, %c0_6, %c0_7] : memref<4x2x4480xf32, #tpu.memory_space<vmem>>, vector<1x2x4480xf32>
    %7 = vector.shape_cast %6 : vector<1x2x4480xf32> to vector<2x4480xf32>
    %8 = arith.maximumf %1, %3 : vector<2x4480xf32>
    %9 = arith.maximumf %5, %7 : vector<2x4480xf32>
    %10 = arith.maximumf %8, %9 : vector<2x4480xf32>
    %11 = arith.cmpf oeq, %1, %10 : vector<2x4480xf32>
    %12 = arith.cmpf oeq, %3, %10 : vector<2x4480xf32>
    %cst = arith.constant dense<true> : vector<2x4480xi1>
    %13 = arith.xori %11, %cst : vector<2x4480xi1>
    %14 = arith.andi %12, %13 : vector<2x4480xi1>
    %15 = arith.cmpf oeq, %5, %10 : vector<2x4480xf32>
    %16 = arith.ori %11, %14 : vector<2x4480xi1>
    %cst_8 = arith.constant dense<true> : vector<2x4480xi1>
    %17 = arith.xori %16, %cst_8 : vector<2x4480xi1>
    %18 = arith.andi %15, %17 : vector<2x4480xi1>
    %19 = arith.ori %11, %14 : vector<2x4480xi1>
    %20 = arith.ori %19, %18 : vector<2x4480xi1>
    %cst_9 = arith.constant dense<true> : vector<2x4480xi1>
    %21 = arith.xori %20, %cst_9 : vector<2x4480xi1>
    %22 = arith.ori %18, %21 : vector<2x4480xi1>
    %c1_i32 = arith.constant 1 : i32
    %c0_i32 = arith.constant 0 : i32
    %23 = vector.broadcast %c1_i32 : i32 to vector<2x4480xi32>
    %24 = vector.broadcast %c0_i32 : i32 to vector<2x4480xi32>
    %25 = arith.select %22, %23, %24 : vector<2x4480xi1>, vector<2x4480xi32>
    %26 = arith.ori %14, %21 : vector<2x4480xi1>
    %c1_i32_10 = arith.constant 1 : i32
    %c0_i32_11 = arith.constant 0 : i32
    %27 = vector.broadcast %c1_i32_10 : i32 to vector<2x4480xi32>
    %28 = vector.broadcast %c0_i32_11 : i32 to vector<2x4480xi32>
    %29 = arith.select %26, %27, %28 : vector<2x4480xi1>, vector<2x4480xi32>
    %c0_12 = arith.constant 0 : index
    %c0_13 = arith.constant 0 : index
    %30 = vector.load %arg2[%c0_12, %c0_13] : memref<2x4480xf32, #tpu.memory_space<vmem>>, vector<2x4480xf32>
    tpu.vector_store %arg2[%c0_12, %c0_13], %10 {strides = array<i32>} : memref<2x4480xf32, #tpu.memory_space<vmem>>, vector<2x4480xf32>,
    %c0_14 = arith.constant 0 : index
    %c0_15 = arith.constant 0 : index
    %31 = vector.load %arg1[%c0_14, %c0_15] : memref<2x4480xi32, #tpu.memory_space<vmem>>, vector<2x4480xi32>
    %c14_i32 = arith.constant 14 : i32
    %32 = vector.broadcast %c14_i32 : i32 to vector<2x4480xi32>
    %33 = arith.muli %25, %32 : vector<2x4480xi32>
    %34 = arith.addi %31, %33 : vector<2x4480xi32>
    %35 = arith.addi %34, %29 : vector<2x4480xi32>
    %c0_16 = arith.constant 0 : index
    %c0_17 = arith.constant 0 : index
    %36 = vector.load %arg3[%c0_16, %c0_17] : memref<2x4480xi32, #tpu.memory_space<vmem>>, vector<2x4480xi32>
    tpu.vector_store %arg3[%c0_16, %c0_17], %35 {strides = array<i32>} : memref<2x4480xi32, #tpu.memory_space<vmem>>, vector<2x4480xi32>,
    return
  }
}

module attributes {stable_mosaic.version = 11 : i64} {
  func.func @_matmul_kernel(%arg0: i32, %arg1: i32, %arg2: i32, %arg3: memref<8x896xbf16, #tpu.memory_space<vmem>>, %arg4: memref<896x384xbf16, #tpu.memory_space<vmem>>, %arg5: memref<1x384xf32, #tpu.memory_space<vmem>>, %arg6: memref<8x384xf32, #tpu.memory_space<vmem>>, %arg7: memref<8x384xf32, #tpu.memory_space<vmem>>) attributes {dimension_semantics = [#tpu.dimension_semantics<parallel>, #tpu.dimension_semantics<parallel>, #tpu.dimension_semantics<arbitrary>], iteration_bounds = array<i64: 1, 3, 5>, scalar_prefetch = 0 : i64, scratch_operands = 1 : i64, tpu.core_type = #tpu.core_type<tc>, window_params = [{transform_indices = @transform_0, window_bounds = array<i64: 8, 896>}, {transform_indices = @transform_1, window_bounds = array<i64: 896, 384>}, {transform_indices = @transform_2, window_bounds = array<i64: 1, 384>}, {transform_indices = @transform_3, window_bounds = array<i64: 8, 384>}]} {
    %c0_i32 = arith.constant 0 : i32
    %0 = arith.cmpi eq, %arg2, %c0_i32 : i32
    %1 = arith.extui %0 : i1 to i32
    %c0_i32_0 = arith.constant 0 : i32
    %2 = arith.cmpi ne, %1, %c0_i32_0 : i32
    scf.if %2 {
      %cst_9 = arith.constant 0.000000e+00 : f32
      %12 = vector.broadcast %cst_9 : f32 to vector<8x384xf32>
      %c0_10 = arith.constant 0 : index
      %c0_11 = arith.constant 0 : index
      %13 = vector.load %arg7[%c0_10, %c0_11] : memref<8x384xf32, #tpu.memory_space<vmem>>, vector<8x384xf32>
      tpu.vector_store %arg7[%c0_10, %c0_11], %12 {strides = array<i32>} : memref<8x384xf32, #tpu.memory_space<vmem>>, vector<8x384xf32>,
    } else {
    }
    %c0 = arith.constant 0 : index
    %c0_1 = arith.constant 0 : index
    %3 = vector.load %arg7[%c0, %c0_1] : memref<8x384xf32, #tpu.memory_space<vmem>>, vector<8x384xf32>
    %c0_2 = arith.constant 0 : index
    %c0_3 = arith.constant 0 : index
    %4 = vector.load %arg3[%c0_2, %c0_3] : memref<8x896xbf16, #tpu.memory_space<vmem>>, vector<8x896xbf16>
    %c0_4 = arith.constant 0 : index
    %c0_5 = arith.constant 0 : index
    %5 = vector.load %arg4[%c0_4, %c0_5] : memref<896x384xbf16, #tpu.memory_space<vmem>>, vector<896x384xbf16>
    %cst = arith.constant dense<0.000000e+00> : vector<8x384xf32>
    %6 = tpu.matmul %4, %5, %cst {dimension_numbers = #tpu.dot_dimension_numbers<[1], [0], [0], [1], [0, 0, 1, 1], [], []>} : vector<8x896xbf16>, vector<896x384xbf16>, vector<8x384xf32> -> vector<8x384xf32>
    %7 = arith.addf %3, %6 : vector<8x384xf32>
    %c0_6 = arith.constant 0 : index
    %c0_7 = arith.constant 0 : index
    %8 = vector.load %arg7[%c0_6, %c0_7] : memref<8x384xf32, #tpu.memory_space<vmem>>, vector<8x384xf32>
    tpu.vector_store %arg7[%c0_6, %c0_7], %7 {strides = array<i32>} : memref<8x384xf32, #tpu.memory_space<vmem>>, vector<8x384xf32>,
    %c4_i32 = arith.constant 4 : i32
    %9 = arith.cmpi eq, %arg2, %c4_i32 : i32
    %10 = arith.extui %9 : i1 to i32
    %c0_i32_8 = arith.constant 0 : i32
    %11 = arith.cmpi ne, %10, %c0_i32_8 : i32
    scf.if %11 {
      %c0_9 = arith.constant 0 : index
      %c0_10 = arith.constant 0 : index
      %12 = vector.load %arg7[%c0_9, %c0_10] : memref<8x384xf32, #tpu.memory_space<vmem>>, vector<8x384xf32>
      %c0_11 = arith.constant 0 : index
      %c0_12 = arith.constant 0 : index
      %13 = vector.load %arg5[%c0_11, %c0_12] : memref<1x384xf32, #tpu.memory_space<vmem>>, vector<1x384xf32>
      %14 = vector.broadcast %13 : vector<1x384xf32> to vector<8x384xf32>
      %15 = arith.addf %12, %14 : vector<8x384xf32>
      %cst_13 = arith.constant 0.000000e+00 : f32
      %16 = vector.broadcast %cst_13 : f32 to vector<8x384xf32>
      %17 = arith.maximumf %15, %16 : vector<8x384xf32>
      %c0_14 = arith.constant 0 : index
      %c0_15 = arith.constant 0 : index
      %18 = vector.load %arg6[%c0_14, %c0_15] : memref<8x384xf32, #tpu.memory_space<vmem>>, vector<8x384xf32>
      tpu.vector_store %arg6[%c0_14, %c0_15], %17 {strides = array<i32>} : memref<8x384xf32, #tpu.memory_space<vmem>>, vector<8x384xf32>,
    } else {
    }
    return
  }
  func.func @transform_0(%arg0: i32, %arg1: i32, %arg2: i32) -> (i32, i32) {
    %c0_i32 = arith.constant 0 : i32
    return %arg0, %arg2 : i32, i32
  }
  func.func @transform_1(%arg0: i32, %arg1: i32, %arg2: i32) -> (i32, i32) {
    %c0_i32 = arith.constant 0 : i32
    return %arg2, %arg1 : i32, i32
  }
  func.func @transform_2(%arg0: i32, %arg1: i32, %arg2: i32) -> (i32, i32) {
    %c0_i32 = arith.constant 0 : i32
    %c0_i32_0 = arith.constant 0 : i32
    return %c0_i32, %arg1 : i32, i32
  }
  func.func @transform_3(%arg0: i32, %arg1: i32, %arg2: i32) -> (i32, i32) {
    %c0_i32 = arith.constant 0 : i32
    return %arg0, %arg1 : i32, i32
  }
}

module attributes {stable_mosaic.version = 11 : i64} {
  func.func @_matmul_kernel(%arg0: i32, %arg1: i32, %arg2: i32, %arg3: memref<8x384xbf16, #tpu.memory_space<vmem>>, %arg4: memref<384x512xbf16, #tpu.memory_space<vmem>>, %arg5: memref<1x512xf32, #tpu.memory_space<vmem>>, %arg6: memref<8x512xf32, #tpu.memory_space<vmem>>, %arg7: memref<8x512xf32, #tpu.memory_space<vmem>>) attributes {dimension_semantics = [#tpu.dimension_semantics<parallel>, #tpu.dimension_semantics<parallel>, #tpu.dimension_semantics<arbitrary>], iteration_bounds = array<i64: 1, 1, 3>, scalar_prefetch = 0 : i64, scratch_operands = 1 : i64, tpu.core_type = #tpu.core_type<tc>, window_params = [{transform_indices = @transform_0, window_bounds = array<i64: 8, 384>}, {transform_indices = @transform_1, window_bounds = array<i64: 384, 512>}, {transform_indices = @transform_2, window_bounds = array<i64: 1, 512>}, {transform_indices = @transform_3, window_bounds = array<i64: 8, 512>}]} {
    %c0_i32 = arith.constant 0 : i32
    %0 = arith.cmpi eq, %arg2, %c0_i32 : i32
    %1 = arith.extui %0 : i1 to i32
    %c0_i32_0 = arith.constant 0 : i32
    %2 = arith.cmpi ne, %1, %c0_i32_0 : i32
    scf.if %2 {
      %cst_9 = arith.constant 0.000000e+00 : f32
      %12 = vector.broadcast %cst_9 : f32 to vector<8x512xf32>
      %c0_10 = arith.constant 0 : index
      %c0_11 = arith.constant 0 : index
      %13 = vector.load %arg7[%c0_10, %c0_11] : memref<8x512xf32, #tpu.memory_space<vmem>>, vector<8x512xf32>
      tpu.vector_store %arg7[%c0_10, %c0_11], %12 {strides = array<i32>} : memref<8x512xf32, #tpu.memory_space<vmem>>, vector<8x512xf32>,
    } else {
    }
    %c0 = arith.constant 0 : index
    %c0_1 = arith.constant 0 : index
    %3 = vector.load %arg7[%c0, %c0_1] : memref<8x512xf32, #tpu.memory_space<vmem>>, vector<8x512xf32>
    %c0_2 = arith.constant 0 : index
    %c0_3 = arith.constant 0 : index
    %4 = vector.load %arg3[%c0_2, %c0_3] : memref<8x384xbf16, #tpu.memory_space<vmem>>, vector<8x384xbf16>
    %c0_4 = arith.constant 0 : index
    %c0_5 = arith.constant 0 : index
    %5 = vector.load %arg4[%c0_4, %c0_5] : memref<384x512xbf16, #tpu.memory_space<vmem>>, vector<384x512xbf16>
    %cst = arith.constant dense<0.000000e+00> : vector<8x512xf32>
    %6 = tpu.matmul %4, %5, %cst {dimension_numbers = #tpu.dot_dimension_numbers<[1], [0], [0], [1], [0, 0, 1, 1], [], []>} : vector<8x384xbf16>, vector<384x512xbf16>, vector<8x512xf32> -> vector<8x512xf32>
    %7 = arith.addf %3, %6 : vector<8x512xf32>
    %c0_6 = arith.constant 0 : index
    %c0_7 = arith.constant 0 : index
    %8 = vector.load %arg7[%c0_6, %c0_7] : memref<8x512xf32, #tpu.memory_space<vmem>>, vector<8x512xf32>
    tpu.vector_store %arg7[%c0_6, %c0_7], %7 {strides = array<i32>} : memref<8x512xf32, #tpu.memory_space<vmem>>, vector<8x512xf32>,
    %c2_i32 = arith.constant 2 : i32
    %9 = arith.cmpi eq, %arg2, %c2_i32 : i32
    %10 = arith.extui %9 : i1 to i32
    %c0_i32_8 = arith.constant 0 : i32
    %11 = arith.cmpi ne, %10, %c0_i32_8 : i32
    scf.if %11 {
      %c0_9 = arith.constant 0 : index
      %c0_10 = arith.constant 0 : index
      %12 = vector.load %arg7[%c0_9, %c0_10] : memref<8x512xf32, #tpu.memory_space<vmem>>, vector<8x512xf32>
      %c0_11 = arith.constant 0 : index
      %c0_12 = arith.constant 0 : index
      %13 = vector.load %arg5[%c0_11, %c0_12] : memref<1x512xf32, #tpu.memory_space<vmem>>, vector<1x512xf32>
      %14 = vector.broadcast %13 : vector<1x512xf32> to vector<8x512xf32>
      %15 = arith.addf %12, %14 : vector<8x512xf32>
      %cst_13 = arith.constant 0.000000e+00 : f32
      %16 = vector.broadcast %cst_13 : f32 to vector<8x512xf32>
      %17 = arith.maximumf %15, %16 : vector<8x512xf32>
      %c0_14 = arith.constant 0 : index
      %c0_15 = arith.constant 0 : index
      %18 = vector.load %arg6[%c0_14, %c0_15] : memref<8x512xf32, #tpu.memory_space<vmem>>, vector<8x512xf32>
      tpu.vector_store %arg6[%c0_14, %c0_15], %17 {strides = array<i32>} : memref<8x512xf32, #tpu.memory_space<vmem>>, vector<8x512xf32>,
    } else {
    }
    return
  }
  func.func @transform_0(%arg0: i32, %arg1: i32, %arg2: i32) -> (i32, i32) {
    %c0_i32 = arith.constant 0 : i32
    return %arg0, %arg2 : i32, i32
  }
  func.func @transform_1(%arg0: i32, %arg1: i32, %arg2: i32) -> (i32, i32) {
    %c0_i32 = arith.constant 0 : i32
    return %arg2, %arg1 : i32, i32
  }
  func.func @transform_2(%arg0: i32, %arg1: i32, %arg2: i32) -> (i32, i32) {
    %c0_i32 = arith.constant 0 : i32
    %c0_i32_0 = arith.constant 0 : i32
    return %c0_i32, %arg1 : i32, i32
  }
  func.func @transform_3(%arg0: i32, %arg1: i32, %arg2: i32) -> (i32, i32) {
    %c0_i32 = arith.constant 0 : i32
    return %arg0, %arg1 : i32, i32
  }
}

module attributes {stable_mosaic.version = 11 : i64} {
  func.func @_matmul_kernel(%arg0: i32, %arg1: i32, %arg2: i32, %arg3: memref<8x512xbf16, #tpu.memory_space<vmem>>, %arg4: memref<512x128xbf16, #tpu.memory_space<vmem>>, %arg5: memref<1x128xf32, #tpu.memory_space<vmem>>, %arg6: memref<8x128xf32, #tpu.memory_space<vmem>>, %arg7: memref<8x128xf32, #tpu.memory_space<vmem>>) attributes {dimension_semantics = [#tpu.dimension_semantics<parallel>, #tpu.dimension_semantics<parallel>, #tpu.dimension_semantics<arbitrary>], iteration_bounds = array<i64: 1, 1, 1>, scalar_prefetch = 0 : i64, scratch_operands = 1 : i64, tpu.core_type = #tpu.core_type<tc>, window_params = [{transform_indices = @transform_0, window_bounds = array<i64: 8, 512>}, {transform_indices = @transform_1, window_bounds = array<i64: 512, 128>}, {transform_indices = @transform_2, window_bounds = array<i64: 1, 128>}, {transform_indices = @transform_3, window_bounds = array<i64: 8, 128>}]} {
    %c0_i32 = arith.constant 0 : i32
    %0 = arith.cmpi eq, %arg2, %c0_i32 : i32
    %1 = arith.extui %0 : i1 to i32
    %c0_i32_0 = arith.constant 0 : i32
    %2 = arith.cmpi ne, %1, %c0_i32_0 : i32
    scf.if %2 {
      %cst_10 = arith.constant 0.000000e+00 : f32
      %12 = vector.broadcast %cst_10 : f32 to vector<8x128xf32>
      %c0_11 = arith.constant 0 : index
      %c0_12 = arith.constant 0 : index
      %13 = vector.load %arg7[%c0_11, %c0_12] : memref<8x128xf32, #tpu.memory_space<vmem>>, vector<8x128xf32>
      tpu.vector_store %arg7[%c0_11, %c0_12], %12 {strides = array<i32>} : memref<8x128xf32, #tpu.memory_space<vmem>>, vector<8x128xf32>,
    } else {
    }
    %c0 = arith.constant 0 : index
    %c0_1 = arith.constant 0 : index
    %3 = vector.load %arg7[%c0, %c0_1] : memref<8x128xf32, #tpu.memory_space<vmem>>, vector<8x128xf32>
    %c0_2 = arith.constant 0 : index
    %c0_3 = arith.constant 0 : index
    %4 = vector.load %arg3[%c0_2, %c0_3] : memref<8x512xbf16, #tpu.memory_space<vmem>>, vector<8x512xbf16>
    %c0_4 = arith.constant 0 : index
    %c0_5 = arith.constant 0 : index
    %5 = vector.load %arg4[%c0_4, %c0_5] : memref<512x128xbf16, #tpu.memory_space<vmem>>, vector<512x128xbf16>
    %cst = arith.constant dense<0.000000e+00> : vector<8x128xf32>
    %6 = tpu.matmul %4, %5, %cst {dimension_numbers = #tpu.dot_dimension_numbers<[1], [0], [0], [1], [0, 0, 1, 1], [], []>} : vector<8x512xbf16>, vector<512x128xbf16>, vector<8x128xf32> -> vector<8x128xf32>
    %7 = arith.addf %3, %6 : vector<8x128xf32>
    %c0_6 = arith.constant 0 : index
    %c0_7 = arith.constant 0 : index
    %8 = vector.load %arg7[%c0_6, %c0_7] : memref<8x128xf32, #tpu.memory_space<vmem>>, vector<8x128xf32>
    tpu.vector_store %arg7[%c0_6, %c0_7], %7 {strides = array<i32>} : memref<8x128xf32, #tpu.memory_space<vmem>>, vector<8x128xf32>,
    %c0_i32_8 = arith.constant 0 : i32
    %9 = arith.cmpi eq, %arg2, %c0_i32_8 : i32
    %10 = arith.extui %9 : i1 to i32
    %c0_i32_9 = arith.constant 0 : i32
    %11 = arith.cmpi ne, %10, %c0_i32_9 : i32
    scf.if %11 {
      %c0_10 = arith.constant 0 : index
      %c0_11 = arith.constant 0 : index
      %12 = vector.load %arg7[%c0_10, %c0_11] : memref<8x128xf32, #tpu.memory_space<vmem>>, vector<8x128xf32>
      %c0_12 = arith.constant 0 : index
      %c0_13 = arith.constant 0 : index
      %13 = vector.load %arg5[%c0_12, %c0_13] : memref<1x128xf32, #tpu.memory_space<vmem>>, vector<1x128xf32>
      %14 = vector.broadcast %13 : vector<1x128xf32> to vector<8x128xf32>
      %15 = arith.addf %12, %14 : vector<8x128xf32>
      %16 = tpu.iota {dimensions = array<i32: 1>} : vector<8x128xi32>
      %c10_i32 = arith.constant 10 : i32
      %17 = vector.broadcast %c10_i32 : i32 to vector<8x128xi32>
      %18 = arith.cmpi slt, %16, %17 : vector<8x128xi32>
      %cst_14 = arith.constant 0xFF800000 : f32
      %19 = vector.broadcast %cst_14 : f32 to vector<8x128xf32>
      %20 = arith.select %18, %15, %19 : vector<8x128xi1>, vector<8x128xf32>
      %cst_15 = arith.constant dense<0xFF800000> : vector<8xf32>
      %21 = vector.multi_reduction <maximumf>, %20, %cst_15 [1] : vector<8x128xf32> to vector<8xf32>
      %22 = vector.shape_cast %21 : vector<8xf32> to vector<8x1xf32>
      %23 = vector.broadcast %22 : vector<8x1xf32> to vector<8x128xf32>
      %24 = arith.subf %15, %23 : vector<8x128xf32>
      %25 = math.exp %24 : vector<8x128xf32>
      %cst_16 = arith.constant 0.000000e+00 : f32
      %26 = vector.broadcast %cst_16 : f32 to vector<8x128xf32>
      %27 = arith.select %18, %25, %26 : vector<8x128xi1>, vector<8x128xf32>
      %cst_17 = arith.constant dense<0.000000e+00> : vector<8xf32>
      %28 = vector.multi_reduction <add>, %27, %cst_17 [1] : vector<8x128xf32> to vector<8xf32>
      %29 = vector.shape_cast %28 : vector<8xf32> to vector<8x1xf32>
      %30 = vector.broadcast %29 : vector<8x1xf32> to vector<8x128xf32>
      %31 = arith.divf %27, %30 : vector<8x128xf32>
      %c0_18 = arith.constant 0 : index
      %c0_19 = arith.constant 0 : index
      %32 = vector.load %arg6[%c0_18, %c0_19] : memref<8x128xf32, #tpu.memory_space<vmem>>, vector<8x128xf32>
      tpu.vector_store %arg6[%c0_18, %c0_19], %31 {strides = array<i32>} : memref<8x128xf32, #tpu.memory_space<vmem>>, vector<8x128xf32>,
    } else {
    }
    return
  }
  func.func @transform_0(%arg0: i32, %arg1: i32, %arg2: i32) -> (i32, i32) {
    %c0_i32 = arith.constant 0 : i32
    return %arg0, %arg2 : i32, i32
  }
  func.func @transform_1(%arg0: i32, %arg1: i32, %arg2: i32) -> (i32, i32) {
    %c0_i32 = arith.constant 0 : i32
    return %arg2, %arg1 : i32, i32
  }
  func.func @transform_2(%arg0: i32, %arg1: i32, %arg2: i32) -> (i32, i32) {
    %c0_i32 = arith.constant 0 : i32
    %c0_i32_0 = arith.constant 0 : i32
    return %c0_i32, %arg1 : i32, i32
  }
  func.func @transform_3(%arg0: i32, %arg1: i32, %arg2: i32) -> (i32, i32) {
    %c0_i32 = arith.constant 0 : i32
    return %arg0, %arg1 : i32, i32
  }
}

module attributes {stable_mosaic.version = 11 : i64} {
  func.func @_matmul_kernel(%arg0: i32, %arg1: i32, %arg2: i32, %arg3: memref<8x128xbf16, #tpu.memory_space<vmem>>, %arg4: memref<128x512xbf16, #tpu.memory_space<vmem>>, %arg5: memref<1x512xf32, #tpu.memory_space<vmem>>, %arg6: memref<8x512xf32, #tpu.memory_space<vmem>>, %arg7: memref<8x512xf32, #tpu.memory_space<vmem>>) attributes {dimension_semantics = [#tpu.dimension_semantics<parallel>, #tpu.dimension_semantics<parallel>, #tpu.dimension_semantics<arbitrary>], iteration_bounds = array<i64: 1, 1, 1>, scalar_prefetch = 0 : i64, scratch_operands = 1 : i64, tpu.core_type = #tpu.core_type<tc>, window_params = [{transform_indices = @transform_0, window_bounds = array<i64: 8, 128>}, {transform_indices = @transform_1, window_bounds = array<i64: 128, 512>}, {transform_indices = @transform_2, window_bounds = array<i64: 1, 512>}, {transform_indices = @transform_3, window_bounds = array<i64: 8, 512>}]} {
    %c0_i32 = arith.constant 0 : i32
    %0 = arith.cmpi eq, %arg2, %c0_i32 : i32
    %1 = arith.extui %0 : i1 to i32
    %c0_i32_0 = arith.constant 0 : i32
    %2 = arith.cmpi ne, %1, %c0_i32_0 : i32
    scf.if %2 {
      %cst_10 = arith.constant 0.000000e+00 : f32
      %12 = vector.broadcast %cst_10 : f32 to vector<8x512xf32>
      %c0_11 = arith.constant 0 : index
      %c0_12 = arith.constant 0 : index
      %13 = vector.load %arg7[%c0_11, %c0_12] : memref<8x512xf32, #tpu.memory_space<vmem>>, vector<8x512xf32>
      tpu.vector_store %arg7[%c0_11, %c0_12], %12 {strides = array<i32>} : memref<8x512xf32, #tpu.memory_space<vmem>>, vector<8x512xf32>,
    } else {
    }
    %c0 = arith.constant 0 : index
    %c0_1 = arith.constant 0 : index
    %3 = vector.load %arg7[%c0, %c0_1] : memref<8x512xf32, #tpu.memory_space<vmem>>, vector<8x512xf32>
    %c0_2 = arith.constant 0 : index
    %c0_3 = arith.constant 0 : index
    %4 = vector.load %arg3[%c0_2, %c0_3] : memref<8x128xbf16, #tpu.memory_space<vmem>>, vector<8x128xbf16>
    %c0_4 = arith.constant 0 : index
    %c0_5 = arith.constant 0 : index
    %5 = vector.load %arg4[%c0_4, %c0_5] : memref<128x512xbf16, #tpu.memory_space<vmem>>, vector<128x512xbf16>
    %cst = arith.constant dense<0.000000e+00> : vector<8x512xf32>
    %6 = tpu.matmul %4, %5, %cst {dimension_numbers = #tpu.dot_dimension_numbers<[1], [0], [0], [1], [0, 0, 1, 1], [], []>} : vector<8x128xbf16>, vector<128x512xbf16>, vector<8x512xf32> -> vector<8x512xf32>
    %7 = arith.addf %3, %6 : vector<8x512xf32>
    %c0_6 = arith.constant 0 : index
    %c0_7 = arith.constant 0 : index
    %8 = vector.load %arg7[%c0_6, %c0_7] : memref<8x512xf32, #tpu.memory_space<vmem>>, vector<8x512xf32>
    tpu.vector_store %arg7[%c0_6, %c0_7], %7 {strides = array<i32>} : memref<8x512xf32, #tpu.memory_space<vmem>>, vector<8x512xf32>,
    %c0_i32_8 = arith.constant 0 : i32
    %9 = arith.cmpi eq, %arg2, %c0_i32_8 : i32
    %10 = arith.extui %9 : i1 to i32
    %c0_i32_9 = arith.constant 0 : i32
    %11 = arith.cmpi ne, %10, %c0_i32_9 : i32
    scf.if %11 {
      %c0_10 = arith.constant 0 : index
      %c0_11 = arith.constant 0 : index
      %12 = vector.load %arg7[%c0_10, %c0_11] : memref<8x512xf32, #tpu.memory_space<vmem>>, vector<8x512xf32>
      %c0_12 = arith.constant 0 : index
      %c0_13 = arith.constant 0 : index
      %13 = vector.load %arg5[%c0_12, %c0_13] : memref<1x512xf32, #tpu.memory_space<vmem>>, vector<1x512xf32>
      %14 = vector.broadcast %13 : vector<1x512xf32> to vector<8x512xf32>
      %15 = arith.addf %12, %14 : vector<8x512xf32>
      %cst_14 = arith.constant 0.000000e+00 : f32
      %16 = vector.broadcast %cst_14 : f32 to vector<8x512xf32>
      %17 = arith.maximumf %15, %16 : vector<8x512xf32>
      %c0_15 = arith.constant 0 : index
      %c0_16 = arith.constant 0 : index
      %18 = vector.load %arg6[%c0_15, %c0_16] : memref<8x512xf32, #tpu.memory_space<vmem>>, vector<8x512xf32>
      tpu.vector_store %arg6[%c0_15, %c0_16], %17 {strides = array<i32>} : memref<8x512xf32, #tpu.memory_space<vmem>>, vector<8x512xf32>,
    } else {
    }
    return
  }
  func.func @transform_0(%arg0: i32, %arg1: i32, %arg2: i32) -> (i32, i32) {
    %c0_i32 = arith.constant 0 : i32
    return %arg0, %arg2 : i32, i32
  }
  func.func @transform_1(%arg0: i32, %arg1: i32, %arg2: i32) -> (i32, i32) {
    %c0_i32 = arith.constant 0 : i32
    return %arg2, %arg1 : i32, i32
  }
  func.func @transform_2(%arg0: i32, %arg1: i32, %arg2: i32) -> (i32, i32) {
    %c0_i32 = arith.constant 0 : i32
    %c0_i32_0 = arith.constant 0 : i32
    return %c0_i32, %arg1 : i32, i32
  }
  func.func @transform_3(%arg0: i32, %arg1: i32, %arg2: i32) -> (i32, i32) {
    %c0_i32 = arith.constant 0 : i32
    return %arg0, %arg1 : i32, i32
  }
}

module attributes {stable_mosaic.version = 11 : i64} {
  func.func @_matmul_kernel(%arg0: i32, %arg1: i32, %arg2: i32, %arg3: memref<8x512xbf16, #tpu.memory_space<vmem>>, %arg4: memref<512x384xbf16, #tpu.memory_space<vmem>>, %arg5: memref<1x384xf32, #tpu.memory_space<vmem>>, %arg6: memref<8x384xf32, #tpu.memory_space<vmem>>, %arg7: memref<8x384xf32, #tpu.memory_space<vmem>>) attributes {dimension_semantics = [#tpu.dimension_semantics<parallel>, #tpu.dimension_semantics<parallel>, #tpu.dimension_semantics<arbitrary>], iteration_bounds = array<i64: 1, 3, 1>, scalar_prefetch = 0 : i64, scratch_operands = 1 : i64, tpu.core_type = #tpu.core_type<tc>, window_params = [{transform_indices = @transform_0, window_bounds = array<i64: 8, 512>}, {transform_indices = @transform_1, window_bounds = array<i64: 512, 384>}, {transform_indices = @transform_2, window_bounds = array<i64: 1, 384>}, {transform_indices = @transform_3, window_bounds = array<i64: 8, 384>}]} {
    %c0_i32 = arith.constant 0 : i32
    %0 = arith.cmpi eq, %arg2, %c0_i32 : i32
    %1 = arith.extui %0 : i1 to i32
    %c0_i32_0 = arith.constant 0 : i32
    %2 = arith.cmpi ne, %1, %c0_i32_0 : i32
    scf.if %2 {
      %cst_10 = arith.constant 0.000000e+00 : f32
      %12 = vector.broadcast %cst_10 : f32 to vector<8x384xf32>
      %c0_11 = arith.constant 0 : index
      %c0_12 = arith.constant 0 : index
      %13 = vector.load %arg7[%c0_11, %c0_12] : memref<8x384xf32, #tpu.memory_space<vmem>>, vector<8x384xf32>
      tpu.vector_store %arg7[%c0_11, %c0_12], %12 {strides = array<i32>} : memref<8x384xf32, #tpu.memory_space<vmem>>, vector<8x384xf32>,
    } else {
    }
    %c0 = arith.constant 0 : index
    %c0_1 = arith.constant 0 : index
    %3 = vector.load %arg7[%c0, %c0_1] : memref<8x384xf32, #tpu.memory_space<vmem>>, vector<8x384xf32>
    %c0_2 = arith.constant 0 : index
    %c0_3 = arith.constant 0 : index
    %4 = vector.load %arg3[%c0_2, %c0_3] : memref<8x512xbf16, #tpu.memory_space<vmem>>, vector<8x512xbf16>
    %c0_4 = arith.constant 0 : index
    %c0_5 = arith.constant 0 : index
    %5 = vector.load %arg4[%c0_4, %c0_5] : memref<512x384xbf16, #tpu.memory_space<vmem>>, vector<512x384xbf16>
    %cst = arith.constant dense<0.000000e+00> : vector<8x384xf32>
    %6 = tpu.matmul %4, %5, %cst {dimension_numbers = #tpu.dot_dimension_numbers<[1], [0], [0], [1], [0, 0, 1, 1], [], []>} : vector<8x512xbf16>, vector<512x384xbf16>, vector<8x384xf32> -> vector<8x384xf32>
    %7 = arith.addf %3, %6 : vector<8x384xf32>
    %c0_6 = arith.constant 0 : index
    %c0_7 = arith.constant 0 : index
    %8 = vector.load %arg7[%c0_6, %c0_7] : memref<8x384xf32, #tpu.memory_space<vmem>>, vector<8x384xf32>
    tpu.vector_store %arg7[%c0_6, %c0_7], %7 {strides = array<i32>} : memref<8x384xf32, #tpu.memory_space<vmem>>, vector<8x384xf32>,
    %c0_i32_8 = arith.constant 0 : i32
    %9 = arith.cmpi eq, %arg2, %c0_i32_8 : i32
    %10 = arith.extui %9 : i1 to i32
    %c0_i32_9 = arith.constant 0 : i32
    %11 = arith.cmpi ne, %10, %c0_i32_9 : i32
    scf.if %11 {
      %c0_10 = arith.constant 0 : index
      %c0_11 = arith.constant 0 : index
      %12 = vector.load %arg7[%c0_10, %c0_11] : memref<8x384xf32, #tpu.memory_space<vmem>>, vector<8x384xf32>
      %c0_12 = arith.constant 0 : index
      %c0_13 = arith.constant 0 : index
      %13 = vector.load %arg5[%c0_12, %c0_13] : memref<1x384xf32, #tpu.memory_space<vmem>>, vector<1x384xf32>
      %14 = vector.broadcast %13 : vector<1x384xf32> to vector<8x384xf32>
      %15 = arith.addf %12, %14 : vector<8x384xf32>
      %cst_14 = arith.constant 0.000000e+00 : f32
      %16 = vector.broadcast %cst_14 : f32 to vector<8x384xf32>
      %17 = arith.maximumf %15, %16 : vector<8x384xf32>
      %c0_15 = arith.constant 0 : index
      %c0_16 = arith.constant 0 : index
      %18 = vector.load %arg6[%c0_15, %c0_16] : memref<8x384xf32, #tpu.memory_space<vmem>>, vector<8x384xf32>
      tpu.vector_store %arg6[%c0_15, %c0_16], %17 {strides = array<i32>} : memref<8x384xf32, #tpu.memory_space<vmem>>, vector<8x384xf32>,
    } else {
    }
    return
  }
  func.func @transform_0(%arg0: i32, %arg1: i32, %arg2: i32) -> (i32, i32) {
    %c0_i32 = arith.constant 0 : i32
    return %arg0, %arg2 : i32, i32
  }
  func.func @transform_1(%arg0: i32, %arg1: i32, %arg2: i32) -> (i32, i32) {
    %c0_i32 = arith.constant 0 : i32
    return %arg2, %arg1 : i32, i32
  }
  func.func @transform_2(%arg0: i32, %arg1: i32, %arg2: i32) -> (i32, i32) {
    %c0_i32 = arith.constant 0 : i32
    %c0_i32_0 = arith.constant 0 : i32
    return %c0_i32, %arg1 : i32, i32
  }
  func.func @transform_3(%arg0: i32, %arg1: i32, %arg2: i32) -> (i32, i32) {
    %c0_i32 = arith.constant 0 : i32
    return %arg0, %arg1 : i32, i32
  }
}

module attributes {stable_mosaic.version = 11 : i64} {
  func.func @_matmul_kernel(%arg0: i32, %arg1: i32, %arg2: i32, %arg3: memref<8x384xbf16, #tpu.memory_space<vmem>>, %arg4: memref<384x896xbf16, #tpu.memory_space<vmem>>, %arg5: memref<1x896xf32, #tpu.memory_space<vmem>>, %arg6: memref<8x896xf32, #tpu.memory_space<vmem>>, %arg7: memref<8x896xf32, #tpu.memory_space<vmem>>) attributes {dimension_semantics = [#tpu.dimension_semantics<parallel>, #tpu.dimension_semantics<parallel>, #tpu.dimension_semantics<arbitrary>], iteration_bounds = array<i64: 1, 5, 3>, scalar_prefetch = 0 : i64, scratch_operands = 1 : i64, tpu.core_type = #tpu.core_type<tc>, window_params = [{transform_indices = @transform_0, window_bounds = array<i64: 8, 384>}, {transform_indices = @transform_1, window_bounds = array<i64: 384, 896>}, {transform_indices = @transform_2, window_bounds = array<i64: 1, 896>}, {transform_indices = @transform_3, window_bounds = array<i64: 8, 896>}]} {
    %c0_i32 = arith.constant 0 : i32
    %0 = arith.cmpi eq, %arg2, %c0_i32 : i32
    %1 = arith.extui %0 : i1 to i32
    %c0_i32_0 = arith.constant 0 : i32
    %2 = arith.cmpi ne, %1, %c0_i32_0 : i32
    scf.if %2 {
      %cst_9 = arith.constant 0.000000e+00 : f32
      %12 = vector.broadcast %cst_9 : f32 to vector<8x896xf32>
      %c0_10 = arith.constant 0 : index
      %c0_11 = arith.constant 0 : index
      %13 = vector.load %arg7[%c0_10, %c0_11] : memref<8x896xf32, #tpu.memory_space<vmem>>, vector<8x896xf32>
      tpu.vector_store %arg7[%c0_10, %c0_11], %12 {strides = array<i32>} : memref<8x896xf32, #tpu.memory_space<vmem>>, vector<8x896xf32>,
    } else {
    }
    %c0 = arith.constant 0 : index
    %c0_1 = arith.constant 0 : index
    %3 = vector.load %arg7[%c0, %c0_1] : memref<8x896xf32, #tpu.memory_space<vmem>>, vector<8x896xf32>
    %c0_2 = arith.constant 0 : index
    %c0_3 = arith.constant 0 : index
    %4 = vector.load %arg3[%c0_2, %c0_3] : memref<8x384xbf16, #tpu.memory_space<vmem>>, vector<8x384xbf16>
    %c0_4 = arith.constant 0 : index
    %c0_5 = arith.constant 0 : index
    %5 = vector.load %arg4[%c0_4, %c0_5] : memref<384x896xbf16, #tpu.memory_space<vmem>>, vector<384x896xbf16>
    %cst = arith.constant dense<0.000000e+00> : vector<8x896xf32>
    %6 = tpu.matmul %4, %5, %cst {dimension_numbers = #tpu.dot_dimension_numbers<[1], [0], [0], [1], [0, 0, 1, 1], [], []>} : vector<8x384xbf16>, vector<384x896xbf16>, vector<8x896xf32> -> vector<8x896xf32>
    %7 = arith.addf %3, %6 : vector<8x896xf32>
    %c0_6 = arith.constant 0 : index
    %c0_7 = arith.constant 0 : index
    %8 = vector.load %arg7[%c0_6, %c0_7] : memref<8x896xf32, #tpu.memory_space<vmem>>, vector<8x896xf32>
    tpu.vector_store %arg7[%c0_6, %c0_7], %7 {strides = array<i32>} : memref<8x896xf32, #tpu.memory_space<vmem>>, vector<8x896xf32>,
    %c2_i32 = arith.constant 2 : i32
    %9 = arith.cmpi eq, %arg2, %c2_i32 : i32
    %10 = arith.extui %9 : i1 to i32
    %c0_i32_8 = arith.constant 0 : i32
    %11 = arith.cmpi ne, %10, %c0_i32_8 : i32
    scf.if %11 {
      %c0_9 = arith.constant 0 : index
      %c0_10 = arith.constant 0 : index
      %12 = vector.load %arg7[%c0_9, %c0_10] : memref<8x896xf32, #tpu.memory_space<vmem>>, vector<8x896xf32>
      %c0_11 = arith.constant 0 : index
      %c0_12 = arith.constant 0 : index
      %13 = vector.load %arg5[%c0_11, %c0_12] : memref<1x896xf32, #tpu.memory_space<vmem>>, vector<1x896xf32>
      %14 = vector.broadcast %13 : vector<1x896xf32> to vector<8x896xf32>
      %15 = arith.addf %12, %14 : vector<8x896xf32>
      %c0_13 = arith.constant 0 : index
      %c0_14 = arith.constant 0 : index
      %16 = vector.load %arg6[%c0_13, %c0_14] : memref<8x896xf32, #tpu.memory_space<vmem>>, vector<8x896xf32>
      tpu.vector_store %arg6[%c0_13, %c0_14], %15 {strides = array<i32>} : memref<8x896xf32, #tpu.memory_space<vmem>>, vector<8x896xf32>,
    } else {
    }
    return
  }
  func.func @transform_0(%arg0: i32, %arg1: i32, %arg2: i32) -> (i32, i32) {
    %c0_i32 = arith.constant 0 : i32
    return %arg0, %arg2 : i32, i32
  }
  func.func @transform_1(%arg0: i32, %arg1: i32, %arg2: i32) -> (i32, i32) {
    %c0_i32 = arith.constant 0 : i32
    return %arg2, %arg1 : i32, i32
  }
  func.func @transform_2(%arg0: i32, %arg1: i32, %arg2: i32) -> (i32, i32) {
    %c0_i32 = arith.constant 0 : i32
    %c0_i32_0 = arith.constant 0 : i32
    return %c0_i32, %arg1 : i32, i32
  }
  func.func @transform_3(%arg0: i32, %arg1: i32, %arg2: i32) -> (i32, i32) {
    %c0_i32 = arith.constant 0 : i32
    return %arg0, %arg1 : i32, i32
  }
}

module attributes {stable_mosaic.version = 11 : i64} {
  func.func @_matmul_kernel(%arg0: i32, %arg1: i32, %arg2: i32, %arg3: memref<256x640xbf16, #tpu.memory_space<vmem>>, %arg4: memref<640x128xbf16, #tpu.memory_space<vmem>>, %arg5: memref<1x128xf32, #tpu.memory_space<vmem>>, %arg6: memref<256x128xf32, #tpu.memory_space<vmem>>, %arg7: memref<256x128xf32, #tpu.memory_space<vmem>>) attributes {dimension_semantics = [#tpu.dimension_semantics<parallel>, #tpu.dimension_semantics<parallel>, #tpu.dimension_semantics<arbitrary>], iteration_bounds = array<i64: 3, 1, 1>, scalar_prefetch = 0 : i64, scratch_operands = 1 : i64, tpu.core_type = #tpu.core_type<tc>, window_params = [{transform_indices = @transform_0, window_bounds = array<i64: 256, 640>}, {transform_indices = @transform_1, window_bounds = array<i64: 640, 128>}, {transform_indices = @transform_2, window_bounds = array<i64: 1, 128>}, {transform_indices = @transform_3, window_bounds = array<i64: 256, 128>}]} {
    %c0_i32 = arith.constant 0 : i32
    %0 = arith.cmpi eq, %arg2, %c0_i32 : i32
    %1 = arith.extui %0 : i1 to i32
    %c0_i32_0 = arith.constant 0 : i32
    %2 = arith.cmpi ne, %1, %c0_i32_0 : i32
    scf.if %2 {
      %cst_10 = arith.constant 0.000000e+00 : f32
      %12 = vector.broadcast %cst_10 : f32 to vector<256x128xf32>
      %c0_11 = arith.constant 0 : index
      %c0_12 = arith.constant 0 : index
      %13 = vector.load %arg7[%c0_11, %c0_12] : memref<256x128xf32, #tpu.memory_space<vmem>>, vector<256x128xf32>
      tpu.vector_store %arg7[%c0_11, %c0_12], %12 {strides = array<i32>} : memref<256x128xf32, #tpu.memory_space<vmem>>, vector<256x128xf32>,
    } else {
    }
    %c0 = arith.constant 0 : index
    %c0_1 = arith.constant 0 : index
    %3 = vector.load %arg7[%c0, %c0_1] : memref<256x128xf32, #tpu.memory_space<vmem>>, vector<256x128xf32>
    %c0_2 = arith.constant 0 : index
    %c0_3 = arith.constant 0 : index
    %4 = vector.load %arg3[%c0_2, %c0_3] : memref<256x640xbf16, #tpu.memory_space<vmem>>, vector<256x640xbf16>
    %c0_4 = arith.constant 0 : index
    %c0_5 = arith.constant 0 : index
    %5 = vector.load %arg4[%c0_4, %c0_5] : memref<640x128xbf16, #tpu.memory_space<vmem>>, vector<640x128xbf16>
    %cst = arith.constant dense<0.000000e+00> : vector<256x128xf32>
    %6 = tpu.matmul %4, %5, %cst {dimension_numbers = #tpu.dot_dimension_numbers<[1], [0], [0], [1], [0, 0, 1, 1], [], []>} : vector<256x640xbf16>, vector<640x128xbf16>, vector<256x128xf32> -> vector<256x128xf32>
    %7 = arith.addf %3, %6 : vector<256x128xf32>
    %c0_6 = arith.constant 0 : index
    %c0_7 = arith.constant 0 : index
    %8 = vector.load %arg7[%c0_6, %c0_7] : memref<256x128xf32, #tpu.memory_space<vmem>>, vector<256x128xf32>
    tpu.vector_store %arg7[%c0_6, %c0_7], %7 {strides = array<i32>} : memref<256x128xf32, #tpu.memory_space<vmem>>, vector<256x128xf32>,
    %c0_i32_8 = arith.constant 0 : i32
    %9 = arith.cmpi eq, %arg2, %c0_i32_8 : i32
    %10 = arith.extui %9 : i1 to i32
    %c0_i32_9 = arith.constant 0 : i32
    %11 = arith.cmpi ne, %10, %c0_i32_9 : i32
    scf.if %11 {
      %c0_10 = arith.constant 0 : index
      %c0_11 = arith.constant 0 : index
      %12 = vector.load %arg7[%c0_10, %c0_11] : memref<256x128xf32, #tpu.memory_space<vmem>>, vector<256x128xf32>
      %c0_12 = arith.constant 0 : index
      %c0_13 = arith.constant 0 : index
      %13 = vector.load %arg5[%c0_12, %c0_13] : memref<1x128xf32, #tpu.memory_space<vmem>>, vector<1x128xf32>
      %14 = vector.broadcast %13 : vector<1x128xf32> to vector<256x128xf32>
      %15 = arith.addf %12, %14 : vector<256x128xf32>
      %cst_14 = arith.constant 0.000000e+00 : f32
      %16 = vector.broadcast %cst_14 : f32 to vector<256x128xf32>
      %17 = arith.maximumf %15, %16 : vector<256x128xf32>
      %c0_15 = arith.constant 0 : index
      %c0_16 = arith.constant 0 : index
      %18 = vector.load %arg6[%c0_15, %c0_16] : memref<256x128xf32, #tpu.memory_space<vmem>>, vector<256x128xf32>
      tpu.vector_store %arg6[%c0_15, %c0_16], %17 {strides = array<i32>} : memref<256x128xf32, #tpu.memory_space<vmem>>, vector<256x128xf32>,
    } else {
    }
    return
  }
  func.func @transform_0(%arg0: i32, %arg1: i32, %arg2: i32) -> (i32, i32) {
    %c0_i32 = arith.constant 0 : i32
    return %arg0, %arg2 : i32, i32
  }
  func.func @transform_1(%arg0: i32, %arg1: i32, %arg2: i32) -> (i32, i32) {
    %c0_i32 = arith.constant 0 : i32
    return %arg2, %arg1 : i32, i32
  }
  func.func @transform_2(%arg0: i32, %arg1: i32, %arg2: i32) -> (i32, i32) {
    %c0_i32 = arith.constant 0 : i32
    %c0_i32_0 = arith.constant 0 : i32
    return %c0_i32, %arg1 : i32, i32
  }
  func.func @transform_3(%arg0: i32, %arg1: i32, %arg2: i32) -> (i32, i32) {
    %c0_i32 = arith.constant 0 : i32
    return %arg0, %arg1 : i32, i32
  }
}

module attributes {stable_mosaic.version = 11 : i64} {
  func.func @_matmul_kernel(%arg0: i32, %arg1: i32, %arg2: i32, %arg3: memref<256x384xbf16, #tpu.memory_space<vmem>>, %arg4: memref<384x128xbf16, #tpu.memory_space<vmem>>, %arg5: memref<1x128xf32, #tpu.memory_space<vmem>>, %arg6: memref<256x128xf32, #tpu.memory_space<vmem>>, %arg7: memref<256x128xf32, #tpu.memory_space<vmem>>) attributes {dimension_semantics = [#tpu.dimension_semantics<parallel>, #tpu.dimension_semantics<parallel>, #tpu.dimension_semantics<arbitrary>], iteration_bounds = array<i64: 13, 1, 1>, scalar_prefetch = 0 : i64, scratch_operands = 1 : i64, tpu.core_type = #tpu.core_type<tc>, window_params = [{transform_indices = @transform_0, window_bounds = array<i64: 256, 384>}, {transform_indices = @transform_1, window_bounds = array<i64: 384, 128>}, {transform_indices = @transform_2, window_bounds = array<i64: 1, 128>}, {transform_indices = @transform_3, window_bounds = array<i64: 256, 128>}]} {
    %c0_i32 = arith.constant 0 : i32
    %0 = arith.cmpi eq, %arg2, %c0_i32 : i32
    %1 = arith.extui %0 : i1 to i32
    %c0_i32_0 = arith.constant 0 : i32
    %2 = arith.cmpi ne, %1, %c0_i32_0 : i32
    scf.if %2 {
      %cst_10 = arith.constant 0.000000e+00 : f32
      %12 = vector.broadcast %cst_10 : f32 to vector<256x128xf32>
      %c0_11 = arith.constant 0 : index
      %c0_12 = arith.constant 0 : index
      %13 = vector.load %arg7[%c0_11, %c0_12] : memref<256x128xf32, #tpu.memory_space<vmem>>, vector<256x128xf32>
      tpu.vector_store %arg7[%c0_11, %c0_12], %12 {strides = array<i32>} : memref<256x128xf32, #tpu.memory_space<vmem>>, vector<256x128xf32>,
    } else {
    }
    %c0 = arith.constant 0 : index
    %c0_1 = arith.constant 0 : index
    %3 = vector.load %arg7[%c0, %c0_1] : memref<256x128xf32, #tpu.memory_space<vmem>>, vector<256x128xf32>
    %c0_2 = arith.constant 0 : index
    %c0_3 = arith.constant 0 : index
    %4 = vector.load %arg3[%c0_2, %c0_3] : memref<256x384xbf16, #tpu.memory_space<vmem>>, vector<256x384xbf16>
    %c0_4 = arith.constant 0 : index
    %c0_5 = arith.constant 0 : index
    %5 = vector.load %arg4[%c0_4, %c0_5] : memref<384x128xbf16, #tpu.memory_space<vmem>>, vector<384x128xbf16>
    %cst = arith.constant dense<0.000000e+00> : vector<256x128xf32>
    %6 = tpu.matmul %4, %5, %cst {dimension_numbers = #tpu.dot_dimension_numbers<[1], [0], [0], [1], [0, 0, 1, 1], [], []>} : vector<256x384xbf16>, vector<384x128xbf16>, vector<256x128xf32> -> vector<256x128xf32>
    %7 = arith.addf %3, %6 : vector<256x128xf32>
    %c0_6 = arith.constant 0 : index
    %c0_7 = arith.constant 0 : index
    %8 = vector.load %arg7[%c0_6, %c0_7] : memref<256x128xf32, #tpu.memory_space<vmem>>, vector<256x128xf32>
    tpu.vector_store %arg7[%c0_6, %c0_7], %7 {strides = array<i32>} : memref<256x128xf32, #tpu.memory_space<vmem>>, vector<256x128xf32>,
    %c0_i32_8 = arith.constant 0 : i32
    %9 = arith.cmpi eq, %arg2, %c0_i32_8 : i32
    %10 = arith.extui %9 : i1 to i32
    %c0_i32_9 = arith.constant 0 : i32
    %11 = arith.cmpi ne, %10, %c0_i32_9 : i32
    scf.if %11 {
      %c0_10 = arith.constant 0 : index
      %c0_11 = arith.constant 0 : index
      %12 = vector.load %arg7[%c0_10, %c0_11] : memref<256x128xf32, #tpu.memory_space<vmem>>, vector<256x128xf32>
      %c0_12 = arith.constant 0 : index
      %c0_13 = arith.constant 0 : index
      %13 = vector.load %arg5[%c0_12, %c0_13] : memref<1x128xf32, #tpu.memory_space<vmem>>, vector<1x128xf32>
      %14 = vector.broadcast %13 : vector<1x128xf32> to vector<256x128xf32>
      %15 = arith.addf %12, %14 : vector<256x128xf32>
      %cst_14 = arith.constant 0.000000e+00 : f32
      %16 = vector.broadcast %cst_14 : f32 to vector<256x128xf32>
      %17 = arith.maximumf %15, %16 : vector<256x128xf32>
      %c0_15 = arith.constant 0 : index
      %c0_16 = arith.constant 0 : index
      %18 = vector.load %arg6[%c0_15, %c0_16] : memref<256x128xf32, #tpu.memory_space<vmem>>, vector<256x128xf32>
      tpu.vector_store %arg6[%c0_15, %c0_16], %17 {strides = array<i32>} : memref<256x128xf32, #tpu.memory_space<vmem>>, vector<256x128xf32>,
    } else {
    }
    return
  }
  func.func @transform_0(%arg0: i32, %arg1: i32, %arg2: i32) -> (i32, i32) {
    %c0_i32 = arith.constant 0 : i32
    return %arg0, %arg2 : i32, i32
  }
  func.func @transform_1(%arg0: i32, %arg1: i32, %arg2: i32) -> (i32, i32) {
    %c0_i32 = arith.constant 0 : i32
    return %arg2, %arg1 : i32, i32
  }
  func.func @transform_2(%arg0: i32, %arg1: i32, %arg2: i32) -> (i32, i32) {
    %c0_i32 = arith.constant 0 : i32
    %c0_i32_0 = arith.constant 0 : i32
    return %c0_i32, %arg1 : i32, i32
  }
  func.func @transform_3(%arg0: i32, %arg1: i32, %arg2: i32) -> (i32, i32) {
    %c0_i32 = arith.constant 0 : i32
    return %arg0, %arg1 : i32, i32
  }
}

module attributes {stable_mosaic.version = 11 : i64} {
  func.func @_matmul_kernel(%arg0: i32, %arg1: i32, %arg2: i32, %arg3: memref<256x256xbf16, #tpu.memory_space<vmem>>, %arg4: memref<256x128xbf16, #tpu.memory_space<vmem>>, %arg5: memref<1x128xf32, #tpu.memory_space<vmem>>, %arg6: memref<256x128xf32, #tpu.memory_space<vmem>>, %arg7: memref<256x128xf32, #tpu.memory_space<vmem>>) attributes {dimension_semantics = [#tpu.dimension_semantics<parallel>, #tpu.dimension_semantics<parallel>, #tpu.dimension_semantics<arbitrary>], iteration_bounds = array<i64: 50, 1, 1>, scalar_prefetch = 0 : i64, scratch_operands = 1 : i64, tpu.core_type = #tpu.core_type<tc>, window_params = [{transform_indices = @transform_0, window_bounds = array<i64: 256, 256>}, {transform_indices = @transform_1, window_bounds = array<i64: 256, 128>}, {transform_indices = @transform_2, window_bounds = array<i64: 1, 128>}, {transform_indices = @transform_3, window_bounds = array<i64: 256, 128>}]} {
    %c0_i32 = arith.constant 0 : i32
    %0 = arith.cmpi eq, %arg2, %c0_i32 : i32
    %1 = arith.extui %0 : i1 to i32
    %c0_i32_0 = arith.constant 0 : i32
    %2 = arith.cmpi ne, %1, %c0_i32_0 : i32
    scf.if %2 {
      %cst_10 = arith.constant 0.000000e+00 : f32
      %12 = vector.broadcast %cst_10 : f32 to vector<256x128xf32>
      %c0_11 = arith.constant 0 : index
      %c0_12 = arith.constant 0 : index
      %13 = vector.load %arg7[%c0_11, %c0_12] : memref<256x128xf32, #tpu.memory_space<vmem>>, vector<256x128xf32>
      tpu.vector_store %arg7[%c0_11, %c0_12], %12 {strides = array<i32>} : memref<256x128xf32, #tpu.memory_space<vmem>>, vector<256x128xf32>,
    } else {
    }
    %c0 = arith.constant 0 : index
    %c0_1 = arith.constant 0 : index
    %3 = vector.load %arg7[%c0, %c0_1] : memref<256x128xf32, #tpu.memory_space<vmem>>, vector<256x128xf32>
    %c0_2 = arith.constant 0 : index
    %c0_3 = arith.constant 0 : index
    %4 = vector.load %arg3[%c0_2, %c0_3] : memref<256x256xbf16, #tpu.memory_space<vmem>>, vector<256x256xbf16>
    %c0_4 = arith.constant 0 : index
    %c0_5 = arith.constant 0 : index
    %5 = vector.load %arg4[%c0_4, %c0_5] : memref<256x128xbf16, #tpu.memory_space<vmem>>, vector<256x128xbf16>
    %cst = arith.constant dense<0.000000e+00> : vector<256x128xf32>
    %6 = tpu.matmul %4, %5, %cst {dimension_numbers = #tpu.dot_dimension_numbers<[1], [0], [0], [1], [0, 0, 1, 1], [], []>} : vector<256x256xbf16>, vector<256x128xbf16>, vector<256x128xf32> -> vector<256x128xf32>
    %7 = arith.addf %3, %6 : vector<256x128xf32>
    %c0_6 = arith.constant 0 : index
    %c0_7 = arith.constant 0 : index
    %8 = vector.load %arg7[%c0_6, %c0_7] : memref<256x128xf32, #tpu.memory_space<vmem>>, vector<256x128xf32>
    tpu.vector_store %arg7[%c0_6, %c0_7], %7 {strides = array<i32>} : memref<256x128xf32, #tpu.memory_space<vmem>>, vector<256x128xf32>,
    %c0_i32_8 = arith.constant 0 : i32
    %9 = arith.cmpi eq, %arg2, %c0_i32_8 : i32
    %10 = arith.extui %9 : i1 to i32
    %c0_i32_9 = arith.constant 0 : i32
    %11 = arith.cmpi ne, %10, %c0_i32_9 : i32
    scf.if %11 {
      %c0_10 = arith.constant 0 : index
      %c0_11 = arith.constant 0 : index
      %12 = vector.load %arg7[%c0_10, %c0_11] : memref<256x128xf32, #tpu.memory_space<vmem>>, vector<256x128xf32>
      %c0_12 = arith.constant 0 : index
      %c0_13 = arith.constant 0 : index
      %13 = vector.load %arg5[%c0_12, %c0_13] : memref<1x128xf32, #tpu.memory_space<vmem>>, vector<1x128xf32>
      %14 = vector.broadcast %13 : vector<1x128xf32> to vector<256x128xf32>
      %15 = arith.addf %12, %14 : vector<256x128xf32>
      %c0_14 = arith.constant 0 : index
      %c0_15 = arith.constant 0 : index
      %16 = vector.load %arg6[%c0_14, %c0_15] : memref<256x128xf32, #tpu.memory_space<vmem>>, vector<256x128xf32>
      tpu.vector_store %arg6[%c0_14, %c0_15], %15 {strides = array<i32>} : memref<256x128xf32, #tpu.memory_space<vmem>>, vector<256x128xf32>,
    } else {
    }
    return
  }
  func.func @transform_0(%arg0: i32, %arg1: i32, %arg2: i32) -> (i32, i32) {
    %c0_i32 = arith.constant 0 : i32
    return %arg0, %arg2 : i32, i32
  }
  func.func @transform_1(%arg0: i32, %arg1: i32, %arg2: i32) -> (i32, i32) {
    %c0_i32 = arith.constant 0 : i32
    return %arg2, %arg1 : i32, i32
  }
  func.func @transform_2(%arg0: i32, %arg1: i32, %arg2: i32) -> (i32, i32) {
    %c0_i32 = arith.constant 0 : i32
    %c0_i32_0 = arith.constant 0 : i32
    return %c0_i32, %arg1 : i32, i32
  }
  func.func @transform_3(%arg0: i32, %arg1: i32, %arg2: i32) -> (i32, i32) {
    %c0_i32 = arith.constant 0 : i32
    return %arg0, %arg1 : i32, i32
  }
}

</mosaic_0001>

<bundles_post_ra>
// kernel: autoencoder_forward.13
= control target key start
LH: loop header
LB: loop body
LE: loop exit
PB: predicated region body
PF: predicated region fallthrough
CT: control target
= control target key end

     0   :  { %s1212_s12 = smov 0   ;;  %s1214_s13 = smov 0   ;;  %s1362_s0 = inlined_call_operand.vmem [shape: bf16[3328,128], index: 0, kind: input, shape index: {}]   ;;  %s1363_s1 = inlined_call_operand.vmem [shape: bf16[128,128], index: 1, kind: input, shape index: {}]   ;;  %s1364_s2 = inlined_call_operand.vmem [shape: f32[1,128], index: 2, kind: input, shape index: {}]   ;;  %s1365_s3 = inlined_call_operand.vmem [shape: f32[3328,128], index: 3, kind: output, shape index: {}]  }
   0x1   :  { %s1216_s14 = smov 0  }
   0x2 LB: > { %s32_s15 = sadd.s32 1, %s1186_s13  ;;  %p1000_p0 = scmp.ge.s32.totalorder %s1190_s14, 1  ;;  %s1190_s14 = sphi %s1216_s14, %s13_s14   ;;  %s1186_s13 = sphi %s1214_s13, %s1367_s13   ;;  %s1182_s12 = sphi %s1212_s12, %s1366_s12  }
   0x3   : > { %p34_p1 = scmp.ge.s32.totalorder %s32_s15, 13  ;;  %p188_p2 = scmp.lt.s32.totalorder %s1190_s14, 14 }
   0x5   : > { %s1369_s15 = smov (%p34_p1, %s32_s15), 0  ;;  %p189_p3 = pnand %p1000_p0, %p188_p2 }
   0x6   : > { %v1144_v0 = vld [vmem:[%s1363_s1] sm:$0xff] (!%p189_p3)   ;;  %s1001_s18 = sshll.u32 (!%p189_p3), %s1182_s12, 5  ;;  %v1145_v1 = vld [vmem:[%s1363_s1 + $0x8] sm:$0xff] (!%p189_p3)   ;;  %v1146_v2 = vld [vmem:[%s1363_s1 + $0x10] sm:$0xff] (!%p189_p3)  }
   0x7   : > { %192 = sbr.rel (%p189_p3) target bundleno = 283 (0x11b), region = 32  ;;  %p230_p4 = scmp.lt.s32.totalorder (!%p189_p3), %s1001_s18, 415  ;;  %1056 = vmatprep.subr.bf16.mxu0 (!%p189_p3), %v1144_v0  ;;  %1104 = vmatprep.subr.bf16.mxu1 (!%p189_p3), %v1144_v0  ;;  %v1147_v3 = vld [vmem:[%s1363_s1 + $0x18] sm:$0xff] (!%p189_p3)   ;;  %v1148_v6 = vld [vmem:[%s1363_s1 + $0x20] sm:$0xff] (!%p189_p3)   ;;  %v1149_v7 = vld [vmem:[%s1363_s1 + $0x28] sm:$0xff] (!%p189_p3)  }
   0x8   : > { %1057 = vmatpush3.bf16.msra.mxu0 (!%p189_p3), %v1144_v0  ;;  %1112 = vmatpush3.bf16.msra.mxu1 (!%p189_p3), %v1144_v0  ;;  %v1150_v8 = vld [vmem:[%s1363_s1 + $0x30] sm:$0xff] (!%p189_p3)   ;;  %v1151_v9 = vld [vmem:[%s1363_s1 + $0x38] sm:$0xff] (!%p189_p3)   ;;  %v1281_v24 = vld [vmem:[%s1364_s2] ss:$0 sm:$0xff] (!%p189_p3) }
   0x9   : > { %1058 = vmatprep.subr.bf16.mxu0 (!%p189_p3), %v1145_v1  ;;  %1105 = vmatprep.subr.bf16.mxu1 (!%p189_p3), %v1145_v1 }
   0xc   : > { %1059 = vmatpush3.bf16.msra.mxu0 (!%p189_p3), %v1145_v1  ;;  %1113 = vmatpush3.bf16.msra.mxu1 (!%p189_p3), %v1145_v1 }
   0xd   : > { %1060 = vmatprep.subr.bf16.mxu0 (!%p189_p3), %v1146_v2  ;;  %1106 = vmatprep.subr.bf16.mxu1 (!%p189_p3), %v1146_v2 }
   0xe   : > { %s1371_s18 = smov (!%p230_p4, %s1001_s18), 415 }
   0xf   : > { %s1002_s23 = sshll.u32 %s1371_s18, 2  ;;  %s1004_s12 = sshll.u32 %s1371_s18, 3 }
  0x10   : > { %s1245_s26 = scalar_lea.vmem %s1362_s0, %s1002_s23  ;;  %1061 = vmatpush3.bf16.msra.mxu0 %v1146_v2  ;;  %1114 = vmatpush3.bf16.msra.mxu1 %v1146_v2  ;;  %s1289_s19 = scalar_lea.vmem %s1365_s3, %s1004_s12 }
  0x11   : > { %v1152_v4 = vld [vmem:[%s1245_s26] sm:$0xff]   ;;  %1062 = vmatprep.subr.bf16.mxu0 %v1147_v3  ;;  %1107 = vmatprep.subr.bf16.mxu1 %v1147_v3  ;;  %v1154_v10 = vld [vmem:[%s1245_s26 + $0x8] sm:$0xff]   ;;  %v1156_v12 = vld [vmem:[%s1245_s26 + $0x10] sm:$0xff]  }
  0x12   : > { %v1153_v5 = vld [vmem:[%s1245_s26 + $0x40] sm:$0xff]   ;;  %1072 = vmatprep.mubr.bf16.mxu0 %v1152_v4  ;;  %v1155_v11 = vld [vmem:[%s1245_s26 + $0x48] sm:$0xff]   ;;  %v1157_v13 = vld [vmem:[%s1245_s26 + $0x50] sm:$0xff]  }
  0x13   : > { %1088 = vmatprep.mubr.bf16.mxu1 %v1153_v5  ;;  %v1158_v14 = vld [vmem:[%s1245_s26 + $0x18] sm:$0xff]   ;;  %v1160_v16 = vld [vmem:[%s1245_s26 + $0x20] sm:$0xff]   ;;  %v1162_v18 = vld [vmem:[%s1245_s26 + $0x28] sm:$0xff]  }
  0x14   : > { %1063 = vmatpush3.bf16.msra.mxu0 %v1147_v3  ;;  %1115 = vmatpush3.bf16.msra.mxu1 %v1147_v3  ;;  %v1159_v15 = vld [vmem:[%s1245_s26 + $0x58] sm:$0xff]   ;;  %v1161_v17 = vld [vmem:[%s1245_s26 + $0x60] sm:$0xff]   ;;  %v1163_v19 = vld [vmem:[%s1245_s26 + $0x68] sm:$0xff]  }
  0x15   : > { %1064 = vmatprep.subr.bf16.mxu0 %v1148_v6  ;;  %1108 = vmatprep.subr.bf16.mxu1 %v1148_v6  ;;  %v1164_v20 = vld [vmem:[%s1245_s26 + $0x30] sm:$0xff]   ;;  %v1166_v22 = vld [vmem:[%s1245_s26 + $0x38] sm:$0xff]  }
  0x16   : > { %v1165_v21 = vld [vmem:[%s1245_s26 + $0x70] sm:$0xff]   ;;  %v1167_v23 = vld [vmem:[%s1245_s26 + $0x78] sm:$0xff]  }
  0x18   : > { %1065 = vmatpush3.bf16.msra.mxu0 %v1148_v6  ;;  %1116 = vmatpush3.bf16.msra.mxu1 %v1148_v6 }
  0x19   : > { %1066 = vmatprep.subr.bf16.mxu0 %v1149_v7  ;;  %1109 = vmatprep.subr.bf16.mxu1 %v1149_v7 }
  0x1c   : > { %1067 = vmatpush3.bf16.msra.mxu0 %v1149_v7  ;;  %1117 = vmatpush3.bf16.msra.mxu1 %v1149_v7 }
  0x1d   : > { %1068 = vmatprep.subr.bf16.mxu0 %v1150_v8  ;;  %1110 = vmatprep.subr.bf16.mxu1 %v1150_v8 }
  0x20   : > { %1069 = vmatpush3.bf16.msra.mxu0 %v1150_v8  ;;  %1118 = vmatpush3.bf16.msra.mxu1 %v1150_v8 }
  0x21   : > { %1070 = vmatprep.subr.bf16.mxu0 %v1151_v9  ;;  %1111 = vmatprep.subr.bf16.mxu1 %v1151_v9 }
  0x24   : > { %1071 = vmatpush3.bf16.msra.mxu0 %v1151_v9  ;;  %1119 = vmatpush3.bf16.msra.mxu1 %v1151_v9 }
  0x27   : > { %1073 = vmatmul.mubr.bf16.vlgmr.msra.gmra.mrb[0].mxu0 %v1154_v10  ;;  %1089 = vmatmul.mubr.bf16.vlgmr.msra.gmra.mrb[0].mxu1 %v1155_v11 }
  0x28   : > { %1076 = vmatprep.mubr.bf16.mxu0 %v1156_v12  ;;  %1092 = vmatprep.mubr.bf16.mxu1 %v1157_v13 }
  0x2f   : > { %1077 = vmatmul.mubr.bf16.gmra.mrb[4].mxu0 %v1158_v14  ;;  %1093 = vmatmul.mubr.bf16.gmra.mrb[4].mxu1 %v1159_v15 }
  0x30   : > { %1080 = vmatprep.mubr.bf16.mxu0 %v1160_v16  ;;  %1096 = vmatprep.mubr.bf16.mxu1 %v1161_v17 }
  0x37   : > { %1081 = vmatmul.mubr.bf16.gmra.mrb[8].mxu0 %v1162_v18  ;;  %1097 = vmatmul.mubr.bf16.gmra.mrb[8].mxu1 %v1163_v19 }
  0x38   : > { %1084 = vmatprep.mubr.bf16.mxu0 %v1164_v20  ;;  %1100 = vmatprep.mubr.bf16.mxu1 %v1165_v21 }
  0x3f   : > { %1085 = vmatmul.mubr.bf16.gmra.mrb[12].mxu0 %v1166_v22  ;;  %1101 = vmatmul.mubr.bf16.gmra.mrb[12].mxu1 %v1167_v23 }
  0xfa   : > { %v1074_v25 = vpop.f32.mrb[0].mxu0  ;;  %v1090_v26 = vpop.f32.mrb[0].mxu1 }
  0xfb   : > { %v789_v27 = vadd.f32 %v1074_v25, %v1281_v24  ;;  %v805_v28 = vadd.f32 %v1090_v26, %v1281_v24  ;;  %v554_v29 = vpop.f32.mrb[1].mxu0  ;;  %v618_v30 = vpop.f32.mrb[1].mxu1 }
  0xfc   : > { %v787_v31 = vadd.f32 %v1281_v24, %v554_v29  ;;  %v803_v32 = vadd.f32 %v1281_v24, %v618_v30  ;;  %v1075_v33 = vpop.f32.mrb[2].mxu0  ;;  %v1091_v34 = vpop.f32.mrb[2].mxu1 }
  0xfd   : > { %v821_v35 = vmax.f32 %v789_v27, 0.0  ;;  %v837_v36 = vmax.f32 %v805_v28, 0.0  ;;  %v790_v37 = vadd.f32 %v1075_v33, %v1281_v24  ;;  %v806_v38 = vadd.f32 %v1091_v34, %v1281_v24  ;;  %v557_v39 = vpop.f32.mrb[3].mxu0  ;;  %v621_v40 = vpop.f32.mrb[3].mxu1 }
  0xfe   : > { %v819_v41 = vmax.f32 %v787_v31, 0.0  ;;  %v835_v42 = vmax.f32 %v803_v32, 0.0  ;;  %v788_v43 = vadd.f32 %v1281_v24, %v557_v39  ;;  %v804_v44 = vadd.f32 %v1281_v24, %v621_v40 }
  0xff   : > { %853 = vst [vmem:[%s1289_s19 + $0x10] sm:$0xff] %v821_v35  ;;  %869 = vst [vmem:[%s1289_s19 + $0x90] sm:$0xff] %v837_v36  ;;  %v822_v45 = vmax.f32 %v790_v37, 0.0  ;;  %v838_v46 = vmax.f32 %v806_v38, 0.0 }
 0x100   : > { %851 = vst [vmem:[%s1289_s19] sm:$0xff] %v819_v41  ;;  %867 = vst [vmem:[%s1289_s19 + $0x80] sm:$0xff] %v835_v42  ;;  %v820_v47 = vmax.f32 %v788_v43, 0.0  ;;  %v836_v48 = vmax.f32 %v804_v44, 0.0 }
 0x101   : > { %854 = vst [vmem:[%s1289_s19 + $0x18] sm:$0xff] %v822_v45  ;;  %870 = vst [vmem:[%s1289_s19 + $0x98] sm:$0xff] %v838_v46 }
 0x102   : > { %852 = vst [vmem:[%s1289_s19 + $0x8] sm:$0xff] %v820_v47  ;;  %868 = vst [vmem:[%s1289_s19 + $0x88] sm:$0xff] %v836_v48  ;;  %v1078_v49 = vpop.f32.mrb[4].mxu0  ;;  %v1094_v50 = vpop.f32.mrb[4].mxu1 }
 0x103   : > { %v793_v51 = vadd.f32 %v1078_v49, %v1281_v24  ;;  %v809_v52 = vadd.f32 %v1094_v50, %v1281_v24  ;;  %v570_v53 = vpop.f32.mrb[5].mxu0  ;;  %v634_v54 = vpop.f32.mrb[5].mxu1 }
 0x104   : > { %v791_v55 = vadd.f32 %v1281_v24, %v570_v53  ;;  %v807_v56 = vadd.f32 %v1281_v24, %v634_v54  ;;  %v1079_v57 = vpop.f32.mrb[6].mxu0  ;;  %v1095_v58 = vpop.f32.mrb[6].mxu1 }
 0x105   : > { %v825_v59 = vmax.f32 %v793_v51, 0.0  ;;  %v841_v60 = vmax.f32 %v809_v52, 0.0  ;;  %v794_v61 = vadd.f32 %v1079_v57, %v1281_v24  ;;  %v810_v62 = vadd.f32 %v1095_v58, %v1281_v24  ;;  %v573_v63 = vpop.f32.mrb[7].mxu0  ;;  %v637_v0 = vpop.f32.mrb[7].mxu1 }
 0x106   : > { %v823_v1 = vmax.f32 %v791_v55, 0.0  ;;  %v839_v2 = vmax.f32 %v807_v56, 0.0  ;;  %v792_v3 = vadd.f32 %v1281_v24, %v573_v63  ;;  %v808_v4 = vadd.f32 %v1281_v24, %v637_v0 }
 0x107   : > { %857 = vst [vmem:[%s1289_s19 + $0x30] sm:$0xff] %v825_v59  ;;  %873 = vst [vmem:[%s1289_s19 + $0xb0] sm:$0xff] %v841_v60  ;;  %v826_v5 = vmax.f32 %v794_v61, 0.0  ;;  %v842_v6 = vmax.f32 %v810_v62, 0.0 }
 0x108   : > { %855 = vst [vmem:[%s1289_s19 + $0x20] sm:$0xff] %v823_v1  ;;  %871 = vst [vmem:[%s1289_s19 + $0xa0] sm:$0xff] %v839_v2  ;;  %v824_v7 = vmax.f32 %v792_v3, 0.0  ;;  %v840_v8 = vmax.f32 %v808_v4, 0.0 }
 0x109   : > { %858 = vst [vmem:[%s1289_s19 + $0x38] sm:$0xff] %v826_v5  ;;  %874 = vst [vmem:[%s1289_s19 + $0xb8] sm:$0xff] %v842_v6 }
 0x10a   : > { %856 = vst [vmem:[%s1289_s19 + $0x28] sm:$0xff] %v824_v7  ;;  %872 = vst [vmem:[%s1289_s19 + $0xa8] sm:$0xff] %v840_v8  ;;  %v1082_v9 = vpop.f32.mrb[8].mxu0  ;;  %v1098_v10 = vpop.f32.mrb[8].mxu1 }
 0x10b   : > { %v797_v11 = vadd.f32 %v1082_v9, %v1281_v24  ;;  %v813_v12 = vadd.f32 %v1098_v10, %v1281_v24  ;;  %v586_v13 = vpop.f32.mrb[9].mxu0  ;;  %v650_v14 = vpop.f32.mrb[9].mxu1 }
 0x10c   : > { %v795_v15 = vadd.f32 %v1281_v24, %v586_v13  ;;  %v811_v16 = vadd.f32 %v1281_v24, %v650_v14  ;;  %v1083_v17 = vpop.f32.mrb[10].mxu0  ;;  %v1099_v18 = vpop.f32.mrb[10].mxu1 }
 0x10d   : > { %v829_v19 = vmax.f32 %v797_v11, 0.0  ;;  %v845_v20 = vmax.f32 %v813_v12, 0.0  ;;  %v798_v21 = vadd.f32 %v1083_v17, %v1281_v24  ;;  %v814_v22 = vadd.f32 %v1099_v18, %v1281_v24  ;;  %v589_v23 = vpop.f32.mrb[11].mxu0  ;;  %v653_v25 = vpop.f32.mrb[11].mxu1 }
 0x10e   : > { %v827_v26 = vmax.f32 %v795_v15, 0.0  ;;  %v843_v27 = vmax.f32 %v811_v16, 0.0  ;;  %v796_v28 = vadd.f32 %v1281_v24, %v589_v23  ;;  %v812_v29 = vadd.f32 %v1281_v24, %v653_v25 }
 0x10f   : > { %861 = vst [vmem:[%s1289_s19 + $0x50] sm:$0xff] %v829_v19  ;;  %877 = vst [vmem:[%s1289_s19 + $0xd0] sm:$0xff] %v845_v20  ;;  %v830_v30 = vmax.f32 %v798_v21, 0.0  ;;  %v846_v31 = vmax.f32 %v814_v22, 0.0 }
 0x110   : > { %859 = vst [vmem:[%s1289_s19 + $0x40] sm:$0xff] %v827_v26  ;;  %875 = vst [vmem:[%s1289_s19 + $0xc0] sm:$0xff] %v843_v27  ;;  %v828_v32 = vmax.f32 %v796_v28, 0.0  ;;  %v844_v33 = vmax.f32 %v812_v29, 0.0 }
 0x111   : > { %862 = vst [vmem:[%s1289_s19 + $0x58] sm:$0xff] %v830_v30  ;;  %878 = vst [vmem:[%s1289_s19 + $0xd8] sm:$0xff] %v846_v31 }
 0x112   : > { %860 = vst [vmem:[%s1289_s19 + $0x48] sm:$0xff] %v828_v32  ;;  %876 = vst [vmem:[%s1289_s19 + $0xc8] sm:$0xff] %v844_v33  ;;  %v1086_v34 = vpop.f32.mrb[12].mxu0  ;;  %v1102_v35 = vpop.f32.mrb[12].mxu1 }
 0x113   : > { %v801_v36 = vadd.f32 %v1086_v34, %v1281_v24  ;;  %v817_v37 = vadd.f32 %v1102_v35, %v1281_v24  ;;  %v602_v38 = vpop.f32.mrb[13].mxu0  ;;  %v666_v39 = vpop.f32.mrb[13].mxu1 }
 0x114   : > { %v799_v40 = vadd.f32 %v1281_v24, %v602_v38  ;;  %v815_v41 = vadd.f32 %v1281_v24, %v666_v39  ;;  %v1087_v42 = vpop.f32.mrb[14].mxu0  ;;  %v1103_v43 = vpop.f32.mrb[14].mxu1 }
 0x115   : > { %v833_v44 = vmax.f32 %v801_v36, 0.0  ;;  %v849_v45 = vmax.f32 %v817_v37, 0.0  ;;  %v802_v46 = vadd.f32 %v1087_v42, %v1281_v24  ;;  %v818_v47 = vadd.f32 %v1103_v43, %v1281_v24  ;;  %v605_v48 = vpop.f32.mrb[15].mxu0  ;;  %v669_v49 = vpop.f32.mrb[15].mxu1 }
 0x116   : > { %v831_v50 = vmax.f32 %v799_v40, 0.0  ;;  %v847_v51 = vmax.f32 %v815_v41, 0.0  ;;  %v800_v52 = vadd.f32 %v1281_v24, %v605_v48  ;;  %v816_v53 = vadd.f32 %v1281_v24, %v669_v49 }
 0x117   : > { %865 = vst [vmem:[%s1289_s19 + $0x70] sm:$0xff] %v833_v44  ;;  %881 = vst [vmem:[%s1289_s19 + $0xf0] sm:$0xff] %v849_v45  ;;  %v834_v54 = vmax.f32 %v802_v46, 0.0  ;;  %v850_v55 = vmax.f32 %v818_v47, 0.0 }
 0x118   : > { %863 = vst [vmem:[%s1289_s19 + $0x60] sm:$0xff] %v831_v50  ;;  %879 = vst [vmem:[%s1289_s19 + $0xe0] sm:$0xff] %v847_v51  ;;  %v832_v56 = vmax.f32 %v800_v52, 0.0  ;;  %v848_v57 = vmax.f32 %v816_v53, 0.0 }
 0x119   : > { %866 = vst [vmem:[%s1289_s19 + $0x78] sm:$0xff] %v834_v54  ;;  %882 = vst [vmem:[%s1289_s19 + $0xf8] sm:$0xff] %v850_v55 }
 0x11a   : > { %864 = vst [vmem:[%s1289_s19 + $0x68] sm:$0xff] %v832_v56  ;;  %880 = vst [vmem:[%s1289_s19 + $0xe8] sm:$0xff] %v848_v57 }
 0x11b PF: > { %s13_s14 = sadd.s32 1, %s1190_s14   ;;  %s1366_s12 = smov %s1186_s13 }
 0x11c   : > { %p10_p5 = scmp.ge.s32.totalorder %s13_s14, 15   ;;  %s1367_s13 = smov %s1369_s15 }
 0x11e   :  { %12 = sbr.rel (!%p10_p5) target bundleno = 2 (0x2), region = 76 }

// kernel: autoencoder_forward.14
= control target key start
LH: loop header
LB: loop body
LE: loop exit
PB: predicated region body
PF: predicated region fallthrough
CT: control target
= control target key end

     0   :  { %s1457_s12 = smov 0   ;;  %s1459_s13 = smov 0   ;;  %s1650_s0 = inlined_call_operand.vmem [shape: bf16[768,256], index: 0, kind: input, shape index: {}]   ;;  %s1651_s1 = inlined_call_operand.vmem [shape: bf16[256,128], index: 1, kind: input, shape index: {}]   ;;  %s1652_s2 = inlined_call_operand.vmem [shape: f32[1,128], index: 2, kind: input, shape index: {}]   ;;  %s1653_s3 = inlined_call_operand.vmem [shape: f32[768,128], index: 3, kind: output, shape index: {}]  }
   0x1   :  { %s1461_s14 = smov 0  }
   0x2 LB: > { %s32_s15 = sadd.s32 1, %s1431_s13  ;;  %p1139_p0 = scmp.ge.s32.totalorder %s1435_s14, 1  ;;  %s1435_s14 = sphi %s1461_s14, %s13_s14   ;;  %s1431_s13 = sphi %s1459_s13, %s1655_s13   ;;  %s1427_s12 = sphi %s1457_s12, %s1654_s12  }
   0x3   : > { %p34_p1 = scmp.ge.s32.totalorder %s32_s15, 3  ;;  %p191_p2 = scmp.lt.s32.totalorder %s1435_s14, 4 }
   0x5   : > { %s1657_s15 = smov (%p34_p1, %s32_s15), 0  ;;  %p192_p3 = pnand %p1139_p0, %p191_p2 }
   0x6   : > { %v1349_v0 = vld [vmem:[%s1651_s1 + $0x40] sm:$0xff] (!%p192_p3)   ;;  %s1140_s18 = sshll.u32 (!%p192_p3), %s1427_s12, 5  ;;  %v1351_v2 = vld [vmem:[%s1651_s1 + $0x48] sm:$0xff] (!%p192_p3)   ;;  %v1353_v4 = vld [vmem:[%s1651_s1 + $0x50] sm:$0xff] (!%p192_p3)  }
   0x7   : > { %195 = sbr.rel (%p192_p3) target bundleno = 317 (0x13d), region = 32  ;;  %v1350_v1 = vld [vmem:[%s1651_s1] sm:$0xff] (!%p192_p3)   ;;  %1197 = vmatprep.subr.bf16.mxu0 (!%p192_p3), %v1349_v0  ;;  %1309 = vmatprep.subr.bf16.mxu1 (!%p192_p3), %v1349_v0  ;;  %v1352_v3 = vld [vmem:[%s1651_s1 + $0x8] sm:$0xff] (!%p192_p3)   ;;  %p236_p4 = scmp.lt.s32.totalorder (!%p192_p3), %s1140_s18, 95  ;;  %v1354_v5 = vld [vmem:[%s1651_s1 + $0x10] sm:$0xff] (!%p192_p3)  }
   0x8   : > { %1198 = vmatpush3.bf16.msra.mxu0 (!%p192_p3), %v1350_v1  ;;  %1317 = vmatpush3.bf16.msra.mxu1 (!%p192_p3), %v1350_v1  ;;  %v1355_v6 = vld [vmem:[%s1651_s1 + $0x58] sm:$0xff] (!%p192_p3)   ;;  %v1357_v8 = vld [vmem:[%s1651_s1 + $0x60] sm:$0xff] (!%p192_p3)   ;;  %v1359_v10 = vld [vmem:[%s1651_s1 + $0x68] sm:$0xff] (!%p192_p3)  }
   0x9   : > { %1199 = vmatprep.subr.bf16.mxu0 (!%p192_p3), %v1351_v2  ;;  %1310 = vmatprep.subr.bf16.mxu1 (!%p192_p3), %v1351_v2  ;;  %v1356_v7 = vld [vmem:[%s1651_s1 + $0x18] sm:$0xff] (!%p192_p3)   ;;  %v1358_v9 = vld [vmem:[%s1651_s1 + $0x20] sm:$0xff] (!%p192_p3)   ;;  %v1360_v13 = vld [vmem:[%s1651_s1 + $0x28] sm:$0xff] (!%p192_p3)  }
   0xa   : > { %v1361_v14 = vld [vmem:[%s1651_s1 + $0x70] sm:$0xff] (!%p192_p3)   ;;  %v1363_v16 = vld [vmem:[%s1651_s1 + $0x78] sm:$0xff] (!%p192_p3)   ;;  %v1568_v51 = vld [vmem:[%s1652_s2] ss:$0 sm:$0xff] (!%p192_p3) }
   0xb   : > { %v1362_v15 = vld [vmem:[%s1651_s1 + $0x30] sm:$0xff] (!%p192_p3)   ;;  %v1364_v17 = vld [vmem:[%s1651_s1 + $0x38] sm:$0xff] (!%p192_p3)  }
   0xc   : > { %1200 = vmatpush3.bf16.msra.mxu0 (!%p192_p3), %v1352_v3  ;;  %1318 = vmatpush3.bf16.msra.mxu1 (!%p192_p3), %v1352_v3 }
   0xd   : > { %1201 = vmatprep.subr.bf16.mxu0 (!%p192_p3), %v1353_v4  ;;  %1311 = vmatprep.subr.bf16.mxu1 (!%p192_p3), %v1353_v4 }
   0xe   : > { %s1659_s18 = smov (!%p236_p4, %s1140_s18), 95 }
   0xf   : > { %s1196_s6 = sshll.u32 %s1659_s18, 3 }
  0x10   : > { %1202 = vmatpush3.bf16.msra.mxu0 %v1354_v5  ;;  %1319 = vmatpush3.bf16.msra.mxu1 %v1354_v5  ;;  %s1510_s11 = scalar_lea.vmem %s1650_s0, %s1196_s6  ;;  %s1577_s8 = scalar_lea.vmem %s1653_s3, %s1196_s6 }
  0x11   : > { %1203 = vmatprep.subr.bf16.mxu0 %v1355_v6  ;;  %1312 = vmatprep.subr.bf16.mxu1 %v1355_v6  ;;  %v1367_v11 = vld [vmem:[%s1510_s11 + $0x4] ss:$8 sps:$4 sm:$0xff]   ;;  %v1365_v18 = vld [vmem:[%s1510_s11] ss:$8 sps:$4 sm:$0xff]   ;;  %v1371_v20 = vld [vmem:[%s1510_s11 + $0x14] ss:$8 sps:$4 sm:$0xff]  }
  0x12   : > { %v1370_v12 = vld [vmem:[%s1510_s11 + $0x84] ss:$8 sps:$4 sm:$0xff]   ;;  %688 = vmatprep.mubr.bf16.mxu0 %v1367_v11  ;;  %v1368_v19 = vld [vmem:[%s1510_s11 + $0x80] ss:$8 sps:$4 sm:$0xff]   ;;  %v1373_v21 = vld [vmem:[%s1510_s11 + $0x94] ss:$8 sps:$4 sm:$0xff]  }
  0x13   : > { %752 = vmatprep.mubr.bf16.mxu1 %v1370_v12  ;;  %v1375_v22 = vld [vmem:[%s1510_s11 + $0x10] ss:$8 sps:$4 sm:$0xff]   ;;  %v1377_v24 = vld [vmem:[%s1510_s11 + $0x24] ss:$8 sps:$4 sm:$0xff]   ;;  %v1381_v26 = vld [vmem:[%s1510_s11 + $0x20] ss:$8 sps:$4 sm:$0xff]  }
  0x14   : > { %1204 = vmatpush3.bf16.msra.mxu0 %v1356_v7  ;;  %1320 = vmatpush3.bf16.msra.mxu1 %v1356_v7  ;;  %v1376_v23 = vld [vmem:[%s1510_s11 + $0x90] ss:$8 sps:$4 sm:$0xff]   ;;  %v1379_v25 = vld [vmem:[%s1510_s11 + $0xa4] ss:$8 sps:$4 sm:$0xff]   ;;  %v1382_v27 = vld [vmem:[%s1510_s11 + $0xa0] ss:$8 sps:$4 sm:$0xff]  }
  0x15   : > { %1205 = vmatprep.subr.bf16.mxu0 %v1357_v8  ;;  %1313 = vmatprep.subr.bf16.mxu1 %v1357_v8  ;;  %v1383_v28 = vld [vmem:[%s1510_s11 + $0x34] ss:$8 sps:$4 sm:$0xff]   ;;  %v1387_v30 = vld [vmem:[%s1510_s11 + $0x30] ss:$8 sps:$4 sm:$0xff]   ;;  %v1389_v32 = vld [vmem:[%s1510_s11 + $0x44] ss:$8 sps:$4 sm:$0xff]  }
  0x16   : > { %v1385_v29 = vld [vmem:[%s1510_s11 + $0xb4] ss:$8 sps:$4 sm:$0xff]   ;;  %v1388_v31 = vld [vmem:[%s1510_s11 + $0xb0] ss:$8 sps:$4 sm:$0xff]   ;;  %v1391_v33 = vld [vmem:[%s1510_s11 + $0xc4] ss:$8 sps:$4 sm:$0xff]  }
  0x17   : > { %v1393_v34 = vld [vmem:[%s1510_s11 + $0x40] ss:$8 sps:$4 sm:$0xff]   ;;  %v1395_v36 = vld [vmem:[%s1510_s11 + $0x54] ss:$8 sps:$4 sm:$0xff]   ;;  %v1399_v38 = vld [vmem:[%s1510_s11 + $0x50] ss:$8 sps:$4 sm:$0xff]  }
  0x18   : > { %1206 = vmatpush3.bf16.msra.mxu0 %v1358_v9  ;;  %1321 = vmatpush3.bf16.msra.mxu1 %v1358_v9  ;;  %v1394_v35 = vld [vmem:[%s1510_s11 + $0xc0] ss:$8 sps:$4 sm:$0xff]   ;;  %v1397_v37 = vld [vmem:[%s1510_s11 + $0xd4] ss:$8 sps:$4 sm:$0xff]   ;;  %v1400_v39 = vld [vmem:[%s1510_s11 + $0xd0] ss:$8 sps:$4 sm:$0xff]  }
  0x19   : > { %1207 = vmatprep.subr.bf16.mxu0 %v1359_v10  ;;  %1314 = vmatprep.subr.bf16.mxu1 %v1359_v10  ;;  %v1401_v40 = vld [vmem:[%s1510_s11 + $0x64] ss:$8 sps:$4 sm:$0xff]   ;;  %v1405_v42 = vld [vmem:[%s1510_s11 + $0x60] ss:$8 sps:$4 sm:$0xff]   ;;  %v1407_v44 = vld [vmem:[%s1510_s11 + $0x74] ss:$8 sps:$4 sm:$0xff]  }
  0x1a   : > { %v1403_v41 = vld [vmem:[%s1510_s11 + $0xe4] ss:$8 sps:$4 sm:$0xff]   ;;  %v1406_v43 = vld [vmem:[%s1510_s11 + $0xe0] ss:$8 sps:$4 sm:$0xff]   ;;  %v1409_v45 = vld [vmem:[%s1510_s11 + $0xf4] ss:$8 sps:$4 sm:$0xff]  }
  0x1b   : > { %v1411_v46 = vld [vmem:[%s1510_s11 + $0x70] ss:$8 sps:$4 sm:$0xff]  }
  0x1c   : > { %1208 = vmatpush3.bf16.msra.mxu0 %v1360_v13  ;;  %1322 = vmatpush3.bf16.msra.mxu1 %v1360_v13  ;;  %v1412_v47 = vld [vmem:[%s1510_s11 + $0xf0] ss:$8 sps:$4 sm:$0xff]  }
  0x1d   : > { %1209 = vmatprep.subr.bf16.mxu0 %v1361_v14  ;;  %1315 = vmatprep.subr.bf16.mxu1 %v1361_v14 }
  0x20   : > { %1210 = vmatpush3.bf16.msra.mxu0 %v1362_v15  ;;  %1323 = vmatpush3.bf16.msra.mxu1 %v1362_v15 }
  0x21   : > { %1211 = vmatprep.subr.bf16.mxu0 %v1363_v16  ;;  %1316 = vmatprep.subr.bf16.mxu1 %v1363_v16 }
  0x24   : > { %1212 = vmatpush3.bf16.msra.mxu0 %v1364_v17  ;;  %1324 = vmatpush3.bf16.msra.mxu1 %v1364_v17 }
  0x27   : > { %689 = vmatmul.mubr.bf16.vlgmr.msra.gmra.mrb[0].mxu0 %v1365_v18  ;;  %753 = vmatmul.mubr.bf16.vlgmr.msra.gmra.mrb[0].mxu1 %v1368_v19 }
  0x28   : > { %696 = vmatprep.mubr.bf16.mxu0 %v1371_v20  ;;  %760 = vmatprep.mubr.bf16.mxu1 %v1373_v21 }
  0x2f   : > { %697 = vmatmul.mubr.bf16.gmra.mrb[4].mxu0 %v1375_v22  ;;  %761 = vmatmul.mubr.bf16.gmra.mrb[4].mxu1 %v1376_v23 }
  0x30   : > { %704 = vmatprep.mubr.bf16.mxu0 %v1377_v24  ;;  %768 = vmatprep.mubr.bf16.mxu1 %v1379_v25 }
  0x37   : > { %705 = vmatmul.mubr.bf16.gmra.mrb[8].mxu0 %v1381_v26  ;;  %769 = vmatmul.mubr.bf16.gmra.mrb[8].mxu1 %v1382_v27 }
  0x38   : > { %712 = vmatprep.mubr.bf16.mxu0 %v1383_v28  ;;  %776 = vmatprep.mubr.bf16.mxu1 %v1385_v29 }
  0x3f   : > { %713 = vmatmul.mubr.bf16.gmra.mrb[12].mxu0 %v1387_v30  ;;  %777 = vmatmul.mubr.bf16.gmra.mrb[12].mxu1 %v1388_v31 }
  0x40   : > { %720 = vmatprep.mubr.bf16.mxu0 %v1389_v32  ;;  %784 = vmatprep.mubr.bf16.mxu1 %v1391_v33 }
  0x47   : > { %721 = vmatmul.mubr.bf16.gmra.mrb[16].mxu0 %v1393_v34  ;;  %785 = vmatmul.mubr.bf16.gmra.mrb[16].mxu1 %v1394_v35 }
  0x48   : > { %728 = vmatprep.mubr.bf16.mxu0 %v1395_v36  ;;  %792 = vmatprep.mubr.bf16.mxu1 %v1397_v37 }
  0x4f   : > { %729 = vmatmul.mubr.bf16.gmra.mrb[20].mxu0 %v1399_v38  ;;  %793 = vmatmul.mubr.bf16.gmra.mrb[20].mxu1 %v1400_v39 }
  0x50   : > { %736 = vmatprep.mubr.bf16.mxu0 %v1401_v40  ;;  %800 = vmatprep.mubr.bf16.mxu1 %v1403_v41 }
  0x57   : > { %737 = vmatmul.mubr.bf16.gmra.mrb[24].mxu0 %v1405_v42  ;;  %801 = vmatmul.mubr.bf16.gmra.mrb[24].mxu1 %v1406_v43 }
  0x58   : > { %744 = vmatprep.mubr.bf16.mxu0 %v1407_v44  ;;  %808 = vmatprep.mubr.bf16.mxu1 %v1409_v45 }
  0x5f   : > { %745 = vmatmul.mubr.bf16.gmra.mrb[28].mxu0 %v1411_v46  ;;  %809 = vmatmul.mubr.bf16.gmra.mrb[28].mxu1 %v1412_v47 }
  0xfa   : > { %v1213_v48 = vpop.f32.mrb[0].mxu0  ;;  %v1261_v49 = vpop.f32.mrb[0].mxu1 }
  0xfb   : > { %v1214_v50 = vpop.f32.mrb[1].mxu0  ;;  %v1262_v52 = vpop.f32.mrb[1].mxu1 }
  0xfc   : > { %v1215_v53 = vadd.f32 %v1214_v50, %v1213_v48  ;;  %v1263_v54 = vadd.f32 %v1262_v52, %v1261_v49  ;;  %v1216_v55 = vpop.f32.mrb[2].mxu0  ;;  %v1264_v56 = vpop.f32.mrb[2].mxu1 }
  0xfd   : > { %v1217_v57 = vpop.f32.mrb[3].mxu0  ;;  %v1265_v58 = vpop.f32.mrb[3].mxu1 }
  0xfe   : > { %v923_v59 = vadd.f32 %v1215_v53, %v1568_v51  ;;  %v939_v60 = vadd.f32 %v1263_v54, %v1568_v51  ;;  %v1218_v61 = vadd.f32 %v1217_v57, %v1216_v55  ;;  %v1266_v62 = vadd.f32 %v1265_v58, %v1264_v56 }
 0x100   : > { %v955_v63 = vmax.f32 %v923_v59, 0.0  ;;  %v971_v0 = vmax.f32 %v939_v60, 0.0  ;;  %v924_v1 = vadd.f32 %v1218_v61, %v1568_v51  ;;  %v940_v2 = vadd.f32 %v1266_v62, %v1568_v51 }
 0x102   : > { %987 = vst [vmem:[%s1577_s8] sm:$0xff] %v955_v63  ;;  %1003 = vst [vmem:[%s1577_s8 + $0x80] sm:$0xff] %v971_v0  ;;  %v956_v3 = vmax.f32 %v924_v1, 0.0  ;;  %v972_v4 = vmax.f32 %v940_v2, 0.0  ;;  %v1219_v5 = vpop.f32.mrb[4].mxu0  ;;  %v1267_v6 = vpop.f32.mrb[4].mxu1 }
 0x103   : > { %v1220_v7 = vpop.f32.mrb[5].mxu0  ;;  %v1268_v8 = vpop.f32.mrb[5].mxu1 }
 0x104   : > { %988 = vst [vmem:[%s1577_s8 + $0x8] sm:$0xff] %v956_v3  ;;  %1004 = vst [vmem:[%s1577_s8 + $0x88] sm:$0xff] %v972_v4  ;;  %v1221_v9 = vadd.f32 %v1220_v7, %v1219_v5  ;;  %v1269_v10 = vadd.f32 %v1268_v8, %v1267_v6  ;;  %v1222_v11 = vpop.f32.mrb[6].mxu0  ;;  %v1270_v12 = vpop.f32.mrb[6].mxu1 }
 0x105   : > { %v1223_v13 = vpop.f32.mrb[7].mxu0  ;;  %v1271_v14 = vpop.f32.mrb[7].mxu1 }
 0x106   : > { %v925_v15 = vadd.f32 %v1221_v9, %v1568_v51  ;;  %v941_v16 = vadd.f32 %v1269_v10, %v1568_v51  ;;  %v1224_v17 = vadd.f32 %v1223_v13, %v1222_v11  ;;  %v1272_v18 = vadd.f32 %v1271_v14, %v1270_v12 }
 0x108   : > { %v957_v19 = vmax.f32 %v925_v15, 0.0  ;;  %v973_v20 = vmax.f32 %v941_v16, 0.0  ;;  %v926_v21 = vadd.f32 %v1224_v17, %v1568_v51  ;;  %v942_v22 = vadd.f32 %v1272_v18, %v1568_v51 }
 0x10a   : > { %989 = vst [vmem:[%s1577_s8 + $0x10] sm:$0xff] %v957_v19  ;;  %1005 = vst [vmem:[%s1577_s8 + $0x90] sm:$0xff] %v973_v20  ;;  %v958_v23 = vmax.f32 %v926_v21, 0.0  ;;  %v974_v24 = vmax.f32 %v942_v22, 0.0  ;;  %v1225_v25 = vpop.f32.mrb[8].mxu0  ;;  %v1273_v26 = vpop.f32.mrb[8].mxu1 }
 0x10b   : > { %v1226_v27 = vpop.f32.mrb[9].mxu0  ;;  %v1274_v28 = vpop.f32.mrb[9].mxu1 }
 0x10c   : > { %990 = vst [vmem:[%s1577_s8 + $0x18] sm:$0xff] %v958_v23  ;;  %1006 = vst [vmem:[%s1577_s8 + $0x98] sm:$0xff] %v974_v24  ;;  %v1227_v29 = vadd.f32 %v1226_v27, %v1225_v25  ;;  %v1275_v30 = vadd.f32 %v1274_v28, %v1273_v26  ;;  %v1228_v31 = vpop.f32.mrb[10].mxu0  ;;  %v1276_v32 = vpop.f32.mrb[10].mxu1 }
 0x10d   : > { %v1229_v33 = vpop.f32.mrb[11].mxu0  ;;  %v1277_v34 = vpop.f32.mrb[11].mxu1 }
 0x10e   : > { %v927_v35 = vadd.f32 %v1227_v29, %v1568_v51  ;;  %v943_v36 = vadd.f32 %v1275_v30, %v1568_v51  ;;  %v1230_v37 = vadd.f32 %v1229_v33, %v1228_v31  ;;  %v1278_v38 = vadd.f32 %v1277_v34, %v1276_v32 }
 0x110   : > { %v959_v39 = vmax.f32 %v927_v35, 0.0  ;;  %v975_v40 = vmax.f32 %v943_v36, 0.0  ;;  %v928_v41 = vadd.f32 %v1230_v37, %v1568_v51  ;;  %v944_v42 = vadd.f32 %v1278_v38, %v1568_v51 }
 0x112   : > { %991 = vst [vmem:[%s1577_s8 + $0x20] sm:$0xff] %v959_v39  ;;  %1007 = vst [vmem:[%s1577_s8 + $0xa0] sm:$0xff] %v975_v40  ;;  %v960_v43 = vmax.f32 %v928_v41, 0.0  ;;  %v976_v44 = vmax.f32 %v944_v42, 0.0  ;;  %v1231_v45 = vpop.f32.mrb[12].mxu0  ;;  %v1279_v46 = vpop.f32.mrb[12].mxu1 }
 0x113   : > { %v1232_v47 = vpop.f32.mrb[13].mxu0  ;;  %v1280_v48 = vpop.f32.mrb[13].mxu1 }
 0x114   : > { %992 = vst [vmem:[%s1577_s8 + $0x28] sm:$0xff] %v960_v43  ;;  %1008 = vst [vmem:[%s1577_s8 + $0xa8] sm:$0xff] %v976_v44  ;;  %v1233_v49 = vadd.f32 %v1232_v47, %v1231_v45  ;;  %v1281_v50 = vadd.f32 %v1280_v48, %v1279_v46  ;;  %v1234_v52 = vpop.f32.mrb[14].mxu0  ;;  %v1282_v53 = vpop.f32.mrb[14].mxu1 }
 0x115   : > { %v1235_v54 = vpop.f32.mrb[15].mxu0  ;;  %v1283_v55 = vpop.f32.mrb[15].mxu1 }
 0x116   : > { %v929_v56 = vadd.f32 %v1233_v49, %v1568_v51  ;;  %v945_v57 = vadd.f32 %v1281_v50, %v1568_v51  ;;  %v1236_v58 = vadd.f32 %v1235_v54, %v1234_v52  ;;  %v1284_v59 = vadd.f32 %v1283_v55, %v1282_v53 }
 0x118   : > { %v961_v60 = vmax.f32 %v929_v56, 0.0  ;;  %v977_v61 = vmax.f32 %v945_v57, 0.0  ;;  %v930_v62 = vadd.f32 %v1236_v58, %v1568_v51  ;;  %v946_v63 = vadd.f32 %v1284_v59, %v1568_v51 }
 0x11a   : > { %993 = vst [vmem:[%s1577_s8 + $0x30] sm:$0xff] %v961_v60  ;;  %1009 = vst [vmem:[%s1577_s8 + $0xb0] sm:$0xff] %v977_v61  ;;  %v962_v0 = vmax.f32 %v930_v62, 0.0  ;;  %v978_v1 = vmax.f32 %v946_v63, 0.0  ;;  %v1237_v2 = vpop.f32.mrb[16].mxu0  ;;  %v1285_v3 = vpop.f32.mrb[16].mxu1 }
 0x11b   : > { %v1238_v4 = vpop.f32.mrb[17].mxu0  ;;  %v1286_v5 = vpop.f32.mrb[17].mxu1 }
 0x11c   : > { %994 = vst [vmem:[%s1577_s8 + $0x38] sm:$0xff] %v962_v0  ;;  %1010 = vst [vmem:[%s1577_s8 + $0xb8] sm:$0xff] %v978_v1  ;;  %v1239_v6 = vadd.f32 %v1238_v4, %v1237_v2  ;;  %v1287_v7 = vadd.f32 %v1286_v5, %v1285_v3  ;;  %v1240_v8 = vpop.f32.mrb[18].mxu0  ;;  %v1288_v9 = vpop.f32.mrb[18].mxu1 }
 0x11d   : > { %v1241_v10 = vpop.f32.mrb[19].mxu0  ;;  %v1289_v11 = vpop.f32.mrb[19].mxu1 }
 0x11e   : > { %v931_v12 = vadd.f32 %v1239_v6, %v1568_v51  ;;  %v947_v13 = vadd.f32 %v1287_v7, %v1568_v51  ;;  %v1242_v14 = vadd.f32 %v1241_v10, %v1240_v8  ;;  %v1290_v15 = vadd.f32 %v1289_v11, %v1288_v9 }
 0x120   : > { %v963_v16 = vmax.f32 %v931_v12, 0.0  ;;  %v979_v17 = vmax.f32 %v947_v13, 0.0  ;;  %v932_v18 = vadd.f32 %v1242_v14, %v1568_v51  ;;  %v948_v19 = vadd.f32 %v1290_v15, %v1568_v51 }
 0x122   : > { %995 = vst [vmem:[%s1577_s8 + $0x40] sm:$0xff] %v963_v16  ;;  %1011 = vst [vmem:[%s1577_s8 + $0xc0] sm:$0xff] %v979_v17  ;;  %v964_v20 = vmax.f32 %v932_v18, 0.0  ;;  %v980_v21 = vmax.f32 %v948_v19, 0.0  ;;  %v1243_v22 = vpop.f32.mrb[20].mxu0  ;;  %v1291_v23 = vpop.f32.mrb[20].mxu1 }
 0x123   : > { %v1244_v24 = vpop.f32.mrb[21].mxu0  ;;  %v1292_v25 = vpop.f32.mrb[21].mxu1 }
 0x124   : > { %996 = vst [vmem:[%s1577_s8 + $0x48] sm:$0xff] %v964_v20  ;;  %1012 = vst [vmem:[%s1577_s8 + $0xc8] sm:$0xff] %v980_v21  ;;  %v1245_v26 = vadd.f32 %v1244_v24, %v1243_v22  ;;  %v1293_v27 = vadd.f32 %v1292_v25, %v1291_v23  ;;  %v1246_v28 = vpop.f32.mrb[22].mxu0  ;;  %v1294_v29 = vpop.f32.mrb[22].mxu1 }
 0x125   : > { %v1247_v30 = vpop.f32.mrb[23].mxu0  ;;  %v1295_v31 = vpop.f32.mrb[23].mxu1 }
 0x126   : > { %v933_v32 = vadd.f32 %v1245_v26, %v1568_v51  ;;  %v949_v33 = vadd.f32 %v1293_v27, %v1568_v51  ;;  %v1248_v34 = vadd.f32 %v1247_v30, %v1246_v28  ;;  %v1296_v35 = vadd.f32 %v1295_v31, %v1294_v29 }
 0x128   : > { %v965_v36 = vmax.f32 %v933_v32, 0.0  ;;  %v981_v37 = vmax.f32 %v949_v33, 0.0  ;;  %v934_v38 = vadd.f32 %v1248_v34, %v1568_v51  ;;  %v950_v39 = vadd.f32 %v1296_v35, %v1568_v51 }
 0x12a   : > { %997 = vst [vmem:[%s1577_s8 + $0x50] sm:$0xff] %v965_v36  ;;  %1013 = vst [vmem:[%s1577_s8 + $0xd0] sm:$0xff] %v981_v37  ;;  %v966_v40 = vmax.f32 %v934_v38, 0.0  ;;  %v982_v41 = vmax.f32 %v950_v39, 0.0  ;;  %v1249_v42 = vpop.f32.mrb[24].mxu0  ;;  %v1297_v43 = vpop.f32.mrb[24].mxu1 }
 0x12b   : > { %v1250_v44 = vpop.f32.mrb[25].mxu0  ;;  %v1298_v45 = vpop.f32.mrb[25].mxu1 }
 0x12c   : > { %998 = vst [vmem:[%s1577_s8 + $0x58] sm:$0xff] %v966_v40  ;;  %1014 = vst [vmem:[%s1577_s8 + $0xd8] sm:$0xff] %v982_v41  ;;  %v1251_v46 = vadd.f32 %v1250_v44, %v1249_v42  ;;  %v1299_v47 = vadd.f32 %v1298_v45, %v1297_v43  ;;  %v1252_v48 = vpop.f32.mrb[26].mxu0  ;;  %v1300_v49 = vpop.f32.mrb[26].mxu1 }
 0x12d   : > { %v1253_v50 = vpop.f32.mrb[27].mxu0  ;;  %v1301_v52 = vpop.f32.mrb[27].mxu1 }
 0x12e   : > { %v935_v53 = vadd.f32 %v1251_v46, %v1568_v51  ;;  %v951_v54 = vadd.f32 %v1299_v47, %v1568_v51  ;;  %v1254_v55 = vadd.f32 %v1253_v50, %v1252_v48  ;;  %v1302_v56 = vadd.f32 %v1301_v52, %v1300_v49 }
 0x130   : > { %v967_v57 = vmax.f32 %v935_v53, 0.0  ;;  %v983_v58 = vmax.f32 %v951_v54, 0.0  ;;  %v936_v59 = vadd.f32 %v1254_v55, %v1568_v51  ;;  %v952_v60 = vadd.f32 %v1302_v56, %v1568_v51 }
 0x132   : > { %999 = vst [vmem:[%s1577_s8 + $0x60] sm:$0xff] %v967_v57  ;;  %1015 = vst [vmem:[%s1577_s8 + $0xe0] sm:$0xff] %v983_v58  ;;  %v968_v61 = vmax.f32 %v936_v59, 0.0  ;;  %v984_v62 = vmax.f32 %v952_v60, 0.0  ;;  %v1255_v63 = vpop.f32.mrb[28].mxu0  ;;  %v1303_v0 = vpop.f32.mrb[28].mxu1 }
 0x133   : > { %v1256_v1 = vpop.f32.mrb[29].mxu0  ;;  %v1304_v2 = vpop.f32.mrb[29].mxu1 }
 0x134   : > { %1000 = vst [vmem:[%s1577_s8 + $0x68] sm:$0xff] %v968_v61  ;;  %1016 = vst [vmem:[%s1577_s8 + $0xe8] sm:$0xff] %v984_v62  ;;  %v1257_v3 = vadd.f32 %v1256_v1, %v1255_v63  ;;  %v1305_v4 = vadd.f32 %v1304_v2, %v1303_v0  ;;  %v1258_v5 = vpop.f32.mrb[30].mxu0  ;;  %v1306_v6 = vpop.f32.mrb[30].mxu1 }
 0x135   : > { %v1259_v7 = vpop.f32.mrb[31].mxu0  ;;  %v1307_v8 = vpop.f32.mrb[31].mxu1 }
 0x136   : > { %v937_v9 = vadd.f32 %v1257_v3, %v1568_v51  ;;  %v953_v10 = vadd.f32 %v1305_v4, %v1568_v51  ;;  %v1260_v11 = vadd.f32 %v1259_v7, %v1258_v5  ;;  %v1308_v12 = vadd.f32 %v1307_v8, %v1306_v6 }
 0x138   : > { %v969_v13 = vmax.f32 %v937_v9, 0.0  ;;  %v985_v14 = vmax.f32 %v953_v10, 0.0  ;;  %v938_v15 = vadd.f32 %v1260_v11, %v1568_v51  ;;  %v954_v16 = vadd.f32 %v1308_v12, %v1568_v51 }
 0x13a   : > { %1001 = vst [vmem:[%s1577_s8 + $0x70] sm:$0xff] %v969_v13  ;;  %1017 = vst [vmem:[%s1577_s8 + $0xf0] sm:$0xff] %v985_v14  ;;  %v970_v17 = vmax.f32 %v938_v15, 0.0  ;;  %v986_v18 = vmax.f32 %v954_v16, 0.0 }
 0x13c   : > { %1002 = vst [vmem:[%s1577_s8 + $0x78] sm:$0xff] %v970_v17  ;;  %1018 = vst [vmem:[%s1577_s8 + $0xf8] sm:$0xff] %v986_v18 }
 0x13d PF: > { %s13_s14 = sadd.s32 1, %s1435_s14   ;;  %s1654_s12 = smov %s1431_s13 }
 0x13e   : > { %p10_p5 = scmp.ge.s32.totalorder %s13_s14, 5   ;;  %s1655_s13 = smov %s1657_s15 }
 0x140   :  { %12 = sbr.rel (!%p10_p5) target bundleno = 2 (0x2), region = 76 }

// kernel: autoencoder_forward.15
= control target key start
LH: loop header
LB: loop body
LE: loop exit
PB: predicated region body
PF: predicated region fallthrough
CT: control target
= control target key end

     0   :  { %s1897_s12 = smov 0   ;;  %s1899_s13 = smov 0   ;;  %s2151_s0 = inlined_call_operand.vmem [shape: bf16[768,384], index: 0, kind: input, shape index: {}]   ;;  %s2152_s1 = inlined_call_operand.vmem [shape: bf16[384,128], index: 1, kind: input, shape index: {}]   ;;  %s2153_s2 = inlined_call_operand.vmem [shape: f32[1,128], index: 2, kind: input, shape index: {}]   ;;  %s2154_s3 = inlined_call_operand.vmem [shape: f32[768,128], index: 3, kind: output, shape index: {}]  }
   0x1   :  { %s1901_s14 = smov 0  }
   0x2 LB: > { %s32_s15 = sadd.s32 1, %s1871_s13  ;;  %p1460_p0 = scmp.ge.s32.totalorder %s1875_s14, 1  ;;  %s1875_s14 = sphi %s1901_s14, %s13_s14   ;;  %s1871_s13 = sphi %s1899_s13, %s2156_s13   ;;  %s1867_s12 = sphi %s1897_s12, %s2155_s12  }
   0x3   : > { %p34_p1 = scmp.ge.s32.totalorder %s32_s15, 3  ;;  %p191_p2 = scmp.lt.s32.totalorder %s1875_s14, 4 }
   0x5   : > { %s2158_s15 = smov (%p34_p1, %s32_s15), 0  ;;  %p192_p3 = pnand %p1460_p0, %p191_p2 }
   0x6   : > { %v1765_v0 = vld [vmem:[%s2152_s1 + $0x40] sm:$0xff] (!%p192_p3)   ;;  %s1461_s18 = sshll.u32 (!%p192_p3), %s1867_s12, 5  ;;  %v1767_v2 = vld [vmem:[%s2152_s1 + $0x48] sm:$0xff] (!%p192_p3)   ;;  %v1769_v4 = vld [vmem:[%s2152_s1 + $0x50] sm:$0xff] (!%p192_p3)  }
   0x7   : > { %195 = sbr.rel (%p192_p3) target bundleno = 349 (0x15d), region = 32  ;;  %v1766_v1 = vld [vmem:[%s2152_s1] sm:$0xff] (!%p192_p3)   ;;  %1540 = vmatprep.subr.bf16.mxu0 (!%p192_p3), %v1765_v0  ;;  %1724 = vmatprep.subr.bf16.mxu1 (!%p192_p3), %v1765_v0  ;;  %p236_p4 = scmp.lt.s32.totalorder (!%p192_p3), %s1461_s18, 95  ;;  %v1768_v3 = vld [vmem:[%s2152_s1 + $0x8] sm:$0xff] (!%p192_p3)   ;;  %v1770_v5 = vld [vmem:[%s2152_s1 + $0x10] sm:$0xff] (!%p192_p3)  }
   0x8   : > { %1541 = vmatpush3.bf16.msra.mxu0 (!%p192_p3), %v1766_v1  ;;  %1732 = vmatpush3.bf16.msra.mxu1 (!%p192_p3), %v1766_v1  ;;  %v1771_v6 = vld [vmem:[%s2152_s1 + $0x58] sm:$0xff] (!%p192_p3)   ;;  %v1773_v8 = vld [vmem:[%s2152_s1 + $0x60] sm:$0xff] (!%p192_p3)   ;;  %v1775_v10 = vld [vmem:[%s2152_s1 + $0x68] sm:$0xff] (!%p192_p3)  }
   0x9   : > { %1542 = vmatprep.subr.bf16.mxu0 (!%p192_p3), %v1767_v2  ;;  %1725 = vmatprep.subr.bf16.mxu1 (!%p192_p3), %v1767_v2  ;;  %v1772_v7 = vld [vmem:[%s2152_s1 + $0x18] sm:$0xff] (!%p192_p3)   ;;  %v1774_v9 = vld [vmem:[%s2152_s1 + $0x20] sm:$0xff] (!%p192_p3)   ;;  %v1776_v13 = vld [vmem:[%s2152_s1 + $0x28] sm:$0xff] (!%p192_p3)  }
   0xa   : > { %v1777_v14 = vld [vmem:[%s2152_s1 + $0x70] sm:$0xff] (!%p192_p3)   ;;  %v1779_v16 = vld [vmem:[%s2152_s1 + $0x78] sm:$0xff] (!%p192_p3)   ;;  %v1787_v18 = vld [vmem:[%s2152_s1 + $0x80] sm:$0xff] (!%p192_p3)  }
   0xb   : > { %v1778_v15 = vld [vmem:[%s2152_s1 + $0x30] sm:$0xff] (!%p192_p3)   ;;  %v1780_v17 = vld [vmem:[%s2152_s1 + $0x38] sm:$0xff] (!%p192_p3)   ;;  %v1788_v22 = vld [vmem:[%s2152_s1 + $0x88] sm:$0xff] (!%p192_p3)  }
   0xc   : > { %1543 = vmatpush3.bf16.msra.mxu0 (!%p192_p3), %v1768_v3  ;;  %1733 = vmatpush3.bf16.msra.mxu1 (!%p192_p3), %v1768_v3  ;;  %v1795_v25 = vld [vmem:[%s2152_s1 + $0x90] sm:$0xff] (!%p192_p3)   ;;  %v1796_v27 = vld [vmem:[%s2152_s1 + $0x98] sm:$0xff] (!%p192_p3)   ;;  %v1803_v30 = vld [vmem:[%s2152_s1 + $0xa0] sm:$0xff] (!%p192_p3)  }
   0xd   : > { %1544 = vmatprep.subr.bf16.mxu0 (!%p192_p3), %v1769_v4  ;;  %1726 = vmatprep.subr.bf16.mxu1 (!%p192_p3), %v1769_v4  ;;  %v1804_v33 = vld [vmem:[%s2152_s1 + $0xa8] sm:$0xff] (!%p192_p3)   ;;  %v1811_v36 = vld [vmem:[%s2152_s1 + $0xb0] sm:$0xff] (!%p192_p3)   ;;  %v1812_v40 = vld [vmem:[%s2152_s1 + $0xb8] sm:$0xff] (!%p192_p3)  }
   0xe   : > { %s2160_s18 = smov (!%p236_p4, %s1461_s18), 95 }
   0xf   : > { %s1740_s4 = smul.u32 12, %s2160_s18 }
  0x10   : > { %1545 = vmatpush3.bf16.msra.mxu0 %v1770_v5  ;;  %1734 = vmatpush3.bf16.msra.mxu1 %v1770_v5 }
  0x11   : > { %1546 = vmatprep.subr.bf16.mxu0 %v1771_v6  ;;  %1727 = vmatprep.subr.bf16.mxu1 %v1771_v6  ;;  %s1948_s11 = scalar_lea.vmem %s2151_s0, %s1740_s4 }
  0x12   : > { %v1783_v11 = vld [vmem:[%s1948_s11 + $0x4] ss:$12 sps:$4 sm:$0xff]   ;;  %v1781_v19 = vld [vmem:[%s1948_s11] ss:$12 sps:$4 sm:$0xff]   ;;  %v1789_v21 = vld [vmem:[%s1948_s11 + $0x1c] ss:$12 sps:$4 sm:$0xff]  }
  0x13   : > { %v1786_v12 = vld [vmem:[%s1948_s11 + $0x124] ss:$12 sps:$4 sm:$0xff]   ;;  %880 = vmatprep.mubr.bf16.mxu0 %v1783_v11  ;;  %v1784_v20 = vld [vmem:[%s1948_s11 + $0x120] ss:$12 sps:$4 sm:$0xff]   ;;  %v1791_v23 = vld [vmem:[%s1948_s11 + $0x13c] ss:$12 sps:$4 sm:$0xff]  }
  0x14   : > { %1547 = vmatpush3.bf16.msra.mxu0 %v1772_v7  ;;  %1735 = vmatpush3.bf16.msra.mxu1 %v1772_v7  ;;  %v1793_v24 = vld [vmem:[%s1948_s11 + $0x18] ss:$12 sps:$4 sm:$0xff]   ;;  %v1797_v28 = vld [vmem:[%s1948_s11 + $0x34] ss:$12 sps:$4 sm:$0xff]   ;;  %v1801_v31 = vld [vmem:[%s1948_s11 + $0x30] ss:$12 sps:$4 sm:$0xff]  }
  0x15   : > { %1548 = vmatprep.subr.bf16.mxu0 %v1773_v8  ;;  %1728 = vmatprep.subr.bf16.mxu1 %v1773_v8  ;;  %v1794_v26 = vld [vmem:[%s1948_s11 + $0x138] ss:$12 sps:$4 sm:$0xff]   ;;  %v1799_v29 = vld [vmem:[%s1948_s11 + $0x154] ss:$12 sps:$4 sm:$0xff]   ;;  %v1802_v32 = vld [vmem:[%s1948_s11 + $0x150] ss:$12 sps:$4 sm:$0xff]  }
  0x16   : > { %976 = vmatprep.mubr.bf16.mxu1 %v1786_v12  ;;  %v1805_v34 = vld [vmem:[%s1948_s11 + $0x4c] ss:$12 sps:$4 sm:$0xff]   ;;  %v1809_v37 = vld [vmem:[%s1948_s11 + $0x48] ss:$12 sps:$4 sm:$0xff]   ;;  %v1813_v39 = vld [vmem:[%s1948_s11 + $0x64] ss:$12 sps:$4 sm:$0xff]  }
  0x17   : > { %v1807_v35 = vld [vmem:[%s1948_s11 + $0x16c] ss:$12 sps:$4 sm:$0xff]   ;;  %v1810_v38 = vld [vmem:[%s1948_s11 + $0x168] ss:$12 sps:$4 sm:$0xff]   ;;  %v1822_v47 = vld [vmem:[%s1948_s11 + $0x50] ss:$12 sps:$4 sm:$0xff]  }
  0x18   : > { %1549 = vmatpush3.bf16.msra.mxu0 %v1774_v9  ;;  %1736 = vmatpush3.bf16.msra.mxu1 %v1774_v9  ;;  %v1815_v41 = vld [vmem:[%s1948_s11 + $0x8] ss:$12 sps:$4 sm:$0xff]   ;;  %v1816_v42 = vld [vmem:[%s1948_s11 + $0x60] ss:$12 sps:$4 sm:$0xff]   ;;  %v1820_v45 = vld [vmem:[%s1948_s11 + $0x38] ss:$12 sps:$4 sm:$0xff]  }
  0x19   : > { %1550 = vmatprep.subr.bf16.mxu0 %v1775_v10  ;;  %1729 = vmatprep.subr.bf16.mxu1 %v1775_v10  ;;  %v1817_v43 = vld [vmem:[%s1948_s11 + $0x20] ss:$12 sps:$4 sm:$0xff]   ;;  %v1818_v44 = vld [vmem:[%s1948_s11 + $0x7c] ss:$12 sps:$4 sm:$0xff]   ;;  %v1821_v46 = vld [vmem:[%s1948_s11 + $0x78] ss:$12 sps:$4 sm:$0xff]  }
  0x1a   : > { %v1823_v48 = vld [vmem:[%s1948_s11 + $0x94] ss:$12 sps:$4 sm:$0xff]   ;;  %v1826_v50 = vld [vmem:[%s1948_s11 + $0x90] ss:$12 sps:$4 sm:$0xff]   ;;  %v1828_v52 = vld [vmem:[%s1948_s11 + $0xac] ss:$12 sps:$4 sm:$0xff]  }
  0x1b   : > { %v1825_v49 = vld [vmem:[%s1948_s11 + $0x68] ss:$12 sps:$4 sm:$0xff]   ;;  %v1827_v51 = vld [vmem:[%s1948_s11 + $0x80] ss:$12 sps:$4 sm:$0xff]   ;;  %v1830_v53 = vld [vmem:[%s1948_s11 + $0x98] ss:$12 sps:$4 sm:$0xff]  }
  0x1c   : > { %1551 = vmatpush3.bf16.msra.mxu0 %v1776_v13  ;;  %1737 = vmatpush3.bf16.msra.mxu1 %v1776_v13  ;;  %v1831_v54 = vld [vmem:[%s1948_s11 + $0xa8] ss:$12 sps:$4 sm:$0xff]   ;;  %v1832_v55 = vld [vmem:[%s1948_s11 + $0xb0] ss:$12 sps:$4 sm:$0xff]   ;;  %v1836_v58 = vld [vmem:[%s1948_s11 + $0xc0] ss:$12 sps:$4 sm:$0xff]  }
  0x1d   : > { %1552 = vmatprep.subr.bf16.mxu0 %v1777_v14  ;;  %1730 = vmatprep.subr.bf16.mxu1 %v1777_v14  ;;  %v1833_v56 = vld [vmem:[%s1948_s11 + $0xc4] ss:$12 sps:$4 sm:$0xff]   ;;  %v1835_v57 = vld [vmem:[%s1948_s11 + $0xc8] ss:$12 sps:$4 sm:$0xff]   ;;  %v1837_v59 = vld [vmem:[%s1948_s11 + $0xe0] ss:$12 sps:$4 sm:$0xff]  }
  0x1e   : > { %v1838_v60 = vld [vmem:[%s1948_s11 + $0xdc] ss:$12 sps:$4 sm:$0xff]   ;;  %v1840_v61 = vld [vmem:[%s1948_s11 + $0xf8] ss:$12 sps:$4 sm:$0xff]   ;;  %v1843_v0 = vld [vmem:[%s1948_s11 + $0xf4] ss:$12 sps:$4 sm:$0xff]  }
  0x1f   : > { %v1841_v62 = vld [vmem:[%s1948_s11 + $0xd8] ss:$12 sps:$4 sm:$0xff]   ;;  %v1842_v63 = vld [vmem:[%s1948_s11 + $0x110] ss:$12 sps:$4 sm:$0xff]   ;;  %v1845_v1 = vld [vmem:[%s1948_s11 + $0x128] ss:$12 sps:$4 sm:$0xff]  }
  0x20   : > { %1553 = vmatpush3.bf16.msra.mxu0 %v1778_v15  ;;  %1738 = vmatpush3.bf16.msra.mxu1 %v1778_v15  ;;  %v1846_v2 = vld [vmem:[%s1948_s11 + $0xf0] ss:$12 sps:$4 sm:$0xff]   ;;  %v1847_v3 = vld [vmem:[%s1948_s11 + $0x140] ss:$12 sps:$4 sm:$0xff]   ;;  %v1850_v5 = vld [vmem:[%s1948_s11 + $0x158] ss:$12 sps:$4 sm:$0xff]  }
  0x21   : > { %1554 = vmatprep.subr.bf16.mxu0 %v1779_v16  ;;  %1731 = vmatprep.subr.bf16.mxu1 %v1779_v16  ;;  %v1848_v4 = vld [vmem:[%s1948_s11 + $0x10c] ss:$12 sps:$4 sm:$0xff]   ;;  %v1851_v6 = vld [vmem:[%s1948_s11 + $0x108] ss:$12 sps:$4 sm:$0xff]   ;;  %v1852_v7 = vld [vmem:[%s1948_s11 + $0x170] ss:$12 sps:$4 sm:$0xff]  }
  0x22   : > { %s1464_s11 = sshll.u32 %s2160_s18, 3 }
  0x23   : > { %s2068_s28 = scalar_lea.vmem %s2154_s3, %s1464_s11 }
  0x24   : > { %1555 = vmatpush3.bf16.msra.mxu0 %v1780_v17  ;;  %1739 = vmatpush3.bf16.msra.mxu1 %v1780_v17 }
  0x25   : > { %1676 = vmatprep.subr.bf16.mxu1 %v1787_v18 }
  0x27   : > { %881 = vmatmul.mubr.bf16.vlgmr.msra.gmra.mrb[0].mxu0 %v1781_v19  ;;  %977 = vmatmul.mubr.bf16.vlgmr.msra.gmra.mrb[0].mxu1 %v1784_v20 }
  0x28   : > { %1677 = vmatpush3.bf16.msra.mxu1 %v1787_v18  ;;  %888 = vmatprep.mubr.bf16.mxu0 %v1789_v21 }
  0x29   : > { %1678 = vmatprep.subr.bf16.mxu1 %v1788_v22  ;;  %984 = vmatprep.mubr.bf16.mxu1 %v1791_v23 }
  0x2c   : > { %1679 = vmatpush3.bf16.msra.mxu1 %v1788_v22 }
  0x2d   : > { %1680 = vmatprep.subr.bf16.mxu1 %v1795_v25 }
  0x2f   : > { %889 = vmatmul.mubr.bf16.gmra.mrb[4].mxu0 %v1793_v24  ;;  %985 = vmatmul.mubr.bf16.gmra.mrb[4].mxu1 %v1794_v26 }
  0x30   : > { %1681 = vmatpush3.bf16.msra.mxu1 %v1795_v25  ;;  %896 = vmatprep.mubr.bf16.mxu0 %v1797_v28 }
  0x31   : > { %1682 = vmatprep.subr.bf16.mxu1 %v1796_v27  ;;  %992 = vmatprep.mubr.bf16.mxu1 %v1799_v29 }
  0x34   : > { %1683 = vmatpush3.bf16.msra.mxu1 %v1796_v27 }
  0x35   : > { %1684 = vmatprep.subr.bf16.mxu1 %v1803_v30 }
  0x37   : > { %897 = vmatmul.mubr.bf16.gmra.mrb[8].mxu0 %v1801_v31  ;;  %993 = vmatmul.mubr.bf16.gmra.mrb[8].mxu1 %v1802_v32 }
  0x38   : > { %1685 = vmatpush3.bf16.msra.mxu1 %v1803_v30  ;;  %904 = vmatprep.mubr.bf16.mxu0 %v1805_v34 }
  0x39   : > { %1686 = vmatprep.subr.bf16.mxu1 %v1804_v33  ;;  %1000 = vmatprep.mubr.bf16.mxu1 %v1807_v35 }
  0x3c   : > { %1687 = vmatpush3.bf16.msra.mxu1 %v1804_v33 }
  0x3d   : > { %1688 = vmatprep.subr.bf16.mxu1 %v1811_v36 }
  0x3f   : > { %905 = vmatmul.mubr.bf16.gmra.mrb[12].mxu0 %v1809_v37  ;;  %1001 = vmatmul.mubr.bf16.gmra.mrb[12].mxu1 %v1810_v38 }
  0x40   : > { %1689 = vmatpush3.bf16.msra.mxu1 %v1811_v36  ;;  %912 = vmatprep.mubr.bf16.mxu0 %v1813_v39 }
  0x41   : > { %1690 = vmatprep.subr.bf16.mxu1 %v1812_v40  ;;  %1692 = vmatprep.mubr.bf16.mxu1 %v1815_v41 }
  0x44   : > { %1691 = vmatpush3.bf16.msra.mxu1 %v1812_v40 }
  0x47   : > { %913 = vmatmul.mubr.bf16.gmra.mrb[16].mxu0 %v1816_v42  ;;  %1693 = vmatmul.mubr.bf16.vlgmr.msra.gmra.mrb[16].mxu1 %v1817_v43 }
  0x48   : > { %920 = vmatprep.mubr.bf16.mxu0 %v1818_v44  ;;  %1696 = vmatprep.mubr.bf16.mxu1 %v1820_v45 }
  0x4f   : > { %921 = vmatmul.mubr.bf16.gmra.mrb[20].mxu0 %v1821_v46  ;;  %1697 = vmatmul.mubr.bf16.gmra.mrb[20].mxu1 %v1822_v47 }
  0x50   : > { %928 = vmatprep.mubr.bf16.mxu0 %v1823_v48  ;;  %1700 = vmatprep.mubr.bf16.mxu1 %v1825_v49 }
  0x57   : > { %929 = vmatmul.mubr.bf16.gmra.mrb[24].mxu0 %v1826_v50  ;;  %1701 = vmatmul.mubr.bf16.gmra.mrb[24].mxu1 %v1827_v51 }
  0x58   : > { %936 = vmatprep.mubr.bf16.mxu0 %v1828_v52  ;;  %1704 = vmatprep.mubr.bf16.mxu1 %v1830_v53 }
  0x5f   : > { %937 = vmatmul.mubr.bf16.gmra.mrb[28].mxu0 %v1831_v54  ;;  %1705 = vmatmul.mubr.bf16.gmra.mrb[28].mxu1 %v1832_v55 }
  0x60   : > { %944 = vmatprep.mubr.bf16.mxu0 %v1833_v56  ;;  %1708 = vmatprep.mubr.bf16.mxu1 %v1835_v57 }
  0x67   : > { %945 = vmatmul.mubr.bf16.gmra.mrb[32].mxu0 %v1836_v58  ;;  %1709 = vmatmul.mubr.bf16.gmra.mrb[32].mxu1 %v1837_v59  ;;  %v2063_v58 = vld [vmem:[%s2153_s2] ss:$0 sm:$0xff] }
  0x68   : > { %952 = vmatprep.mubr.bf16.mxu0 %v1838_v60  ;;  %1712 = vmatprep.mubr.bf16.mxu1 %v1840_v61 }
  0x6f   : > { %953 = vmatmul.mubr.bf16.gmra.mrb[36].mxu0 %v1841_v62  ;;  %1713 = vmatmul.mubr.bf16.gmra.mrb[36].mxu1 %v1842_v63 }
  0x70   : > { %960 = vmatprep.mubr.bf16.mxu0 %v1843_v0  ;;  %1716 = vmatprep.mubr.bf16.mxu1 %v1845_v1 }
  0x77   : > { %961 = vmatmul.mubr.bf16.gmra.mrb[40].mxu0 %v1846_v2  ;;  %1717 = vmatmul.mubr.bf16.gmra.mrb[40].mxu1 %v1847_v3 }
  0x78   : > { %968 = vmatprep.mubr.bf16.mxu0 %v1848_v4  ;;  %1720 = vmatprep.mubr.bf16.mxu1 %v1850_v5 }
  0x7f   : > { %969 = vmatmul.mubr.bf16.gmra.mrb[44].mxu0 %v1851_v6  ;;  %1721 = vmatmul.mubr.bf16.gmra.mrb[44].mxu1 %v1852_v7 }
  0xfa   : > { %v1556_v8 = vpop.f32.mrb[0].mxu0  ;;  %v1628_v9 = vpop.f32.mrb[0].mxu1 }
  0xfb   : > { %v1557_v10 = vpop.f32.mrb[1].mxu0  ;;  %v1629_v11 = vpop.f32.mrb[1].mxu1 }
  0xfc   : > { %v1558_v12 = vadd.f32 %v1557_v10, %v1556_v8  ;;  %v2043_v13 = vadd.f32 %v1629_v11, %v1628_v9  ;;  %v1559_v14 = vpop.f32.mrb[2].mxu0  ;;  %v1631_v15 = vpop.f32.mrb[2].mxu1 }
  0xfd   : > { %v1560_v16 = vpop.f32.mrb[3].mxu0  ;;  %v1632_v17 = vpop.f32.mrb[3].mxu1 }
  0xfe   : > { %v1561_v18 = vadd.f32 %v1560_v16, %v1559_v14  ;;  %v2045_v19 = vadd.f32 %v1632_v17, %v1631_v15 }
 0x102   : > { %v1562_v20 = vpop.f32.mrb[4].mxu0  ;;  %v1634_v21 = vpop.f32.mrb[4].mxu1 }
 0x103   : > { %v1563_v22 = vpop.f32.mrb[5].mxu0  ;;  %v1635_v23 = vpop.f32.mrb[5].mxu1 }
 0x104   : > { %v1564_v24 = vadd.f32 %v1563_v22, %v1562_v20  ;;  %v2047_v25 = vadd.f32 %v1635_v23, %v1634_v21  ;;  %v1565_v26 = vpop.f32.mrb[6].mxu0  ;;  %v1637_v27 = vpop.f32.mrb[6].mxu1 }
 0x105   : > { %v1566_v28 = vpop.f32.mrb[7].mxu0  ;;  %v1638_v29 = vpop.f32.mrb[7].mxu1 }
 0x106   : > { %v1567_v30 = vadd.f32 %v1566_v28, %v1565_v26  ;;  %v2049_v31 = vadd.f32 %v1638_v29, %v1637_v27 }
 0x10a   : > { %v1568_v32 = vpop.f32.mrb[8].mxu0  ;;  %v1640_v33 = vpop.f32.mrb[8].mxu1 }
 0x10b   : > { %v1569_v34 = vpop.f32.mrb[9].mxu0  ;;  %v1641_v35 = vpop.f32.mrb[9].mxu1 }
 0x10c   : > { %v1570_v36 = vadd.f32 %v1569_v34, %v1568_v32  ;;  %v2051_v37 = vadd.f32 %v1641_v35, %v1640_v33  ;;  %v1571_v38 = vpop.f32.mrb[10].mxu0  ;;  %v1643_v39 = vpop.f32.mrb[10].mxu1 }
 0x10d   : > { %v1572_v40 = vpop.f32.mrb[11].mxu0  ;;  %v1644_v41 = vpop.f32.mrb[11].mxu1 }
 0x10e   : > { %v1573_v42 = vadd.f32 %v1572_v40, %v1571_v38  ;;  %v2053_v43 = vadd.f32 %v1644_v41, %v1643_v39 }
 0x112   : > { %v1574_v44 = vpop.f32.mrb[12].mxu0  ;;  %v1646_v45 = vpop.f32.mrb[12].mxu1 }
 0x113   : > { %v1575_v46 = vpop.f32.mrb[13].mxu0  ;;  %v1647_v47 = vpop.f32.mrb[13].mxu1 }
 0x114   : > { %v1576_v48 = vadd.f32 %v1575_v46, %v1574_v44  ;;  %v2055_v49 = vadd.f32 %v1647_v47, %v1646_v45  ;;  %v1577_v50 = vpop.f32.mrb[14].mxu0  ;;  %v1649_v51 = vpop.f32.mrb[14].mxu1 }
 0x115   : > { %v1578_v52 = vpop.f32.mrb[15].mxu0  ;;  %v1650_v53 = vpop.f32.mrb[15].mxu1 }
 0x116   : > { %v1579_v54 = vadd.f32 %v1578_v52, %v1577_v50  ;;  %v2057_v55 = vadd.f32 %v1650_v53, %v1649_v51 }
 0x11a   : > { %v1580_v56 = vpop.f32.mrb[16].mxu0  ;;  %v1694_v57 = vpop.f32.mrb[16].mxu1 }
 0x11b   : > { %v1052_v59 = vadd.f32 %v1694_v57, %v1564_v24  ;;  %v1581_v60 = vpop.f32.mrb[17].mxu0  ;;  %v1043_v61 = vpop.f32.mrb[17].mxu1 }
 0x11c   : > { %v1582_v62 = vadd.f32 %v1581_v60, %v1580_v56  ;;  %v1044_v63 = vadd.f32 %v1558_v12, %v1043_v61  ;;  %v1583_v0 = vpop.f32.mrb[18].mxu0  ;;  %v1695_v1 = vpop.f32.mrb[18].mxu1 }
 0x11d   : > { %v1278_v2 = vadd.f32 %v2063_v58, %v1052_v59  ;;  %v1055_v3 = vadd.f32 %v1695_v1, %v1567_v30  ;;  %v1584_v4 = vpop.f32.mrb[19].mxu0  ;;  %v1046_v5 = vpop.f32.mrb[19].mxu1 }
 0x11e   : > { %v1276_v6 = vadd.f32 %v2063_v58, %v1044_v63  ;;  %v1585_v7 = vadd.f32 %v1584_v4, %v1583_v0  ;;  %v1047_v8 = vadd.f32 %v1561_v18, %v1046_v5 }
 0x11f   : > { %1310 = vst [vmem:[%s2068_s28 + $0x10] sm:$0xff] %v1278_v2  ;;  %v1279_v9 = vadd.f32 %v2063_v58, %v1055_v3 }
 0x120   : > { %1308 = vst [vmem:[%s2068_s28] sm:$0xff] %v1276_v6  ;;  %v1277_v10 = vadd.f32 %v2063_v58, %v1047_v8 }
 0x121   : > { %1311 = vst [vmem:[%s2068_s28 + $0x18] sm:$0xff] %v1279_v9 }
 0x122   : > { %1309 = vst [vmem:[%s2068_s28 + $0x8] sm:$0xff] %v1277_v10  ;;  %v1586_v11 = vpop.f32.mrb[20].mxu0  ;;  %v1698_v12 = vpop.f32.mrb[20].mxu1 }
 0x123   : > { %v1068_v14 = vadd.f32 %v1698_v12, %v1576_v48  ;;  %v1587_v15 = vpop.f32.mrb[21].mxu0  ;;  %v1059_v16 = vpop.f32.mrb[21].mxu1 }
 0x124   : > { %v1588_v17 = vadd.f32 %v1587_v15, %v1586_v11  ;;  %v1060_v20 = vadd.f32 %v1570_v36, %v1059_v16  ;;  %v1589_v18 = vpop.f32.mrb[22].mxu0  ;;  %v1699_v21 = vpop.f32.mrb[22].mxu1 }
 0x125   : > { %v1282_v22 = vadd.f32 %v2063_v58, %v1068_v14  ;;  %v1071_v23 = vadd.f32 %v1699_v21, %v1579_v54  ;;  %v1590_v24 = vpop.f32.mrb[23].mxu0  ;;  %v1062_v26 = vpop.f32.mrb[23].mxu1 }
 0x126   : > { %v1280_v27 = vadd.f32 %v2063_v58, %v1060_v20  ;;  %v1591_v28 = vadd.f32 %v1590_v24, %v1589_v18  ;;  %v1063_v29 = vadd.f32 %v1573_v42, %v1062_v26 }
 0x127   : > { %1314 = vst [vmem:[%s2068_s28 + $0x30] sm:$0xff] %v1282_v22  ;;  %v1283_v30 = vadd.f32 %v2063_v58, %v1071_v23 }
 0x128   : > { %1312 = vst [vmem:[%s2068_s28 + $0x20] sm:$0xff] %v1280_v27  ;;  %v1281_v32 = vadd.f32 %v2063_v58, %v1063_v29 }
 0x129   : > { %1315 = vst [vmem:[%s2068_s28 + $0x38] sm:$0xff] %v1283_v30 }
 0x12a   : > { %1313 = vst [vmem:[%s2068_s28 + $0x28] sm:$0xff] %v1281_v32  ;;  %v1592_v33 = vpop.f32.mrb[24].mxu0  ;;  %v1702_v34 = vpop.f32.mrb[24].mxu1 }
 0x12b   : > { %v1084_v35 = vadd.f32 %v1702_v34, %v1588_v17  ;;  %v1593_v36 = vpop.f32.mrb[25].mxu0  ;;  %v1075_v38 = vpop.f32.mrb[25].mxu1 }
 0x12c   : > { %v1594_v39 = vadd.f32 %v1593_v36, %v1592_v33  ;;  %v1076_v40 = vadd.f32 %v1582_v62, %v1075_v38  ;;  %v1595_v41 = vpop.f32.mrb[26].mxu0  ;;  %v1703_v42 = vpop.f32.mrb[26].mxu1 }
 0x12d   : > { %v1286_v44 = vadd.f32 %v2063_v58, %v1084_v35  ;;  %v1087_v45 = vadd.f32 %v1703_v42, %v1591_v28  ;;  %v1596_v46 = vpop.f32.mrb[27].mxu0  ;;  %v1078_v47 = vpop.f32.mrb[27].mxu1 }
 0x12e   : > { %v1284_v48 = vadd.f32 %v2063_v58, %v1076_v40  ;;  %v1597_v50 = vadd.f32 %v1596_v46, %v1595_v41  ;;  %v1079_v51 = vadd.f32 %v1585_v7, %v1078_v47 }
 0x12f   : > { %1318 = vst [vmem:[%s2068_s28 + $0x50] sm:$0xff] %v1286_v44  ;;  %v1287_v52 = vadd.f32 %v2063_v58, %v1087_v45 }
 0x130   : > { %1316 = vst [vmem:[%s2068_s28 + $0x40] sm:$0xff] %v1284_v48  ;;  %v1285_v53 = vadd.f32 %v2063_v58, %v1079_v51 }
 0x131   : > { %1319 = vst [vmem:[%s2068_s28 + $0x58] sm:$0xff] %v1287_v52 }
 0x132   : > { %1317 = vst [vmem:[%s2068_s28 + $0x48] sm:$0xff] %v1285_v53  ;;  %v1598_v54 = vpop.f32.mrb[28].mxu0  ;;  %v1706_v56 = vpop.f32.mrb[28].mxu1 }
 0x133   : > { %v1599_v57 = vpop.f32.mrb[29].mxu0  ;;  %v1091_v59 = vpop.f32.mrb[29].mxu1 }
 0x134   : > { %v1600_v60 = vadd.f32 %v1599_v57, %v1598_v54  ;;  %v1092_v61 = vadd.f32 %v1594_v39, %v1091_v59  ;;  %v1601_v62 = vpop.f32.mrb[30].mxu0  ;;  %v1707_v63 = vpop.f32.mrb[30].mxu1 }
 0x135   : > { %v1602_v0 = vpop.f32.mrb[31].mxu0  ;;  %v1094_v1 = vpop.f32.mrb[31].mxu1 }
 0x136   : > { %v1100_v2 = vadd.f32 %v1706_v56, %v1600_v60  ;;  %v1288_v3 = vadd.f32 %v2063_v58, %v1092_v61  ;;  %v1603_v4 = vadd.f32 %v1602_v0, %v1601_v62  ;;  %v1095_v5 = vadd.f32 %v1597_v50, %v1094_v1 }
 0x138   : > { %v1290_v6 = vadd.f32 %v2063_v58, %v1100_v2  ;;  %1320 = vst [vmem:[%s2068_s28 + $0x60] sm:$0xff] %v1288_v3  ;;  %v1103_v7 = vadd.f32 %v1707_v63, %v1603_v4  ;;  %v1289_v8 = vadd.f32 %v2063_v58, %v1095_v5 }
 0x13a   : > { %1322 = vst [vmem:[%s2068_s28 + $0x70] sm:$0xff] %v1290_v6  ;;  %v1291_v9 = vadd.f32 %v2063_v58, %v1103_v7  ;;  %1321 = vst [vmem:[%s2068_s28 + $0x68] sm:$0xff] %v1289_v8  ;;  %v1604_v10 = vpop.f32.mrb[32].mxu0  ;;  %v1710_v11 = vpop.f32.mrb[32].mxu1 }
 0x13b   : > { %v1605_v12 = vpop.f32.mrb[33].mxu0  ;;  %v1107_v14 = vpop.f32.mrb[33].mxu1 }
 0x13c   : > { %1323 = vst [vmem:[%s2068_s28 + $0x78] sm:$0xff] %v1291_v9  ;;  %v1606_v15 = vadd.f32 %v1605_v12, %v1604_v10  ;;  %v1607_v16 = vpop.f32.mrb[34].mxu0  ;;  %v1711_v17 = vpop.f32.mrb[34].mxu1 }
 0x13d   : > { %v1608_v20 = vpop.f32.mrb[35].mxu0  ;;  %v1110_v18 = vpop.f32.mrb[35].mxu1 }
 0x13e   : > { %v1108_v21 = vadd.f32 %v1606_v15, %v1107_v14  ;;  %v1609_v22 = vadd.f32 %v1608_v20, %v1607_v16 }
 0x140   : > { %v1292_v23 = vadd.f32 %v2063_v58, %v1108_v21  ;;  %v1111_v24 = vadd.f32 %v1609_v22, %v1110_v18 }
 0x142   : > { %1324 = vst [vmem:[%s2068_s28 + $0x80] sm:$0xff] %v1292_v23  ;;  %v1293_v26 = vadd.f32 %v2063_v58, %v1111_v24  ;;  %v1610_v27 = vpop.f32.mrb[36].mxu0  ;;  %v1714_v28 = vpop.f32.mrb[36].mxu1 }
 0x143   : > { %v1611_v29 = vpop.f32.mrb[37].mxu0  ;;  %v1123_v30 = vpop.f32.mrb[37].mxu1 }
 0x144   : > { %1325 = vst [vmem:[%s2068_s28 + $0x88] sm:$0xff] %v1293_v26  ;;  %v1612_v32 = vadd.f32 %v1611_v29, %v1610_v27  ;;  %v1613_v33 = vpop.f32.mrb[38].mxu0  ;;  %v1715_v34 = vpop.f32.mrb[38].mxu1 }
 0x145   : > { %v1614_v35 = vpop.f32.mrb[39].mxu0  ;;  %v1126_v36 = vpop.f32.mrb[39].mxu1 }
 0x146   : > { %v1116_v38 = vadd.f32 %v1710_v11, %v1612_v32  ;;  %v1615_v39 = vadd.f32 %v1614_v35, %v1613_v33 }
 0x148   : > { %v1294_v40 = vadd.f32 %v2063_v58, %v1116_v38  ;;  %v1119_v41 = vadd.f32 %v1711_v17, %v1615_v39 }
 0x14a   : > { %1326 = vst [vmem:[%s2068_s28 + $0x90] sm:$0xff] %v1294_v40  ;;  %v1295_v42 = vadd.f32 %v2063_v58, %v1119_v41  ;;  %v1616_v44 = vpop.f32.mrb[40].mxu0  ;;  %v1718_v45 = vpop.f32.mrb[40].mxu1 }
 0x14b   : > { %v1148_v46 = vadd.f32 %v1718_v45, %v2047_v25  ;;  %v1617_v47 = vpop.f32.mrb[41].mxu0  ;;  %v1139_v48 = vpop.f32.mrb[41].mxu1 }
 0x14c   : > { %1327 = vst [vmem:[%s2068_s28 + $0x98] sm:$0xff] %v1295_v42  ;;  %v1618_v50 = vadd.f32 %v1617_v47, %v1616_v44  ;;  %v1140_v51 = vadd.f32 %v2043_v13, %v1139_v48  ;;  %v1619_v52 = vpop.f32.mrb[42].mxu0  ;;  %v1719_v53 = vpop.f32.mrb[42].mxu1 }
 0x14d   : > { %v1302_v54 = vadd.f32 %v2063_v58, %v1148_v46  ;;  %v1151_v56 = vadd.f32 %v1719_v53, %v2049_v31  ;;  %v1620_v57 = vpop.f32.mrb[43].mxu0  ;;  %v1142_v59 = vpop.f32.mrb[43].mxu1 }
 0x14e   : > { %v1124_v25 = vadd.f32 %v1618_v50, %v1123_v30  ;;  %v1300_v60 = vadd.f32 %v2063_v58, %v1140_v51  ;;  %v1621_v61 = vadd.f32 %v1620_v57, %v1619_v52  ;;  %v1143_v62 = vadd.f32 %v2045_v19, %v1142_v59 }
 0x14f   : > { %1334 = vst [vmem:[%s2068_s28 + $0xd0] sm:$0xff] %v1302_v54  ;;  %v1303_v13 = vadd.f32 %v2063_v58, %v1151_v56 }
 0x150   : > { %v1296_v63 = vadd.f32 %v2063_v58, %v1124_v25  ;;  %1332 = vst [vmem:[%s2068_s28 + $0xc0] sm:$0xff] %v1300_v60  ;;  %v1127_v0 = vadd.f32 %v1621_v61, %v1126_v36  ;;  %v1301_v1 = vadd.f32 %v2063_v58, %v1143_v62 }
 0x151   : > { %1335 = vst [vmem:[%s2068_s28 + $0xd8] sm:$0xff] %v1303_v13 }
 0x152   : > { %1328 = vst [vmem:[%s2068_s28 + $0xa0] sm:$0xff] %v1296_v63  ;;  %v1297_v31 = vadd.f32 %v2063_v58, %v1127_v0  ;;  %1333 = vst [vmem:[%s2068_s28 + $0xc8] sm:$0xff] %v1301_v1  ;;  %v1622_v2 = vpop.f32.mrb[44].mxu0  ;;  %v1722_v3 = vpop.f32.mrb[44].mxu1 }
 0x153   : > { %v1164_v4 = vadd.f32 %v1722_v3, %v2055_v49  ;;  %v1623_v19 = vpop.f32.mrb[45].mxu0  ;;  %v1155_v5 = vpop.f32.mrb[45].mxu1 }
 0x154   : > { %1329 = vst [vmem:[%s2068_s28 + $0xa8] sm:$0xff] %v1297_v31  ;;  %v1624_v6 = vadd.f32 %v1623_v19, %v1622_v2  ;;  %v1156_v7 = vadd.f32 %v2051_v37, %v1155_v5  ;;  %v1625_v8 = vpop.f32.mrb[46].mxu0  ;;  %v1723_v9 = vpop.f32.mrb[46].mxu1 }
 0x155   : > { %v1306_v10 = vadd.f32 %v2063_v58, %v1164_v4  ;;  %v1167_v11 = vadd.f32 %v1723_v9, %v2057_v55  ;;  %v1626_v12 = vpop.f32.mrb[47].mxu0  ;;  %v1158_v49 = vpop.f32.mrb[47].mxu1 }
 0x156   : > { %v1132_v14 = vadd.f32 %v1714_v28, %v1624_v6  ;;  %v1304_v15 = vadd.f32 %v2063_v58, %v1156_v7  ;;  %v1627_v16 = vadd.f32 %v1626_v12, %v1625_v8  ;;  %v1159_v17 = vadd.f32 %v2053_v43, %v1158_v49 }
 0x157   : > { %1338 = vst [vmem:[%s2068_s28 + $0xf0] sm:$0xff] %v1306_v10  ;;  %v1307_v37 = vadd.f32 %v2063_v58, %v1167_v11 }
 0x158   : > { %v1298_v20 = vadd.f32 %v2063_v58, %v1132_v14  ;;  %1336 = vst [vmem:[%s2068_s28 + $0xe0] sm:$0xff] %v1304_v15  ;;  %v1135_v18 = vadd.f32 %v1715_v34, %v1627_v16  ;;  %v1305_v21 = vadd.f32 %v2063_v58, %v1159_v17 }
 0x159   : > { %1339 = vst [vmem:[%s2068_s28 + $0xf8] sm:$0xff] %v1307_v37 }
 0x15a   : > { %1330 = vst [vmem:[%s2068_s28 + $0xb0] sm:$0xff] %v1298_v20  ;;  %v1299_v55 = vadd.f32 %v2063_v58, %v1135_v18  ;;  %1337 = vst [vmem:[%s2068_s28 + $0xe8] sm:$0xff] %v1305_v21 }
 0x15c   : > { %1331 = vst [vmem:[%s2068_s28 + $0xb8] sm:$0xff] %v1299_v55 }
 0x15d PF: > { %s13_s14 = sadd.s32 1, %s1875_s14   ;;  %s2155_s12 = smov %s1871_s13 }
 0x15e   : > { %p10_p5 = scmp.ge.s32.totalorder %s13_s14, 5   ;;  %s2156_s13 = smov %s2158_s15 }
 0x160   :  { %12 = sbr.rel (!%p10_p5) target bundleno = 2 (0x2), region = 76 }

// kernel: autoencoder_forward.16
= control target key start
LH: loop header
LB: loop body
LE: loop exit
PB: predicated region body
PF: predicated region fallthrough
CT: control target
= control target key end

     0   :  { %vm296_vm2 = vmmov 1   ;;  %s799_s0 = inlined_call_operand.vmem [shape: f32[4,2,4480], index: 0, kind: input, shape index: {}]   ;;  %s800_s2 = inlined_call_operand.vmem [shape: f32[2,4480], index: 2, kind: output, shape index: {0}]   ;;  %s801_s1 = inlined_call_operand.vmem [shape: s32[2,4480], index: 1, kind: input, shape index: {}]   ;;  %s802_s3 = inlined_call_operand.vmem [shape: s32[2,4480], index: 3, kind: output, shape index: {1}]  }
   0x1   :  { %v321_v0 = vld [vmem:[%s799_s0] sm:$0xff]  ;;  %v331_v2 = vld [vmem:[%s799_s0 + $0x8c] sm:$0xff]  ;;  %v352_v8 = vld [vmem:[%s799_s0 + $0x94] sm:$0xff] }
   0x2   :  { %v326_v1 = vld [vmem:[%s799_s0 + $0x46] sm:$0xff]  ;;  %v285_v3 = vld [vmem:[%s799_s0 + $0xd2] sm:$0xff]  ;;  %v286_v9 = vld [vmem:[%s799_s0 + $0xda] sm:$0xff] }
   0x3   :  { %v52_v4 = vmax.f32 %v321_v0, %v326_v1  ;;  %v341_v5 = vld [vmem:[%s799_s0 + $0x8] sm:$0xff]  ;;  %v61_v7 = vmax.f32 %v331_v2, %v285_v3  ;;  %v362_v11 = vld [vmem:[%s799_s0 + $0x10] sm:$0xff]  ;;  %v62_v12 = vmax.f32 %v352_v8, %v286_v9  ;;  %v373_v14 = vld [vmem:[%s799_s0 + $0x9c] sm:$0xff] }
   0x4   :  { %v346_v6 = vld [vmem:[%s799_s0 + $0x4e] sm:$0xff]  ;;  %v368_v13 = vld [vmem:[%s799_s0 + $0x56] sm:$0xff]  ;;  %v287_v15 = vld [vmem:[%s799_s0 + $0xe2] sm:$0xff] }
   0x5   :  { %v53_v10 = vmax.f32 %v341_v5, %v346_v6  ;;  %v378_v16 = vmax.f32 %v52_v4, %v61_v7  ;;  %v54_v17 = vmax.f32 %v362_v11, %v368_v13  ;;  %v63_v18 = vmax.f32 %v373_v14, %v287_v15  ;;  %v386_v19 = vld [vmem:[%s799_s0 + $0x18] sm:$0xff]  ;;  %v396_v21 = vld [vmem:[%s799_s0 + $0xa4] sm:$0xff]  ;;  %v425_v29 = vld [vmem:[%s799_s0 + $0xac] sm:$0xff] }
   0x6   :  { %v391_v20 = vld [vmem:[%s799_s0 + $0x5e] sm:$0xff]  ;;  %v288_v23 = vld [vmem:[%s799_s0 + $0xea] sm:$0xff]  ;;  %v289_v30 = vld [vmem:[%s799_s0 + $0xf2] sm:$0xff] }
   0x7   :  { %v398_v22 = vmax.f32 %v53_v10, %v62_v12  ;;  %v55_v24 = vmax.f32 %v386_v19, %v391_v20  ;;  %v408_v25 = vld [vmem:[%s799_s0 + $0x20] sm:$0xff]  ;;  %205 = vst [vmem:[%s800_s2] sm:$0xff] %v378_v16  ;;  %v419_v27 = vmax.f32 %v54_v17, %v63_v18  ;;  %v64_v28 = vmax.f32 %v396_v21, %v288_v23  ;;  %v435_v32 = vld [vmem:[%s799_s0 + $0x28] sm:$0xff]  ;;  %v450_v35 = vld [vmem:[%s799_s0 + $0xb4] sm:$0xff] }
   0x8   :  { %v413_v26 = vld [vmem:[%s799_s0 + $0x66] sm:$0xff]  ;;  %v65_v33 = vmax.f32 %v425_v29, %v289_v30  ;;  %v445_v34 = vld [vmem:[%s799_s0 + $0x6e] sm:$0xff]  ;;  %v290_v36 = vld [vmem:[%s799_s0 + $0xfa] sm:$0xff]  ;;  %vm79_vm0 = vcmp.eq.f32.partialorder %v321_v0, %v378_v16  ;;  %vm88_vm1 = vcmp.eq.f32.partialorder %v326_v1, %v378_v16  ;;  %vm115_vm5 = vcmp.eq.f32.partialorder %v331_v2, %v378_v16 }
   0x9   :  { %v56_v31 = vmax.f32 %v408_v25, %v413_v26  ;;  %206 = vst [vmem:[%s800_s2 + $0x8] sm:$0xff] %v398_v22  ;;  %207 = vst [vmem:[%s800_s2 + $0x10] sm:$0xff] %v419_v27  ;;  %v459_v37 = vmax.f32 %v55_v24, %v64_v28  ;;  %v57_v38 = vmax.f32 %v435_v32, %v445_v34  ;;  %v467_v40 = vld [vmem:[%s799_s0 + $0x30] sm:$0xff]  ;;  %v477_v42 = vld [vmem:[%s799_s0 + $0xbc] sm:$0xff]  ;;  %v297_v0 = vmov 0  }
   0xa   :  { %v66_v39 = vmax.f32 %v450_v35, %v290_v36  ;;  %v472_v41 = vld [vmem:[%s799_s0 + $0x76] sm:$0xff]  ;;  %v291_v44 = vld [vmem:[%s799_s0 + $0x102] sm:$0xff]  ;;  %v292_v51 = vld [vmem:[%s799_s0 + $0x10a] sm:$0xff]  ;;  %vm80_vm15 = vcmp.eq.f32.partialorder %v341_v5, %v398_v22 }
   0xb   :  { %v479_v43 = vmax.f32 %v56_v31, %v65_v33  ;;  %v58_v45 = vmax.f32 %v467_v40, %v472_v41  ;;  %v489_v46 = vld [vmem:[%s799_s0 + $0x38] sm:$0xff]  ;;  %208 = vst [vmem:[%s800_s2 + $0x18] sm:$0xff] %v459_v37  ;;  %v67_v49 = vmax.f32 %v477_v42, %v291_v44  ;;  %v508_v50 = vld [vmem:[%s799_s0 + $0xc4] sm:$0xff]  ;;  %v535_v56 = vld [vmem:[%s799_s0 + $0xcc] sm:$0x3f] }
   0xc   :  { %v494_v47 = vld [vmem:[%s799_s0 + $0x7e] sm:$0xff]  ;;  %v502_v48 = vmax.f32 %v57_v38, %v66_v39  ;;  %v68_v54 = vmax.f32 %v508_v50, %v292_v51  ;;  %v530_v55 = vld [vmem:[%s799_s0 + $0x86] sm:$0x3f]  ;;  %v293_v57 = vld [vmem:[%s799_s0 + $0x112] sm:$0x3f] }
   0xd   :  { %v59_v52 = vmax.f32 %v489_v46, %v494_v47  ;;  %v518_v53 = vld [vmem:[%s799_s0 + $0x40] sm:$0x3f]  ;;  %209 = vst [vmem:[%s800_s2 + $0x20] sm:$0xff] %v479_v43  ;;  %v544_v58 = vmax.f32 %v58_v45, %v67_v49  ;;  %v69_v60 = vmax.f32 %v535_v56, %v293_v57  ;;  %vm97_vm3 = vmxor %vm79_vm0, %vm296_vm2  ;;  %v215_v9 = vld [vmem:[%s801_s1 + $0x8] sm:$0xff] }
   0xe   :  { %210 = vst [vmem:[%s800_s2 + $0x28] sm:$0xff] %v502_v48  ;;  %v60_v59 = vmax.f32 %v518_v53, %v530_v55  ;;  %vm555_vm4 = vmand %vm88_vm1, %vm97_vm3  ;;  %vm89_vm1 = vcmp.eq.f32.partialorder %v346_v6, %v398_v22  ;;  %v214_v2 = vld [vmem:[%s801_s1] sm:$0xff]  ;;  %v216_v16 = vld [vmem:[%s801_s1 + $0x10] sm:$0xff] }
   0xf   :  { %v553_v61 = vmax.f32 %v59_v52, %v68_v54  ;;  %211 = vst [vmem:[%s800_s2 + $0x30] sm:$0xff] %v544_v58  ;;  %vm124_vm6 = vmor %vm79_vm0, %vm555_vm4  ;;  %v217_v23 = vld [vmem:[%s801_s1 + $0x18] sm:$0xff]  ;;  %v218_v30 = vld [vmem:[%s801_s1 + $0x20] sm:$0xff] }
  0x10   :  { %v565_v63 = vmax.f32 %v60_v59, %v69_v60  ;;  %vm133_vm7 = vmxor %vm124_vm6, %vm296_vm2  ;;  %v220_v44 = vld [vmem:[%s801_s1 + $0x30] sm:$0xff]  ;;  %v221_v52 = vld [vmem:[%s801_s1 + $0x38] sm:$0xff] }
  0x11   :  { %212 = vst [vmem:[%s800_s2 + $0x38] sm:$0xff] %v553_v61  ;;  %vm142_vm8 = vmand %vm115_vm5, %vm133_vm7  ;;  %vm122_vm9 = vcmp.eq.f32.partialorder %v508_v50, %v553_v61  ;;  %vm116_vm7 = vcmp.eq.f32.partialorder %v352_v8, %v398_v22 }
  0x12   :  { %213 = vst [vmem:[%s800_s2 + $0x40] sm:$0x3f] %v565_v63  ;;  %vm87_vm10 = vcmp.eq.f32.partialorder %v518_v53, %v565_v63  ;;  %vm96_vm11 = vcmp.eq.f32.partialorder %v530_v55, %v565_v63  ;;  %vm151_vm12 = vmor %vm124_vm6, %vm142_vm8  ;;  %vm123_vm13 = vcmp.eq.f32.partialorder %v535_v56, %v565_v63  ;;  %v222_v53 = vld [vmem:[%s801_s1 + $0x40] sm:$0x3f] }
  0x13   :  { %vm160_vm14 = vmxor %vm151_vm12, %vm296_vm2 }
  0x14   :  { %vm169_vm0 = vmor %vm142_vm8, %vm160_vm14 }
  0x15   :  { %v178_v1 = vsel %vm169_vm0, 1, %v297_v0  ;;  %vm187_vm3 = vmor %vm555_vm4, %vm160_vm14 }
  0x16   :  { %v223_v3 = vmul.u32 14, %v178_v1  ;;  %vm98_vm5 = vmxor %vm80_vm15, %vm296_vm2  ;;  %v196_v4 = vsel %vm187_vm3, 1, %v297_v0 }
  0x17   :  { %vm602_vm6 = vmand %vm89_vm1, %vm98_vm5  ;;  %vm81_vm1 = vcmp.eq.f32.partialorder %v362_v11, %v419_v27  ;;  %vm90_vm5 = vcmp.eq.f32.partialorder %v368_v13, %v419_v27 }
  0x18   :  { %v232_v6 = vadd.s32 %v223_v3, %v214_v2  ;;  %vm125_vm4 = vmor %vm80_vm15, %vm602_vm6 }
  0x19   :  { %vm134_vm8 = vmxor %vm125_vm4, %vm296_vm2 }
  0x1a   :  { %v241_v7 = vadd.s32 %v232_v6, %v196_v4  ;;  %vm143_vm12 = vmand %vm116_vm7, %vm134_vm8  ;;  %vm117_vm8 = vcmp.eq.f32.partialorder %v373_v14, %v419_v27 }
  0x1b   :  { %vm152_vm14 = vmor %vm125_vm4, %vm143_vm12 }
  0x1c   :  { %250 = vst [vmem:[%s802_s3] sm:$0xff] %v241_v7  ;;  %vm161_vm0 = vmxor %vm152_vm14, %vm296_vm2 }
  0x1d   :  { %vm170_vm3 = vmor %vm143_vm12, %vm161_vm0 }
  0x1e   :  { %v179_v8 = vsel %vm170_vm3, 1, %v297_v0  ;;  %vm188_vm15 = vmor %vm602_vm6, %vm161_vm0 }
  0x1f   :  { %v224_v10 = vmul.u32 14, %v179_v8  ;;  %vm99_vm7 = vmxor %vm81_vm1, %vm296_vm2  ;;  %v197_v12 = vsel %vm188_vm15, 1, %v297_v0 }
  0x20   :  { %vm627_vm4 = vmand %vm90_vm5, %vm99_vm7  ;;  %vm82_vm5 = vcmp.eq.f32.partialorder %v386_v19, %v459_v37  ;;  %vm91_vm7 = vcmp.eq.f32.partialorder %v391_v20, %v459_v37 }
  0x21   :  { %v233_v13 = vadd.s32 %v224_v10, %v215_v9  ;;  %vm126_vm6 = vmor %vm81_vm1, %vm627_vm4 }
  0x22   :  { %vm135_vm12 = vmxor %vm126_vm6, %vm296_vm2 }
  0x23   :  { %v242_v15 = vadd.s32 %v233_v13, %v197_v12  ;;  %vm144_vm14 = vmand %vm117_vm8, %vm135_vm12  ;;  %vm118_vm12 = vcmp.eq.f32.partialorder %v396_v21, %v459_v37  ;;  %v219_v37 = vld [vmem:[%s801_s1 + $0x28] sm:$0xff] }
  0x24   :  { %vm153_vm0 = vmor %vm126_vm6, %vm144_vm14 }
  0x25   :  { %251 = vst [vmem:[%s802_s3 + $0x8] sm:$0xff] %v242_v15  ;;  %vm162_vm3 = vmxor %vm153_vm0, %vm296_vm2 }
  0x26   :  { %vm171_vm15 = vmor %vm144_vm14, %vm162_vm3 }
  0x27   :  { %v180_v14 = vsel %vm171_vm15, 1, %v297_v0  ;;  %vm189_vm1 = vmor %vm627_vm4, %vm162_vm3 }
  0x28   :  { %v225_v17 = vmul.u32 14, %v180_v14  ;;  %vm100_vm8 = vmxor %vm82_vm5, %vm296_vm2  ;;  %v198_v18 = vsel %vm189_vm1, 1, %v297_v0 }
  0x29   :  { %vm652_vm6 = vmand %vm91_vm7, %vm100_vm8  ;;  %vm83_vm7 = vcmp.eq.f32.partialorder %v408_v25, %v479_v43  ;;  %vm92_vm8 = vcmp.eq.f32.partialorder %v413_v26, %v479_v43 }
  0x2a   :  { %v234_v20 = vadd.s32 %v225_v17, %v216_v16  ;;  %vm127_vm4 = vmor %vm82_vm5, %vm652_vm6 }
  0x2b   :  { %vm136_vm14 = vmxor %vm127_vm4, %vm296_vm2 }
  0x2c   :  { %v243_v22 = vadd.s32 %v234_v20, %v198_v18  ;;  %vm145_vm0 = vmand %vm118_vm12, %vm136_vm14  ;;  %vm119_vm14 = vcmp.eq.f32.partialorder %v425_v29, %v479_v43 }
  0x2d   :  { %vm154_vm3 = vmor %vm127_vm4, %vm145_vm0 }
  0x2e   :  { %252 = vst [vmem:[%s802_s3 + $0x10] sm:$0xff] %v243_v22  ;;  %vm163_vm15 = vmxor %vm154_vm3, %vm296_vm2 }
  0x2f   :  { %vm172_vm1 = vmor %vm145_vm0, %vm163_vm15 }
  0x30   :  { %v181_v21 = vsel %vm172_vm1, 1, %v297_v0  ;;  %vm190_vm5 = vmor %vm652_vm6, %vm163_vm15 }
  0x31   :  { %v226_v24 = vmul.u32 14, %v181_v21  ;;  %vm101_vm12 = vmxor %vm83_vm7, %vm296_vm2  ;;  %v199_v27 = vsel %vm190_vm5, 1, %v297_v0 }
  0x32   :  { %vm677_vm4 = vmand %vm92_vm8, %vm101_vm12  ;;  %vm84_vm8 = vcmp.eq.f32.partialorder %v435_v32, %v502_v48  ;;  %vm93_vm12 = vcmp.eq.f32.partialorder %v445_v34, %v502_v48 }
  0x33   :  { %v235_v26 = vadd.s32 %v226_v24, %v217_v23  ;;  %vm128_vm6 = vmor %vm83_vm7, %vm677_vm4 }
  0x34   :  { %vm137_vm0 = vmxor %vm128_vm6, %vm296_vm2 }
  0x35   :  { %v244_v28 = vadd.s32 %v235_v26, %v199_v27  ;;  %vm146_vm3 = vmand %vm119_vm14, %vm137_vm0  ;;  %vm120_vm0 = vcmp.eq.f32.partialorder %v450_v35, %v502_v48 }
  0x36   :  { %vm155_vm15 = vmor %vm128_vm6, %vm146_vm3 }
  0x37   :  { %253 = vst [vmem:[%s802_s3 + $0x18] sm:$0xff] %v244_v28  ;;  %vm164_vm1 = vmxor %vm155_vm15, %vm296_vm2 }
  0x38   :  { %vm173_vm5 = vmor %vm146_vm3, %vm164_vm1 }
  0x39   :  { %v182_v29 = vsel %vm173_vm5, 1, %v297_v0  ;;  %vm191_vm7 = vmor %vm677_vm4, %vm164_vm1 }
  0x3a   :  { %v227_v31 = vmul.u32 14, %v182_v29  ;;  %vm102_vm14 = vmxor %vm84_vm8, %vm296_vm2  ;;  %v200_v33 = vsel %vm191_vm7, 1, %v297_v0 }
  0x3b   :  { %vm702_vm6 = vmand %vm93_vm12, %vm102_vm14  ;;  %vm85_vm12 = vcmp.eq.f32.partialorder %v467_v40, %v544_v58  ;;  %vm94_vm14 = vcmp.eq.f32.partialorder %v472_v41, %v544_v58 }
  0x3c   :  { %v236_v34 = vadd.s32 %v227_v31, %v218_v30  ;;  %vm129_vm4 = vmor %vm84_vm8, %vm702_vm6 }
  0x3d   :  { %vm138_vm3 = vmxor %vm129_vm4, %vm296_vm2 }
  0x3e   :  { %v245_v36 = vadd.s32 %v236_v34, %v200_v33  ;;  %vm147_vm15 = vmand %vm120_vm0, %vm138_vm3  ;;  %vm121_vm3 = vcmp.eq.f32.partialorder %v477_v42, %v544_v58 }
  0x3f   :  { %vm156_vm1 = vmor %vm129_vm4, %vm147_vm15 }
  0x40   :  { %254 = vst [vmem:[%s802_s3 + $0x20] sm:$0xff] %v245_v36  ;;  %vm165_vm5 = vmxor %vm156_vm1, %vm296_vm2 }
  0x41   :  { %vm174_vm7 = vmor %vm147_vm15, %vm165_vm5 }
  0x42   :  { %v183_v35 = vsel %vm174_vm7, 1, %v297_v0  ;;  %vm192_vm8 = vmor %vm702_vm6, %vm165_vm5 }
  0x43   :  { %v228_v38 = vmul.u32 14, %v183_v35  ;;  %vm103_vm0 = vmxor %vm85_vm12, %vm296_vm2  ;;  %v201_v39 = vsel %vm192_vm8, 1, %v297_v0 }
  0x44   :  { %vm727_vm4 = vmand %vm94_vm14, %vm103_vm0  ;;  %vm86_vm14 = vcmp.eq.f32.partialorder %v489_v46, %v553_v61  ;;  %vm95_vm0 = vcmp.eq.f32.partialorder %v494_v47, %v553_v61 }
  0x45   :  { %v237_v41 = vadd.s32 %v228_v38, %v219_v37  ;;  %vm130_vm6 = vmor %vm85_vm12, %vm727_vm4 }
  0x46   :  { %vm139_vm15 = vmxor %vm130_vm6, %vm296_vm2 }
  0x47   :  { %v246_v43 = vadd.s32 %v237_v41, %v201_v39  ;;  %vm148_vm1 = vmand %vm121_vm3, %vm139_vm15 }
  0x48   :  { %vm157_vm5 = vmor %vm130_vm6, %vm148_vm1 }
  0x49   :  { %255 = vst [vmem:[%s802_s3 + $0x28] sm:$0xff] %v246_v43  ;;  %vm166_vm7 = vmxor %vm157_vm5, %vm296_vm2 }
  0x4a   :  { %vm175_vm8 = vmor %vm148_vm1, %vm166_vm7 }
  0x4b   :  { %v184_v42 = vsel %vm175_vm8, 1, %v297_v0  ;;  %vm193_vm12 = vmor %vm727_vm4, %vm166_vm7 }
  0x4c   :  { %v229_v45 = vmul.u32 14, %v184_v42  ;;  %vm104_vm3 = vmxor %vm86_vm14, %vm296_vm2  ;;  %v202_v48 = vsel %vm193_vm12, 1, %v297_v0 }
  0x4d   :  { %vm752_vm6 = vmand %vm95_vm0, %vm104_vm3 }
  0x4e   :  { %v238_v49 = vadd.s32 %v229_v45, %v220_v44  ;;  %vm131_vm15 = vmor %vm86_vm14, %vm752_vm6 }
  0x4f   :  { %vm140_vm1 = vmxor %vm131_vm15, %vm296_vm2 }
  0x50   :  { %v247_v47 = vadd.s32 %v238_v49, %v202_v48  ;;  %vm149_vm4 = vmand %vm122_vm9, %vm140_vm1 }
  0x51   :  { %vm158_vm5 = vmor %vm131_vm15, %vm149_vm4 }
  0x52   :  { %256 = vst [vmem:[%s802_s3 + $0x30] sm:$0xff] %v247_v47  ;;  %vm167_vm7 = vmxor %vm158_vm5, %vm296_vm2 }
  0x53   :  { %vm176_vm8 = vmor %vm149_vm4, %vm167_vm7 }
  0x54   :  { %v185_v51 = vsel %vm176_vm8, 1, %v297_v0  ;;  %vm194_vm14 = vmor %vm752_vm6, %vm167_vm7 }
  0x55   :  { %v230_v54 = vmul.u32 14, %v185_v51  ;;  %vm105_vm9 = vmxor %vm87_vm10, %vm296_vm2  ;;  %v203_v50 = vsel %vm194_vm14, 1, %v297_v0 }
  0x56   :  { %vm114_vm0 = vmand %vm96_vm11, %vm105_vm9 }
  0x57   :  { %v239_v57 = vadd.s32 %v230_v54, %v221_v52  ;;  %vm132_vm12 = vmor %vm87_vm10, %vm114_vm0 }
  0x58   :  { %vm141_vm3 = vmxor %vm132_vm12, %vm296_vm2 }
  0x59   :  { %v248_v58 = vadd.s32 %v239_v57, %v203_v50  ;;  %vm150_vm6 = vmand %vm123_vm13, %vm141_vm3 }
  0x5a   :  { %vm159_vm15 = vmor %vm132_vm12, %vm150_vm6 }
  0x5b   :  { %257 = vst [vmem:[%s802_s3 + $0x38] sm:$0xff] %v248_v58  ;;  %vm168_vm1 = vmxor %vm159_vm15, %vm296_vm2 }
  0x5c   :  { %vm177_vm11 = vmor %vm150_vm6, %vm168_vm1 }
  0x5d   :  { %v186_v55 = vsel %vm177_vm11, 1, %v297_v0  ;;  %vm195_vm4 = vmor %vm114_vm0, %vm168_vm1 }
  0x5e   :  { %v231_v59 = vmul.u32 14, %v186_v55  ;;  %v204_v60 = vsel %vm195_vm4, 1, %v297_v0 }
  0x60   :  { %v240_v56 = vadd.s32 %v231_v59, %v222_v53 }
  0x62   :  { %v249_v61 = vadd.s32 %v240_v56, %v204_v60 }
  0x64   :  { %258 = vst [vmem:[%s802_s3 + $0x40] sm:$0x3f] %v249_v61 }

// kernel: autoencoder_forward.19
= control target key start
LH: loop header
LB: loop body
LE: loop exit
PB: predicated region body
PF: predicated region fallthrough
CT: control target
= control target key end

     0   :  { %v387_v38 = vlaneseq  ;;  %s655_s1 = inlined_call_operand.vmem [shape: bf16[512,128], index: 1, kind: input, shape index: {}]   ;;  %s656_s0 = inlined_call_operand.vmem [shape: bf16[8,512], index: 0, kind: input, shape index: {}]   ;;  %s657_s2 = inlined_call_operand.vmem [shape: f32[1,128], index: 2, kind: input, shape index: {}]   ;;  %s658_s3 = inlined_call_operand.vmem [shape: f32[8,128], index: 3, kind: output, shape index: {}]  }
   0x1   :  { %v487_v0 = vld [vmem:[%s655_s1 + $0x40] sm:$0xff]   ;;  %v491_v4 = vld [vmem:[%s655_s1 + $0x48] sm:$0xff]   ;;  %v495_v8 = vld [vmem:[%s655_s1 + $0x50] sm:$0xff]  }
   0x2   :  { %v488_v1 = vld [vmem:[%s655_s1 + $0xc0] sm:$0xff]   ;;  %443 = vmatprep.subr.bf16.mxu0 %v487_v0  ;;  %v492_v5 = vld [vmem:[%s655_s1 + $0xc8] sm:$0xff]   ;;  %v496_v9 = vld [vmem:[%s655_s1 + $0xd0] sm:$0xff]   ;;  %v388_v43 = vand.u32 127, %v387_v38 }
   0x3   :  { %v489_v2 = vld [vmem:[%s655_s1] sm:$0xff]   ;;  %465 = vmatprep.subr.bf16.mxu1 %v488_v1  ;;  %v493_v6 = vld [vmem:[%s655_s1 + $0x8] sm:$0xff]   ;;  %v497_v10 = vld [vmem:[%s655_s1 + $0x10] sm:$0xff]  }
   0x4   :  { %v490_v3 = vld [vmem:[%s655_s1 + $0x80] sm:$0xff]   ;;  %444 = vmatpush3.bf16.msra.mxu0 %v489_v2  ;;  %v494_v7 = vld [vmem:[%s655_s1 + $0x88] sm:$0xff]   ;;  %v498_v11 = vld [vmem:[%s655_s1 + $0x90] sm:$0xff]   ;;  %vm389_vm0 = vcmp.lt.s32.totalorder %v388_v43, 10 }
   0x5   :  { %466 = vmatpush3.bf16.msra.mxu1 %v490_v3  ;;  %445 = vmatprep.subr.bf16.mxu0 %v491_v4  ;;  %v499_v12 = vld [vmem:[%s655_s1 + $0x58] sm:$0xff]   ;;  %v503_v16 = vld [vmem:[%s655_s1 + $0x60] sm:$0xff]   ;;  %v507_v20 = vld [vmem:[%s655_s1 + $0x68] sm:$0xff]  }
   0x6   :  { %467 = vmatprep.subr.bf16.mxu1 %v492_v5  ;;  %v500_v13 = vld [vmem:[%s655_s1 + $0xd8] sm:$0xff]   ;;  %v504_v17 = vld [vmem:[%s655_s1 + $0xe0] sm:$0xff]   ;;  %v508_v21 = vld [vmem:[%s655_s1 + $0xe8] sm:$0xff]  }
   0x7   :  { %v501_v14 = vld [vmem:[%s655_s1 + $0x18] sm:$0xff]   ;;  %v505_v18 = vld [vmem:[%s655_s1 + $0x20] sm:$0xff]   ;;  %v509_v22 = vld [vmem:[%s655_s1 + $0x28] sm:$0xff]  }
   0x8   :  { %446 = vmatpush3.bf16.msra.mxu0 %v493_v6  ;;  %v502_v15 = vld [vmem:[%s655_s1 + $0x98] sm:$0xff]   ;;  %v506_v19 = vld [vmem:[%s655_s1 + $0xa0] sm:$0xff]   ;;  %v510_v23 = vld [vmem:[%s655_s1 + $0xa8] sm:$0xff]  }
   0x9   :  { %468 = vmatpush3.bf16.msra.mxu1 %v494_v7  ;;  %447 = vmatprep.subr.bf16.mxu0 %v495_v8  ;;  %v511_v24 = vld [vmem:[%s655_s1 + $0x70] sm:$0xff]   ;;  %v515_v28 = vld [vmem:[%s655_s1 + $0x78] sm:$0xff]   ;;  %v21_v32 = vld [vmem:[%s656_s0] sm:$0xff] }
   0xa   :  { %469 = vmatprep.subr.bf16.mxu1 %v496_v9  ;;  %v512_v25 = vld [vmem:[%s655_s1 + $0xf0] sm:$0xff]   ;;  %v516_v29 = vld [vmem:[%s655_s1 + $0xf8] sm:$0xff]   ;;  %v22_v33 = vld [vmem:[%s656_s0 + $0x8] sm:$0xff]  ;;  %v406_v34 = vcombine.low %v21_v32, %v21_v32  ;;  %v407_v35 = vcombine.high %v21_v32, %v21_v32 }
   0xb   :  { %v513_v26 = vld [vmem:[%s655_s1 + $0x30] sm:$0xff]   ;;  %v517_v30 = vld [vmem:[%s655_s1 + $0x38] sm:$0xff]   ;;  %v408_v36 = vcombine.low %v22_v33, %v22_v33  ;;  %v409_v37 = vcombine.high %v22_v33, %v22_v33  ;;  %v442_v50 = vld [vmem:[%s657_s2] ss:$0 sm:$0xff] }
   0xc   :  { %448 = vmatpush3.bf16.msra.mxu0 %v497_v10  ;;  %v514_v27 = vld [vmem:[%s655_s1 + $0xb0] sm:$0xff]   ;;  %v518_v31 = vld [vmem:[%s655_s1 + $0xb8] sm:$0xff]   ;;  %325 = vmatprep.mubr.bf16.mxu0 %v407_v35 }
   0xd   :  { %470 = vmatpush3.bf16.msra.mxu1 %v498_v11  ;;  %449 = vmatprep.subr.bf16.mxu0 %v499_v12 }
   0xe   :  { %471 = vmatprep.subr.bf16.mxu1 %v500_v13  ;;  %365 = vmatprep.mubr.bf16.mxu1 %v409_v37 }
  0x10   :  { %450 = vmatpush3.bf16.msra.mxu0 %v501_v14 }
  0x11   :  { %472 = vmatpush3.bf16.msra.mxu1 %v502_v15  ;;  %451 = vmatprep.subr.bf16.mxu0 %v503_v16 }
  0x12   :  { %473 = vmatprep.subr.bf16.mxu1 %v504_v17 }
  0x14   :  { %452 = vmatpush3.bf16.msra.mxu0 %v505_v18 }
  0x15   :  { %474 = vmatpush3.bf16.msra.mxu1 %v506_v19  ;;  %453 = vmatprep.subr.bf16.mxu0 %v507_v20 }
  0x16   :  { %475 = vmatprep.subr.bf16.mxu1 %v508_v21 }
  0x18   :  { %454 = vmatpush3.bf16.msra.mxu0 %v509_v22 }
  0x19   :  { %476 = vmatpush3.bf16.msra.mxu1 %v510_v23  ;;  %455 = vmatprep.subr.bf16.mxu0 %v511_v24 }
  0x1a   :  { %477 = vmatprep.subr.bf16.mxu1 %v512_v25 }
  0x1c   :  { %456 = vmatpush3.bf16.msra.mxu0 %v513_v26 }
  0x1d   :  { %478 = vmatpush3.bf16.msra.mxu1 %v514_v27  ;;  %457 = vmatprep.subr.bf16.mxu0 %v515_v28 }
  0x1e   :  { %479 = vmatprep.subr.bf16.mxu1 %v516_v29 }
  0x20   :  { %458 = vmatpush3.bf16.msra.mxu0 %v517_v30 }
  0x21   :  { %480 = vmatpush3.bf16.msra.mxu1 %v518_v31 }
  0x23   :  { %326 = vmatmul.mubr.bf16.vlgmr.msra.gmra.mrb[0].mxu0 %v406_v34 }
  0x24   :  { %366 = vmatmul.mubr.bf16.vlgmr.msra.gmra.mrb[0].mxu1 %v408_v36 }
  0xf6   :  { %v459_v39 = vpop.f32.mrb[0].mxu0 }
  0xf7   :  { %v481_v40 = vpop.f32.mrb[0].mxu1  ;;  %v460_v41 = vpop.f32.mrb[1].mxu0 }
  0xf8   :  { %v482_v42 = vpop.f32.mrb[1].mxu1  ;;  %v461_v44 = vadd.f32 %v460_v41, %v459_v39  ;;  %v462_v46 = vpop.f32.mrb[2].mxu0 }
  0xf9   :  { %v483_v45 = vadd.f32 %v482_v42, %v481_v40  ;;  %v484_v47 = vpop.f32.mrb[2].mxu1  ;;  %v463_v48 = vpop.f32.mrb[3].mxu0 }
  0xfa   :  { %v485_v49 = vpop.f32.mrb[3].mxu1 }
  0xfb   :  { %v368_v51 = vadd.f32 %v483_v45, %v461_v44 }
  0xfd   :  { %v386_v52 = vadd.f32 %v442_v50, %v368_v51 }
  0xff   :  { %v390_v53 = vsel %vm389_vm0, %v386_v52, -inf }
 0x100   :  { %391 = vmax.xlane.f32.xlu0 %v390_v53 }
 0x18d   :  { %v392_v54 = vpop.xlane.xlu0 %391 }
 0x18e   :  { %v393_v55 = vsub.f32 %v386_v52, %v392_v54 }
 0x190   :  { %v394_v56 = vmul.f32 1.442695, %v393_v55 }
 0x192   :  { %523 = vpow2.f32 %v394_v56 }
 0x19c   :  { %v524_v57 = vpop.eup %523 }
 0x19d   :  { %v396_v58 = vsel %vm389_vm0, %v524_v57, 0.0 }
 0x19e   :  { %397 = vadd.xlane.f32.xlu0 %v396_v58 }
 0x22b   :  { %v398_v59 = vpop.xlane.xlu0 %397 }
 0x22c   :  { %525 = vrcp.f32 %v398_v59 }
 0x236   :  { %v526_v60 = vpop.eup %525 }
 0x237   :  { %v400_v61 = vmul.f32 %v526_v60, %v396_v58 }
 0x239   :  { %401 = vst [vmem:[%s658_s3] sm:$0xff] %v400_v61 }

// kernel: autoencoder_forward.18
= control target key start
LH: loop header
LB: loop body
LE: loop exit
PB: predicated region body
PF: predicated region fallthrough
CT: control target
= control target key end

     0   :  { %s1543_s12 = smov 0   ;;  %s1545_s13 = smov 0   ;;  %s1709_s0 = inlined_call_operand.vmem [shape: bf16[8,1152], index: 0, kind: input, shape index: {}]   ;;  %s1710_s1 = inlined_call_operand.vmem [shape: bf16[1152,512], index: 1, kind: input, shape index: {}]   ;;  %s1711_s2 = inlined_call_operand.vmem [shape: f32[1,512], index: 2, kind: input, shape index: {}]   ;;  %s1712_s3 = inlined_call_operand.vmem [shape: f32[8,512], index: 3, kind: output, shape index: {}]  }
   0x1   :  { %s1547_s14 = smov 0  }
   0x2 LB: > { %s25_s15 = sadd.s32 1, %s1515_s13  ;;  %p1214_p0 = scmp.ge.s32.totalorder %s1519_s14, 1  ;;  %s1519_s14 = sphi %s1547_s14, %s13_s14   ;;  %s1515_s13 = sphi %s1545_s13, %s1714_s13   ;;  %s1511_s12 = sphi %s1543_s12, %s1713_s12  }
   0x3   : > { %p26_p1 = scmp.ge.s32.totalorder %s25_s15, 3  ;;  %p194_p2 = scmp.lt.s32.totalorder %s1519_s14, 4 }
   0x5   : > { %s1716_s15 = smov (%p26_p1, %s25_s15), 0  ;;  %p195_p3 = pnand %p1214_p0, %p194_p2 }
   0x6   : > { %s240_s16 = smul.u32 (!%p195_p3), 3, %s1511_s12  ;;  %p1218_p6 = scmp.ne.s32.totalorder (!%p195_p3), %s1511_s12, 0 }
   0x7   : > { %198 = sbr.rel (%p195_p3) target bundleno = 352 (0x160), region = 32 }
   0x8   : > { %s250_s17 = smul.u32 (!%p195_p3), 48, %s1511_s12  ;;  %p243_p4 = scmp.lt.s32.totalorder (!%p195_p3), %s240_s16, 8 }
   0xa   : > { %p252_p5 = scmp.lt.s32.totalorder (!%p195_p3), %s250_s17, 143 }
   0xe   : > { %s1718_s16 = smov (!%p243_p4, %s240_s16), 8  ;;  %s1720_s17 = smov (!%p252_p5, %s250_s17), 143 }
   0xf   : > { %s1215_s18 = sshll.u32 %s1718_s16, 2  ;;  %s1323_s22 = sshll.u32 %s1720_s17, 4  ;;  %v1521_v0 = vmov (!%p1218_p6), 0.0  }
  0x10   : > { %s1568_s21 = scalar_lea.vmem %s1709_s0, %s1215_s18  ;;  %s1573_s25 = scalar_lea.vmem %s1710_s1, %s1323_s22  ;;  %282 = vst [vmem:[#allocation2] sm:$0xff] (!%p1218_p6), %v1521_v0  ;;  %283 = vst [vmem:[#allocation2 + $0x8] sm:$0xff] (!%p1218_p6), %v1521_v0 }
  0x11   : > { %281 = sbr.rel (%p1218_p6) target bundleno = 24 (0x18), region = 36  ;;  %284 = vst [vmem:[#allocation2 + $0x10] sm:$0xff] (!%p1218_p6), %v1521_v0  ;;  %285 = vst [vmem:[#allocation2 + $0x18] sm:$0xff] (!%p1218_p6), %v1521_v0 }
  0x18 PF: > { %v1350_v1 = vld [vmem:[%s1573_s25 + $0x4] ss:$16 sps:$4 sm:$0xff]   ;;  %v1522_v3 = vmov 0   ;;  %v1354_v4 = vld [vmem:[%s1573_s25] ss:$16 sps:$4 sm:$0xff]   ;;  %p1318_p7 = scmp.ne.s32.totalorder %s1511_s12, 2 }
  0x19   : > { %v1352_v2 = vld [vmem:[%s1573_s25 + $0x204] ss:$16 sps:$4 sm:$0xff]   ;;  %952 = vmatprep.mubr.bf16.mxu1 %v1522_v3  ;;  %879 = vmatprep.subr.bf16.mxu0 %v1350_v1  ;;  %v1355_v5 = vld [vmem:[%s1573_s25 + $0x200] ss:$16 sps:$4 sm:$0xff]   ;;  %v1403_v35 = vld [vmem:[%s1573_s25 + $0xc] ss:$16 sps:$4 sm:$0xff]  }
  0x1a   : > { %920 = vmatprep.subr.bf16.mxu1 %v1352_v2  ;;  %v1356_v6 = vld [vmem:[%s1573_s25 + $0x24] ss:$16 sps:$4 sm:$0xff]   ;;  %880 = vmatpush1.bf16.msra.mxu0 %v1354_v4  ;;  %v1360_v8 = vld [vmem:[%s1573_s25 + $0x20] ss:$16 sps:$4 sm:$0xff]   ;;  %v1612_v36 = vld [vmem:[%s1568_s21 + $0x8] ss:$0 sps:$4 sm:$0xff]  }
  0x1b   : > { %921 = vmatpush1.bf16.msra.mxu1 %v1355_v5  ;;  %v1358_v7 = vld [vmem:[%s1573_s25 + $0x224] ss:$16 sps:$4 sm:$0xff]   ;;  %881 = vmatprep.subr.bf16.mxu0 %v1356_v6  ;;  %v1361_v9 = vld [vmem:[%s1573_s25 + $0x220] ss:$16 sps:$4 sm:$0xff]   ;;  %v1401_v37 = vld [vmem:[%s1573_s25 + $0x8] ss:$16 sps:$4 sm:$0xff]  }
  0x1c   : > { %922 = vmatprep.subr.bf16.mxu1 %v1358_v7  ;;  %v1362_v10 = vld [vmem:[%s1573_s25 + $0x44] ss:$16 sps:$4 sm:$0xff]   ;;  %v1366_v12 = vld [vmem:[%s1573_s25 + $0x40] ss:$16 sps:$4 sm:$0xff]   ;;  %v1409_v40 = vld [vmem:[%s1573_s25 + $0x2c] ss:$16 sps:$4 sm:$0xff]  }
  0x1d   : > { %v1364_v11 = vld [vmem:[%s1573_s25 + $0x244] ss:$16 sps:$4 sm:$0xff]   ;;  %v1367_v13 = vld [vmem:[%s1573_s25 + $0x240] ss:$16 sps:$4 sm:$0xff]   ;;  %v1407_v41 = vld [vmem:[%s1573_s25 + $0x28] ss:$16 sps:$4 sm:$0xff]  }
  0x1e   : > { %882 = vmatpush1.bf16.msra.mxu0 %v1360_v8  ;;  %v1368_v14 = vld [vmem:[%s1573_s25 + $0x64] ss:$16 sps:$4 sm:$0xff]   ;;  %v1372_v16 = vld [vmem:[%s1573_s25 + $0x60] ss:$16 sps:$4 sm:$0xff]   ;;  %v1415_v44 = vld [vmem:[%s1573_s25 + $0x4c] ss:$16 sps:$4 sm:$0xff]  }
  0x1f   : > { %923 = vmatpush1.bf16.msra.mxu1 %v1361_v9  ;;  %883 = vmatprep.subr.bf16.mxu0 %v1362_v10  ;;  %v1370_v15 = vld [vmem:[%s1573_s25 + $0x264] ss:$16 sps:$4 sm:$0xff]   ;;  %v1373_v17 = vld [vmem:[%s1573_s25 + $0x260] ss:$16 sps:$4 sm:$0xff]   ;;  %v1413_v45 = vld [vmem:[%s1573_s25 + $0x48] ss:$16 sps:$4 sm:$0xff]  }
  0x20   : > { %924 = vmatprep.subr.bf16.mxu1 %v1364_v11  ;;  %v1374_v18 = vld [vmem:[%s1573_s25 + $0x84] ss:$16 sps:$4 sm:$0xff]   ;;  %v1378_v20 = vld [vmem:[%s1573_s25 + $0x80] ss:$16 sps:$4 sm:$0xff]   ;;  %v1421_v48 = vld [vmem:[%s1573_s25 + $0x6c] ss:$16 sps:$4 sm:$0xff]  }
  0x21   : > { %v1376_v19 = vld [vmem:[%s1573_s25 + $0x284] ss:$16 sps:$4 sm:$0xff]   ;;  %v1379_v21 = vld [vmem:[%s1573_s25 + $0x280] ss:$16 sps:$4 sm:$0xff]   ;;  %v1419_v49 = vld [vmem:[%s1573_s25 + $0x68] ss:$16 sps:$4 sm:$0xff]  }
  0x22   : > { %884 = vmatpush1.bf16.msra.mxu0 %v1366_v12  ;;  %v1380_v22 = vld [vmem:[%s1573_s25 + $0xa4] ss:$16 sps:$4 sm:$0xff]   ;;  %v1384_v24 = vld [vmem:[%s1573_s25 + $0xa0] ss:$16 sps:$4 sm:$0xff]   ;;  %v1427_v54 = vld [vmem:[%s1573_s25 + $0x8c] ss:$16 sps:$4 sm:$0xff]  }
  0x23   : > { %925 = vmatpush1.bf16.msra.mxu1 %v1367_v13  ;;  %885 = vmatprep.subr.bf16.mxu0 %v1368_v14  ;;  %v1382_v23 = vld [vmem:[%s1573_s25 + $0x2a4] ss:$16 sps:$4 sm:$0xff]   ;;  %v1385_v25 = vld [vmem:[%s1573_s25 + $0x2a0] ss:$16 sps:$4 sm:$0xff]   ;;  %v1425_v55 = vld [vmem:[%s1573_s25 + $0x88] ss:$16 sps:$4 sm:$0xff]  }
  0x24   : > { %926 = vmatprep.subr.bf16.mxu1 %v1370_v15  ;;  %v1386_v26 = vld [vmem:[%s1573_s25 + $0xc4] ss:$16 sps:$4 sm:$0xff]   ;;  %v1390_v28 = vld [vmem:[%s1573_s25 + $0xc0] ss:$16 sps:$4 sm:$0xff]   ;;  %v1433_v58 = vld [vmem:[%s1573_s25 + $0xac] ss:$16 sps:$4 sm:$0xff]  }
  0x25   : > { %v1388_v27 = vld [vmem:[%s1573_s25 + $0x2c4] ss:$16 sps:$4 sm:$0xff]   ;;  %v1391_v29 = vld [vmem:[%s1573_s25 + $0x2c0] ss:$16 sps:$4 sm:$0xff]   ;;  %v1431_v59 = vld [vmem:[%s1573_s25 + $0xa8] ss:$16 sps:$4 sm:$0xff]  }
  0x26   : > { %886 = vmatpush1.bf16.msra.mxu0 %v1372_v16  ;;  %v1392_v30 = vld [vmem:[%s1573_s25 + $0xe4] ss:$16 sps:$4 sm:$0xff]   ;;  %v1396_v32 = vld [vmem:[%s1573_s25 + $0xe0] ss:$16 sps:$4 sm:$0xff]   ;;  %v1439_v62 = vld [vmem:[%s1573_s25 + $0xcc] ss:$16 sps:$4 sm:$0xff]  }
  0x27   : > { %927 = vmatpush1.bf16.msra.mxu1 %v1373_v17  ;;  %887 = vmatprep.subr.bf16.mxu0 %v1374_v18  ;;  %v1394_v31 = vld [vmem:[%s1573_s25 + $0x2e4] ss:$16 sps:$4 sm:$0xff]   ;;  %v1397_v33 = vld [vmem:[%s1573_s25 + $0x2e0] ss:$16 sps:$4 sm:$0xff]   ;;  %v1437_v63 = vld [vmem:[%s1573_s25 + $0xc8] ss:$16 sps:$4 sm:$0xff]  }
  0x28   : > { %928 = vmatprep.subr.bf16.mxu1 %v1376_v19  ;;  %v1398_v34 = vld [vmem:[%s1573_s25 + $0x104] ss:$16 sps:$4 sm:$0xff]   ;;  %v1404_v38 = vld [vmem:[%s1573_s25 + $0x100] ss:$16 sps:$4 sm:$0xff]   ;;  %v1445_v2 = vld [vmem:[%s1573_s25 + $0xec] ss:$16 sps:$4 sm:$0xff]  }
  0x29   : > { %v1405_v39 = vld [vmem:[%s1573_s25 + $0x124] ss:$16 sps:$4 sm:$0xff]   ;;  %v1410_v42 = vld [vmem:[%s1573_s25 + $0x120] ss:$16 sps:$4 sm:$0xff]   ;;  %v1443_v4 = vld [vmem:[%s1573_s25 + $0xe8] ss:$16 sps:$4 sm:$0xff]  }
  0x2a   : > { %888 = vmatpush1.bf16.msra.mxu0 %v1378_v20  ;;  %v1411_v43 = vld [vmem:[%s1573_s25 + $0x144] ss:$16 sps:$4 sm:$0xff]   ;;  %v1416_v46 = vld [vmem:[%s1573_s25 + $0x140] ss:$16 sps:$4 sm:$0xff]   ;;  %v1451_v6 = vld [vmem:[%s1573_s25 + $0x10c] ss:$16 sps:$4 sm:$0xff]  }
  0x2b   : > { %929 = vmatpush1.bf16.msra.mxu1 %v1379_v21  ;;  %889 = vmatprep.subr.bf16.mxu0 %v1380_v22  ;;  %v1417_v47 = vld [vmem:[%s1573_s25 + $0x164] ss:$16 sps:$4 sm:$0xff]   ;;  %v1422_v51 = vld [vmem:[%s1573_s25 + $0x160] ss:$16 sps:$4 sm:$0xff]   ;;  %v1454_v7 = vld [vmem:[%s1573_s25 + $0x20c] ss:$16 sps:$4 sm:$0xff]  }
  0x2c   : > { %930 = vmatprep.subr.bf16.mxu1 %v1382_v23  ;;  %v290_v50 = vld [vmem:[%s1568_s21] sm:$0xff]  ;;  %v1449_v9 = vld [vmem:[%s1573_s25 + $0x108] ss:$16 sps:$4 sm:$0xff]   ;;  %v1457_v11 = vld [vmem:[%s1573_s25 + $0x12c] ss:$16 sps:$4 sm:$0xff]  }
  0x2d   : > { %v1423_v52 = vld [vmem:[%s1573_s25 + $0x184] ss:$16 sps:$4 sm:$0xff]   ;;  %v1220_v53 = vcombine.high %v290_v50, %v290_v50  ;;  %v1428_v56 = vld [vmem:[%s1573_s25 + $0x180] ss:$16 sps:$4 sm:$0xff]   ;;  %v1648_v8 = vcombine.low %v290_v50, %v290_v50  ;;  %v1452_v10 = vld [vmem:[%s1573_s25 + $0x208] ss:$16 sps:$4 sm:$0xff]  }
  0x2e   : > { %890 = vmatpush1.bf16.msra.mxu0 %v1384_v24  ;;  %v1429_v57 = vld [vmem:[%s1573_s25 + $0x1a4] ss:$16 sps:$4 sm:$0xff]   ;;  %v1434_v60 = vld [vmem:[%s1573_s25 + $0x1a0] ss:$16 sps:$4 sm:$0xff]   ;;  %v1460_v12 = vld [vmem:[%s1573_s25 + $0x22c] ss:$16 sps:$4 sm:$0xff]  }
  0x2f   : > { %931 = vmatpush1.bf16.msra.mxu1 %v1385_v25  ;;  %891 = vmatprep.subr.bf16.mxu0 %v1386_v26  ;;  %v1435_v61 = vld [vmem:[%s1573_s25 + $0x1c4] ss:$16 sps:$4 sm:$0xff]   ;;  %v1440_v0 = vld [vmem:[%s1573_s25 + $0x1c0] ss:$16 sps:$4 sm:$0xff]   ;;  %v1455_v13 = vld [vmem:[%s1573_s25 + $0x128] ss:$16 sps:$4 sm:$0xff]  }
  0x30   : > { %932 = vmatprep.subr.bf16.mxu1 %v1388_v27  ;;  %911 = vmatprep.mubr.bf16.mxu0 %v1220_v53  ;;  %v1441_v1 = vld [vmem:[%s1573_s25 + $0x1e4] ss:$16 sps:$4 sm:$0xff]   ;;  %v1446_v5 = vld [vmem:[%s1573_s25 + $0x1e0] ss:$16 sps:$4 sm:$0xff]   ;;  %v1458_v14 = vld [vmem:[%s1573_s25 + $0x228] ss:$16 sps:$4 sm:$0xff]  }
  0x31   : > { %v1463_v15 = vld [vmem:[%s1573_s25 + $0x14c] ss:$16 sps:$4 sm:$0xff]   ;;  %v1461_v17 = vld [vmem:[%s1573_s25 + $0x148] ss:$16 sps:$4 sm:$0xff]  }
  0x32   : > { %892 = vmatpush1.bf16.msra.mxu0 %v1390_v28  ;;  %v1466_v16 = vld [vmem:[%s1573_s25 + $0x24c] ss:$16 sps:$4 sm:$0xff]   ;;  %v1464_v18 = vld [vmem:[%s1573_s25 + $0x248] ss:$16 sps:$4 sm:$0xff]  }
  0x33   : > { %933 = vmatpush1.bf16.msra.mxu1 %v1391_v29  ;;  %893 = vmatprep.subr.bf16.mxu0 %v1392_v30  ;;  %v1469_v19 = vld [vmem:[%s1573_s25 + $0x16c] ss:$16 sps:$4 sm:$0xff]   ;;  %v1467_v21 = vld [vmem:[%s1573_s25 + $0x168] ss:$16 sps:$4 sm:$0xff]  }
  0x34   : > { %934 = vmatprep.subr.bf16.mxu1 %v1394_v31  ;;  %v1472_v20 = vld [vmem:[%s1573_s25 + $0x26c] ss:$16 sps:$4 sm:$0xff]   ;;  %v1470_v22 = vld [vmem:[%s1573_s25 + $0x268] ss:$16 sps:$4 sm:$0xff]  }
  0x35   : > { %v1478_v23 = vld [vmem:[%s1573_s25 + $0x28c] ss:$16 sps:$4 sm:$0xff]   ;;  %v1473_v24 = vld [vmem:[%s1573_s25 + $0x188] ss:$16 sps:$4 sm:$0xff]  }
  0x36   : > { %894 = vmatpush1.bf16.msra.mxu0 %v1396_v32  ;;  %v1476_v25 = vld [vmem:[%s1573_s25 + $0x288] ss:$16 sps:$4 sm:$0xff]   ;;  %v1481_v26 = vld [vmem:[%s1573_s25 + $0x1ac] ss:$16 sps:$4 sm:$0xff]  }
  0x37   : > { %935 = vmatpush1.bf16.msra.mxu1 %v1397_v33  ;;  %895 = vmatprep.subr.bf16.mxu0 %v1398_v34  ;;  %v1484_v27 = vld [vmem:[%s1573_s25 + $0x2ac] ss:$16 sps:$4 sm:$0xff]   ;;  %v1479_v28 = vld [vmem:[%s1573_s25 + $0x1a8] ss:$16 sps:$4 sm:$0xff]  }
  0x38   : > { %961 = vmatprep.subr.bf16.mxu1 %v1403_v35  ;;  %v1482_v29 = vld [vmem:[%s1573_s25 + $0x2a8] ss:$16 sps:$4 sm:$0xff]   ;;  %v1487_v30 = vld [vmem:[%s1573_s25 + $0x1cc] ss:$16 sps:$4 sm:$0xff]  }
  0x39   : > { %v1490_v31 = vld [vmem:[%s1573_s25 + $0x2cc] ss:$16 sps:$4 sm:$0xff]   ;;  %v1485_v32 = vld [vmem:[%s1573_s25 + $0x1c8] ss:$16 sps:$4 sm:$0xff]  }
  0x3a   : > { %953 = vmatmul.mubr.bf16.vlgmr.msra.gmra.mrb[0].mxu1 %v1612_v36  ;;  %896 = vmatpush1.bf16.msra.mxu0 %v1404_v38  ;;  %v1488_v33 = vld [vmem:[%s1573_s25 + $0x2c8] ss:$16 sps:$4 sm:$0xff]   ;;  %v1493_v34 = vld [vmem:[%s1573_s25 + $0x1ec] ss:$16 sps:$4 sm:$0xff]  }
  0x3b   : > { %962 = vmatpush1.bf16.msra.mxu1 %v1401_v37  ;;  %897 = vmatprep.subr.bf16.mxu0 %v1405_v39  ;;  %v1496_v35 = vld [vmem:[%s1573_s25 + $0x2ec] ss:$16 sps:$4 sm:$0xff]   ;;  %v1491_v37 = vld [vmem:[%s1573_s25 + $0x1e8] ss:$16 sps:$4 sm:$0xff]  }
  0x3c   : > { %963 = vmatprep.subr.bf16.mxu1 %v1409_v40  ;;  %993 = vmatprep.mubr.bf16.mxu1 %v1220_v53  ;;  %v1494_v38 = vld [vmem:[%s1573_s25 + $0x2e8] ss:$16 sps:$4 sm:$0xff]  }
  0x3e   : > { %898 = vmatpush1.bf16.msra.mxu0 %v1410_v42 }
  0x3f   : > { %964 = vmatpush1.bf16.msra.mxu1 %v1407_v41  ;;  %899 = vmatprep.subr.bf16.mxu0 %v1411_v43  ;;  %v286_v43 = vld [vmem:[#allocation2] sm:$0xff] }
  0x40   : > { %965 = vmatprep.subr.bf16.mxu1 %v1415_v44 }
  0x42   : > { %900 = vmatpush1.bf16.msra.mxu0 %v1416_v46  ;;  %v287_v46 = vld [vmem:[#allocation2 + $0x8] sm:$0xff] }
  0x43   : > { %966 = vmatpush1.bf16.msra.mxu1 %v1413_v45  ;;  %901 = vmatprep.subr.bf16.mxu0 %v1417_v47 }
  0x44   : > { %967 = vmatprep.subr.bf16.mxu1 %v1421_v48 }
  0x46   : > { %902 = vmatpush1.bf16.msra.mxu0 %v1422_v51 }
  0x47   : > { %968 = vmatpush1.bf16.msra.mxu1 %v1419_v49  ;;  %903 = vmatprep.subr.bf16.mxu0 %v1423_v52 }
  0x48   : > { %969 = vmatprep.subr.bf16.mxu1 %v1427_v54  ;;  %v288_v54 = vld [vmem:[#allocation2 + $0x10] sm:$0xff] }
  0x4a   : > { %904 = vmatpush1.bf16.msra.mxu0 %v1428_v56 }
  0x4b   : > { %970 = vmatpush1.bf16.msra.mxu1 %v1425_v55  ;;  %905 = vmatprep.subr.bf16.mxu0 %v1429_v57  ;;  %v289_v57 = vld [vmem:[#allocation2 + $0x18] sm:$0xff] }
  0x4c   : > { %971 = vmatprep.subr.bf16.mxu1 %v1433_v58 }
  0x4e   : > { %906 = vmatpush1.bf16.msra.mxu0 %v1434_v60 }
  0x4f   : > { %972 = vmatpush1.bf16.msra.mxu1 %v1431_v59  ;;  %907 = vmatprep.subr.bf16.mxu0 %v1435_v61 }
  0x50   : > { %973 = vmatprep.subr.bf16.mxu1 %v1439_v62 }
  0x52   : > { %908 = vmatpush1.bf16.msra.mxu0 %v1440_v0 }
  0x53   : > { %974 = vmatpush1.bf16.msra.mxu1 %v1437_v63  ;;  %909 = vmatprep.subr.bf16.mxu0 %v1441_v1 }
  0x54   : > { %975 = vmatprep.subr.bf16.mxu1 %v1445_v2  ;;  %v1061_v2 = vlaneseq (!%p1318_p7) }
  0x56   : > { %910 = vmatpush1.bf16.msra.mxu0 %v1446_v5  ;;  %v1059_v5 = vld [vmem:[%s1711_s2] sm:$0xf] (!%p1318_p7) }
  0x57   : > { %976 = vmatpush1.bf16.msra.mxu1 %v1443_v4  ;;  %1002 = vmatprep.subr.bf16.mxu0 %v1454_v7  ;;  %v1062_v4 = vshrl.u32 (!%p1318_p7), %v1061_v2, 7 }
  0x58   : > { %977 = vmatprep.subr.bf16.mxu1 %v1451_v6 }
  0x59   : > { %912 = vmatmul.mubr.bf16.vlgmr.msra.gmra.mrb[0].mxu0 %v1648_v8  ;;  %v1063_v7 = vsub.s32 (!%p1318_p7), 0, %v1062_v4 }
  0x5a   : > { %1003 = vmatpush1.bf16.msra.mxu0 %v1452_v10  ;;  %1034 = vmatprep.mubr.bf16.mxu0 %v1522_v3  ;;  %v1475_v3 = vld [vmem:[%s1573_s25 + $0x18c] ss:$16 sps:$4 sm:$0xff]   ;;  %v1075_v10 = vsub.s32 (!%p1318_p7), 3, %v1062_v4 }
  0x5b   : > { %978 = vmatpush1.bf16.msra.mxu1 %v1449_v9  ;;  %1004 = vmatprep.subr.bf16.mxu0 %v1460_v12  ;;  %v1071_v9 = vsub.s32 (!%p1318_p7), 2, %v1062_v4 }
  0x5c   : > { %979 = vmatprep.subr.bf16.mxu1 %v1457_v11 }
  0x5e   : > { %1005 = vmatpush1.bf16.msra.mxu0 %v1458_v14  ;;  %v1064_v14 = vrot.slane (!%p1318_p7), %v1059_v5, %v1063_v7 }
  0x5f   : > { %980 = vmatpush1.bf16.msra.mxu1 %v1455_v13  ;;  %1006 = vmatprep.subr.bf16.mxu0 %v1466_v16  ;;  %v1072_v16 = vrot.slane (!%p1318_p7), %v1059_v5, %v1071_v9 }
  0x60   : > { %981 = vmatprep.subr.bf16.mxu1 %v1463_v15 }
  0x62   : > { %1007 = vmatpush1.bf16.msra.mxu0 %v1464_v18 }
  0x63   : > { %982 = vmatpush1.bf16.msra.mxu1 %v1461_v17  ;;  %1008 = vmatprep.subr.bf16.mxu0 %v1472_v20  ;;  %v1076_v17 = vrot.slane (!%p1318_p7), %v1059_v5, %v1075_v10 }
  0x64   : > { %983 = vmatprep.subr.bf16.mxu1 %v1469_v19 }
  0x66   : > { %1009 = vmatpush1.bf16.msra.mxu0 %v1470_v22 }
  0x67   : > { %984 = vmatpush1.bf16.msra.mxu1 %v1467_v21  ;;  %1010 = vmatprep.subr.bf16.mxu0 %v1478_v23 }
  0x68   : > { %985 = vmatprep.subr.bf16.mxu1 %v1475_v3 }
  0x6a   : > { %1011 = vmatpush1.bf16.msra.mxu0 %v1476_v25 }
  0x6b   : > { %986 = vmatpush1.bf16.msra.mxu1 %v1473_v24  ;;  %1012 = vmatprep.subr.bf16.mxu0 %v1484_v27 }
  0x6c   : > { %987 = vmatprep.subr.bf16.mxu1 %v1481_v26 }
  0x6e   : > { %1013 = vmatpush1.bf16.msra.mxu0 %v1482_v29 }
  0x6f   : > { %988 = vmatpush1.bf16.msra.mxu1 %v1479_v28  ;;  %1014 = vmatprep.subr.bf16.mxu0 %v1490_v31 }
  0x70   : > { %989 = vmatprep.subr.bf16.mxu1 %v1487_v30 }
  0x72   : > { %1015 = vmatpush1.bf16.msra.mxu0 %v1488_v33 }
  0x73   : > { %990 = vmatpush1.bf16.msra.mxu1 %v1485_v32  ;;  %1016 = vmatprep.subr.bf16.mxu0 %v1496_v35 }
  0x74   : > { %991 = vmatprep.subr.bf16.mxu1 %v1493_v34 }
  0x76   : > { %1017 = vmatpush1.bf16.msra.mxu0 %v1494_v38 }
  0x77   : > { %992 = vmatpush1.bf16.msra.mxu1 %v1491_v37 }
  0x79   : > { %1035 = vmatmul.mubr.bf16.vlgmr.msra.gmra.mrb[4].mxu0 %v1612_v36 }
  0x7a   : > { %994 = vmatmul.mubr.bf16.vlgmr.msra.gmra.mrb[4].mxu1 %v1648_v8  ;;  %v1067_v8 = vsub.s32 (!%p1318_p7), 1, %v1062_v4 }
  0x7c   : > { %v1068_v15 = vrot.slane (!%p1318_p7), %v1059_v5, %v1067_v8 }
 0x10d   : > { %v954_v39 = vpop.f32.mrb[0].mxu1 }
 0x10e   : > { %v956_v40 = vpop.f32.mrb[1].mxu1 }
 0x10f   : > { %v958_v41 = vpop.f32.mrb[2].mxu1 }
 0x110   : > { %v959_v42 = vpop.f32.mrb[3].mxu1 }
 0x12c   : > { %v913_v44 = vpop.f32.mrb[0].mxu0 }
 0x12d   : > { %v955_v45 = vadd.f32 %v954_v39, %v913_v44  ;;  %v915_v47 = vpop.f32.mrb[1].mxu0 }
 0x12e   : > { %v957_v48 = vadd.f32 %v956_v40, %v915_v47  ;;  %v917_v49 = vpop.f32.mrb[2].mxu0 }
 0x12f   : > { %v1043_v50 = vadd.f32 %v955_v45, %v286_v43  ;;  %v918_v51 = vpop.f32.mrb[3].mxu0 }
 0x130   : > { %v1044_v52 = vadd.f32 %v957_v48, %v287_v46 }
 0x131   : > { %1047 = vst [vmem:[#allocation2] sm:$0xff] %v1043_v50 }
 0x132   : > { %1048 = vst [vmem:[#allocation2 + $0x8] sm:$0xff] %v1044_v52 }
 0x138   : > { %v1055_v6 = vld [vmem:[#allocation2] sm:$0xff] (!%p1318_p7) }
 0x139   : > { %v1056_v11 = vld [vmem:[#allocation2 + $0x8] sm:$0xff] (!%p1318_p7)  ;;  %v1081_v18 = vadd.f32 (!%p1318_p7), %v1064_v14, %v1055_v6 }
 0x13a   : > { %v1082_v19 = vadd.f32 (!%p1318_p7), %v1068_v15, %v1056_v11 }
 0x13b   : > { %v1085_v22 = vmax.f32 (!%p1318_p7), %v1081_v18, 0.0 }
 0x13c   : > { %v1086_v3 = vmax.f32 (!%p1318_p7), %v1082_v19, 0.0 }
 0x13d   : > { %1089 = vst [vmem:[%s1712_s3] sm:$0xff] (!%p1318_p7), %v1085_v22 }
 0x13e   : > { %1090 = vst [vmem:[%s1712_s3 + $0x8] sm:$0xff] (!%p1318_p7), %v1086_v3 }
 0x14c   : > { %v1036_v55 = vpop.f32.mrb[4].mxu0 }
 0x14d   : > { %v995_v53 = vpop.f32.mrb[4].mxu1  ;;  %v1038_v58 = vpop.f32.mrb[5].mxu0  ;;  %1054 = sbr.rel (%p1318_p7) target bundleno = 352 (0x160), region = 40 }
 0x14e   : > { %v1037_v36 = vadd.f32 %v1036_v55, %v995_v53  ;;  %v997_v56 = vpop.f32.mrb[5].mxu1  ;;  %v1040_v61 = vpop.f32.mrb[6].mxu0 }
 0x14f   : > { %v1039_v59 = vadd.f32 %v1038_v58, %v997_v56  ;;  %v999_v60 = vpop.f32.mrb[6].mxu1  ;;  %v1041_v0 = vpop.f32.mrb[7].mxu0 }
 0x150   : > { %v1045_v62 = vadd.f32 %v1037_v36, %v288_v54  ;;  %v1000_v63 = vpop.f32.mrb[7].mxu1 }
 0x151   : > { %v1046_v1 = vadd.f32 %v1039_v59, %v289_v57 }
 0x152   : > { %1049 = vst [vmem:[#allocation2 + $0x10] sm:$0xff] %v1045_v62 }
 0x153   : > { %1050 = vst [vmem:[#allocation2 + $0x18] sm:$0xff] %v1046_v1 }
 0x159   : > { %v1057_v12 = vld [vmem:[#allocation2 + $0x10] sm:$0xff] }
 0x15a   : > { %v1058_v13 = vld [vmem:[#allocation2 + $0x18] sm:$0xff]  ;;  %v1083_v20 = vadd.f32 %v1072_v16, %v1057_v12 }
 0x15b   : > { %v1084_v21 = vadd.f32 %v1076_v17, %v1058_v13 }
 0x15c   : > { %v1087_v23 = vmax.f32 %v1083_v20, 0.0 }
 0x15d   : > { %v1088_v24 = vmax.f32 %v1084_v21, 0.0 }
 0x15e   : > { %1091 = vst [vmem:[%s1712_s3 + $0x10] sm:$0xff] %v1087_v23 }
 0x15f   : > { %1092 = vst [vmem:[%s1712_s3 + $0x18] sm:$0xff] %v1088_v24 }
 0x160 PF: > { %s13_s14 = sadd.s32 1, %s1519_s14   ;;  %s1713_s12 = smov %s1515_s13 }
 0x161   : > { %p10_p8 = scmp.ge.s32.totalorder %s13_s14, 5   ;;  %s1714_s13 = smov %s1716_s15 }
 0x163   :  { %12 = sbr.rel (!%p10_p8) target bundleno = 2 (0x2), region = 76 }

// kernel: autoencoder_forward.17
= control target key start
LH: loop header
LB: loop body
LE: loop exit
PB: predicated region body
PF: predicated region fallthrough
CT: control target
= control target key end

     0   :  { %s3269_s12 = smov 0   ;;  %s3271_s13 = smov 0   ;;  %s4042_s0 = inlined_call_operand.vmem [shape: bf16[8,4480], index: 0, kind: input, shape index: {}]   ;;  %s4043_s1 = inlined_call_operand.vmem [shape: bf16[4480,1152], index: 1, kind: input, shape index: {}]   ;;  %s4044_s2 = inlined_call_operand.vmem [shape: f32[1,1152], index: 2, kind: input, shape index: {}]   ;;  %s4045_s3 = inlined_call_operand.vmem [shape: f32[8,1152], index: 3, kind: output, shape index: {}]  }
   0x1   :  { %s3273_s14 = smov 0   ;;  %s3275_s15 = smov 0  }
   0x2   :  { %s3277_s16 = smov 0   ;;  %s3279_s17 = smov 0  }
   0x3   :  { %s3281_s18 = smov 0  }
   0x4 LB: > { %s25_s19 = sadd.s32 1, %s3235_s16  ;;  %s28_s20 = sadd.s32 1, %s3239_s17  ;;  %s3243_s18 = sphi %s3281_s18, %s13_s18   ;;  %s3239_s17 = sphi %s3279_s17, %s4051_s17   ;;  %s3235_s16 = sphi %s3277_s16, %s4050_s16   ;;  %s3231_s15 = sphi %s3275_s15, %s4049_s15   ;;  %s3227_s14 = sphi %s3273_s14, %s4048_s14   ;;  %s3223_s13 = sphi %s3271_s13, %s4047_s13   ;;  %s3219_s12 = sphi %s3269_s12, %s4046_s12  }
   0x5   : > { %p26_p0 = scmp.ge.s32.totalorder %s25_s19, 5  ;;  %p76_p1 = scmp.ne.s32.totalorder %s3223_s13, %s3219_s12 }
   0x6   : > { %p77_p2 = scmp.eq.s32.totalorder %s3243_s18, 0  ;;  %s69_s24 = sadd.s32 1, %s3223_s13 }
   0x7   : > { %s4053_s19 = smov (%p26_p0, %s25_s19), 0  ;;  %s4055_s20 = smov (!%p26_p0, %s28_s20), %s3239_s17 }
   0x8   : > { %p78_p3 = por %p77_p2, %p76_p1  ;;  %p30_p4 = scmp.ge.s32.totalorder %s4055_s20, 3 }
   0x9   : > { %s64_s21 = ssub.s32 %s3235_s16, %s4053_s19  ;;  %p2391_p6 = scmp.ge.s32.totalorder %s3243_s18, 15 }
   0xa   : > { %s4057_s20 = smov (%p30_p4, %s4055_s20), 0 }
   0xb   : > { %s65_s22 = ssub.s32 %s3239_s17, %s4057_s20  ;;  %156 = sbr.rel (%p2391_p6) target bundleno = 157 (0x9d), region = 16 }
   0xc   : > { %s66_s23 = sor.u32 %s65_s22, %s64_s21 }
   0xd   : > { %p67_p5 = scmp.eq.s32.totalorder %s66_s23, 0 }
   0xf   : > { %s3320_s25 = scalar_select %p67_p5, %s3223_s13, %s69_s24  }
  0x12   : > { %172 = sbr.rel (!%p78_p3) target bundleno = 157 (0x9d), region = 24  ;;  %s174_s26 = sand.u32 (%p78_p3), 1, %s3223_s13  }
  0x13   : > { %s2894_s27 = smul.u32 (%p78_p3), 1344, %s174_s26 }
  0x14   : > { %s178_s28 = smul.u32 (%p78_p3), 3, %s3239_s17 }
  0x15   : > { %s2897_s29 = smul.u32 (%p78_p3), 1008, %s3235_s16  ;;  %s3334_s8 = scalar_lea.vmem (%p78_p3), [#allocation3], %s2894_s27 }
  0x17   : > { %s180_s30 = sadd.s32 (%p78_p3), %s2897_s29, %s178_s28 }
  0x18   : > { %s2392_s4 = sshll.u32 (%p78_p3), %s180_s30, 2 }
  0x19   : > { %s3329_s7 = scalar_lea.vmem %s4043_s1, %s2392_s4 }
  0x1a   : > { %v197_v0 = vld [vmem:[%s3329_s7] sm:$0xff]  ;;  %v201_v2 = vld [vmem:[%s3329_s7 + $0x48] sm:$0xff]  ;;  %v205_v4 = vld [vmem:[%s3329_s7 + $0x90] sm:$0xff] }
  0x1b   : > { %v199_v1 = vld [vmem:[%s3329_s7 + $0x24] sm:$0xff]  ;;  %198 = vst [vmem:[%s3334_s8] sm:$0xff] %v197_v0  ;;  %202 = vst [vmem:[%s3334_s8 + $0x18] sm:$0xff] %v201_v2  ;;  %v203_v3 = vld [vmem:[%s3329_s7 + $0x6c] sm:$0xff] }
  0x1c   : > { %200 = vst [vmem:[%s3334_s8 + $0xc] sm:$0xff] %v199_v1  ;;  %v207_v5 = vld [vmem:[%s3329_s7 + $0xb4] sm:$0xff]  ;;  %204 = vst [vmem:[%s3334_s8 + $0x24] sm:$0xff] %v203_v3  ;;  %v211_v7 = vld [vmem:[%s3329_s7 + $0xfc] sm:$0xff] }
  0x1d   : > { %206 = vst [vmem:[%s3334_s8 + $0x30] sm:$0xff] %v205_v4  ;;  %208 = vst [vmem:[%s3334_s8 + $0x3c] sm:$0xff] %v207_v5  ;;  %v209_v6 = vld [vmem:[%s3329_s7 + $0xd8] sm:$0xff]  ;;  %v213_v8 = vld [vmem:[%s3329_s7 + $0x120] sm:$0xff] }
  0x1e   : > { %210 = vst [vmem:[%s3334_s8 + $0x48] sm:$0xff] %v209_v6  ;;  %212 = vst [vmem:[%s3334_s8 + $0x54] sm:$0xff] %v211_v7  ;;  %v215_v9 = vld [vmem:[%s3329_s7 + $0x144] sm:$0xff]  ;;  %v219_v11 = vld [vmem:[%s3329_s7 + $0x18c] sm:$0xff] }
  0x1f   : > { %214 = vst [vmem:[%s3334_s8 + $0x60] sm:$0xff] %v213_v8  ;;  %v217_v10 = vld [vmem:[%s3329_s7 + $0x168] sm:$0xff]  ;;  %216 = vst [vmem:[%s3334_s8 + $0x6c] sm:$0xff] %v215_v9  ;;  %v221_v12 = vld [vmem:[%s3329_s7 + $0x1b0] sm:$0xff] }
  0x20   : > { %218 = vst [vmem:[%s3334_s8 + $0x78] sm:$0xff] %v217_v10  ;;  %220 = vst [vmem:[%s3334_s8 + $0x84] sm:$0xff] %v219_v11  ;;  %v223_v13 = vld [vmem:[%s3329_s7 + $0x1d4] sm:$0xff]  ;;  %v227_v15 = vld [vmem:[%s3329_s7 + $0x21c] sm:$0xff] }
  0x21   : > { %v225_v14 = vld [vmem:[%s3329_s7 + $0x1f8] sm:$0xff]  ;;  %222 = vst [vmem:[%s3334_s8 + $0x90] sm:$0xff] %v221_v12  ;;  %224 = vst [vmem:[%s3334_s8 + $0x9c] sm:$0xff] %v223_v13  ;;  %v229_v16 = vld [vmem:[%s3329_s7 + $0x240] sm:$0xff] }
  0x22   : > { %226 = vst [vmem:[%s3334_s8 + $0xa8] sm:$0xff] %v225_v14  ;;  %v231_v17 = vld [vmem:[%s3329_s7 + $0x264] sm:$0xff]  ;;  %228 = vst [vmem:[%s3334_s8 + $0xb4] sm:$0xff] %v227_v15  ;;  %v235_v19 = vld [vmem:[%s3329_s7 + $0x2ac] sm:$0xff] }
  0x23   : > { %230 = vst [vmem:[%s3334_s8 + $0xc0] sm:$0xff] %v229_v16  ;;  %232 = vst [vmem:[%s3334_s8 + $0xcc] sm:$0xff] %v231_v17  ;;  %v233_v18 = vld [vmem:[%s3329_s7 + $0x288] sm:$0xff]  ;;  %v237_v20 = vld [vmem:[%s3329_s7 + $0x2d0] sm:$0xff] }
  0x24   : > { %234 = vst [vmem:[%s3334_s8 + $0xd8] sm:$0xff] %v233_v18  ;;  %236 = vst [vmem:[%s3334_s8 + $0xe4] sm:$0xff] %v235_v19  ;;  %v239_v21 = vld [vmem:[%s3329_s7 + $0x2f4] sm:$0xff]  ;;  %v243_v23 = vld [vmem:[%s3329_s7 + $0x33c] sm:$0xff] }
  0x25   : > { %238 = vst [vmem:[%s3334_s8 + $0xf0] sm:$0xff] %v237_v20  ;;  %v241_v22 = vld [vmem:[%s3329_s7 + $0x318] sm:$0xff]  ;;  %240 = vst [vmem:[%s3334_s8 + $0xfc] sm:$0xff] %v239_v21  ;;  %v245_v24 = vld [vmem:[%s3329_s7 + $0x360] sm:$0xff] }
  0x26   : > { %242 = vst [vmem:[%s3334_s8 + $0x108] sm:$0xff] %v241_v22  ;;  %244 = vst [vmem:[%s3334_s8 + $0x114] sm:$0xff] %v243_v23  ;;  %v247_v25 = vld [vmem:[%s3329_s7 + $0x384] sm:$0xff]  ;;  %v251_v27 = vld [vmem:[%s3329_s7 + $0x3cc] sm:$0xff] }
  0x27   : > { %v249_v26 = vld [vmem:[%s3329_s7 + $0x3a8] sm:$0xff]  ;;  %246 = vst [vmem:[%s3334_s8 + $0x120] sm:$0xff] %v245_v24  ;;  %248 = vst [vmem:[%s3334_s8 + $0x12c] sm:$0xff] %v247_v25  ;;  %v253_v28 = vld [vmem:[%s3329_s7 + $0x3f0] sm:$0xff] }
  0x28   : > { %250 = vst [vmem:[%s3334_s8 + $0x138] sm:$0xff] %v249_v26  ;;  %v255_v29 = vld [vmem:[%s3329_s7 + $0x414] sm:$0xff]  ;;  %252 = vst [vmem:[%s3334_s8 + $0x144] sm:$0xff] %v251_v27  ;;  %v259_v31 = vld [vmem:[%s3329_s7 + $0x45c] sm:$0xff] }
  0x29   : > { %254 = vst [vmem:[%s3334_s8 + $0x150] sm:$0xff] %v253_v28  ;;  %256 = vst [vmem:[%s3334_s8 + $0x15c] sm:$0xff] %v255_v29  ;;  %v257_v30 = vld [vmem:[%s3329_s7 + $0x438] sm:$0xff]  ;;  %v261_v32 = vld [vmem:[%s3329_s7 + $0x480] sm:$0xff] }
  0x2a   : > { %258 = vst [vmem:[%s3334_s8 + $0x168] sm:$0xff] %v257_v30  ;;  %260 = vst [vmem:[%s3334_s8 + $0x174] sm:$0xff] %v259_v31  ;;  %v263_v33 = vld [vmem:[%s3329_s7 + $0x4a4] sm:$0xff]  ;;  %v267_v35 = vld [vmem:[%s3329_s7 + $0x4ec] sm:$0xff] }
  0x2b   : > { %262 = vst [vmem:[%s3334_s8 + $0x180] sm:$0xff] %v261_v32  ;;  %v265_v34 = vld [vmem:[%s3329_s7 + $0x4c8] sm:$0xff]  ;;  %264 = vst [vmem:[%s3334_s8 + $0x18c] sm:$0xff] %v263_v33  ;;  %v269_v36 = vld [vmem:[%s3329_s7 + $0x510] sm:$0xff] }
  0x2c   : > { %266 = vst [vmem:[%s3334_s8 + $0x198] sm:$0xff] %v265_v34  ;;  %268 = vst [vmem:[%s3334_s8 + $0x1a4] sm:$0xff] %v267_v35  ;;  %v271_v37 = vld [vmem:[%s3329_s7 + $0x534] sm:$0xff]  ;;  %v275_v39 = vld [vmem:[%s3329_s7 + $0x57c] sm:$0xff] }
  0x2d   : > { %v273_v38 = vld [vmem:[%s3329_s7 + $0x558] sm:$0xff]  ;;  %270 = vst [vmem:[%s3334_s8 + $0x1b0] sm:$0xff] %v269_v36  ;;  %272 = vst [vmem:[%s3334_s8 + $0x1bc] sm:$0xff] %v271_v37  ;;  %v277_v40 = vld [vmem:[%s3329_s7 + $0x5a0] sm:$0xff] }
  0x2e   : > { %274 = vst [vmem:[%s3334_s8 + $0x1c8] sm:$0xff] %v273_v38  ;;  %v279_v41 = vld [vmem:[%s3329_s7 + $0x5c4] sm:$0xff]  ;;  %276 = vst [vmem:[%s3334_s8 + $0x1d4] sm:$0xff] %v275_v39  ;;  %v283_v43 = vld [vmem:[%s3329_s7 + $0x60c] sm:$0xff] }
  0x2f   : > { %278 = vst [vmem:[%s3334_s8 + $0x1e0] sm:$0xff] %v277_v40  ;;  %280 = vst [vmem:[%s3334_s8 + $0x1ec] sm:$0xff] %v279_v41  ;;  %v281_v42 = vld [vmem:[%s3329_s7 + $0x5e8] sm:$0xff]  ;;  %v285_v44 = vld [vmem:[%s3329_s7 + $0x630] sm:$0xff] }
  0x30   : > { %282 = vst [vmem:[%s3334_s8 + $0x1f8] sm:$0xff] %v281_v42  ;;  %284 = vst [vmem:[%s3334_s8 + $0x204] sm:$0xff] %v283_v43  ;;  %v287_v45 = vld [vmem:[%s3329_s7 + $0x654] sm:$0xff]  ;;  %v291_v47 = vld [vmem:[%s3329_s7 + $0x69c] sm:$0xff] }
  0x31   : > { %286 = vst [vmem:[%s3334_s8 + $0x210] sm:$0xff] %v285_v44  ;;  %v289_v46 = vld [vmem:[%s3329_s7 + $0x678] sm:$0xff]  ;;  %288 = vst [vmem:[%s3334_s8 + $0x21c] sm:$0xff] %v287_v45  ;;  %v293_v48 = vld [vmem:[%s3329_s7 + $0x6c0] sm:$0xff] }
  0x32   : > { %290 = vst [vmem:[%s3334_s8 + $0x228] sm:$0xff] %v289_v46  ;;  %292 = vst [vmem:[%s3334_s8 + $0x234] sm:$0xff] %v291_v47  ;;  %v295_v49 = vld [vmem:[%s3329_s7 + $0x6e4] sm:$0xff]  ;;  %v299_v51 = vld [vmem:[%s3329_s7 + $0x72c] sm:$0xff] }
  0x33   : > { %v297_v50 = vld [vmem:[%s3329_s7 + $0x708] sm:$0xff]  ;;  %294 = vst [vmem:[%s3334_s8 + $0x240] sm:$0xff] %v293_v48  ;;  %296 = vst [vmem:[%s3334_s8 + $0x24c] sm:$0xff] %v295_v49  ;;  %v301_v52 = vld [vmem:[%s3329_s7 + $0x750] sm:$0xff] }
  0x34   : > { %298 = vst [vmem:[%s3334_s8 + $0x258] sm:$0xff] %v297_v50  ;;  %v303_v53 = vld [vmem:[%s3329_s7 + $0x774] sm:$0xff]  ;;  %300 = vst [vmem:[%s3334_s8 + $0x264] sm:$0xff] %v299_v51  ;;  %v307_v55 = vld [vmem:[%s3329_s7 + $0x7bc] sm:$0xff] }
  0x35   : > { %302 = vst [vmem:[%s3334_s8 + $0x270] sm:$0xff] %v301_v52  ;;  %304 = vst [vmem:[%s3334_s8 + $0x27c] sm:$0xff] %v303_v53  ;;  %v305_v54 = vld [vmem:[%s3329_s7 + $0x798] sm:$0xff]  ;;  %v309_v56 = vld [vmem:[%s3329_s7 + $0x7e0] sm:$0xff] }
  0x36   : > { %306 = vst [vmem:[%s3334_s8 + $0x288] sm:$0xff] %v305_v54  ;;  %308 = vst [vmem:[%s3334_s8 + $0x294] sm:$0xff] %v307_v55  ;;  %v311_v57 = vld [vmem:[%s3329_s7 + $0x804] sm:$0xff]  ;;  %v315_v59 = vld [vmem:[%s3329_s7 + $0x84c] sm:$0xff] }
  0x37   : > { %310 = vst [vmem:[%s3334_s8 + $0x2a0] sm:$0xff] %v309_v56  ;;  %v313_v58 = vld [vmem:[%s3329_s7 + $0x828] sm:$0xff]  ;;  %312 = vst [vmem:[%s3334_s8 + $0x2ac] sm:$0xff] %v311_v57  ;;  %v317_v60 = vld [vmem:[%s3329_s7 + $0x870] sm:$0xff] }
  0x38   : > { %314 = vst [vmem:[%s3334_s8 + $0x2b8] sm:$0xff] %v313_v58  ;;  %316 = vst [vmem:[%s3334_s8 + $0x2c4] sm:$0xff] %v315_v59  ;;  %v319_v61 = vld [vmem:[%s3329_s7 + $0x894] sm:$0xff]  ;;  %v323_v63 = vld [vmem:[%s3329_s7 + $0x8dc] sm:$0xff] }
  0x39   : > { %v321_v62 = vld [vmem:[%s3329_s7 + $0x8b8] sm:$0xff]  ;;  %318 = vst [vmem:[%s3334_s8 + $0x2d0] sm:$0xff] %v317_v60  ;;  %320 = vst [vmem:[%s3334_s8 + $0x2dc] sm:$0xff] %v319_v61  ;;  %v325_v0 = vld [vmem:[%s3329_s7 + $0x900] sm:$0xff] }
  0x3a   : > { %322 = vst [vmem:[%s3334_s8 + $0x2e8] sm:$0xff] %v321_v62  ;;  %v327_v1 = vld [vmem:[%s3329_s7 + $0x924] sm:$0xff]  ;;  %324 = vst [vmem:[%s3334_s8 + $0x2f4] sm:$0xff] %v323_v63  ;;  %v331_v3 = vld [vmem:[%s3329_s7 + $0x96c] sm:$0xff] }
  0x3b   : > { %326 = vst [vmem:[%s3334_s8 + $0x300] sm:$0xff] %v325_v0  ;;  %328 = vst [vmem:[%s3334_s8 + $0x30c] sm:$0xff] %v327_v1  ;;  %v329_v2 = vld [vmem:[%s3329_s7 + $0x948] sm:$0xff]  ;;  %v333_v4 = vld [vmem:[%s3329_s7 + $0x990] sm:$0xff] }
  0x3c   : > { %330 = vst [vmem:[%s3334_s8 + $0x318] sm:$0xff] %v329_v2  ;;  %332 = vst [vmem:[%s3334_s8 + $0x324] sm:$0xff] %v331_v3  ;;  %v335_v5 = vld [vmem:[%s3329_s7 + $0x9b4] sm:$0xff]  ;;  %v339_v7 = vld [vmem:[%s3329_s7 + $0x9fc] sm:$0xff] }
  0x3d   : > { %334 = vst [vmem:[%s3334_s8 + $0x330] sm:$0xff] %v333_v4  ;;  %v337_v6 = vld [vmem:[%s3329_s7 + $0x9d8] sm:$0xff]  ;;  %336 = vst [vmem:[%s3334_s8 + $0x33c] sm:$0xff] %v335_v5  ;;  %v341_v8 = vld [vmem:[%s3329_s7 + $0xa20] sm:$0xff] }
  0x3e   : > { %338 = vst [vmem:[%s3334_s8 + $0x348] sm:$0xff] %v337_v6  ;;  %340 = vst [vmem:[%s3334_s8 + $0x354] sm:$0xff] %v339_v7  ;;  %v343_v9 = vld [vmem:[%s3329_s7 + $0xa44] sm:$0xff]  ;;  %v347_v11 = vld [vmem:[%s3329_s7 + $0xa8c] sm:$0xff] }
  0x3f   : > { %v345_v10 = vld [vmem:[%s3329_s7 + $0xa68] sm:$0xff]  ;;  %342 = vst [vmem:[%s3334_s8 + $0x360] sm:$0xff] %v341_v8  ;;  %344 = vst [vmem:[%s3334_s8 + $0x36c] sm:$0xff] %v343_v9  ;;  %v349_v12 = vld [vmem:[%s3329_s7 + $0xab0] sm:$0xff] }
  0x40   : > { %346 = vst [vmem:[%s3334_s8 + $0x378] sm:$0xff] %v345_v10  ;;  %v351_v13 = vld [vmem:[%s3329_s7 + $0xad4] sm:$0xff]  ;;  %348 = vst [vmem:[%s3334_s8 + $0x384] sm:$0xff] %v347_v11  ;;  %v355_v15 = vld [vmem:[%s3329_s7 + $0xb1c] sm:$0xff] }
  0x41   : > { %350 = vst [vmem:[%s3334_s8 + $0x390] sm:$0xff] %v349_v12  ;;  %352 = vst [vmem:[%s3334_s8 + $0x39c] sm:$0xff] %v351_v13  ;;  %v353_v14 = vld [vmem:[%s3329_s7 + $0xaf8] sm:$0xff]  ;;  %v357_v16 = vld [vmem:[%s3329_s7 + $0xb40] sm:$0xff] }
  0x42   : > { %354 = vst [vmem:[%s3334_s8 + $0x3a8] sm:$0xff] %v353_v14  ;;  %356 = vst [vmem:[%s3334_s8 + $0x3b4] sm:$0xff] %v355_v15  ;;  %v359_v17 = vld [vmem:[%s3329_s7 + $0xb64] sm:$0xff]  ;;  %v363_v19 = vld [vmem:[%s3329_s7 + $0xbac] sm:$0xff] }
  0x43   : > { %358 = vst [vmem:[%s3334_s8 + $0x3c0] sm:$0xff] %v357_v16  ;;  %v361_v18 = vld [vmem:[%s3329_s7 + $0xb88] sm:$0xff]  ;;  %360 = vst [vmem:[%s3334_s8 + $0x3cc] sm:$0xff] %v359_v17  ;;  %v365_v20 = vld [vmem:[%s3329_s7 + $0xbd0] sm:$0xff] }
  0x44   : > { %362 = vst [vmem:[%s3334_s8 + $0x3d8] sm:$0xff] %v361_v18  ;;  %364 = vst [vmem:[%s3334_s8 + $0x3e4] sm:$0xff] %v363_v19  ;;  %v367_v21 = vld [vmem:[%s3329_s7 + $0xbf4] sm:$0xff]  ;;  %v371_v23 = vld [vmem:[%s3329_s7 + $0xc3c] sm:$0xff] }
  0x45   : > { %v369_v22 = vld [vmem:[%s3329_s7 + $0xc18] sm:$0xff]  ;;  %366 = vst [vmem:[%s3334_s8 + $0x3f0] sm:$0xff] %v365_v20  ;;  %368 = vst [vmem:[%s3334_s8 + $0x3fc] sm:$0xff] %v367_v21  ;;  %v373_v24 = vld [vmem:[%s3329_s7 + $0xc60] sm:$0xff] }
  0x46   : > { %370 = vst [vmem:[%s3334_s8 + $0x408] sm:$0xff] %v369_v22  ;;  %v375_v25 = vld [vmem:[%s3329_s7 + $0xc84] sm:$0xff]  ;;  %372 = vst [vmem:[%s3334_s8 + $0x414] sm:$0xff] %v371_v23  ;;  %v379_v27 = vld [vmem:[%s3329_s7 + $0xccc] sm:$0xff] }
  0x47   : > { %374 = vst [vmem:[%s3334_s8 + $0x420] sm:$0xff] %v373_v24  ;;  %376 = vst [vmem:[%s3334_s8 + $0x42c] sm:$0xff] %v375_v25  ;;  %v377_v26 = vld [vmem:[%s3329_s7 + $0xca8] sm:$0xff]  ;;  %v381_v28 = vld [vmem:[%s3329_s7 + $0xcf0] sm:$0xff] }
  0x48   : > { %378 = vst [vmem:[%s3334_s8 + $0x438] sm:$0xff] %v377_v26  ;;  %380 = vst [vmem:[%s3334_s8 + $0x444] sm:$0xff] %v379_v27  ;;  %v383_v29 = vld [vmem:[%s3329_s7 + $0xd14] sm:$0xff]  ;;  %v387_v31 = vld [vmem:[%s3329_s7 + $0xd5c] sm:$0xff] }
  0x49   : > { %382 = vst [vmem:[%s3334_s8 + $0x450] sm:$0xff] %v381_v28  ;;  %v385_v30 = vld [vmem:[%s3329_s7 + $0xd38] sm:$0xff]  ;;  %384 = vst [vmem:[%s3334_s8 + $0x45c] sm:$0xff] %v383_v29  ;;  %v389_v32 = vld [vmem:[%s3329_s7 + $0xd80] sm:$0xff] }
  0x4a   : > { %386 = vst [vmem:[%s3334_s8 + $0x468] sm:$0xff] %v385_v30  ;;  %388 = vst [vmem:[%s3334_s8 + $0x474] sm:$0xff] %v387_v31  ;;  %v391_v33 = vld [vmem:[%s3329_s7 + $0xda4] sm:$0xff]  ;;  %v395_v35 = vld [vmem:[%s3329_s7 + $0xdec] sm:$0xff] }
  0x4b   : > { %v393_v34 = vld [vmem:[%s3329_s7 + $0xdc8] sm:$0xff]  ;;  %390 = vst [vmem:[%s3334_s8 + $0x480] sm:$0xff] %v389_v32  ;;  %392 = vst [vmem:[%s3334_s8 + $0x48c] sm:$0xff] %v391_v33  ;;  %v397_v36 = vld [vmem:[%s3329_s7 + $0xe10] sm:$0xff] }
  0x4c   : > { %394 = vst [vmem:[%s3334_s8 + $0x498] sm:$0xff] %v393_v34  ;;  %v399_v37 = vld [vmem:[%s3329_s7 + $0xe34] sm:$0xff]  ;;  %396 = vst [vmem:[%s3334_s8 + $0x4a4] sm:$0xff] %v395_v35  ;;  %v403_v39 = vld [vmem:[%s3329_s7 + $0xe7c] sm:$0xff] }
  0x4d   : > { %398 = vst [vmem:[%s3334_s8 + $0x4b0] sm:$0xff] %v397_v36  ;;  %400 = vst [vmem:[%s3334_s8 + $0x4bc] sm:$0xff] %v399_v37  ;;  %v401_v38 = vld [vmem:[%s3329_s7 + $0xe58] sm:$0xff]  ;;  %v405_v40 = vld [vmem:[%s3329_s7 + $0xea0] sm:$0xff] }
  0x4e   : > { %402 = vst [vmem:[%s3334_s8 + $0x4c8] sm:$0xff] %v401_v38  ;;  %404 = vst [vmem:[%s3334_s8 + $0x4d4] sm:$0xff] %v403_v39  ;;  %v407_v41 = vld [vmem:[%s3329_s7 + $0xec4] sm:$0xff]  ;;  %v411_v43 = vld [vmem:[%s3329_s7 + $0xf0c] sm:$0xff] }
  0x4f   : > { %406 = vst [vmem:[%s3334_s8 + $0x4e0] sm:$0xff] %v405_v40  ;;  %v409_v42 = vld [vmem:[%s3329_s7 + $0xee8] sm:$0xff]  ;;  %408 = vst [vmem:[%s3334_s8 + $0x4ec] sm:$0xff] %v407_v41  ;;  %v413_v44 = vld [vmem:[%s3329_s7 + $0xf30] sm:$0xff] }
  0x50   : > { %410 = vst [vmem:[%s3334_s8 + $0x4f8] sm:$0xff] %v409_v42  ;;  %412 = vst [vmem:[%s3334_s8 + $0x504] sm:$0xff] %v411_v43  ;;  %v415_v45 = vld [vmem:[%s3329_s7 + $0xf54] sm:$0xff]  ;;  %v419_v47 = vld [vmem:[%s3329_s7 + $0xf9c] sm:$0xff] }
  0x51   : > { %v417_v46 = vld [vmem:[%s3329_s7 + $0xf78] sm:$0xff]  ;;  %414 = vst [vmem:[%s3334_s8 + $0x510] sm:$0xff] %v413_v44  ;;  %416 = vst [vmem:[%s3334_s8 + $0x51c] sm:$0xff] %v415_v45  ;;  %v2393_v48 = vld [vmem:[%s3329_s7 + $0x8] sm:$0xf] }
  0x52   : > { %418 = vst [vmem:[%s3334_s8 + $0x528] sm:$0xff] %v417_v46  ;;  %v2395_v49 = vld [vmem:[%s3329_s7 + $0x2c] sm:$0xf]  ;;  %420 = vst [vmem:[%s3334_s8 + $0x534] sm:$0xff] %v419_v47  ;;  %v2397_v50 = vld [vmem:[%s3329_s7 + $0x50] sm:$0xf] }
  0x53   : > { %2394 = vst [vmem:[%s3334_s8 + $0x8] sm:$0xf] %v2393_v48  ;;  %2396 = vst [vmem:[%s3334_s8 + $0x14] sm:$0xf] %v2395_v49  ;;  %v2399_v51 = vld [vmem:[%s3329_s7 + $0x74] sm:$0xf] }
  0x54   : > { %v2401_v52 = vld [vmem:[%s3329_s7 + $0x98] sm:$0xf]  ;;  %2398 = vst [vmem:[%s3334_s8 + $0x20] sm:$0xf] %v2397_v50  ;;  %2400 = vst [vmem:[%s3334_s8 + $0x2c] sm:$0xf] %v2399_v51 }
  0x55   : > { %2402 = vst [vmem:[%s3334_s8 + $0x38] sm:$0xf] %v2401_v52  ;;  %v2403_v53 = vld [vmem:[%s3329_s7 + $0xbc] sm:$0xf]  ;;  %v2405_v54 = vld [vmem:[%s3329_s7 + $0xe0] sm:$0xf] }
  0x56   : > { %v2407_v55 = vld [vmem:[%s3329_s7 + $0x104] sm:$0xf]  ;;  %2404 = vst [vmem:[%s3334_s8 + $0x44] sm:$0xf] %v2403_v53  ;;  %2406 = vst [vmem:[%s3334_s8 + $0x50] sm:$0xf] %v2405_v54 }
  0x57   : > { %2408 = vst [vmem:[%s3334_s8 + $0x5c] sm:$0xf] %v2407_v55  ;;  %v2409_v56 = vld [vmem:[%s3329_s7 + $0x128] sm:$0xf]  ;;  %v2411_v57 = vld [vmem:[%s3329_s7 + $0x14c] sm:$0xf] }
  0x58   : > { %v2413_v58 = vld [vmem:[%s3329_s7 + $0x170] sm:$0xf]  ;;  %2410 = vst [vmem:[%s3334_s8 + $0x68] sm:$0xf] %v2409_v56  ;;  %2412 = vst [vmem:[%s3334_s8 + $0x74] sm:$0xf] %v2411_v57 }
  0x59   : > { %2414 = vst [vmem:[%s3334_s8 + $0x80] sm:$0xf] %v2413_v58  ;;  %v2415_v59 = vld [vmem:[%s3329_s7 + $0x194] sm:$0xf]  ;;  %v2417_v60 = vld [vmem:[%s3329_s7 + $0x1b8] sm:$0xf] }
  0x5a   : > { %v2419_v61 = vld [vmem:[%s3329_s7 + $0x1dc] sm:$0xf]  ;;  %2416 = vst [vmem:[%s3334_s8 + $0x8c] sm:$0xf] %v2415_v59  ;;  %2418 = vst [vmem:[%s3334_s8 + $0x98] sm:$0xf] %v2417_v60 }
  0x5b   : > { %2420 = vst [vmem:[%s3334_s8 + $0xa4] sm:$0xf] %v2419_v61  ;;  %v2421_v62 = vld [vmem:[%s3329_s7 + $0x200] sm:$0xf]  ;;  %v2423_v63 = vld [vmem:[%s3329_s7 + $0x224] sm:$0xf] }
  0x5c   : > { %v2425_v0 = vld [vmem:[%s3329_s7 + $0x248] sm:$0xf]  ;;  %2422 = vst [vmem:[%s3334_s8 + $0xb0] sm:$0xf] %v2421_v62  ;;  %2424 = vst [vmem:[%s3334_s8 + $0xbc] sm:$0xf] %v2423_v63 }
  0x5d   : > { %2426 = vst [vmem:[%s3334_s8 + $0xc8] sm:$0xf] %v2425_v0  ;;  %v2427_v1 = vld [vmem:[%s3329_s7 + $0x26c] sm:$0xf]  ;;  %v2429_v2 = vld [vmem:[%s3329_s7 + $0x290] sm:$0xf] }
  0x5e   : > { %v2431_v3 = vld [vmem:[%s3329_s7 + $0x2b4] sm:$0xf]  ;;  %2428 = vst [vmem:[%s3334_s8 + $0xd4] sm:$0xf] %v2427_v1  ;;  %2430 = vst [vmem:[%s3334_s8 + $0xe0] sm:$0xf] %v2429_v2 }
  0x5f   : > { %2432 = vst [vmem:[%s3334_s8 + $0xec] sm:$0xf] %v2431_v3  ;;  %v2433_v4 = vld [vmem:[%s3329_s7 + $0x2d8] sm:$0xf]  ;;  %v2435_v5 = vld [vmem:[%s3329_s7 + $0x2fc] sm:$0xf] }
  0x60   : > { %v2437_v6 = vld [vmem:[%s3329_s7 + $0x320] sm:$0xf]  ;;  %2434 = vst [vmem:[%s3334_s8 + $0xf8] sm:$0xf] %v2433_v4  ;;  %2436 = vst [vmem:[%s3334_s8 + $0x104] sm:$0xf] %v2435_v5 }
  0x61   : > { %2438 = vst [vmem:[%s3334_s8 + $0x110] sm:$0xf] %v2437_v6  ;;  %v2439_v7 = vld [vmem:[%s3329_s7 + $0x344] sm:$0xf]  ;;  %v2441_v8 = vld [vmem:[%s3329_s7 + $0x368] sm:$0xf] }
  0x62   : > { %v2443_v9 = vld [vmem:[%s3329_s7 + $0x38c] sm:$0xf]  ;;  %2440 = vst [vmem:[%s3334_s8 + $0x11c] sm:$0xf] %v2439_v7  ;;  %2442 = vst [vmem:[%s3334_s8 + $0x128] sm:$0xf] %v2441_v8 }
  0x63   : > { %2444 = vst [vmem:[%s3334_s8 + $0x134] sm:$0xf] %v2443_v9  ;;  %v2445_v10 = vld [vmem:[%s3329_s7 + $0x3b0] sm:$0xf]  ;;  %v2447_v11 = vld [vmem:[%s3329_s7 + $0x3d4] sm:$0xf] }
  0x64   : > { %v2449_v12 = vld [vmem:[%s3329_s7 + $0x3f8] sm:$0xf]  ;;  %2446 = vst [vmem:[%s3334_s8 + $0x140] sm:$0xf] %v2445_v10  ;;  %2448 = vst [vmem:[%s3334_s8 + $0x14c] sm:$0xf] %v2447_v11 }
  0x65   : > { %2450 = vst [vmem:[%s3334_s8 + $0x158] sm:$0xf] %v2449_v12  ;;  %v2451_v13 = vld [vmem:[%s3329_s7 + $0x41c] sm:$0xf]  ;;  %v2453_v14 = vld [vmem:[%s3329_s7 + $0x440] sm:$0xf] }
  0x66   : > { %v2455_v15 = vld [vmem:[%s3329_s7 + $0x464] sm:$0xf]  ;;  %2452 = vst [vmem:[%s3334_s8 + $0x164] sm:$0xf] %v2451_v13  ;;  %2454 = vst [vmem:[%s3334_s8 + $0x170] sm:$0xf] %v2453_v14 }
  0x67   : > { %2456 = vst [vmem:[%s3334_s8 + $0x17c] sm:$0xf] %v2455_v15  ;;  %v2457_v16 = vld [vmem:[%s3329_s7 + $0x488] sm:$0xf]  ;;  %v2459_v17 = vld [vmem:[%s3329_s7 + $0x4ac] sm:$0xf] }
  0x68   : > { %v2461_v18 = vld [vmem:[%s3329_s7 + $0x4d0] sm:$0xf]  ;;  %2458 = vst [vmem:[%s3334_s8 + $0x188] sm:$0xf] %v2457_v16  ;;  %2460 = vst [vmem:[%s3334_s8 + $0x194] sm:$0xf] %v2459_v17 }
  0x69   : > { %2462 = vst [vmem:[%s3334_s8 + $0x1a0] sm:$0xf] %v2461_v18  ;;  %v2463_v19 = vld [vmem:[%s3329_s7 + $0x4f4] sm:$0xf]  ;;  %v2465_v20 = vld [vmem:[%s3329_s7 + $0x518] sm:$0xf] }
  0x6a   : > { %v2467_v21 = vld [vmem:[%s3329_s7 + $0x53c] sm:$0xf]  ;;  %2464 = vst [vmem:[%s3334_s8 + $0x1ac] sm:$0xf] %v2463_v19  ;;  %2466 = vst [vmem:[%s3334_s8 + $0x1b8] sm:$0xf] %v2465_v20 }
  0x6b   : > { %2468 = vst [vmem:[%s3334_s8 + $0x1c4] sm:$0xf] %v2467_v21  ;;  %v2469_v22 = vld [vmem:[%s3329_s7 + $0x560] sm:$0xf]  ;;  %v2471_v23 = vld [vmem:[%s3329_s7 + $0x584] sm:$0xf] }
  0x6c   : > { %v2473_v24 = vld [vmem:[%s3329_s7 + $0x5a8] sm:$0xf]  ;;  %2470 = vst [vmem:[%s3334_s8 + $0x1d0] sm:$0xf] %v2469_v22  ;;  %2472 = vst [vmem:[%s3334_s8 + $0x1dc] sm:$0xf] %v2471_v23 }
  0x6d   : > { %2474 = vst [vmem:[%s3334_s8 + $0x1e8] sm:$0xf] %v2473_v24  ;;  %v2475_v25 = vld [vmem:[%s3329_s7 + $0x5cc] sm:$0xf]  ;;  %v2477_v26 = vld [vmem:[%s3329_s7 + $0x5f0] sm:$0xf] }
  0x6e   : > { %v2479_v27 = vld [vmem:[%s3329_s7 + $0x614] sm:$0xf]  ;;  %2476 = vst [vmem:[%s3334_s8 + $0x1f4] sm:$0xf] %v2475_v25  ;;  %2478 = vst [vmem:[%s3334_s8 + $0x200] sm:$0xf] %v2477_v26 }
  0x6f   : > { %2480 = vst [vmem:[%s3334_s8 + $0x20c] sm:$0xf] %v2479_v27  ;;  %v2481_v28 = vld [vmem:[%s3329_s7 + $0x638] sm:$0xf]  ;;  %v2483_v29 = vld [vmem:[%s3329_s7 + $0x65c] sm:$0xf] }
  0x70   : > { %v2485_v30 = vld [vmem:[%s3329_s7 + $0x680] sm:$0xf]  ;;  %2482 = vst [vmem:[%s3334_s8 + $0x218] sm:$0xf] %v2481_v28  ;;  %2484 = vst [vmem:[%s3334_s8 + $0x224] sm:$0xf] %v2483_v29 }
  0x71   : > { %2486 = vst [vmem:[%s3334_s8 + $0x230] sm:$0xf] %v2485_v30  ;;  %v2487_v31 = vld [vmem:[%s3329_s7 + $0x6a4] sm:$0xf]  ;;  %v2489_v32 = vld [vmem:[%s3329_s7 + $0x6c8] sm:$0xf] }
  0x72   : > { %v2491_v33 = vld [vmem:[%s3329_s7 + $0x6ec] sm:$0xf]  ;;  %2488 = vst [vmem:[%s3334_s8 + $0x23c] sm:$0xf] %v2487_v31  ;;  %2490 = vst [vmem:[%s3334_s8 + $0x248] sm:$0xf] %v2489_v32 }
  0x73   : > { %2492 = vst [vmem:[%s3334_s8 + $0x254] sm:$0xf] %v2491_v33  ;;  %v2493_v34 = vld [vmem:[%s3329_s7 + $0x710] sm:$0xf]  ;;  %v2495_v35 = vld [vmem:[%s3329_s7 + $0x734] sm:$0xf] }
  0x74   : > { %v2497_v36 = vld [vmem:[%s3329_s7 + $0x758] sm:$0xf]  ;;  %2494 = vst [vmem:[%s3334_s8 + $0x260] sm:$0xf] %v2493_v34  ;;  %2496 = vst [vmem:[%s3334_s8 + $0x26c] sm:$0xf] %v2495_v35 }
  0x75   : > { %2498 = vst [vmem:[%s3334_s8 + $0x278] sm:$0xf] %v2497_v36  ;;  %v2499_v37 = vld [vmem:[%s3329_s7 + $0x77c] sm:$0xf]  ;;  %v2501_v38 = vld [vmem:[%s3329_s7 + $0x7a0] sm:$0xf] }
  0x76   : > { %v2503_v39 = vld [vmem:[%s3329_s7 + $0x7c4] sm:$0xf]  ;;  %2500 = vst [vmem:[%s3334_s8 + $0x284] sm:$0xf] %v2499_v37  ;;  %2502 = vst [vmem:[%s3334_s8 + $0x290] sm:$0xf] %v2501_v38 }
  0x77   : > { %2504 = vst [vmem:[%s3334_s8 + $0x29c] sm:$0xf] %v2503_v39  ;;  %v2505_v40 = vld [vmem:[%s3329_s7 + $0x7e8] sm:$0xf]  ;;  %v2507_v41 = vld [vmem:[%s3329_s7 + $0x80c] sm:$0xf] }
  0x78   : > { %v2509_v42 = vld [vmem:[%s3329_s7 + $0x830] sm:$0xf]  ;;  %2506 = vst [vmem:[%s3334_s8 + $0x2a8] sm:$0xf] %v2505_v40  ;;  %2508 = vst [vmem:[%s3334_s8 + $0x2b4] sm:$0xf] %v2507_v41 }
  0x79   : > { %2510 = vst [vmem:[%s3334_s8 + $0x2c0] sm:$0xf] %v2509_v42  ;;  %v2511_v43 = vld [vmem:[%s3329_s7 + $0x854] sm:$0xf]  ;;  %v2513_v44 = vld [vmem:[%s3329_s7 + $0x878] sm:$0xf] }
  0x7a   : > { %v2515_v45 = vld [vmem:[%s3329_s7 + $0x89c] sm:$0xf]  ;;  %2512 = vst [vmem:[%s3334_s8 + $0x2cc] sm:$0xf] %v2511_v43  ;;  %2514 = vst [vmem:[%s3334_s8 + $0x2d8] sm:$0xf] %v2513_v44 }
  0x7b   : > { %2516 = vst [vmem:[%s3334_s8 + $0x2e4] sm:$0xf] %v2515_v45  ;;  %v2517_v46 = vld [vmem:[%s3329_s7 + $0x8c0] sm:$0xf]  ;;  %v2519_v47 = vld [vmem:[%s3329_s7 + $0x8e4] sm:$0xf] }
  0x7c   : > { %v2521_v48 = vld [vmem:[%s3329_s7 + $0x908] sm:$0xf]  ;;  %2518 = vst [vmem:[%s3334_s8 + $0x2f0] sm:$0xf] %v2517_v46  ;;  %2520 = vst [vmem:[%s3334_s8 + $0x2fc] sm:$0xf] %v2519_v47 }
  0x7d   : > { %2522 = vst [vmem:[%s3334_s8 + $0x308] sm:$0xf] %v2521_v48  ;;  %v2523_v49 = vld [vmem:[%s3329_s7 + $0x92c] sm:$0xf]  ;;  %v2525_v50 = vld [vmem:[%s3329_s7 + $0x950] sm:$0xf] }
  0x7e   : > { %v2527_v51 = vld [vmem:[%s3329_s7 + $0x974] sm:$0xf]  ;;  %2524 = vst [vmem:[%s3334_s8 + $0x314] sm:$0xf] %v2523_v49  ;;  %2526 = vst [vmem:[%s3334_s8 + $0x320] sm:$0xf] %v2525_v50 }
  0x7f   : > { %2528 = vst [vmem:[%s3334_s8 + $0x32c] sm:$0xf] %v2527_v51  ;;  %v2529_v52 = vld [vmem:[%s3329_s7 + $0x998] sm:$0xf]  ;;  %v2531_v53 = vld [vmem:[%s3329_s7 + $0x9bc] sm:$0xf] }
  0x80   : > { %v2533_v54 = vld [vmem:[%s3329_s7 + $0x9e0] sm:$0xf]  ;;  %2530 = vst [vmem:[%s3334_s8 + $0x338] sm:$0xf] %v2529_v52  ;;  %2532 = vst [vmem:[%s3334_s8 + $0x344] sm:$0xf] %v2531_v53 }
  0x81   : > { %2534 = vst [vmem:[%s3334_s8 + $0x350] sm:$0xf] %v2533_v54  ;;  %v2535_v55 = vld [vmem:[%s3329_s7 + $0xa04] sm:$0xf]  ;;  %v2537_v56 = vld [vmem:[%s3329_s7 + $0xa28] sm:$0xf] }
  0x82   : > { %v2539_v57 = vld [vmem:[%s3329_s7 + $0xa4c] sm:$0xf]  ;;  %2536 = vst [vmem:[%s3334_s8 + $0x35c] sm:$0xf] %v2535_v55  ;;  %2538 = vst [vmem:[%s3334_s8 + $0x368] sm:$0xf] %v2537_v56 }
  0x83   : > { %2540 = vst [vmem:[%s3334_s8 + $0x374] sm:$0xf] %v2539_v57  ;;  %v2541_v58 = vld [vmem:[%s3329_s7 + $0xa70] sm:$0xf]  ;;  %v2543_v59 = vld [vmem:[%s3329_s7 + $0xa94] sm:$0xf] }
  0x84   : > { %v2545_v60 = vld [vmem:[%s3329_s7 + $0xab8] sm:$0xf]  ;;  %2542 = vst [vmem:[%s3334_s8 + $0x380] sm:$0xf] %v2541_v58  ;;  %2544 = vst [vmem:[%s3334_s8 + $0x38c] sm:$0xf] %v2543_v59 }
  0x85   : > { %2546 = vst [vmem:[%s3334_s8 + $0x398] sm:$0xf] %v2545_v60  ;;  %v2547_v61 = vld [vmem:[%s3329_s7 + $0xadc] sm:$0xf]  ;;  %v2549_v62 = vld [vmem:[%s3329_s7 + $0xb00] sm:$0xf] }
  0x86   : > { %v2551_v63 = vld [vmem:[%s3329_s7 + $0xb24] sm:$0xf]  ;;  %2548 = vst [vmem:[%s3334_s8 + $0x3a4] sm:$0xf] %v2547_v61  ;;  %2550 = vst [vmem:[%s3334_s8 + $0x3b0] sm:$0xf] %v2549_v62 }
  0x87   : > { %2552 = vst [vmem:[%s3334_s8 + $0x3bc] sm:$0xf] %v2551_v63  ;;  %v2553_v0 = vld [vmem:[%s3329_s7 + $0xb48] sm:$0xf]  ;;  %v2555_v1 = vld [vmem:[%s3329_s7 + $0xb6c] sm:$0xf] }
  0x88   : > { %v2557_v2 = vld [vmem:[%s3329_s7 + $0xb90] sm:$0xf]  ;;  %2554 = vst [vmem:[%s3334_s8 + $0x3c8] sm:$0xf] %v2553_v0  ;;  %2556 = vst [vmem:[%s3334_s8 + $0x3d4] sm:$0xf] %v2555_v1 }
  0x89   : > { %2558 = vst [vmem:[%s3334_s8 + $0x3e0] sm:$0xf] %v2557_v2  ;;  %v2559_v3 = vld [vmem:[%s3329_s7 + $0xbb4] sm:$0xf]  ;;  %v2561_v4 = vld [vmem:[%s3329_s7 + $0xbd8] sm:$0xf] }
  0x8a   : > { %v2563_v5 = vld [vmem:[%s3329_s7 + $0xbfc] sm:$0xf]  ;;  %2560 = vst [vmem:[%s3334_s8 + $0x3ec] sm:$0xf] %v2559_v3  ;;  %2562 = vst [vmem:[%s3334_s8 + $0x3f8] sm:$0xf] %v2561_v4 }
  0x8b   : > { %2564 = vst [vmem:[%s3334_s8 + $0x404] sm:$0xf] %v2563_v5  ;;  %v2565_v6 = vld [vmem:[%s3329_s7 + $0xc20] sm:$0xf]  ;;  %v2567_v7 = vld [vmem:[%s3329_s7 + $0xc44] sm:$0xf] }
  0x8c   : > { %v2569_v8 = vld [vmem:[%s3329_s7 + $0xc68] sm:$0xf]  ;;  %2566 = vst [vmem:[%s3334_s8 + $0x410] sm:$0xf] %v2565_v6  ;;  %2568 = vst [vmem:[%s3334_s8 + $0x41c] sm:$0xf] %v2567_v7 }
  0x8d   : > { %2570 = vst [vmem:[%s3334_s8 + $0x428] sm:$0xf] %v2569_v8  ;;  %v2571_v9 = vld [vmem:[%s3329_s7 + $0xc8c] sm:$0xf]  ;;  %v2573_v10 = vld [vmem:[%s3329_s7 + $0xcb0] sm:$0xf] }
  0x8e   : > { %v2575_v11 = vld [vmem:[%s3329_s7 + $0xcd4] sm:$0xf]  ;;  %2572 = vst [vmem:[%s3334_s8 + $0x434] sm:$0xf] %v2571_v9  ;;  %2574 = vst [vmem:[%s3334_s8 + $0x440] sm:$0xf] %v2573_v10 }
  0x8f   : > { %2576 = vst [vmem:[%s3334_s8 + $0x44c] sm:$0xf] %v2575_v11  ;;  %v2577_v12 = vld [vmem:[%s3329_s7 + $0xcf8] sm:$0xf]  ;;  %v2579_v13 = vld [vmem:[%s3329_s7 + $0xd1c] sm:$0xf] }
  0x90   : > { %v2581_v14 = vld [vmem:[%s3329_s7 + $0xd40] sm:$0xf]  ;;  %2578 = vst [vmem:[%s3334_s8 + $0x458] sm:$0xf] %v2577_v12  ;;  %2580 = vst [vmem:[%s3334_s8 + $0x464] sm:$0xf] %v2579_v13 }
  0x91   : > { %2582 = vst [vmem:[%s3334_s8 + $0x470] sm:$0xf] %v2581_v14  ;;  %v2583_v15 = vld [vmem:[%s3329_s7 + $0xd64] sm:$0xf]  ;;  %v2585_v16 = vld [vmem:[%s3329_s7 + $0xd88] sm:$0xf] }
  0x92   : > { %v2587_v17 = vld [vmem:[%s3329_s7 + $0xdac] sm:$0xf]  ;;  %2584 = vst [vmem:[%s3334_s8 + $0x47c] sm:$0xf] %v2583_v15  ;;  %2586 = vst [vmem:[%s3334_s8 + $0x488] sm:$0xf] %v2585_v16 }
  0x93   : > { %2588 = vst [vmem:[%s3334_s8 + $0x494] sm:$0xf] %v2587_v17  ;;  %v2589_v18 = vld [vmem:[%s3329_s7 + $0xdd0] sm:$0xf]  ;;  %v2591_v19 = vld [vmem:[%s3329_s7 + $0xdf4] sm:$0xf] }
  0x94   : > { %v2593_v20 = vld [vmem:[%s3329_s7 + $0xe18] sm:$0xf]  ;;  %2590 = vst [vmem:[%s3334_s8 + $0x4a0] sm:$0xf] %v2589_v18  ;;  %2592 = vst [vmem:[%s3334_s8 + $0x4ac] sm:$0xf] %v2591_v19 }
  0x95   : > { %2594 = vst [vmem:[%s3334_s8 + $0x4b8] sm:$0xf] %v2593_v20  ;;  %v2595_v21 = vld [vmem:[%s3329_s7 + $0xe3c] sm:$0xf]  ;;  %v2597_v22 = vld [vmem:[%s3329_s7 + $0xe60] sm:$0xf] }
  0x96   : > { %v2599_v23 = vld [vmem:[%s3329_s7 + $0xe84] sm:$0xf]  ;;  %2596 = vst [vmem:[%s3334_s8 + $0x4c4] sm:$0xf] %v2595_v21  ;;  %2598 = vst [vmem:[%s3334_s8 + $0x4d0] sm:$0xf] %v2597_v22 }
  0x97   : > { %2600 = vst [vmem:[%s3334_s8 + $0x4dc] sm:$0xf] %v2599_v23  ;;  %v2601_v24 = vld [vmem:[%s3329_s7 + $0xea8] sm:$0xf]  ;;  %v2603_v25 = vld [vmem:[%s3329_s7 + $0xecc] sm:$0xf] }
  0x98   : > { %v2605_v26 = vld [vmem:[%s3329_s7 + $0xef0] sm:$0xf]  ;;  %2602 = vst [vmem:[%s3334_s8 + $0x4e8] sm:$0xf] %v2601_v24  ;;  %2604 = vst [vmem:[%s3334_s8 + $0x4f4] sm:$0xf] %v2603_v25 }
  0x99   : > { %2606 = vst [vmem:[%s3334_s8 + $0x500] sm:$0xf] %v2605_v26  ;;  %v2607_v27 = vld [vmem:[%s3329_s7 + $0xf14] sm:$0xf]  ;;  %v2609_v28 = vld [vmem:[%s3329_s7 + $0xf38] sm:$0xf] }
  0x9a   : > { %v2611_v29 = vld [vmem:[%s3329_s7 + $0xf5c] sm:$0xf]  ;;  %2608 = vst [vmem:[%s3334_s8 + $0x50c] sm:$0xf] %v2607_v27  ;;  %2610 = vst [vmem:[%s3334_s8 + $0x518] sm:$0xf] %v2609_v28 }
  0x9b   : > { %2612 = vst [vmem:[%s3334_s8 + $0x524] sm:$0xf] %v2611_v29  ;;  %v2613_v30 = vld [vmem:[%s3329_s7 + $0xf80] sm:$0xf]  ;;  %v2615_v31 = vld [vmem:[%s3329_s7 + $0xfa4] sm:$0xf] }
  0x9c   : > { %2614 = vst [vmem:[%s3334_s8 + $0x530] sm:$0xf] %v2613_v30  ;;  %2616 = vst [vmem:[%s3334_s8 + $0x53c] sm:$0xf] %v2615_v31 }
  0x9d PF: > { %p2617_p7 = scmp.ge.s32.totalorder %s3243_s18, 1  ;;  %p664_p8 = scmp.lt.s32.totalorder %s3243_s18, 16 }
  0x9f   : > { %p665_p9 = pnand %p2617_p7, %p664_p8 }
  0xa0   : > { %s671_s9 = sand.u32 (!%p665_p9), 1, %s3219_s12   ;;  %s711_s10 = smul.u32 (!%p665_p9), 7, %s3227_s14 }
  0xa1   : > { %668 = sbr.rel (%p665_p9) target bundleno = 600 (0x258), region = 54  ;;  %p2620_p12 = scmp.ne.s32.totalorder (!%p665_p9), %s3227_s14, 0 }
  0xa2   : > { %s2896_s11 = smul.u32 (!%p665_p9), 1344, %s671_s9  ;;  %p714_p10 = scmp.lt.s32.totalorder (!%p665_p9), %s711_s10, 34 }
  0xa3   : > { %s723_s21 = smul.u32 (!%p665_p9), 3, %s3231_s15 }
  0xa4   : > { %s3803_s5 = scalar_lea.vmem (!%p665_p9), [#allocation3], %s2896_s11 }
  0xa5   : > { %p724_p11 = scmp.lt.s32.totalorder (!%p665_p9), %s723_s21, 8 }
  0xa8   : > { %s4059_s10 = smov (!%p714_p10, %s711_s10), 34  ;;  %s4061_s21 = smov (!%p724_p11, %s723_s21), 8 }
  0xa9   : > { %s2618_s22 = sshll.u32 %s4059_s10, 2  ;;  %s726_s12 = scalar_lea.vmem %s4044_s2, %s4061_s21  ;;  %v3245_v32 = vmov (!%p2620_p12), 0.0  }
  0xaa   : > { %s3789_s26 = scalar_lea.vmem %s4042_s0, %s2618_s22  ;;  %s2619_s29 = sshll.u32 %s4061_s21, 3  ;;  %743 = vst [vmem:[#allocation2] sm:$0xff] (!%p2620_p12), %v3245_v32  ;;  %744 = vst [vmem:[#allocation2 + $0x8] sm:$0xff] (!%p2620_p12), %v3245_v32 }
  0xab   : > { %s3801_s15 = scalar_lea.vmem %s4045_s3, %s2619_s29  ;;  %742 = sbr.rel (%p2620_p12) target bundleno = 178 (0xb2), region = 62  ;;  %745 = vst [vmem:[#allocation2 + $0x10] sm:$0xff] (!%p2620_p12), %v3245_v32 }
  0xb2 PF: > { %v2958_v33 = vld [vmem:[%s3803_s5 + $0x4] ss:$12 sps:$4 sm:$0xff]   ;;  %v2962_v35 = vld [vmem:[%s3803_s5] ss:$12 sps:$4 sm:$0xff]   ;;  %v2964_v37 = vld [vmem:[%s3803_s5 + $0x1c] ss:$12 sps:$4 sm:$0xff]  }
  0xb3   : > { %v2960_v34 = vld [vmem:[%s3803_s5 + $0x184] ss:$12 sps:$4 sm:$0xff]   ;;  %1898 = vmatprep.subr.bf16.mxu0 %v2958_v33  ;;  %v2963_v36 = vld [vmem:[%s3803_s5 + $0x180] ss:$12 sps:$4 sm:$0xff]   ;;  %v2966_v38 = vld [vmem:[%s3803_s5 + $0x19c] ss:$12 sps:$4 sm:$0xff]  }
  0xb4   : > { %1939 = vmatprep.subr.bf16.mxu1 %v2960_v34  ;;  %1899 = vmatpush1.bf16.msra.mxu0 %v2962_v35  ;;  %v2968_v39 = vld [vmem:[%s3803_s5 + $0x18] ss:$12 sps:$4 sm:$0xff]   ;;  %v2970_v41 = vld [vmem:[%s3803_s5 + $0x34] ss:$12 sps:$4 sm:$0xff]   ;;  %v2974_v43 = vld [vmem:[%s3803_s5 + $0x30] ss:$12 sps:$4 sm:$0xff]  }
  0xb5   : > { %1940 = vmatpush1.bf16.msra.mxu1 %v2963_v36  ;;  %1900 = vmatprep.subr.bf16.mxu0 %v2964_v37  ;;  %v2969_v40 = vld [vmem:[%s3803_s5 + $0x198] ss:$12 sps:$4 sm:$0xff]   ;;  %v2972_v42 = vld [vmem:[%s3803_s5 + $0x1b4] ss:$12 sps:$4 sm:$0xff]   ;;  %v2975_v44 = vld [vmem:[%s3803_s5 + $0x1b0] ss:$12 sps:$4 sm:$0xff]  }
  0xb6   : > { %1941 = vmatprep.subr.bf16.mxu1 %v2966_v38  ;;  %v2976_v45 = vld [vmem:[%s3803_s5 + $0x4c] ss:$12 sps:$4 sm:$0xff]   ;;  %v2980_v47 = vld [vmem:[%s3803_s5 + $0x48] ss:$12 sps:$4 sm:$0xff]   ;;  %v2982_v49 = vld [vmem:[%s3803_s5 + $0x64] ss:$12 sps:$4 sm:$0xff]  }
  0xb7   : > { %v2978_v46 = vld [vmem:[%s3803_s5 + $0x1cc] ss:$12 sps:$4 sm:$0xff]   ;;  %v2981_v48 = vld [vmem:[%s3803_s5 + $0x1c8] ss:$12 sps:$4 sm:$0xff]   ;;  %v2984_v50 = vld [vmem:[%s3803_s5 + $0x1e4] ss:$12 sps:$4 sm:$0xff]  }
  0xb8   : > { %1901 = vmatpush1.bf16.msra.mxu0 %v2968_v39  ;;  %v2986_v51 = vld [vmem:[%s3803_s5 + $0x60] ss:$12 sps:$4 sm:$0xff]   ;;  %v2988_v53 = vld [vmem:[%s3803_s5 + $0x7c] ss:$12 sps:$4 sm:$0xff]   ;;  %v2992_v55 = vld [vmem:[%s3803_s5 + $0x78] ss:$12 sps:$4 sm:$0xff]  }
  0xb9   : > { %1942 = vmatpush1.bf16.msra.mxu1 %v2969_v40  ;;  %1902 = vmatprep.subr.bf16.mxu0 %v2970_v41  ;;  %v2987_v52 = vld [vmem:[%s3803_s5 + $0x1e0] ss:$12 sps:$4 sm:$0xff]   ;;  %v2990_v54 = vld [vmem:[%s3803_s5 + $0x1fc] ss:$12 sps:$4 sm:$0xff]   ;;  %v2993_v56 = vld [vmem:[%s3803_s5 + $0x1f8] ss:$12 sps:$4 sm:$0xff]  }
  0xba   : > { %1943 = vmatprep.subr.bf16.mxu1 %v2972_v42  ;;  %v2994_v57 = vld [vmem:[%s3803_s5 + $0x94] ss:$12 sps:$4 sm:$0xff]   ;;  %v2998_v59 = vld [vmem:[%s3803_s5 + $0x90] ss:$12 sps:$4 sm:$0xff]   ;;  %v3000_v61 = vld [vmem:[%s3803_s5 + $0xac] ss:$12 sps:$4 sm:$0xff]  }
  0xbb   : > { %v2996_v58 = vld [vmem:[%s3803_s5 + $0x214] ss:$12 sps:$4 sm:$0xff]   ;;  %v2999_v60 = vld [vmem:[%s3803_s5 + $0x210] ss:$12 sps:$4 sm:$0xff]   ;;  %v3002_v62 = vld [vmem:[%s3803_s5 + $0x22c] ss:$12 sps:$4 sm:$0xff]  }
  0xbc   : > { %1903 = vmatpush1.bf16.msra.mxu0 %v2974_v43  ;;  %v3004_v63 = vld [vmem:[%s3803_s5 + $0xa8] ss:$12 sps:$4 sm:$0xff]   ;;  %v3006_v1 = vld [vmem:[%s3803_s5 + $0xc4] ss:$12 sps:$4 sm:$0xff]   ;;  %v3010_v3 = vld [vmem:[%s3803_s5 + $0xc0] ss:$12 sps:$4 sm:$0xff]  }
  0xbd   : > { %1944 = vmatpush1.bf16.msra.mxu1 %v2975_v44  ;;  %1904 = vmatprep.subr.bf16.mxu0 %v2976_v45  ;;  %v3005_v0 = vld [vmem:[%s3803_s5 + $0x228] ss:$12 sps:$4 sm:$0xff]   ;;  %v3008_v2 = vld [vmem:[%s3803_s5 + $0x244] ss:$12 sps:$4 sm:$0xff]   ;;  %v3011_v4 = vld [vmem:[%s3803_s5 + $0x240] ss:$12 sps:$4 sm:$0xff]  }
  0xbe   : > { %1945 = vmatprep.subr.bf16.mxu1 %v2978_v46  ;;  %v3012_v5 = vld [vmem:[%s3803_s5 + $0xdc] ss:$12 sps:$4 sm:$0xff]   ;;  %v3016_v7 = vld [vmem:[%s3803_s5 + $0xd8] ss:$12 sps:$4 sm:$0xff]   ;;  %v3018_v9 = vld [vmem:[%s3803_s5 + $0xf4] ss:$12 sps:$4 sm:$0xff]  }
  0xbf   : > { %v3014_v6 = vld [vmem:[%s3803_s5 + $0x25c] ss:$12 sps:$4 sm:$0xff]   ;;  %v3017_v8 = vld [vmem:[%s3803_s5 + $0x258] ss:$12 sps:$4 sm:$0xff]   ;;  %v3020_v10 = vld [vmem:[%s3803_s5 + $0x274] ss:$12 sps:$4 sm:$0xff]  }
  0xc0   : > { %1905 = vmatpush1.bf16.msra.mxu0 %v2980_v47  ;;  %v3022_v11 = vld [vmem:[%s3803_s5 + $0xf0] ss:$12 sps:$4 sm:$0xff]   ;;  %v3024_v13 = vld [vmem:[%s3803_s5 + $0x10c] ss:$12 sps:$4 sm:$0xff]   ;;  %v3028_v18 = vld [vmem:[%s3803_s5 + $0x108] ss:$12 sps:$4 sm:$0xff]  }
  0xc1   : > { %1946 = vmatpush1.bf16.msra.mxu1 %v2981_v48  ;;  %1906 = vmatprep.subr.bf16.mxu0 %v2982_v49  ;;  %v3023_v12 = vld [vmem:[%s3803_s5 + $0x270] ss:$12 sps:$4 sm:$0xff]   ;;  %v3026_v14 = vld [vmem:[%s3803_s5 + $0x28c] ss:$12 sps:$4 sm:$0xff]   ;;  %v3029_v19 = vld [vmem:[%s3803_s5 + $0x288] ss:$12 sps:$4 sm:$0xff]  }
  0xc2   : > { %1947 = vmatprep.subr.bf16.mxu1 %v2984_v50  ;;  %v749_v15 = vld [vmem:[%s3789_s26] sm:$0xff]  ;;  %v750_v17 = vld [vmem:[%s3789_s26 + $0x8] sm:$0xff]  ;;  %v3040_v27 = vld [vmem:[%s3803_s5 + $0x138] ss:$12 sps:$4 sm:$0xff]   ;;  %v3246_v50 = vmov 0   ;;  %vm3248_vm0 = vmmov 0  }
  0xc3   : > { %v3853_v16 = vcombine.high %v749_v15, %v749_v15  ;;  %v3858_v20 = vcombine.high %v750_v17, %v750_v17  ;;  %v3030_v21 = vld [vmem:[%s3803_s5 + $0x124] ss:$12 sps:$4 sm:$0xff]   ;;  %v3034_v23 = vld [vmem:[%s3803_s5 + $0x120] ss:$12 sps:$4 sm:$0xff]   ;;  %v3036_v25 = vld [vmem:[%s3803_s5 + $0x13c] ss:$12 sps:$4 sm:$0xff]   ;;  %v3880_v39 = vcombine.low %v749_v15, %v749_v15  ;;  %v3882_v40 = vcombine.low %v750_v17, %v750_v17 }
  0xc4   : > { %1907 = vmatpush1.bf16.msra.mxu0 %v2986_v51  ;;  %v3032_v22 = vld [vmem:[%s3803_s5 + $0x2a4] ss:$12 sps:$4 sm:$0xff]   ;;  %v3035_v24 = vld [vmem:[%s3803_s5 + $0x2a0] ss:$12 sps:$4 sm:$0xff]   ;;  %v3038_v26 = vld [vmem:[%s3803_s5 + $0x2bc] ss:$12 sps:$4 sm:$0xff]  }
  0xc5   : > { %1948 = vmatpush1.bf16.msra.mxu1 %v2987_v52  ;;  %1908 = vmatprep.subr.bf16.mxu0 %v2988_v53  ;;  %v3041_v28 = vld [vmem:[%s3803_s5 + $0x2b8] ss:$12 sps:$4 sm:$0xff]   ;;  %v3042_v29 = vld [vmem:[%s3803_s5 + $0x154] ss:$12 sps:$4 sm:$0xff]   ;;  %v3046_v31 = vld [vmem:[%s3803_s5 + $0x150] ss:$12 sps:$4 sm:$0xff]  }
  0xc6   : > { %1949 = vmatprep.subr.bf16.mxu1 %v2990_v54  ;;  %1930 = vmatprep.mubr.bf16.mxu0 %v3853_v16  ;;  %v3044_v30 = vld [vmem:[%s3803_s5 + $0x2d4] ss:$12 sps:$4 sm:$0xff]   ;;  %v3047_v32 = vld [vmem:[%s3803_s5 + $0x2d0] ss:$12 sps:$4 sm:$0xff]   ;;  %v3048_v33 = vld [vmem:[%s3803_s5 + $0x16c] ss:$12 sps:$4 sm:$0xff]  }
  0xc7   : > { %1971 = vmatprep.mubr.bf16.mxu1 %v3858_v20  ;;  %v3050_v34 = vld [vmem:[%s3803_s5 + $0x2ec] ss:$12 sps:$4 sm:$0xff]   ;;  %v3052_v35 = vld [vmem:[%s3803_s5 + $0x168] ss:$12 sps:$4 sm:$0xff]   ;;  %v3060_v37 = vld [vmem:[%s3803_s5 + $0x304] ss:$12 sps:$4 sm:$0xff]  }
  0xc8   : > { %1909 = vmatpush1.bf16.msra.mxu0 %v2992_v55  ;;  %v3053_v36 = vld [vmem:[%s3803_s5 + $0x2e8] ss:$12 sps:$4 sm:$0xff]   ;;  %v3063_v38 = vld [vmem:[%s3803_s5 + $0x484] ss:$12 sps:$4 sm:$0xff]   ;;  %v3058_v41 = vld [vmem:[%s3803_s5 + $0x300] ss:$12 sps:$4 sm:$0xff]  }
  0xc9   : > { %1950 = vmatpush1.bf16.msra.mxu1 %v2993_v56  ;;  %1910 = vmatprep.subr.bf16.mxu0 %v2994_v57  ;;  %v3061_v42 = vld [vmem:[%s3803_s5 + $0x480] ss:$12 sps:$4 sm:$0xff]   ;;  %v3066_v43 = vld [vmem:[%s3803_s5 + $0x31c] ss:$12 sps:$4 sm:$0xff]   ;;  %v3064_v45 = vld [vmem:[%s3803_s5 + $0x318] ss:$12 sps:$4 sm:$0xff]  }
  0xca   : > { %1951 = vmatprep.subr.bf16.mxu1 %v2996_v58  ;;  %v3069_v44 = vld [vmem:[%s3803_s5 + $0x49c] ss:$12 sps:$4 sm:$0xff]   ;;  %v3067_v46 = vld [vmem:[%s3803_s5 + $0x498] ss:$12 sps:$4 sm:$0xff]   ;;  %v3072_v47 = vld [vmem:[%s3803_s5 + $0x334] ss:$12 sps:$4 sm:$0xff]  }
  0xcb   : > { %v3075_v48 = vld [vmem:[%s3803_s5 + $0x4b4] ss:$12 sps:$4 sm:$0xff]   ;;  %v3070_v49 = vld [vmem:[%s3803_s5 + $0x330] ss:$12 sps:$4 sm:$0xff]   ;;  %v3078_v52 = vld [vmem:[%s3803_s5 + $0x34c] ss:$12 sps:$4 sm:$0xff]  }
  0xcc   : > { %1911 = vmatpush1.bf16.msra.mxu0 %v2998_v59  ;;  %v3073_v51 = vld [vmem:[%s3803_s5 + $0x4b0] ss:$12 sps:$4 sm:$0xff]   ;;  %v3081_v53 = vld [vmem:[%s3803_s5 + $0x4cc] ss:$12 sps:$4 sm:$0xff]   ;;  %v3076_v54 = vld [vmem:[%s3803_s5 + $0x348] ss:$12 sps:$4 sm:$0xff]  }
  0xcd   : > { %1952 = vmatpush1.bf16.msra.mxu1 %v2999_v60  ;;  %1912 = vmatprep.subr.bf16.mxu0 %v3000_v61  ;;  %v3079_v55 = vld [vmem:[%s3803_s5 + $0x4c8] ss:$12 sps:$4 sm:$0xff]   ;;  %v3084_v56 = vld [vmem:[%s3803_s5 + $0x364] ss:$12 sps:$4 sm:$0xff]   ;;  %v3082_v58 = vld [vmem:[%s3803_s5 + $0x360] ss:$12 sps:$4 sm:$0xff]  }
  0xce   : > { %1953 = vmatprep.subr.bf16.mxu1 %v3002_v62  ;;  %v3087_v57 = vld [vmem:[%s3803_s5 + $0x4e4] ss:$12 sps:$4 sm:$0xff]   ;;  %v3085_v59 = vld [vmem:[%s3803_s5 + $0x4e0] ss:$12 sps:$4 sm:$0xff]   ;;  %v3090_v60 = vld [vmem:[%s3803_s5 + $0x37c] ss:$12 sps:$4 sm:$0xff]  }
  0xcf   : > { %v3093_v61 = vld [vmem:[%s3803_s5 + $0x4fc] ss:$12 sps:$4 sm:$0xff]   ;;  %v3088_v62 = vld [vmem:[%s3803_s5 + $0x378] ss:$12 sps:$4 sm:$0xff]   ;;  %v3115_v17 = vld [vmem:[%s3803_s5 + $0xe0] ss:$12 sps:$4 sm:$0xff]  }
  0xd0   : > { %1913 = vmatpush1.bf16.msra.mxu0 %v3004_v63  ;;  %v3091_v63 = vld [vmem:[%s3803_s5 + $0x4f8] ss:$12 sps:$4 sm:$0xff]   ;;  %v3114_v15 = vld [vmem:[%s3803_s5 + $0x3dc] ss:$12 sps:$4 sm:$0xff]   ;;  %p2796_p13 = scmp.ne.s32.totalorder %s3227_s14, 4 }
  0xd1   : > { %1954 = vmatpush1.bf16.msra.mxu1 %v3005_v0  ;;  %1914 = vmatprep.subr.bf16.mxu0 %v3006_v1  ;;  %v3096_v0 = vld [vmem:[%s3803_s5 + $0x394] ss:$12 sps:$4 sm:$0xff]  }
  0xd2   : > { %1955 = vmatprep.subr.bf16.mxu1 %v3008_v2  ;;  %v3099_v1 = vld [vmem:[%s3803_s5 + $0x514] ss:$12 sps:$4 sm:$0xff]   ;;  %v3094_v2 = vld [vmem:[%s3803_s5 + $0x390] ss:$12 sps:$4 sm:$0xff]  }
  0xd4   : > { %1915 = vmatpush1.bf16.msra.mxu0 %v3010_v3  ;;  %v3097_v3 = vld [vmem:[%s3803_s5 + $0x510] ss:$12 sps:$4 sm:$0xff]  }
  0xd5   : > { %1956 = vmatpush1.bf16.msra.mxu1 %v3011_v4  ;;  %1916 = vmatprep.subr.bf16.mxu0 %v3012_v5  ;;  %v3102_v4 = vld [vmem:[%s3803_s5 + $0x3ac] ss:$12 sps:$4 sm:$0xff]  }
  0xd6   : > { %1957 = vmatprep.subr.bf16.mxu1 %v3014_v6  ;;  %v3105_v5 = vld [vmem:[%s3803_s5 + $0x52c] ss:$12 sps:$4 sm:$0xff]   ;;  %v3100_v6 = vld [vmem:[%s3803_s5 + $0x3a8] ss:$12 sps:$4 sm:$0xff]  }
  0xd8   : > { %1917 = vmatpush1.bf16.msra.mxu0 %v3016_v7  ;;  %v3103_v7 = vld [vmem:[%s3803_s5 + $0x528] ss:$12 sps:$4 sm:$0xff]  }
  0xd9   : > { %1958 = vmatpush1.bf16.msra.mxu1 %v3017_v8  ;;  %1918 = vmatprep.subr.bf16.mxu0 %v3018_v9  ;;  %v3917_v8 = vld [vmem:[%s3789_s26 + $0x10] sm:$0xff]  ;;  %v3108_v9 = vld [vmem:[%s3803_s5 + $0x3c4] ss:$12 sps:$4 sm:$0xff]  }
  0xda   : > { %1959 = vmatprep.subr.bf16.mxu1 %v3020_v10  ;;  %v3922_v10 = vcombine.high %v3917_v8, %v3917_v8 }
  0xdc   : > { %1919 = vmatpush1.bf16.msra.mxu0 %v3022_v11  ;;  %v3109_v11 = vld [vmem:[%s3803_s5 + $0xc8] ss:$12 sps:$4 sm:$0xff]  }
  0xdd   : > { %1960 = vmatpush1.bf16.msra.mxu1 %v3023_v12  ;;  %1920 = vmatprep.subr.bf16.mxu0 %v3024_v13  ;;  %v3106_v12 = vld [vmem:[%s3803_s5 + $0x3c0] ss:$12 sps:$4 sm:$0xff]  }
  0xde   : > { %1961 = vmatprep.subr.bf16.mxu1 %v3026_v14  ;;  %v3927_v13 = vld [vmem:[%s3789_s26 + $0x18] ss:$0 sps:$4 sm:$0xff]   ;;  %v3111_v14 = vld [vmem:[%s3803_s5 + $0x8] ss:$12 sps:$4 sm:$0xff]  }
  0xe0   : > { %1921 = vmatpush1.bf16.msra.mxu0 %v3028_v18  ;;  %v3112_v18 = vld [vmem:[%s3803_s5 + $0x3d8] ss:$12 sps:$4 sm:$0xff]  }
  0xe1   : > { %1962 = vmatpush1.bf16.msra.mxu1 %v3029_v19  ;;  %1922 = vmatprep.subr.bf16.mxu0 %v3030_v21  ;;  %v3116_v19 = vld [vmem:[%s3803_s5 + $0x20] ss:$12 sps:$4 sm:$0xff]  }
  0xe2   : > { %1963 = vmatprep.subr.bf16.mxu1 %v3032_v22  ;;  %v3119_v21 = vld [vmem:[%s3803_s5 + $0x3f4] ss:$12 sps:$4 sm:$0xff]   ;;  %v3120_v22 = vld [vmem:[%s3803_s5 + $0xf8] ss:$12 sps:$4 sm:$0xff]  }
  0xe4   : > { %1923 = vmatpush1.bf16.msra.mxu0 %v3034_v23  ;;  %v3117_v23 = vld [vmem:[%s3803_s5 + $0x3f0] ss:$12 sps:$4 sm:$0xff]  }
  0xe5   : > { %1964 = vmatpush1.bf16.msra.mxu1 %v3035_v24  ;;  %1924 = vmatprep.subr.bf16.mxu0 %v3036_v25  ;;  %v3121_v24 = vld [vmem:[%s3803_s5 + $0x38] ss:$12 sps:$4 sm:$0xff]  }
  0xe6   : > { %1965 = vmatprep.subr.bf16.mxu1 %v3038_v26  ;;  %v3124_v25 = vld [vmem:[%s3803_s5 + $0x40c] ss:$12 sps:$4 sm:$0xff]   ;;  %v3125_v26 = vld [vmem:[%s3803_s5 + $0x110] ss:$12 sps:$4 sm:$0xff]  }
  0xe8   : > { %1925 = vmatpush1.bf16.msra.mxu0 %v3040_v27  ;;  %v3122_v27 = vld [vmem:[%s3803_s5 + $0x408] ss:$12 sps:$4 sm:$0xff]  }
  0xe9   : > { %1966 = vmatpush1.bf16.msra.mxu1 %v3041_v28  ;;  %1926 = vmatprep.subr.bf16.mxu0 %v3042_v29  ;;  %v3126_v28 = vld [vmem:[%s3803_s5 + $0x50] ss:$12 sps:$4 sm:$0xff]  }
  0xea   : > { %1967 = vmatprep.subr.bf16.mxu1 %v3044_v30  ;;  %v3129_v29 = vld [vmem:[%s3803_s5 + $0x424] ss:$12 sps:$4 sm:$0xff]   ;;  %v3127_v30 = vld [vmem:[%s3803_s5 + $0x420] ss:$12 sps:$4 sm:$0xff]  }
  0xec   : > { %1927 = vmatpush1.bf16.msra.mxu0 %v3046_v31  ;;  %v3131_v31 = vld [vmem:[%s3803_s5 + $0x68] ss:$12 sps:$4 sm:$0xff]  }
  0xed   : > { %1968 = vmatpush1.bf16.msra.mxu1 %v3047_v32  ;;  %1928 = vmatprep.subr.bf16.mxu0 %v3048_v33  ;;  %v3134_v32 = vld [vmem:[%s3803_s5 + $0x43c] ss:$12 sps:$4 sm:$0xff]   ;;  %v3135_v33 = vld [vmem:[%s3803_s5 + $0x140] ss:$12 sps:$4 sm:$0xff]  }
  0xee   : > { %1969 = vmatprep.subr.bf16.mxu1 %v3050_v34  ;;  %v3132_v34 = vld [vmem:[%s3803_s5 + $0x438] ss:$12 sps:$4 sm:$0xff]  }
  0xf0   : > { %1929 = vmatpush1.bf16.msra.mxu0 %v3052_v35  ;;  %v3136_v35 = vld [vmem:[%s3803_s5 + $0x80] ss:$12 sps:$4 sm:$0xff]  }
  0xf1   : > { %1970 = vmatpush1.bf16.msra.mxu1 %v3053_v36  ;;  %1980 = vmatprep.subr.bf16.mxu0 %v3060_v37  ;;  %v3139_v36 = vld [vmem:[%s3803_s5 + $0x454] ss:$12 sps:$4 sm:$0xff]   ;;  %v3140_v37 = vld [vmem:[%s3803_s5 + $0x158] ss:$12 sps:$4 sm:$0xff]  }
  0xf2   : > { %2021 = vmatprep.subr.bf16.mxu1 %v3063_v38  ;;  %v3137_v38 = vld [vmem:[%s3803_s5 + $0x450] ss:$12 sps:$4 sm:$0xff]  }
  0xf3   : > { %1931 = vmatmul.mubr.bf16.vlgmr.msra.gmra.mrb[0].mxu0 %v3880_v39 }
  0xf4   : > { %1972 = vmatmul.mubr.bf16.vlgmr.msra.gmra.mrb[0].mxu1 %v3882_v40  ;;  %1981 = vmatpush1.bf16.msra.mxu0 %v3058_v41  ;;  %v3141_v41 = vld [vmem:[%s3803_s5 + $0x98] ss:$12 sps:$4 sm:$0xff]  }
  0xf5   : > { %2022 = vmatpush1.bf16.msra.mxu1 %v3061_v42  ;;  %1982 = vmatprep.subr.bf16.mxu0 %v3066_v43  ;;  %v3144_v42 = vld [vmem:[%s3803_s5 + $0x46c] ss:$12 sps:$4 sm:$0xff]   ;;  %v3145_v43 = vld [vmem:[%s3803_s5 + $0x170] ss:$12 sps:$4 sm:$0xff]  }
  0xf6   : > { %2023 = vmatprep.subr.bf16.mxu1 %v3069_v44  ;;  %2053 = vmatprep.mubr.bf16.mxu1 %v3246_v50  ;;  %v3142_v44 = vld [vmem:[%s3803_s5 + $0x468] ss:$12 sps:$4 sm:$0xff]  }
  0xf7   : > { %2012 = vmatprep.mubr.bf16.mxu0 %v3922_v10  ;;  %v3152_v50 = vld [vmem:[%s3803_s5 + $0x308] ss:$12 sps:$4 sm:$0xff]  }
  0xf8   : > { %1983 = vmatpush1.bf16.msra.mxu0 %v3064_v45  ;;  %v3148_v45 = vld [vmem:[%s3803_s5 + $0xb0] ss:$12 sps:$4 sm:$0xff]  }
  0xf9   : > { %2024 = vmatpush1.bf16.msra.mxu1 %v3067_v46  ;;  %1984 = vmatprep.subr.bf16.mxu0 %v3072_v47  ;;  %v3149_v46 = vld [vmem:[%s3803_s5 + $0x248] ss:$12 sps:$4 sm:$0xff]  }
  0xfa   : > { %2025 = vmatprep.subr.bf16.mxu1 %v3075_v48  ;;  %v3151_v47 = vld [vmem:[%s3803_s5 + $0x3c8] ss:$12 sps:$4 sm:$0xff]  }
  0xfb   : > { %v3150_v48 = vld [vmem:[%s3803_s5 + $0x188] ss:$12 sps:$4 sm:$0xff]  }
  0xfc   : > { %1985 = vmatpush1.bf16.msra.mxu0 %v3070_v49  ;;  %v3966_v49 = vcombine.low %v3917_v8, %v3917_v8  ;;  %v3176_v8 = vld [vmem:[%s3803_s5 + $0x398] ss:$12 sps:$4 sm:$0xff]  }
  0xfd   : > { %2026 = vmatpush1.bf16.msra.mxu1 %v3073_v51  ;;  %1986 = vmatprep.subr.bf16.mxu0 %v3078_v52  ;;  %v3153_v51 = vld [vmem:[%s3803_s5 + $0x260] ss:$12 sps:$4 sm:$0xff]  }
  0xfe   : > { %2027 = vmatprep.subr.bf16.mxu1 %v3081_v53  ;;  %v3155_v52 = vld [vmem:[%s3803_s5 + $0x3e0] ss:$12 sps:$4 sm:$0xff]  }
  0xff   : > { %v3154_v53 = vld [vmem:[%s3803_s5 + $0x1a0] ss:$12 sps:$4 sm:$0xff]  }
 0x100   : > { %1987 = vmatpush1.bf16.msra.mxu0 %v3076_v54  ;;  %v3156_v54 = vld [vmem:[%s3803_s5 + $0x320] ss:$12 sps:$4 sm:$0xff]  }
 0x101   : > { %2028 = vmatpush1.bf16.msra.mxu1 %v3079_v55  ;;  %1988 = vmatprep.subr.bf16.mxu0 %v3084_v56  ;;  %v3157_v55 = vld [vmem:[%s3803_s5 + $0x278] ss:$12 sps:$4 sm:$0xff]  }
 0x102   : > { %2029 = vmatprep.subr.bf16.mxu1 %v3087_v57  ;;  %v3159_v56 = vld [vmem:[%s3803_s5 + $0x3f8] ss:$12 sps:$4 sm:$0xff]  }
 0x103   : > { %v3160_v57 = vld [vmem:[%s3803_s5 + $0x338] ss:$12 sps:$4 sm:$0xff]  }
 0x104   : > { %1989 = vmatpush1.bf16.msra.mxu0 %v3082_v58  ;;  %v3161_v58 = vld [vmem:[%s3803_s5 + $0x290] ss:$12 sps:$4 sm:$0xff]  }
 0x105   : > { %2030 = vmatpush1.bf16.msra.mxu1 %v3085_v59  ;;  %1990 = vmatprep.subr.bf16.mxu0 %v3090_v60  ;;  %v3163_v59 = vld [vmem:[%s3803_s5 + $0x410] ss:$12 sps:$4 sm:$0xff]  }
 0x106   : > { %2031 = vmatprep.subr.bf16.mxu1 %v3093_v61  ;;  %v3162_v60 = vld [vmem:[%s3803_s5 + $0x1d0] ss:$12 sps:$4 sm:$0xff]   ;;  %v3165_v61 = vld [vmem:[%s3803_s5 + $0x2a8] ss:$12 sps:$4 sm:$0xff]  }
 0x108   : > { %1991 = vmatpush1.bf16.msra.mxu0 %v3088_v62  ;;  %v3167_v62 = vld [vmem:[%s3803_s5 + $0x428] ss:$12 sps:$4 sm:$0xff]  }
 0x109   : > { %2032 = vmatpush1.bf16.msra.mxu1 %v3091_v63  ;;  %1992 = vmatprep.subr.bf16.mxu0 %v3096_v0  ;;  %v3166_v63 = vld [vmem:[%s3803_s5 + $0x1e8] ss:$12 sps:$4 sm:$0xff]  }
 0x10a   : > { %2033 = vmatprep.subr.bf16.mxu1 %v3099_v1  ;;  %v3168_v0 = vld [vmem:[%s3803_s5 + $0x368] ss:$12 sps:$4 sm:$0xff]   ;;  %v3169_v1 = vld [vmem:[%s3803_s5 + $0x2c0] ss:$12 sps:$4 sm:$0xff]  }
 0x10c   : > { %1993 = vmatpush1.bf16.msra.mxu0 %v3094_v2  ;;  %v3171_v2 = vld [vmem:[%s3803_s5 + $0x440] ss:$12 sps:$4 sm:$0xff]  }
 0x10d   : > { %2034 = vmatpush1.bf16.msra.mxu1 %v3097_v3  ;;  %1994 = vmatprep.subr.bf16.mxu0 %v3102_v4  ;;  %v3170_v3 = vld [vmem:[%s3803_s5 + $0x200] ss:$12 sps:$4 sm:$0xff]  }
 0x10e   : > { %2035 = vmatprep.subr.bf16.mxu1 %v3105_v5  ;;  %v3172_v4 = vld [vmem:[%s3803_s5 + $0x380] ss:$12 sps:$4 sm:$0xff]   ;;  %v3173_v5 = vld [vmem:[%s3803_s5 + $0x2d8] ss:$12 sps:$4 sm:$0xff]  }
 0x110   : > { %1995 = vmatpush1.bf16.msra.mxu0 %v3100_v6  ;;  %v3175_v6 = vld [vmem:[%s3803_s5 + $0x458] ss:$12 sps:$4 sm:$0xff]  }
 0x111   : > { %2036 = vmatpush1.bf16.msra.mxu1 %v3103_v7  ;;  %1996 = vmatprep.subr.bf16.mxu0 %v3108_v9  ;;  %v3174_v7 = vld [vmem:[%s3803_s5 + $0x218] ss:$12 sps:$4 sm:$0xff]   ;;  %v3177_v9 = vld [vmem:[%s3803_s5 + $0x2f0] ss:$12 sps:$4 sm:$0xff]  }
 0x112   : > { %2799 = vmatprep.subr.bf16.mxu1 %v3109_v11  ;;  %v3178_v11 = vld [vmem:[%s3803_s5 + $0x230] ss:$12 sps:$4 sm:$0xff]  }
 0x114   : > { %2054 = vmatmul.mubr.bf16.vlgmr.msra.gmra.mrb[4].mxu1 %v3927_v13  ;;  %1997 = vmatpush1.bf16.msra.mxu0 %v3106_v12  ;;  %v3180_v12 = vld [vmem:[%s3803_s5 + $0x3b0] ss:$12 sps:$4 sm:$0xff]  }
 0x115   : > { %2800 = vmatpush3.bf16.msra.mxu1 %v3111_v14  ;;  %1998 = vmatprep.subr.bf16.mxu0 %v3114_v15  ;;  %v3181_v14 = vld [vmem:[%s3803_s5 + $0x488] ss:$12 sps:$4 sm:$0xff]   ;;  %v3247_v15 = vmov 0.0  }
 0x116   : > { %2801 = vmatprep.subr.bf16.mxu1 %v3115_v17  ;;  %2094 = vmatprep.mubr.bf16.mxu1 %v3853_v16  ;;  %v3130_v16 = vld [vmem:[%s3803_s5 + $0x128] ss:$12 sps:$4 sm:$0xff]   ;;  %v3182_v17 = vld [vmem:[%s3803_s5 + $0x4a0] ss:$12 sps:$4 sm:$0xff]  }
 0x118   : > { %1999 = vmatpush1.bf16.msra.mxu0 %v3112_v18  ;;  %v3183_v18 = vld [vmem:[%s3803_s5 + $0x4b8] ss:$12 sps:$4 sm:$0xff]  }
 0x119   : > { %2802 = vmatpush3.bf16.msra.mxu1 %v3116_v19  ;;  %2000 = vmatprep.subr.bf16.mxu0 %v3119_v21  ;;  %v3184_v19 = vld [vmem:[%s3803_s5 + $0x4d0] ss:$12 sps:$4 sm:$0xff]   ;;  %v3185_v21 = vld [vmem:[%s3803_s5 + $0x4e8] ss:$12 sps:$4 sm:$0xff]  }
 0x11a   : > { %2803 = vmatprep.subr.bf16.mxu1 %v3120_v22  ;;  %v3187_v22 = vld [vmem:[%s3803_s5 + $0x518] ss:$12 sps:$4 sm:$0xff]  }
 0x11c   : > { %2001 = vmatpush1.bf16.msra.mxu0 %v3117_v23  ;;  %v3188_v23 = vld [vmem:[%s3803_s5 + $0x530] ss:$12 sps:$4 sm:$0xff]  }
 0x11d   : > { %2804 = vmatpush3.bf16.msra.mxu1 %v3121_v24  ;;  %2002 = vmatprep.subr.bf16.mxu0 %v3124_v25 }
 0x11e   : > { %2805 = vmatprep.subr.bf16.mxu1 %v3125_v26 }
 0x120   : > { %2003 = vmatpush1.bf16.msra.mxu0 %v3122_v27 }
 0x121   : > { %2806 = vmatpush3.bf16.msra.mxu1 %v3126_v28  ;;  %2004 = vmatprep.subr.bf16.mxu0 %v3129_v29 }
 0x122   : > { %2807 = vmatprep.subr.bf16.mxu1 %v3130_v16 }
 0x124   : > { %2005 = vmatpush1.bf16.msra.mxu0 %v3127_v30 }
 0x125   : > { %2808 = vmatpush3.bf16.msra.mxu1 %v3131_v31  ;;  %2006 = vmatprep.subr.bf16.mxu0 %v3134_v32 }
 0x126   : > { %2809 = vmatprep.subr.bf16.mxu1 %v3135_v33 }
 0x128   : > { %2007 = vmatpush1.bf16.msra.mxu0 %v3132_v34 }
 0x129   : > { %2810 = vmatpush3.bf16.msra.mxu1 %v3136_v35  ;;  %2008 = vmatprep.subr.bf16.mxu0 %v3139_v36 }
 0x12a   : > { %2811 = vmatprep.subr.bf16.mxu1 %v3140_v37 }
 0x12c   : > { %2009 = vmatpush1.bf16.msra.mxu0 %v3137_v38 }
 0x12d   : > { %2812 = vmatpush3.bf16.msra.mxu1 %v3141_v41  ;;  %2010 = vmatprep.subr.bf16.mxu0 %v3144_v42 }
 0x12e   : > { %2813 = vmatprep.subr.bf16.mxu1 %v3145_v43 }
 0x130   : > { %2011 = vmatpush1.bf16.msra.mxu0 %v3142_v44 }
 0x131   : > { %2814 = vmatpush3.bf16.msra.mxu1 %v3148_v45  ;;  %2821 = vmatprep.subr.bf16.mxu0 %v3149_v46 }
 0x132   : > { %2843 = vmatprep.subr.bf16.mxu1 %v3151_v47 }
 0x133   : > { %2013 = vmatmul.mubr.bf16.vlgmr.msra.gmra.mrb[4].mxu0 %v3966_v49 }
 0x134   : > { %2095 = vmatmul.mubr.bf16.vlgmr.msra.gmra.mrb[8].mxu1 %v3880_v39  ;;  %2822 = vmatpush3.bf16.msra.mxu0 %v3150_v48  ;;  %v3158_v39 = vld [vmem:[%s3803_s5 + $0x1b8] ss:$12 sps:$4 sm:$0xff]  }
 0x135   : > { %2844 = vmatpush3.bf16.msra.mxu1 %v3152_v50  ;;  %2823 = vmatprep.subr.bf16.mxu0 %v3153_v51 }
 0x136   : > { %2845 = vmatprep.subr.bf16.mxu1 %v3155_v52  ;;  %2134 = vmatprep.mubr.bf16.mxu0 %v3858_v20  ;;  %v3164_v20 = vld [vmem:[%s3803_s5 + $0x350] ss:$12 sps:$4 sm:$0xff]  }
 0x137   : > { %2174 = vmatprep.mubr.bf16.mxu1 %v3922_v10  ;;  %v3179_v10 = vld [vmem:[%s3803_s5 + $0x470] ss:$12 sps:$4 sm:$0xff]  }
 0x138   : > { %2824 = vmatpush3.bf16.msra.mxu0 %v3154_v53 }
 0x139   : > { %2846 = vmatpush3.bf16.msra.mxu1 %v3156_v54  ;;  %2825 = vmatprep.subr.bf16.mxu0 %v3157_v55 }
 0x13a   : > { %2847 = vmatprep.subr.bf16.mxu1 %v3159_v56 }
 0x13c   : > { %2826 = vmatpush3.bf16.msra.mxu0 %v3158_v39 }
 0x13d   : > { %2848 = vmatpush3.bf16.msra.mxu1 %v3160_v57  ;;  %2827 = vmatprep.subr.bf16.mxu0 %v3161_v58 }
 0x13e   : > { %2849 = vmatprep.subr.bf16.mxu1 %v3163_v59 }
 0x140   : > { %2828 = vmatpush3.bf16.msra.mxu0 %v3162_v60 }
 0x141   : > { %2850 = vmatpush3.bf16.msra.mxu1 %v3164_v20  ;;  %2829 = vmatprep.subr.bf16.mxu0 %v3165_v61 }
 0x142   : > { %2851 = vmatprep.subr.bf16.mxu1 %v3167_v62 }
 0x144   : > { %2830 = vmatpush3.bf16.msra.mxu0 %v3166_v63 }
 0x145   : > { %2852 = vmatpush3.bf16.msra.mxu1 %v3168_v0  ;;  %2831 = vmatprep.subr.bf16.mxu0 %v3169_v1  ;;  %v748_v1 = vld [vmem:[#allocation2 + $0x10] sm:$0xff] }
 0x146   : > { %2853 = vmatprep.subr.bf16.mxu1 %v3171_v2 }
 0x148   : > { %2832 = vmatpush3.bf16.msra.mxu0 %v3170_v3 }
 0x149   : > { %2854 = vmatpush3.bf16.msra.mxu1 %v3172_v4  ;;  %2833 = vmatprep.subr.bf16.mxu0 %v3173_v5 }
 0x14a   : > { %2855 = vmatprep.subr.bf16.mxu1 %v3175_v6 }
 0x14c   : > { %2834 = vmatpush3.bf16.msra.mxu0 %v3174_v7 }
 0x14d   : > { %2856 = vmatpush3.bf16.msra.mxu1 %v3176_v8  ;;  %2835 = vmatprep.subr.bf16.mxu0 %v3177_v9  ;;  %v2237_v8 = vlaneseq (!%p2796_p13) }
 0x14e   : > { %2857 = vmatprep.subr.bf16.mxu1 %v3179_v10  ;;  %v2235_v10 = vld [vmem:[%s726_s12] sm:$0x7] (!%p2796_p13) }
 0x14f   : > { %v2238_v9 = vshrl.u32 (!%p2796_p13), %v2237_v8, 7 }
 0x150   : > { %2836 = vmatpush3.bf16.msra.mxu0 %v3178_v11 }
 0x151   : > { %2858 = vmatpush3.bf16.msra.mxu1 %v3180_v12  ;;  %2874 = vmatprep.subr.bf16.mxu0 %v3247_v15  ;;  %v2239_v11 = vsub.s32 (!%p2796_p13), 0, %v2238_v9  ;;  %v2243_v12 = vsub.s32 (!%p2796_p13), 1, %v2238_v9 }
 0x153   : > { %2135 = vmatmul.mubr.bf16.vlgmr.msra.gmra.mrb[8].mxu0 %v3882_v40  ;;  %v3186_v40 = vld [vmem:[%s3803_s5 + $0x500] ss:$12 sps:$4 sm:$0xff]  }
 0x154   : > { %2175 = vmatmul.mubr.bf16.vlgmr.msra.gmra.mrb[12].mxu1 %v3966_v49  ;;  %2875 = vmatpush3.bf16.msra.mxu0 %v3181_v14  ;;  %v747_v49 = vld [vmem:[#allocation2 + $0x8] sm:$0xff]  ;;  %v2247_v14 = vsub.s32 (!%p2796_p13), 2, %v2238_v9 }
 0x155   : > { %2890 = vmatprep.mubr.msk.bf16.mxu0 %vm3248_vm0, %v3247_v15  ;;  %2876 = vmatprep.subr.bf16.mxu0 %v3247_v15 }
 0x158   : > { %2877 = vmatpush3.bf16.msra.mxu0 %v3182_v17 }
 0x159   : > { %2878 = vmatprep.subr.bf16.mxu0 %v3247_v15 }
 0x15c   : > { %2879 = vmatpush3.bf16.msra.mxu0 %v3183_v18 }
 0x15d   : > { %2880 = vmatprep.subr.bf16.mxu0 %v3247_v15 }
 0x160   : > { %2881 = vmatpush3.bf16.msra.mxu0 %v3184_v19  ;;  %v2240_v19 = vrot.slane (!%p2796_p13), %v2235_v10, %v2239_v11 }
 0x161   : > { %2882 = vmatprep.subr.bf16.mxu0 %v3247_v15 }
 0x164   : > { %2883 = vmatpush3.bf16.msra.mxu0 %v3185_v21  ;;  %v2244_v21 = vrot.slane (!%p2796_p13), %v2235_v10, %v2243_v12 }
 0x165   : > { %2884 = vmatprep.subr.bf16.mxu0 %v3247_v15 }
 0x168   : > { %2885 = vmatpush3.bf16.msra.mxu0 %v3186_v40  ;;  %v2248_v40 = vrot.slane (!%p2796_p13), %v2235_v10, %v2247_v14 }
 0x169   : > { %2886 = vmatprep.subr.bf16.mxu0 %v3247_v15 }
 0x16c   : > { %2887 = vmatpush3.bf16.msra.mxu0 %v3187_v22 }
 0x16d   : > { %2888 = vmatprep.subr.bf16.mxu0 %v3247_v15 }
 0x170   : > { %2889 = vmatpush3.bf16.msra.mxu0 %v3188_v23 }
 0x173   : > { %2891 = vmatmul.mubr.bf16.vlgmr.msra.gmra.mrb[12].mxu0 %v3927_v13  ;;  %v746_v13 = vld [vmem:[#allocation2] sm:$0xff] }
 0x1c6   : > { %v1932_v24 = vpop.f32.mrb[0].mxu0 }
 0x1c7   : > { %v1973_v25 = vpop.f32.mrb[0].mxu1  ;;  %v1934_v27 = vpop.f32.mrb[1].mxu0 }
 0x1c8   : > { %v1974_v26 = vadd.f32 %v1973_v25, %v1932_v24  ;;  %v1975_v28 = vpop.f32.mrb[1].mxu1  ;;  %v1936_v16 = vpop.f32.mrb[2].mxu0 }
 0x1c9   : > { %v1976_v29 = vadd.f32 %v1975_v28, %v1934_v27  ;;  %v1977_v30 = vpop.f32.mrb[2].mxu1  ;;  %v1937_v31 = vpop.f32.mrb[3].mxu0 }
 0x1ca   : > { %v1978_v32 = vpop.f32.mrb[3].mxu1 }
 0x1e7   : > { %v2055_v33 = vpop.f32.mrb[4].mxu1 }
 0x1e8   : > { %v2057_v34 = vpop.f32.mrb[5].mxu1 }
 0x1e9   : > { %v2059_v35 = vpop.f32.mrb[6].mxu1 }
 0x1ea   : > { %v2060_v36 = vpop.f32.mrb[7].mxu1 }
 0x206   : > { %v2014_v37 = vpop.f32.mrb[4].mxu0 }
 0x207   : > { %v2815_v38 = vpop.f32.mrb[8].mxu1  ;;  %v2015_v41 = vadd.f32 %v2014_v37, %v1974_v26  ;;  %v2016_v42 = vpop.f32.mrb[5].mxu0 }
 0x208   : > { %v2816_v43 = vpop.f32.mrb[9].mxu1  ;;  %v2017_v44 = vadd.f32 %v2016_v42, %v1976_v29  ;;  %v2018_v45 = vpop.f32.mrb[6].mxu0 }
 0x209   : > { %v2817_v46 = vadd.f32 %v2816_v43, %v2815_v38  ;;  %v2818_v47 = vpop.f32.mrb[10].mxu1  ;;  %v2056_v48 = vadd.f32 %v2055_v33, %v2015_v41  ;;  %v2019_v50 = vpop.f32.mrb[7].mxu0 }
 0x20a   : > { %v2819_v51 = vpop.f32.mrb[11].mxu1  ;;  %v2058_v52 = vadd.f32 %v2057_v34, %v2017_v44 }
 0x20b   : > { %v2222_v53 = vadd.f32 %v2056_v48, %v746_v13 }
 0x20c   : > { %v2223_v54 = vadd.f32 %v2058_v52, %v747_v49 }
 0x20d   : > { %2225 = vst [vmem:[#allocation2] sm:$0xff] %v2222_v53 }
 0x20e   : > { %2226 = vst [vmem:[#allocation2 + $0x8] sm:$0xff] %v2223_v54 }
 0x214   : > { %v2232_v15 = vld [vmem:[#allocation2] sm:$0xff] (!%p2796_p13) }
 0x215   : > { %v2233_v17 = vld [vmem:[#allocation2 + $0x8] sm:$0xff] (!%p2796_p13)  ;;  %v2252_v22 = vadd.f32 (!%p2796_p13), %v2240_v19, %v2232_v15 }
 0x216   : > { %v2253_v23 = vadd.f32 (!%p2796_p13), %v2244_v21, %v2233_v17 }
 0x217   : > { %v2255_v25 = vmax.f32 (!%p2796_p13), %v2252_v22, 0.0 }
 0x218   : > { %v2256_v26 = vmax.f32 (!%p2796_p13), %v2253_v23, 0.0 }
 0x219   : > { %2258 = vst [vmem:[%s3801_s15] sm:$0xff] (!%p2796_p13), %v2255_v25 }
 0x21a   : > { %2259 = vst [vmem:[%s3801_s15 + $0x8] sm:$0xff] (!%p2796_p13), %v2256_v26 }
 0x226   : > { %v2837_v55 = vpop.f32.mrb[8].mxu0 }
 0x227   : > { %v2859_v56 = vpop.f32.mrb[12].mxu1  ;;  %v2838_v39 = vpop.f32.mrb[9].mxu0 }
 0x228   : > { %v2860_v57 = vpop.f32.mrb[13].mxu1  ;;  %v2839_v58 = vadd.f32 %v2838_v39, %v2837_v55  ;;  %v2840_v59 = vpop.f32.mrb[10].mxu0 }
 0x229   : > { %v2861_v60 = vadd.f32 %v2860_v57, %v2859_v56  ;;  %v2862_v20 = vpop.f32.mrb[14].mxu1  ;;  %v2841_v61 = vpop.f32.mrb[11].mxu0 }
 0x22a   : > { %v2863_v62 = vpop.f32.mrb[15].mxu1  ;;  %v2137_v63 = vadd.f32 %v2839_v58, %v2817_v46 }
 0x22c   : > { %v2177_v0 = vadd.f32 %v2861_v60, %v2137_v63 }
 0x245   : > { %2231 = sbr.rel (%p2796_p13) target bundleno = 600 (0x258), region = 66 }
 0x246   : > { %v2216_v2 = vpop.f32.mrb[12].mxu0 }
 0x247   : > { %v2217_v3 = vadd.f32 %v2216_v2, %v2177_v0  ;;  %v2892_v4 = vpop.f32.mrb[13].mxu0 }
 0x248   : > { %v2219_v5 = vpop.f32.mrb[14].mxu0 }
 0x249   : > { %v2224_v6 = vadd.f32 %v2217_v3, %v748_v1  ;;  %v2893_v7 = vpop.f32.mrb[15].mxu0 }
 0x24b   : > { %2227 = vst [vmem:[#allocation2 + $0x10] sm:$0xff] %v2224_v6 }
 0x252   : > { %v2234_v18 = vld [vmem:[#allocation2 + $0x10] sm:$0xff] }
 0x253   : > { %v2254_v24 = vadd.f32 %v2248_v40, %v2234_v18 }
 0x255   : > { %v2257_v27 = vmax.f32 %v2254_v24, 0.0 }
 0x257   : > { %2260 = vst [vmem:[%s3801_s15 + $0x10] sm:$0xff] %v2257_v27 }
 0x258 PF: > { %s13_s18 = sadd.s32 1, %s3243_s18   ;;  %s4046_s12 = smov %s3223_s13 }
 0x259   : > { %p10_p0 = scmp.ge.s32.totalorder %s13_s18, 17   ;;  %s4047_s13 = smov %s3320_s25 }
 0x25a   : > { %s4048_s14 = smov %s3235_s16  ;;  %s4049_s15 = smov %s3239_s17 }
 0x25b   : > { %s4050_s16 = smov %s4053_s19  ;;  %s4051_s17 = smov %s4057_s20 }
 0x25c   :  { %12 = sbr.rel (!%p10_p0) target bundleno = 4 (0x4), region = 113 }

// kernel: autoencoder_forward.20
= control target key start
LH: loop header
LB: loop body
LE: loop exit
PB: predicated region body
PF: predicated region fallthrough
CT: control target
= control target key end

     0   :  { %v436_v1 = vmov 0   ;;  %v319_v34 = vlaneseq  ;;  %s571_s1 = inlined_call_operand.vmem [shape: bf16[128,512], index: 1, kind: input, shape index: {}]   ;;  %s572_s0 = inlined_call_operand.vmem [shape: bf16[8,128], index: 0, kind: input, shape index: {}]   ;;  %s573_s2 = inlined_call_operand.vmem [shape: f32[1,512], index: 2, kind: input, shape index: {}]   ;;  %s574_s3 = inlined_call_operand.vmem [shape: f32[8,512], index: 3, kind: output, shape index: {}]  }
   0x1   :  { %v388_v0 = vld [vmem:[%s571_s1 + $0x4] ss:$16 sps:$4 sm:$0xff]   ;;  %252 = vmatprep.mubr.bf16.mxu0 %v436_v1  ;;  %293 = vmatprep.mubr.bf16.mxu1 %v436_v1  ;;  %v390_v2 = vld [vmem:[%s571_s1 + $0xc] ss:$16 sps:$4 sm:$0xff]   ;;  %v392_v3 = vld [vmem:[%s571_s1] ss:$16 sps:$4 sm:$0xff]  }
   0x2   :  { %220 = vmatprep.subr.bf16.mxu0 %v388_v0  ;;  %v393_v4 = vld [vmem:[%s571_s1 + $0x8] ss:$16 sps:$4 sm:$0xff]   ;;  %261 = vmatprep.subr.bf16.mxu1 %v390_v2  ;;  %v394_v5 = vld [vmem:[%s571_s1 + $0x24] ss:$16 sps:$4 sm:$0xff]   ;;  %v396_v6 = vld [vmem:[%s571_s1 + $0x2c] ss:$16 sps:$4 sm:$0xff]  }
   0x3   :  { %221 = vmatpush1.bf16.msra.mxu0 %v392_v3  ;;  %262 = vmatpush1.bf16.msra.mxu1 %v393_v4  ;;  %v398_v7 = vld [vmem:[%s571_s1 + $0x20] ss:$16 sps:$4 sm:$0xff]   ;;  %v399_v8 = vld [vmem:[%s571_s1 + $0x28] ss:$16 sps:$4 sm:$0xff]   ;;  %v400_v9 = vld [vmem:[%s571_s1 + $0x44] ss:$16 sps:$4 sm:$0xff]  }
   0x4   :  { %222 = vmatprep.subr.bf16.mxu0 %v394_v5  ;;  %263 = vmatprep.subr.bf16.mxu1 %v396_v6  ;;  %v402_v10 = vld [vmem:[%s571_s1 + $0x4c] ss:$16 sps:$4 sm:$0xff]   ;;  %v404_v11 = vld [vmem:[%s571_s1 + $0x40] ss:$16 sps:$4 sm:$0xff]   ;;  %v405_v12 = vld [vmem:[%s571_s1 + $0x48] ss:$16 sps:$4 sm:$0xff]  }
   0x5   :  { %v406_v13 = vld [vmem:[%s571_s1 + $0x64] ss:$16 sps:$4 sm:$0xff]   ;;  %v408_v14 = vld [vmem:[%s571_s1 + $0x6c] ss:$16 sps:$4 sm:$0xff]   ;;  %v410_v15 = vld [vmem:[%s571_s1 + $0x60] ss:$16 sps:$4 sm:$0xff]  }
   0x6   :  { %v411_v16 = vld [vmem:[%s571_s1 + $0x68] ss:$16 sps:$4 sm:$0xff]   ;;  %v412_v17 = vld [vmem:[%s571_s1 + $0x84] ss:$16 sps:$4 sm:$0xff]   ;;  %v414_v18 = vld [vmem:[%s571_s1 + $0x8c] ss:$16 sps:$4 sm:$0xff]  }
   0x7   :  { %223 = vmatpush1.bf16.msra.mxu0 %v398_v7  ;;  %264 = vmatpush1.bf16.msra.mxu1 %v399_v8  ;;  %v416_v19 = vld [vmem:[%s571_s1 + $0x80] ss:$16 sps:$4 sm:$0xff]   ;;  %v417_v20 = vld [vmem:[%s571_s1 + $0x88] ss:$16 sps:$4 sm:$0xff]   ;;  %v418_v21 = vld [vmem:[%s571_s1 + $0xa4] ss:$16 sps:$4 sm:$0xff]  }
   0x8   :  { %224 = vmatprep.subr.bf16.mxu0 %v400_v9  ;;  %265 = vmatprep.subr.bf16.mxu1 %v402_v10  ;;  %v420_v22 = vld [vmem:[%s571_s1 + $0xac] ss:$16 sps:$4 sm:$0xff]   ;;  %v422_v23 = vld [vmem:[%s571_s1 + $0xa0] ss:$16 sps:$4 sm:$0xff]   ;;  %v423_v24 = vld [vmem:[%s571_s1 + $0xa8] ss:$16 sps:$4 sm:$0xff]  }
   0x9   :  { %v424_v25 = vld [vmem:[%s571_s1 + $0xc4] ss:$16 sps:$4 sm:$0xff]   ;;  %v426_v26 = vld [vmem:[%s571_s1 + $0xcc] ss:$16 sps:$4 sm:$0xff]   ;;  %v428_v27 = vld [vmem:[%s571_s1 + $0xc0] ss:$16 sps:$4 sm:$0xff]  }
   0xa   :  { %v429_v28 = vld [vmem:[%s571_s1 + $0xc8] ss:$16 sps:$4 sm:$0xff]   ;;  %v430_v29 = vld [vmem:[%s571_s1 + $0xe4] ss:$16 sps:$4 sm:$0xff]   ;;  %v432_v30 = vld [vmem:[%s571_s1 + $0xec] ss:$16 sps:$4 sm:$0xff]  }
   0xb   :  { %225 = vmatpush1.bf16.msra.mxu0 %v404_v11  ;;  %266 = vmatpush1.bf16.msra.mxu1 %v405_v12  ;;  %v434_v31 = vld [vmem:[%s571_s1 + $0xe0] ss:$16 sps:$4 sm:$0xff]   ;;  %v435_v32 = vld [vmem:[%s571_s1 + $0xe8] ss:$16 sps:$4 sm:$0xff]   ;;  %v320_v35 = vshrl.u32 %v319_v34, 7 }
   0xc   :  { %226 = vmatprep.subr.bf16.mxu0 %v406_v13  ;;  %267 = vmatprep.subr.bf16.mxu1 %v408_v14  ;;  %v27_v33 = vld [vmem:[%s572_s0] sm:$0xf] }
   0xd   :  { %v321_v36 = vsub.s32 0, %v320_v35  ;;  %v329_v37 = vsub.s32 2, %v320_v35  ;;  %v317_v38 = vld [vmem:[%s573_s2] sm:$0xf]  ;;  %v325_v39 = vsub.s32 1, %v320_v35  ;;  %v333_v40 = vsub.s32 3, %v320_v35 }
   0xf   :  { %227 = vmatpush1.bf16.msra.mxu0 %v410_v15  ;;  %268 = vmatpush1.bf16.msra.mxu1 %v411_v16  ;;  %v322_v41 = vrot.slane %v317_v38, %v321_v36  ;;  %v330_v42 = vrot.slane %v317_v38, %v329_v37  ;;  %v326_v43 = vrot.slane %v317_v38, %v325_v39 }
  0x10   :  { %228 = vmatprep.subr.bf16.mxu0 %v412_v17  ;;  %269 = vmatprep.subr.bf16.mxu1 %v414_v18  ;;  %v334_v44 = vrot.slane %v317_v38, %v333_v40 }
  0x13   :  { %229 = vmatpush1.bf16.msra.mxu0 %v416_v19  ;;  %270 = vmatpush1.bf16.msra.mxu1 %v417_v20 }
  0x14   :  { %230 = vmatprep.subr.bf16.mxu0 %v418_v21  ;;  %271 = vmatprep.subr.bf16.mxu1 %v420_v22 }
  0x17   :  { %231 = vmatpush1.bf16.msra.mxu0 %v422_v23  ;;  %272 = vmatpush1.bf16.msra.mxu1 %v423_v24 }
  0x18   :  { %232 = vmatprep.subr.bf16.mxu0 %v424_v25  ;;  %273 = vmatprep.subr.bf16.mxu1 %v426_v26 }
  0x1b   :  { %233 = vmatpush1.bf16.msra.mxu0 %v428_v27  ;;  %274 = vmatpush1.bf16.msra.mxu1 %v429_v28 }
  0x1c   :  { %234 = vmatprep.subr.bf16.mxu0 %v430_v29  ;;  %275 = vmatprep.subr.bf16.mxu1 %v432_v30 }
  0x1f   :  { %235 = vmatpush1.bf16.msra.mxu0 %v434_v31  ;;  %276 = vmatpush1.bf16.msra.mxu1 %v435_v32 }
  0x22   :  { %253 = vmatmul.mubr.bf16.vlgmr.msra.gmra.mrb[0].mxu0 %v27_v33  ;;  %294 = vmatmul.mubr.bf16.vlgmr.msra.gmra.mrb[0].mxu1 %v27_v33 }
  0xf5   :  { %v254_v45 = vpop.f32.mrb[0].mxu0  ;;  %v295_v46 = vpop.f32.mrb[0].mxu1 }
  0xf6   :  { %v339_v47 = vadd.f32 %v322_v41, %v254_v45  ;;  %v341_v48 = vadd.f32 %v330_v42, %v295_v46  ;;  %v256_v49 = vpop.f32.mrb[1].mxu0  ;;  %v297_v50 = vpop.f32.mrb[1].mxu1 }
  0xf7   :  { %v340_v51 = vadd.f32 %v326_v43, %v256_v49  ;;  %v342_v52 = vadd.f32 %v334_v44, %v297_v50  ;;  %v258_v53 = vpop.f32.mrb[2].mxu0  ;;  %v299_v54 = vpop.f32.mrb[2].mxu1 }
  0xf8   :  { %v343_v55 = vmax.f32 %v339_v47, 0.0  ;;  %v345_v56 = vmax.f32 %v341_v48, 0.0  ;;  %v259_v57 = vpop.f32.mrb[3].mxu0  ;;  %v300_v58 = vpop.f32.mrb[3].mxu1 }
  0xf9   :  { %v344_v59 = vmax.f32 %v340_v51, 0.0  ;;  %v346_v60 = vmax.f32 %v342_v52, 0.0 }
  0xfa   :  { %347 = vst [vmem:[%s574_s3] sm:$0xff] %v343_v55  ;;  %349 = vst [vmem:[%s574_s3 + $0x10] sm:$0xff] %v345_v56 }
  0xfb   :  { %348 = vst [vmem:[%s574_s3 + $0x8] sm:$0xff] %v344_v59  ;;  %350 = vst [vmem:[%s574_s3 + $0x18] sm:$0xff] %v346_v60 }

// kernel: autoencoder_forward.21
= control target key start
LH: loop header
LB: loop body
LE: loop exit
PB: predicated region body
PF: predicated region fallthrough
CT: control target
= control target key end

     0   :  { %s2057_s12 = smov 0   ;;  %s2059_s13 = smov 0   ;;  %s2517_s0 = inlined_call_operand.vmem [shape: bf16[8,512], index: 0, kind: input, shape index: {}]   ;;  %s2518_s1 = inlined_call_operand.vmem [shape: bf16[512,1152], index: 1, kind: input, shape index: {}]   ;;  %s2519_s2 = inlined_call_operand.vmem [shape: f32[1,1152], index: 2, kind: input, shape index: {}]   ;;  %s2520_s3 = inlined_call_operand.vmem [shape: f32[8,1152], index: 3, kind: output, shape index: {}]  }
   0x1   :  { %s2061_s14 = smov 0   ;;  %s2063_s15 = smov 0  }
   0x2   :  { %s2065_s16 = smov 0  }
   0x3 LB: > { %s28_s17 = sadd.s32 1, %s2031_s15  ;;  %p76_p1 = scmp.ne.s32.totalorder %s2023_s13, %s2019_s12  ;;  %s2035_s16 = sphi %s2065_s16, %s13_s16   ;;  %s2031_s15 = sphi %s2063_s15, %s2524_s15   ;;  %s2027_s14 = sphi %s2061_s14, %s2523_s14   ;;  %s2023_s13 = sphi %s2059_s13, %s2522_s13   ;;  %s2019_s12 = sphi %s2057_s12, %s2521_s12  }
   0x4   : > { %p30_p0 = scmp.ge.s32.totalorder %s28_s17, 3  ;;  %p77_p2 = scmp.eq.s32.totalorder %s2035_s16, 0 }
   0x5   : > { %s69_s19 = sadd.s32 1, %s2023_s13  ;;  %p1544_p5 = scmp.ge.s32.totalorder %s2035_s16, 3 }
   0x6   : > { %s2526_s17 = smov (%p30_p0, %s28_s17), 0  ;;  %p78_p3 = por %p77_p2, %p76_p1 }
   0x7   : > { %s65_s18 = ssub.s32 %s2031_s15, %s2526_s17  ;;  %169 = sbr.rel (%p1544_p5) target bundleno = 93 (0x5d), region = 20 }
   0x8   : > { %p67_p4 = scmp.eq.s32.totalorder %s65_s18, 0 }
   0xa   : > { %s2092_s20 = scalar_select %p67_p4, %s2023_s13, %s69_s19  }
   0xe   : > { %172 = sbr.rel (!%p78_p3) target bundleno = 93 (0x5d), region = 24  ;;  %s174_s21 = sand.u32 (%p78_p3), 1, %s2023_s13  }
   0xf   : > { %s1778_s22 = smul.u32 (%p78_p3), 12, %s2031_s15 }
  0x10   : > { %s1823_s23 = smul.u32 (%p78_p3), 768, %s174_s21 }
  0x11   : > { %s2100_s26 = scalar_lea.vmem (%p78_p3), %s2518_s1, %s1778_s22 }
  0x12   : > { %v197_v0 = vld [vmem:[%s2100_s26] sm:$0xff] (%p78_p3)  ;;  %v201_v2 = vld [vmem:[%s2100_s26 + $0x48] sm:$0xff] (%p78_p3)  ;;  %s2105_s27 = scalar_lea.vmem (%p78_p3), [#allocation3], %s1823_s23  ;;  %v205_v4 = vld [vmem:[%s2100_s26 + $0x90] sm:$0xff] (%p78_p3) }
  0x13   : > { %v199_v1 = vld [vmem:[%s2100_s26 + $0x24] sm:$0xff] (%p78_p3)  ;;  %198 = vst [vmem:[%s2105_s27] sm:$0xff] (%p78_p3), %v197_v0  ;;  %202 = vst [vmem:[%s2105_s27 + $0x18] sm:$0xff] (%p78_p3), %v201_v2  ;;  %v203_v3 = vld [vmem:[%s2100_s26 + $0x6c] sm:$0xff] (%p78_p3) }
  0x14   : > { %200 = vst [vmem:[%s2105_s27 + $0xc] sm:$0xff] (%p78_p3), %v199_v1  ;;  %v207_v5 = vld [vmem:[%s2100_s26 + $0xb4] sm:$0xff] (%p78_p3)  ;;  %204 = vst [vmem:[%s2105_s27 + $0x24] sm:$0xff] (%p78_p3), %v203_v3  ;;  %v211_v7 = vld [vmem:[%s2100_s26 + $0xfc] sm:$0xff] (%p78_p3) }
  0x15   : > { %206 = vst [vmem:[%s2105_s27 + $0x30] sm:$0xff] %v205_v4  ;;  %208 = vst [vmem:[%s2105_s27 + $0x3c] sm:$0xff] %v207_v5  ;;  %v209_v6 = vld [vmem:[%s2100_s26 + $0xd8] sm:$0xff]  ;;  %v213_v8 = vld [vmem:[%s2100_s26 + $0x120] sm:$0xff] }
  0x16   : > { %210 = vst [vmem:[%s2105_s27 + $0x48] sm:$0xff] %v209_v6  ;;  %212 = vst [vmem:[%s2105_s27 + $0x54] sm:$0xff] %v211_v7  ;;  %v215_v9 = vld [vmem:[%s2100_s26 + $0x144] sm:$0xff]  ;;  %v219_v11 = vld [vmem:[%s2100_s26 + $0x18c] sm:$0xff] }
  0x17   : > { %214 = vst [vmem:[%s2105_s27 + $0x60] sm:$0xff] %v213_v8  ;;  %v217_v10 = vld [vmem:[%s2100_s26 + $0x168] sm:$0xff]  ;;  %216 = vst [vmem:[%s2105_s27 + $0x6c] sm:$0xff] %v215_v9  ;;  %v221_v12 = vld [vmem:[%s2100_s26 + $0x1b0] sm:$0xff] }
  0x18   : > { %218 = vst [vmem:[%s2105_s27 + $0x78] sm:$0xff] %v217_v10  ;;  %220 = vst [vmem:[%s2105_s27 + $0x84] sm:$0xff] %v219_v11  ;;  %v223_v13 = vld [vmem:[%s2100_s26 + $0x1d4] sm:$0xff]  ;;  %v227_v15 = vld [vmem:[%s2100_s26 + $0x21c] sm:$0xff] }
  0x19   : > { %v225_v14 = vld [vmem:[%s2100_s26 + $0x1f8] sm:$0xff]  ;;  %222 = vst [vmem:[%s2105_s27 + $0x90] sm:$0xff] %v221_v12  ;;  %224 = vst [vmem:[%s2105_s27 + $0x9c] sm:$0xff] %v223_v13  ;;  %v229_v16 = vld [vmem:[%s2100_s26 + $0x240] sm:$0xff] }
  0x1a   : > { %226 = vst [vmem:[%s2105_s27 + $0xa8] sm:$0xff] %v225_v14  ;;  %v231_v17 = vld [vmem:[%s2100_s26 + $0x264] sm:$0xff]  ;;  %228 = vst [vmem:[%s2105_s27 + $0xb4] sm:$0xff] %v227_v15  ;;  %v235_v19 = vld [vmem:[%s2100_s26 + $0x2ac] sm:$0xff] }
  0x1b   : > { %230 = vst [vmem:[%s2105_s27 + $0xc0] sm:$0xff] %v229_v16  ;;  %232 = vst [vmem:[%s2105_s27 + $0xcc] sm:$0xff] %v231_v17  ;;  %v233_v18 = vld [vmem:[%s2100_s26 + $0x288] sm:$0xff]  ;;  %v237_v20 = vld [vmem:[%s2100_s26 + $0x2d0] sm:$0xff] }
  0x1c   : > { %234 = vst [vmem:[%s2105_s27 + $0xd8] sm:$0xff] %v233_v18  ;;  %236 = vst [vmem:[%s2105_s27 + $0xe4] sm:$0xff] %v235_v19  ;;  %v239_v21 = vld [vmem:[%s2100_s26 + $0x2f4] sm:$0xff]  ;;  %v243_v23 = vld [vmem:[%s2100_s26 + $0x33c] sm:$0xff] }
  0x1d   : > { %238 = vst [vmem:[%s2105_s27 + $0xf0] sm:$0xff] %v237_v20  ;;  %v241_v22 = vld [vmem:[%s2100_s26 + $0x318] sm:$0xff]  ;;  %240 = vst [vmem:[%s2105_s27 + $0xfc] sm:$0xff] %v239_v21  ;;  %v245_v24 = vld [vmem:[%s2100_s26 + $0x360] sm:$0xff] }
  0x1e   : > { %242 = vst [vmem:[%s2105_s27 + $0x108] sm:$0xff] %v241_v22  ;;  %244 = vst [vmem:[%s2105_s27 + $0x114] sm:$0xff] %v243_v23  ;;  %v247_v25 = vld [vmem:[%s2100_s26 + $0x384] sm:$0xff]  ;;  %v251_v27 = vld [vmem:[%s2100_s26 + $0x3cc] sm:$0xff] }
  0x1f   : > { %v249_v26 = vld [vmem:[%s2100_s26 + $0x3a8] sm:$0xff]  ;;  %246 = vst [vmem:[%s2105_s27 + $0x120] sm:$0xff] %v245_v24  ;;  %248 = vst [vmem:[%s2105_s27 + $0x12c] sm:$0xff] %v247_v25  ;;  %v253_v28 = vld [vmem:[%s2100_s26 + $0x3f0] sm:$0xff] }
  0x20   : > { %250 = vst [vmem:[%s2105_s27 + $0x138] sm:$0xff] %v249_v26  ;;  %v255_v29 = vld [vmem:[%s2100_s26 + $0x414] sm:$0xff]  ;;  %252 = vst [vmem:[%s2105_s27 + $0x144] sm:$0xff] %v251_v27  ;;  %v259_v31 = vld [vmem:[%s2100_s26 + $0x45c] sm:$0xff] }
  0x21   : > { %254 = vst [vmem:[%s2105_s27 + $0x150] sm:$0xff] %v253_v28  ;;  %256 = vst [vmem:[%s2105_s27 + $0x15c] sm:$0xff] %v255_v29  ;;  %v257_v30 = vld [vmem:[%s2100_s26 + $0x438] sm:$0xff]  ;;  %v261_v32 = vld [vmem:[%s2100_s26 + $0x480] sm:$0xff] }
  0x22   : > { %258 = vst [vmem:[%s2105_s27 + $0x168] sm:$0xff] %v257_v30  ;;  %260 = vst [vmem:[%s2105_s27 + $0x174] sm:$0xff] %v259_v31  ;;  %v263_v33 = vld [vmem:[%s2100_s26 + $0x4a4] sm:$0xff]  ;;  %v267_v35 = vld [vmem:[%s2100_s26 + $0x4ec] sm:$0xff] }
  0x23   : > { %262 = vst [vmem:[%s2105_s27 + $0x180] sm:$0xff] %v261_v32  ;;  %v265_v34 = vld [vmem:[%s2100_s26 + $0x4c8] sm:$0xff]  ;;  %264 = vst [vmem:[%s2105_s27 + $0x18c] sm:$0xff] %v263_v33  ;;  %v269_v36 = vld [vmem:[%s2100_s26 + $0x510] sm:$0xff] }
  0x24   : > { %266 = vst [vmem:[%s2105_s27 + $0x198] sm:$0xff] %v265_v34  ;;  %268 = vst [vmem:[%s2105_s27 + $0x1a4] sm:$0xff] %v267_v35  ;;  %v271_v37 = vld [vmem:[%s2100_s26 + $0x534] sm:$0xff]  ;;  %v275_v39 = vld [vmem:[%s2100_s26 + $0x57c] sm:$0xff] }
  0x25   : > { %v273_v38 = vld [vmem:[%s2100_s26 + $0x558] sm:$0xff]  ;;  %270 = vst [vmem:[%s2105_s27 + $0x1b0] sm:$0xff] %v269_v36  ;;  %272 = vst [vmem:[%s2105_s27 + $0x1bc] sm:$0xff] %v271_v37  ;;  %v277_v40 = vld [vmem:[%s2100_s26 + $0x5a0] sm:$0xff] }
  0x26   : > { %274 = vst [vmem:[%s2105_s27 + $0x1c8] sm:$0xff] %v273_v38  ;;  %v279_v41 = vld [vmem:[%s2100_s26 + $0x5c4] sm:$0xff]  ;;  %276 = vst [vmem:[%s2105_s27 + $0x1d4] sm:$0xff] %v275_v39  ;;  %v283_v43 = vld [vmem:[%s2100_s26 + $0x60c] sm:$0xff] }
  0x27   : > { %278 = vst [vmem:[%s2105_s27 + $0x1e0] sm:$0xff] %v277_v40  ;;  %280 = vst [vmem:[%s2105_s27 + $0x1ec] sm:$0xff] %v279_v41  ;;  %v281_v42 = vld [vmem:[%s2100_s26 + $0x5e8] sm:$0xff]  ;;  %v285_v44 = vld [vmem:[%s2100_s26 + $0x630] sm:$0xff] }
  0x28   : > { %282 = vst [vmem:[%s2105_s27 + $0x1f8] sm:$0xff] %v281_v42  ;;  %284 = vst [vmem:[%s2105_s27 + $0x204] sm:$0xff] %v283_v43  ;;  %v287_v45 = vld [vmem:[%s2100_s26 + $0x654] sm:$0xff]  ;;  %v291_v47 = vld [vmem:[%s2100_s26 + $0x69c] sm:$0xff] }
  0x29   : > { %286 = vst [vmem:[%s2105_s27 + $0x210] sm:$0xff] %v285_v44  ;;  %v289_v46 = vld [vmem:[%s2100_s26 + $0x678] sm:$0xff]  ;;  %288 = vst [vmem:[%s2105_s27 + $0x21c] sm:$0xff] %v287_v45  ;;  %v293_v48 = vld [vmem:[%s2100_s26 + $0x6c0] sm:$0xff] }
  0x2a   : > { %290 = vst [vmem:[%s2105_s27 + $0x228] sm:$0xff] %v289_v46  ;;  %292 = vst [vmem:[%s2105_s27 + $0x234] sm:$0xff] %v291_v47  ;;  %v295_v49 = vld [vmem:[%s2100_s26 + $0x6e4] sm:$0xff]  ;;  %v299_v51 = vld [vmem:[%s2100_s26 + $0x72c] sm:$0xff] }
  0x2b   : > { %v297_v50 = vld [vmem:[%s2100_s26 + $0x708] sm:$0xff]  ;;  %294 = vst [vmem:[%s2105_s27 + $0x240] sm:$0xff] %v293_v48  ;;  %296 = vst [vmem:[%s2105_s27 + $0x24c] sm:$0xff] %v295_v49  ;;  %v301_v52 = vld [vmem:[%s2100_s26 + $0x750] sm:$0xff] }
  0x2c   : > { %298 = vst [vmem:[%s2105_s27 + $0x258] sm:$0xff] %v297_v50  ;;  %v303_v53 = vld [vmem:[%s2100_s26 + $0x774] sm:$0xff]  ;;  %300 = vst [vmem:[%s2105_s27 + $0x264] sm:$0xff] %v299_v51  ;;  %v307_v55 = vld [vmem:[%s2100_s26 + $0x7bc] sm:$0xff] }
  0x2d   : > { %302 = vst [vmem:[%s2105_s27 + $0x270] sm:$0xff] %v301_v52  ;;  %304 = vst [vmem:[%s2105_s27 + $0x27c] sm:$0xff] %v303_v53  ;;  %v305_v54 = vld [vmem:[%s2100_s26 + $0x798] sm:$0xff]  ;;  %v309_v56 = vld [vmem:[%s2100_s26 + $0x7e0] sm:$0xff] }
  0x2e   : > { %306 = vst [vmem:[%s2105_s27 + $0x288] sm:$0xff] %v305_v54  ;;  %308 = vst [vmem:[%s2105_s27 + $0x294] sm:$0xff] %v307_v55  ;;  %v311_v57 = vld [vmem:[%s2100_s26 + $0x804] sm:$0xff]  ;;  %v315_v59 = vld [vmem:[%s2100_s26 + $0x84c] sm:$0xff] }
  0x2f   : > { %310 = vst [vmem:[%s2105_s27 + $0x2a0] sm:$0xff] %v309_v56  ;;  %v313_v58 = vld [vmem:[%s2100_s26 + $0x828] sm:$0xff]  ;;  %312 = vst [vmem:[%s2105_s27 + $0x2ac] sm:$0xff] %v311_v57  ;;  %v317_v60 = vld [vmem:[%s2100_s26 + $0x870] sm:$0xff] }
  0x30   : > { %314 = vst [vmem:[%s2105_s27 + $0x2b8] sm:$0xff] %v313_v58  ;;  %316 = vst [vmem:[%s2105_s27 + $0x2c4] sm:$0xff] %v315_v59  ;;  %v319_v61 = vld [vmem:[%s2100_s26 + $0x894] sm:$0xff]  ;;  %v323_v63 = vld [vmem:[%s2100_s26 + $0x8dc] sm:$0xff] }
  0x31   : > { %v321_v62 = vld [vmem:[%s2100_s26 + $0x8b8] sm:$0xff]  ;;  %318 = vst [vmem:[%s2105_s27 + $0x2d0] sm:$0xff] %v317_v60  ;;  %320 = vst [vmem:[%s2105_s27 + $0x2dc] sm:$0xff] %v319_v61  ;;  %v1546_v0 = vld [vmem:[%s2100_s26 + $0x8] sm:$0xf] }
  0x32   : > { %322 = vst [vmem:[%s2105_s27 + $0x2e8] sm:$0xff] %v321_v62  ;;  %v1548_v1 = vld [vmem:[%s2100_s26 + $0x2c] sm:$0xf]  ;;  %324 = vst [vmem:[%s2105_s27 + $0x2f4] sm:$0xff] %v323_v63  ;;  %v1550_v2 = vld [vmem:[%s2100_s26 + $0x50] sm:$0xf] }
  0x33   : > { %1547 = vst [vmem:[%s2105_s27 + $0x8] sm:$0xf] %v1546_v0  ;;  %1549 = vst [vmem:[%s2105_s27 + $0x14] sm:$0xf] %v1548_v1  ;;  %v1552_v3 = vld [vmem:[%s2100_s26 + $0x74] sm:$0xf] }
  0x34   : > { %v1554_v4 = vld [vmem:[%s2100_s26 + $0x98] sm:$0xf]  ;;  %1551 = vst [vmem:[%s2105_s27 + $0x20] sm:$0xf] %v1550_v2  ;;  %1553 = vst [vmem:[%s2105_s27 + $0x2c] sm:$0xf] %v1552_v3 }
  0x35   : > { %1555 = vst [vmem:[%s2105_s27 + $0x38] sm:$0xf] %v1554_v4  ;;  %v1556_v5 = vld [vmem:[%s2100_s26 + $0xbc] sm:$0xf]  ;;  %v1558_v6 = vld [vmem:[%s2100_s26 + $0xe0] sm:$0xf] }
  0x36   : > { %v1560_v7 = vld [vmem:[%s2100_s26 + $0x104] sm:$0xf]  ;;  %1557 = vst [vmem:[%s2105_s27 + $0x44] sm:$0xf] %v1556_v5  ;;  %1559 = vst [vmem:[%s2105_s27 + $0x50] sm:$0xf] %v1558_v6 }
  0x37   : > { %1561 = vst [vmem:[%s2105_s27 + $0x5c] sm:$0xf] %v1560_v7  ;;  %v1562_v8 = vld [vmem:[%s2100_s26 + $0x128] sm:$0xf]  ;;  %v1564_v9 = vld [vmem:[%s2100_s26 + $0x14c] sm:$0xf] }
  0x38   : > { %v1566_v10 = vld [vmem:[%s2100_s26 + $0x170] sm:$0xf]  ;;  %1563 = vst [vmem:[%s2105_s27 + $0x68] sm:$0xf] %v1562_v8  ;;  %1565 = vst [vmem:[%s2105_s27 + $0x74] sm:$0xf] %v1564_v9 }
  0x39   : > { %1567 = vst [vmem:[%s2105_s27 + $0x80] sm:$0xf] %v1566_v10  ;;  %v1568_v11 = vld [vmem:[%s2100_s26 + $0x194] sm:$0xf]  ;;  %v1570_v12 = vld [vmem:[%s2100_s26 + $0x1b8] sm:$0xf] }
  0x3a   : > { %v1572_v13 = vld [vmem:[%s2100_s26 + $0x1dc] sm:$0xf]  ;;  %1569 = vst [vmem:[%s2105_s27 + $0x8c] sm:$0xf] %v1568_v11  ;;  %1571 = vst [vmem:[%s2105_s27 + $0x98] sm:$0xf] %v1570_v12 }
  0x3b   : > { %1573 = vst [vmem:[%s2105_s27 + $0xa4] sm:$0xf] %v1572_v13  ;;  %v1574_v14 = vld [vmem:[%s2100_s26 + $0x200] sm:$0xf]  ;;  %v1576_v15 = vld [vmem:[%s2100_s26 + $0x224] sm:$0xf] }
  0x3c   : > { %v1578_v16 = vld [vmem:[%s2100_s26 + $0x248] sm:$0xf]  ;;  %1575 = vst [vmem:[%s2105_s27 + $0xb0] sm:$0xf] %v1574_v14  ;;  %1577 = vst [vmem:[%s2105_s27 + $0xbc] sm:$0xf] %v1576_v15 }
  0x3d   : > { %1579 = vst [vmem:[%s2105_s27 + $0xc8] sm:$0xf] %v1578_v16  ;;  %v1580_v17 = vld [vmem:[%s2100_s26 + $0x26c] sm:$0xf]  ;;  %v1582_v18 = vld [vmem:[%s2100_s26 + $0x290] sm:$0xf] }
  0x3e   : > { %v1584_v19 = vld [vmem:[%s2100_s26 + $0x2b4] sm:$0xf]  ;;  %1581 = vst [vmem:[%s2105_s27 + $0xd4] sm:$0xf] %v1580_v17  ;;  %1583 = vst [vmem:[%s2105_s27 + $0xe0] sm:$0xf] %v1582_v18 }
  0x3f   : > { %1585 = vst [vmem:[%s2105_s27 + $0xec] sm:$0xf] %v1584_v19  ;;  %v1586_v20 = vld [vmem:[%s2100_s26 + $0x2d8] sm:$0xf]  ;;  %v1588_v21 = vld [vmem:[%s2100_s26 + $0x2fc] sm:$0xf] }
  0x40   : > { %v1590_v22 = vld [vmem:[%s2100_s26 + $0x320] sm:$0xf]  ;;  %1587 = vst [vmem:[%s2105_s27 + $0xf8] sm:$0xf] %v1586_v20  ;;  %1589 = vst [vmem:[%s2105_s27 + $0x104] sm:$0xf] %v1588_v21 }
  0x41   : > { %1591 = vst [vmem:[%s2105_s27 + $0x110] sm:$0xf] %v1590_v22  ;;  %v1592_v23 = vld [vmem:[%s2100_s26 + $0x344] sm:$0xf]  ;;  %v1594_v24 = vld [vmem:[%s2100_s26 + $0x368] sm:$0xf] }
  0x42   : > { %v1596_v25 = vld [vmem:[%s2100_s26 + $0x38c] sm:$0xf]  ;;  %1593 = vst [vmem:[%s2105_s27 + $0x11c] sm:$0xf] %v1592_v23  ;;  %1595 = vst [vmem:[%s2105_s27 + $0x128] sm:$0xf] %v1594_v24 }
  0x43   : > { %1597 = vst [vmem:[%s2105_s27 + $0x134] sm:$0xf] %v1596_v25  ;;  %v1598_v26 = vld [vmem:[%s2100_s26 + $0x3b0] sm:$0xf]  ;;  %v1600_v27 = vld [vmem:[%s2100_s26 + $0x3d4] sm:$0xf] }
  0x44   : > { %v1602_v28 = vld [vmem:[%s2100_s26 + $0x3f8] sm:$0xf]  ;;  %1599 = vst [vmem:[%s2105_s27 + $0x140] sm:$0xf] %v1598_v26  ;;  %1601 = vst [vmem:[%s2105_s27 + $0x14c] sm:$0xf] %v1600_v27 }
  0x45   : > { %1603 = vst [vmem:[%s2105_s27 + $0x158] sm:$0xf] %v1602_v28  ;;  %v1604_v29 = vld [vmem:[%s2100_s26 + $0x41c] sm:$0xf]  ;;  %v1606_v30 = vld [vmem:[%s2100_s26 + $0x440] sm:$0xf] }
  0x46   : > { %v1608_v31 = vld [vmem:[%s2100_s26 + $0x464] sm:$0xf]  ;;  %1605 = vst [vmem:[%s2105_s27 + $0x164] sm:$0xf] %v1604_v29  ;;  %1607 = vst [vmem:[%s2105_s27 + $0x170] sm:$0xf] %v1606_v30 }
  0x47   : > { %1609 = vst [vmem:[%s2105_s27 + $0x17c] sm:$0xf] %v1608_v31  ;;  %v1610_v32 = vld [vmem:[%s2100_s26 + $0x488] sm:$0xf]  ;;  %v1612_v33 = vld [vmem:[%s2100_s26 + $0x4ac] sm:$0xf] }
  0x48   : > { %v1614_v34 = vld [vmem:[%s2100_s26 + $0x4d0] sm:$0xf]  ;;  %1611 = vst [vmem:[%s2105_s27 + $0x188] sm:$0xf] %v1610_v32  ;;  %1613 = vst [vmem:[%s2105_s27 + $0x194] sm:$0xf] %v1612_v33 }
  0x49   : > { %1615 = vst [vmem:[%s2105_s27 + $0x1a0] sm:$0xf] %v1614_v34  ;;  %v1616_v35 = vld [vmem:[%s2100_s26 + $0x4f4] sm:$0xf]  ;;  %v1618_v36 = vld [vmem:[%s2100_s26 + $0x518] sm:$0xf] }
  0x4a   : > { %v1620_v37 = vld [vmem:[%s2100_s26 + $0x53c] sm:$0xf]  ;;  %1617 = vst [vmem:[%s2105_s27 + $0x1ac] sm:$0xf] %v1616_v35  ;;  %1619 = vst [vmem:[%s2105_s27 + $0x1b8] sm:$0xf] %v1618_v36 }
  0x4b   : > { %1621 = vst [vmem:[%s2105_s27 + $0x1c4] sm:$0xf] %v1620_v37  ;;  %v1622_v38 = vld [vmem:[%s2100_s26 + $0x560] sm:$0xf]  ;;  %v1624_v39 = vld [vmem:[%s2100_s26 + $0x584] sm:$0xf] }
  0x4c   : > { %v1626_v40 = vld [vmem:[%s2100_s26 + $0x5a8] sm:$0xf]  ;;  %1623 = vst [vmem:[%s2105_s27 + $0x1d0] sm:$0xf] %v1622_v38  ;;  %1625 = vst [vmem:[%s2105_s27 + $0x1dc] sm:$0xf] %v1624_v39 }
  0x4d   : > { %1627 = vst [vmem:[%s2105_s27 + $0x1e8] sm:$0xf] %v1626_v40  ;;  %v1628_v41 = vld [vmem:[%s2100_s26 + $0x5cc] sm:$0xf]  ;;  %v1630_v42 = vld [vmem:[%s2100_s26 + $0x5f0] sm:$0xf] }
  0x4e   : > { %v1632_v43 = vld [vmem:[%s2100_s26 + $0x614] sm:$0xf]  ;;  %1629 = vst [vmem:[%s2105_s27 + $0x1f4] sm:$0xf] %v1628_v41  ;;  %1631 = vst [vmem:[%s2105_s27 + $0x200] sm:$0xf] %v1630_v42 }
  0x4f   : > { %1633 = vst [vmem:[%s2105_s27 + $0x20c] sm:$0xf] %v1632_v43  ;;  %v1634_v44 = vld [vmem:[%s2100_s26 + $0x638] sm:$0xf]  ;;  %v1636_v45 = vld [vmem:[%s2100_s26 + $0x65c] sm:$0xf] }
  0x50   : > { %v1638_v46 = vld [vmem:[%s2100_s26 + $0x680] sm:$0xf]  ;;  %1635 = vst [vmem:[%s2105_s27 + $0x218] sm:$0xf] %v1634_v44  ;;  %1637 = vst [vmem:[%s2105_s27 + $0x224] sm:$0xf] %v1636_v45 }
  0x51   : > { %1639 = vst [vmem:[%s2105_s27 + $0x230] sm:$0xf] %v1638_v46  ;;  %v1640_v47 = vld [vmem:[%s2100_s26 + $0x6a4] sm:$0xf]  ;;  %v1642_v48 = vld [vmem:[%s2100_s26 + $0x6c8] sm:$0xf] }
  0x52   : > { %v1644_v49 = vld [vmem:[%s2100_s26 + $0x6ec] sm:$0xf]  ;;  %1641 = vst [vmem:[%s2105_s27 + $0x23c] sm:$0xf] %v1640_v47  ;;  %1643 = vst [vmem:[%s2105_s27 + $0x248] sm:$0xf] %v1642_v48 }
  0x53   : > { %1645 = vst [vmem:[%s2105_s27 + $0x254] sm:$0xf] %v1644_v49  ;;  %v1646_v50 = vld [vmem:[%s2100_s26 + $0x710] sm:$0xf]  ;;  %v1648_v51 = vld [vmem:[%s2100_s26 + $0x734] sm:$0xf] }
  0x54   : > { %v1650_v52 = vld [vmem:[%s2100_s26 + $0x758] sm:$0xf]  ;;  %1647 = vst [vmem:[%s2105_s27 + $0x260] sm:$0xf] %v1646_v50  ;;  %1649 = vst [vmem:[%s2105_s27 + $0x26c] sm:$0xf] %v1648_v51 }
  0x55   : > { %1651 = vst [vmem:[%s2105_s27 + $0x278] sm:$0xf] %v1650_v52  ;;  %v1652_v53 = vld [vmem:[%s2100_s26 + $0x77c] sm:$0xf]  ;;  %v1654_v54 = vld [vmem:[%s2100_s26 + $0x7a0] sm:$0xf] }
  0x56   : > { %v1656_v55 = vld [vmem:[%s2100_s26 + $0x7c4] sm:$0xf]  ;;  %1653 = vst [vmem:[%s2105_s27 + $0x284] sm:$0xf] %v1652_v53  ;;  %1655 = vst [vmem:[%s2105_s27 + $0x290] sm:$0xf] %v1654_v54 }
  0x57   : > { %1657 = vst [vmem:[%s2105_s27 + $0x29c] sm:$0xf] %v1656_v55  ;;  %v1658_v56 = vld [vmem:[%s2100_s26 + $0x7e8] sm:$0xf]  ;;  %v1660_v57 = vld [vmem:[%s2100_s26 + $0x80c] sm:$0xf] }
  0x58   : > { %v1662_v58 = vld [vmem:[%s2100_s26 + $0x830] sm:$0xf]  ;;  %1659 = vst [vmem:[%s2105_s27 + $0x2a8] sm:$0xf] %v1658_v56  ;;  %1661 = vst [vmem:[%s2105_s27 + $0x2b4] sm:$0xf] %v1660_v57 }
  0x59   : > { %1663 = vst [vmem:[%s2105_s27 + $0x2c0] sm:$0xf] %v1662_v58  ;;  %v1664_v59 = vld [vmem:[%s2100_s26 + $0x854] sm:$0xf]  ;;  %v1666_v60 = vld [vmem:[%s2100_s26 + $0x878] sm:$0xf] }
  0x5a   : > { %v1668_v61 = vld [vmem:[%s2100_s26 + $0x89c] sm:$0xf]  ;;  %1665 = vst [vmem:[%s2105_s27 + $0x2cc] sm:$0xf] %v1664_v59  ;;  %1667 = vst [vmem:[%s2105_s27 + $0x2d8] sm:$0xf] %v1666_v60 }
  0x5b   : > { %1669 = vst [vmem:[%s2105_s27 + $0x2e4] sm:$0xf] %v1668_v61  ;;  %v1670_v62 = vld [vmem:[%s2100_s26 + $0x8c0] sm:$0xf]  ;;  %v1672_v63 = vld [vmem:[%s2100_s26 + $0x8e4] sm:$0xf] }
  0x5c   : > { %1671 = vst [vmem:[%s2105_s27 + $0x2f0] sm:$0xf] %v1670_v62  ;;  %1673 = vst [vmem:[%s2105_s27 + $0x2fc] sm:$0xf] %v1672_v63 }
  0x5d PF: > { %p1674_p6 = scmp.ge.s32.totalorder %s2035_s16, 1  ;;  %p472_p7 = scmp.lt.s32.totalorder %s2035_s16, 4 }
  0x5f   : > { %p473_p8 = pnand %p1674_p6, %p472_p7 }
  0x60   : > { %s479_s28 = sand.u32 (!%p473_p8), 1, %s2019_s12   ;;  %v2366_v0 = vld [vmem:[%s2517_s0] sm:$0xff] (!%p473_p8)  ;;  %v2371_v1 = vld [vmem:[%s2517_s0 + $0x8] sm:$0xff] (!%p473_p8)  ;;  %s531_s8 = smul.u32 (!%p473_p8), 3, %s2027_s14 }
  0x61   : > { %476 = sbr.rel (%p473_p8) target bundleno = 421 (0x1a5), region = 54  ;;  %v2375_v2 = vcombine.high (!%p473_p8), %v2366_v0, %v2366_v0  ;;  %v2379_v3 = vcombine.high (!%p473_p8), %v2371_v1, %v2371_v1 }
  0x62   : > { %s1824_s6 = smul.u32 (!%p473_p8), 768, %s479_s28  ;;  %p532_p9 = scmp.lt.s32.totalorder (!%p473_p8), %s531_s8, 8 }
  0x63   : > { %1245 = vmatprep.mubr.bf16.mxu0 (!%p473_p8), %v2375_v2  ;;  %1286 = vmatprep.mubr.bf16.mxu1 (!%p473_p8), %v2379_v3 }
  0x64   : > { %s2383_s7 = scalar_lea.vmem (!%p473_p8), [#allocation3], %s1824_s6 }
  0x65   : > { %v1865_v4 = vld [vmem:[%s2383_s7 + $0x4] ss:$12 sps:$4 sm:$0xff] (!%p473_p8)   ;;  %v1869_v6 = vld [vmem:[%s2383_s7] ss:$12 sps:$4 sm:$0xff] (!%p473_p8)   ;;  %v1871_v8 = vld [vmem:[%s2383_s7 + $0x1c] ss:$12 sps:$4 sm:$0xff] (!%p473_p8)  }
  0x66   : > { %v1867_v5 = vld [vmem:[%s2383_s7 + $0x184] ss:$12 sps:$4 sm:$0xff] (!%p473_p8)   ;;  %1213 = vmatprep.subr.bf16.mxu0 (!%p473_p8), %v1865_v4  ;;  %v1870_v7 = vld [vmem:[%s2383_s7 + $0x180] ss:$12 sps:$4 sm:$0xff] (!%p473_p8)   ;;  %v1873_v9 = vld [vmem:[%s2383_s7 + $0x19c] ss:$12 sps:$4 sm:$0xff] (!%p473_p8)  }
  0x67   : > { %1254 = vmatprep.subr.bf16.mxu1 (!%p473_p8), %v1867_v5  ;;  %1214 = vmatpush1.bf16.msra.mxu0 (!%p473_p8), %v1869_v6  ;;  %v1875_v10 = vld [vmem:[%s2383_s7 + $0x18] ss:$12 sps:$4 sm:$0xff] (!%p473_p8)   ;;  %v1877_v12 = vld [vmem:[%s2383_s7 + $0x34] ss:$12 sps:$4 sm:$0xff] (!%p473_p8)   ;;  %v1881_v14 = vld [vmem:[%s2383_s7 + $0x30] ss:$12 sps:$4 sm:$0xff] (!%p473_p8)  }
  0x68   : > { %1255 = vmatpush1.bf16.msra.mxu1 %v1870_v7  ;;  %1215 = vmatprep.subr.bf16.mxu0 %v1871_v8  ;;  %v1876_v11 = vld [vmem:[%s2383_s7 + $0x198] ss:$12 sps:$4 sm:$0xff]   ;;  %v1879_v13 = vld [vmem:[%s2383_s7 + $0x1b4] ss:$12 sps:$4 sm:$0xff]   ;;  %v1882_v15 = vld [vmem:[%s2383_s7 + $0x1b0] ss:$12 sps:$4 sm:$0xff]  }
  0x69   : > { %1256 = vmatprep.subr.bf16.mxu1 %v1873_v9  ;;  %v1883_v16 = vld [vmem:[%s2383_s7 + $0x4c] ss:$12 sps:$4 sm:$0xff]   ;;  %v1887_v18 = vld [vmem:[%s2383_s7 + $0x48] ss:$12 sps:$4 sm:$0xff]   ;;  %v1889_v20 = vld [vmem:[%s2383_s7 + $0x64] ss:$12 sps:$4 sm:$0xff]  }
  0x6a   : > { %v1885_v17 = vld [vmem:[%s2383_s7 + $0x1cc] ss:$12 sps:$4 sm:$0xff]   ;;  %v1888_v19 = vld [vmem:[%s2383_s7 + $0x1c8] ss:$12 sps:$4 sm:$0xff]   ;;  %v1891_v21 = vld [vmem:[%s2383_s7 + $0x1e4] ss:$12 sps:$4 sm:$0xff]  }
  0x6b   : > { %1216 = vmatpush1.bf16.msra.mxu0 %v1875_v10  ;;  %v1893_v22 = vld [vmem:[%s2383_s7 + $0x60] ss:$12 sps:$4 sm:$0xff]   ;;  %v1895_v24 = vld [vmem:[%s2383_s7 + $0x7c] ss:$12 sps:$4 sm:$0xff]   ;;  %v1899_v26 = vld [vmem:[%s2383_s7 + $0x78] ss:$12 sps:$4 sm:$0xff]  }
  0x6c   : > { %1257 = vmatpush1.bf16.msra.mxu1 %v1876_v11  ;;  %1217 = vmatprep.subr.bf16.mxu0 %v1877_v12  ;;  %v1894_v23 = vld [vmem:[%s2383_s7 + $0x1e0] ss:$12 sps:$4 sm:$0xff]   ;;  %v1897_v25 = vld [vmem:[%s2383_s7 + $0x1fc] ss:$12 sps:$4 sm:$0xff]   ;;  %v1900_v27 = vld [vmem:[%s2383_s7 + $0x1f8] ss:$12 sps:$4 sm:$0xff]   ;;  %v2454_v11 = vcombine.low %v2366_v0, %v2366_v0  ;;  %v2458_v12 = vcombine.low %v2371_v1, %v2371_v1 }
  0x6d   : > { %1258 = vmatprep.subr.bf16.mxu1 %v1879_v13  ;;  %v1901_v28 = vld [vmem:[%s2383_s7 + $0x94] ss:$12 sps:$4 sm:$0xff]   ;;  %v1905_v30 = vld [vmem:[%s2383_s7 + $0x90] ss:$12 sps:$4 sm:$0xff]   ;;  %v1907_v32 = vld [vmem:[%s2383_s7 + $0xac] ss:$12 sps:$4 sm:$0xff]  }
  0x6e   : > { %v1903_v29 = vld [vmem:[%s2383_s7 + $0x214] ss:$12 sps:$4 sm:$0xff]   ;;  %v1906_v31 = vld [vmem:[%s2383_s7 + $0x210] ss:$12 sps:$4 sm:$0xff]   ;;  %v1909_v33 = vld [vmem:[%s2383_s7 + $0x22c] ss:$12 sps:$4 sm:$0xff]  }
  0x6f   : > { %1218 = vmatpush1.bf16.msra.mxu0 %v1881_v14  ;;  %v1911_v34 = vld [vmem:[%s2383_s7 + $0xa8] ss:$12 sps:$4 sm:$0xff]   ;;  %v1913_v36 = vld [vmem:[%s2383_s7 + $0xc4] ss:$12 sps:$4 sm:$0xff]   ;;  %v1917_v38 = vld [vmem:[%s2383_s7 + $0xc0] ss:$12 sps:$4 sm:$0xff]  }
  0x70   : > { %1259 = vmatpush1.bf16.msra.mxu1 %v1882_v15  ;;  %1219 = vmatprep.subr.bf16.mxu0 %v1883_v16  ;;  %v1912_v35 = vld [vmem:[%s2383_s7 + $0x228] ss:$12 sps:$4 sm:$0xff]   ;;  %v1915_v37 = vld [vmem:[%s2383_s7 + $0x244] ss:$12 sps:$4 sm:$0xff]   ;;  %v1918_v39 = vld [vmem:[%s2383_s7 + $0x240] ss:$12 sps:$4 sm:$0xff]  }
  0x71   : > { %1260 = vmatprep.subr.bf16.mxu1 %v1885_v17  ;;  %v1919_v40 = vld [vmem:[%s2383_s7 + $0xdc] ss:$12 sps:$4 sm:$0xff]   ;;  %v1923_v42 = vld [vmem:[%s2383_s7 + $0xd8] ss:$12 sps:$4 sm:$0xff]   ;;  %v1925_v44 = vld [vmem:[%s2383_s7 + $0xf4] ss:$12 sps:$4 sm:$0xff]  }
  0x72   : > { %v1921_v41 = vld [vmem:[%s2383_s7 + $0x25c] ss:$12 sps:$4 sm:$0xff]   ;;  %v1924_v43 = vld [vmem:[%s2383_s7 + $0x258] ss:$12 sps:$4 sm:$0xff]   ;;  %v1927_v45 = vld [vmem:[%s2383_s7 + $0x274] ss:$12 sps:$4 sm:$0xff]  }
  0x73   : > { %1220 = vmatpush1.bf16.msra.mxu0 %v1887_v18  ;;  %v1929_v46 = vld [vmem:[%s2383_s7 + $0xf0] ss:$12 sps:$4 sm:$0xff]   ;;  %v1931_v48 = vld [vmem:[%s2383_s7 + $0x10c] ss:$12 sps:$4 sm:$0xff]   ;;  %v1935_v50 = vld [vmem:[%s2383_s7 + $0x108] ss:$12 sps:$4 sm:$0xff]  }
  0x74   : > { %1261 = vmatpush1.bf16.msra.mxu1 %v1888_v19  ;;  %1221 = vmatprep.subr.bf16.mxu0 %v1889_v20  ;;  %v1930_v47 = vld [vmem:[%s2383_s7 + $0x270] ss:$12 sps:$4 sm:$0xff]   ;;  %v1933_v49 = vld [vmem:[%s2383_s7 + $0x28c] ss:$12 sps:$4 sm:$0xff]   ;;  %v1936_v51 = vld [vmem:[%s2383_s7 + $0x288] ss:$12 sps:$4 sm:$0xff]  }
  0x75   : > { %1262 = vmatprep.subr.bf16.mxu1 %v1891_v21  ;;  %v1937_v52 = vld [vmem:[%s2383_s7 + $0x124] ss:$12 sps:$4 sm:$0xff]   ;;  %v1941_v54 = vld [vmem:[%s2383_s7 + $0x120] ss:$12 sps:$4 sm:$0xff]   ;;  %v1943_v56 = vld [vmem:[%s2383_s7 + $0x13c] ss:$12 sps:$4 sm:$0xff]  }
  0x76   : > { %v1939_v53 = vld [vmem:[%s2383_s7 + $0x2a4] ss:$12 sps:$4 sm:$0xff]   ;;  %v1942_v55 = vld [vmem:[%s2383_s7 + $0x2a0] ss:$12 sps:$4 sm:$0xff]   ;;  %v1945_v57 = vld [vmem:[%s2383_s7 + $0x2bc] ss:$12 sps:$4 sm:$0xff]  }
  0x77   : > { %1222 = vmatpush1.bf16.msra.mxu0 %v1893_v22  ;;  %v1947_v58 = vld [vmem:[%s2383_s7 + $0x138] ss:$12 sps:$4 sm:$0xff]   ;;  %v1949_v60 = vld [vmem:[%s2383_s7 + $0x154] ss:$12 sps:$4 sm:$0xff]   ;;  %v1953_v62 = vld [vmem:[%s2383_s7 + $0x150] ss:$12 sps:$4 sm:$0xff]  }
  0x78   : > { %1263 = vmatpush1.bf16.msra.mxu1 %v1894_v23  ;;  %1223 = vmatprep.subr.bf16.mxu0 %v1895_v24  ;;  %v1948_v59 = vld [vmem:[%s2383_s7 + $0x2b8] ss:$12 sps:$4 sm:$0xff]   ;;  %v1951_v61 = vld [vmem:[%s2383_s7 + $0x2d4] ss:$12 sps:$4 sm:$0xff]   ;;  %v1954_v63 = vld [vmem:[%s2383_s7 + $0x2d0] ss:$12 sps:$4 sm:$0xff]  }
  0x79   : > { %1264 = vmatprep.subr.bf16.mxu1 %v1897_v25  ;;  %v1955_v4 = vld [vmem:[%s2383_s7 + $0x16c] ss:$12 sps:$4 sm:$0xff]   ;;  %v1959_v6 = vld [vmem:[%s2383_s7 + $0x168] ss:$12 sps:$4 sm:$0xff]   ;;  %v1977_v20 = vld [vmem:[%s2383_s7 + $0x110] ss:$12 sps:$4 sm:$0xff]  }
  0x7a   : > { %v1957_v5 = vld [vmem:[%s2383_s7 + $0x2ec] ss:$12 sps:$4 sm:$0xff]   ;;  %v1960_v7 = vld [vmem:[%s2383_s7 + $0x2e8] ss:$12 sps:$4 sm:$0xff]   ;;  %v1978_v21 = vld [vmem:[%s2383_s7 + $0x290] ss:$12 sps:$4 sm:$0xff]  }
  0x7b   : > { %1224 = vmatpush1.bf16.msra.mxu0 %v1899_v26  ;;  %v1965_v8 = vld [vmem:[%s2383_s7 + $0xc8] ss:$12 sps:$4 sm:$0xff]   ;;  %v1969_v14 = vld [vmem:[%s2383_s7 + $0xe0] ss:$12 sps:$4 sm:$0xff]   ;;  %v1973_v1 = vld [vmem:[%s2383_s7 + $0xf8] ss:$12 sps:$4 sm:$0xff]  }
  0x7c   : > { %1265 = vmatpush1.bf16.msra.mxu1 %v1900_v27  ;;  %1225 = vmatprep.subr.bf16.mxu0 %v1901_v28  ;;  %v1966_v9 = vld [vmem:[%s2383_s7 + $0x248] ss:$12 sps:$4 sm:$0xff]   ;;  %v1970_v15 = vld [vmem:[%s2383_s7 + $0x260] ss:$12 sps:$4 sm:$0xff]   ;;  %v1974_v17 = vld [vmem:[%s2383_s7 + $0x278] ss:$12 sps:$4 sm:$0xff]  }
  0x7d   : > { %1266 = vmatprep.subr.bf16.mxu1 %v1903_v29  ;;  %v1967_v10 = vld [vmem:[%s2383_s7 + $0x8] ss:$12 sps:$4 sm:$0xff]   ;;  %v1971_v16 = vld [vmem:[%s2383_s7 + $0x20] ss:$12 sps:$4 sm:$0xff]   ;;  %v1975_v18 = vld [vmem:[%s2383_s7 + $0x38] ss:$12 sps:$4 sm:$0xff]  }
  0x7e   : > { %v1968_v13 = vld [vmem:[%s2383_s7 + $0x188] ss:$12 sps:$4 sm:$0xff]   ;;  %v1972_v0 = vld [vmem:[%s2383_s7 + $0x1a0] ss:$12 sps:$4 sm:$0xff]   ;;  %v1976_v19 = vld [vmem:[%s2383_s7 + $0x1b8] ss:$12 sps:$4 sm:$0xff]  }
  0x7f   : > { %1226 = vmatpush1.bf16.msra.mxu0 %v1905_v30  ;;  %v1979_v22 = vld [vmem:[%s2383_s7 + $0x50] ss:$12 sps:$4 sm:$0xff]   ;;  %v1983_v24 = vld [vmem:[%s2383_s7 + $0x68] ss:$12 sps:$4 sm:$0xff]   ;;  %v1985_v26 = vld [vmem:[%s2383_s7 + $0x140] ss:$12 sps:$4 sm:$0xff]  }
  0x80   : > { %1267 = vmatpush1.bf16.msra.mxu1 %v1906_v31  ;;  %1227 = vmatprep.subr.bf16.mxu0 %v1907_v32  ;;  %v1980_v23 = vld [vmem:[%s2383_s7 + $0x1d0] ss:$12 sps:$4 sm:$0xff]   ;;  %v1984_v25 = vld [vmem:[%s2383_s7 + $0x1e8] ss:$12 sps:$4 sm:$0xff]   ;;  %v1986_v27 = vld [vmem:[%s2383_s7 + $0x2c0] ss:$12 sps:$4 sm:$0xff]  }
  0x81   : > { %1268 = vmatprep.subr.bf16.mxu1 %v1909_v33  ;;  %v1987_v28 = vld [vmem:[%s2383_s7 + $0x80] ss:$12 sps:$4 sm:$0xff]   ;;  %v1989_v30 = vld [vmem:[%s2383_s7 + $0x158] ss:$12 sps:$4 sm:$0xff]   ;;  %s2528_s8 = smov (!%p532_p9, %s531_s8), 8 }
  0x82   : > { %v1988_v29 = vld [vmem:[%s2383_s7 + $0x200] ss:$12 sps:$4 sm:$0xff]   ;;  %v1990_v31 = vld [vmem:[%s2383_s7 + $0x2d8] ss:$12 sps:$4 sm:$0xff]   ;;  %s534_s11 = scalar_lea.vmem %s2519_s2, %s2528_s8  ;;  %s1675_s12 = sshll.u32 %s2528_s8, 3 }
  0x83   : > { %1228 = vmatpush1.bf16.msra.mxu0 %v1911_v34  ;;  %v1991_v32 = vld [vmem:[%s2383_s7 + $0x98] ss:$12 sps:$4 sm:$0xff]   ;;  %v1993_v34 = vld [vmem:[%s2383_s7 + $0x170] ss:$12 sps:$4 sm:$0xff]   ;;  %s544_s19 = scalar_lea.vmem %s2520_s3, %s1675_s12 }
  0x84   : > { %1269 = vmatpush1.bf16.msra.mxu1 %v1912_v35  ;;  %1229 = vmatprep.subr.bf16.mxu0 %v1913_v36  ;;  %v1992_v33 = vld [vmem:[%s2383_s7 + $0x218] ss:$12 sps:$4 sm:$0xff]   ;;  %v1994_v35 = vld [vmem:[%s2383_s7 + $0x2f0] ss:$12 sps:$4 sm:$0xff]  }
  0x85   : > { %1270 = vmatprep.subr.bf16.mxu1 %v1915_v37  ;;  %v1995_v36 = vld [vmem:[%s2383_s7 + $0xb0] ss:$12 sps:$4 sm:$0xff]  }
  0x86   : > { %v1996_v37 = vld [vmem:[%s2383_s7 + $0x230] ss:$12 sps:$4 sm:$0xff]  }
  0x87   : > { %1230 = vmatpush1.bf16.msra.mxu0 %v1917_v38  ;;  %v1389_v38 = vlaneseq }
  0x88   : > { %1271 = vmatpush1.bf16.msra.mxu1 %v1918_v39  ;;  %1231 = vmatprep.subr.bf16.mxu0 %v1919_v40 }
  0x89   : > { %1272 = vmatprep.subr.bf16.mxu1 %v1921_v41  ;;  %v1390_v39 = vshrl.u32 %v1389_v38, 7  ;;  %v1387_v41 = vld [vmem:[%s534_s11] sm:$0x7] }
  0x8b   : > { %1232 = vmatpush1.bf16.msra.mxu0 %v1923_v42  ;;  %v1391_v40 = vsub.s32 0, %v1390_v39  ;;  %v1395_v42 = vsub.s32 1, %v1390_v39 }
  0x8c   : > { %1273 = vmatpush1.bf16.msra.mxu1 %v1924_v43  ;;  %1233 = vmatprep.subr.bf16.mxu0 %v1925_v44 }
  0x8d   : > { %1274 = vmatprep.subr.bf16.mxu1 %v1927_v45  ;;  %v1392_v43 = vrot.slane %v1387_v41, %v1391_v40 }
  0x8f   : > { %1234 = vmatpush1.bf16.msra.mxu0 %v1929_v46  ;;  %v1396_v46 = vrot.slane %v1387_v41, %v1395_v42 }
  0x90   : > { %1275 = vmatpush1.bf16.msra.mxu1 %v1930_v47  ;;  %1235 = vmatprep.subr.bf16.mxu0 %v1931_v48 }
  0x91   : > { %1276 = vmatprep.subr.bf16.mxu1 %v1933_v49 }
  0x93   : > { %1236 = vmatpush1.bf16.msra.mxu0 %v1935_v50 }
  0x94   : > { %1277 = vmatpush1.bf16.msra.mxu1 %v1936_v51  ;;  %1237 = vmatprep.subr.bf16.mxu0 %v1937_v52 }
  0x95   : > { %1278 = vmatprep.subr.bf16.mxu1 %v1939_v53 }
  0x97   : > { %1238 = vmatpush1.bf16.msra.mxu0 %v1941_v54 }
  0x98   : > { %1279 = vmatpush1.bf16.msra.mxu1 %v1942_v55  ;;  %1239 = vmatprep.subr.bf16.mxu0 %v1943_v56 }
  0x99   : > { %1280 = vmatprep.subr.bf16.mxu1 %v1945_v57 }
  0x9b   : > { %1240 = vmatpush1.bf16.msra.mxu0 %v1947_v58 }
  0x9c   : > { %1281 = vmatpush1.bf16.msra.mxu1 %v1948_v59  ;;  %1241 = vmatprep.subr.bf16.mxu0 %v1949_v60  ;;  %v1399_v59 = vsub.s32 2, %v1390_v39 }
  0x9d   : > { %1282 = vmatprep.subr.bf16.mxu1 %v1951_v61 }
  0x9f   : > { %1242 = vmatpush1.bf16.msra.mxu0 %v1953_v62 }
  0xa0   : > { %1283 = vmatpush1.bf16.msra.mxu1 %v1954_v63  ;;  %1243 = vmatprep.subr.bf16.mxu0 %v1955_v4 }
  0xa1   : > { %1284 = vmatprep.subr.bf16.mxu1 %v1957_v5 }
  0xa3   : > { %1244 = vmatpush1.bf16.msra.mxu0 %v1959_v6  ;;  %v1400_v6 = vrot.slane %v1387_v41, %v1399_v59 }
  0xa4   : > { %1285 = vmatpush1.bf16.msra.mxu1 %v1960_v7  ;;  %1779 = vmatprep.subr.bf16.mxu0 %v1965_v8 }
  0xa5   : > { %1801 = vmatprep.subr.bf16.mxu1 %v1966_v9 }
  0xa6   : > { %1246 = vmatmul.mubr.bf16.vlgmr.msra.gmra.mrb[0].mxu0 %v2454_v11 }
  0xa7   : > { %1287 = vmatmul.mubr.bf16.vlgmr.msra.gmra.mrb[0].mxu1 %v2458_v12  ;;  %1780 = vmatpush3.bf16.msra.mxu0 %v1967_v10 }
  0xa8   : > { %1802 = vmatpush3.bf16.msra.mxu1 %v1968_v13  ;;  %1781 = vmatprep.subr.bf16.mxu0 %v1969_v14 }
  0xa9   : > { %1803 = vmatprep.subr.bf16.mxu1 %v1970_v15  ;;  %1327 = vmatprep.mubr.bf16.mxu0 %v2375_v2  ;;  %v1981_v2 = vld [vmem:[%s2383_s7 + $0x128] ss:$12 sps:$4 sm:$0xff]  }
  0xaa   : > { %1367 = vmatprep.mubr.bf16.mxu1 %v2379_v3  ;;  %v1982_v3 = vld [vmem:[%s2383_s7 + $0x2a8] ss:$12 sps:$4 sm:$0xff]  }
  0xab   : > { %1782 = vmatpush3.bf16.msra.mxu0 %v1971_v16 }
  0xac   : > { %1804 = vmatpush3.bf16.msra.mxu1 %v1972_v0  ;;  %1783 = vmatprep.subr.bf16.mxu0 %v1973_v1 }
  0xad   : > { %1805 = vmatprep.subr.bf16.mxu1 %v1974_v17 }
  0xaf   : > { %1784 = vmatpush3.bf16.msra.mxu0 %v1975_v18 }
  0xb0   : > { %1806 = vmatpush3.bf16.msra.mxu1 %v1976_v19  ;;  %1785 = vmatprep.subr.bf16.mxu0 %v1977_v20 }
  0xb1   : > { %1807 = vmatprep.subr.bf16.mxu1 %v1978_v21 }
  0xb3   : > { %1786 = vmatpush3.bf16.msra.mxu0 %v1979_v22 }
  0xb4   : > { %1808 = vmatpush3.bf16.msra.mxu1 %v1980_v23  ;;  %1787 = vmatprep.subr.bf16.mxu0 %v1981_v2 }
  0xb5   : > { %1809 = vmatprep.subr.bf16.mxu1 %v1982_v3 }
  0xb7   : > { %1788 = vmatpush3.bf16.msra.mxu0 %v1983_v24 }
  0xb8   : > { %1810 = vmatpush3.bf16.msra.mxu1 %v1984_v25  ;;  %1789 = vmatprep.subr.bf16.mxu0 %v1985_v26 }
  0xb9   : > { %1811 = vmatprep.subr.bf16.mxu1 %v1986_v27 }
  0xbb   : > { %1790 = vmatpush3.bf16.msra.mxu0 %v1987_v28 }
  0xbc   : > { %1812 = vmatpush3.bf16.msra.mxu1 %v1988_v29  ;;  %1791 = vmatprep.subr.bf16.mxu0 %v1989_v30 }
  0xbd   : > { %1813 = vmatprep.subr.bf16.mxu1 %v1990_v31 }
  0xbf   : > { %1792 = vmatpush3.bf16.msra.mxu0 %v1991_v32 }
  0xc0   : > { %1814 = vmatpush3.bf16.msra.mxu1 %v1992_v33  ;;  %1793 = vmatprep.subr.bf16.mxu0 %v1993_v34 }
  0xc1   : > { %1815 = vmatprep.subr.bf16.mxu1 %v1994_v35 }
  0xc3   : > { %1794 = vmatpush3.bf16.msra.mxu0 %v1995_v36 }
  0xc4   : > { %1816 = vmatpush3.bf16.msra.mxu1 %v1996_v37 }
  0xc6   : > { %1328 = vmatmul.mubr.bf16.vlgmr.msra.gmra.mrb[4].mxu0 %v2454_v11 }
  0xc7   : > { %1368 = vmatmul.mubr.bf16.vlgmr.msra.gmra.mrb[4].mxu1 %v2458_v12 }
 0x179   : > { %v1247_v44 = vpop.f32.mrb[0].mxu0 }
 0x17a   : > { %v1288_v45 = vpop.f32.mrb[0].mxu1  ;;  %v1249_v48 = vpop.f32.mrb[1].mxu0 }
 0x17b   : > { %v1289_v47 = vadd.f32 %v1288_v45, %v1247_v44  ;;  %v1290_v49 = vpop.f32.mrb[1].mxu1  ;;  %v1251_v51 = vpop.f32.mrb[2].mxu0 }
 0x17c   : > { %v1291_v50 = vadd.f32 %v1290_v49, %v1249_v48  ;;  %v1292_v52 = vpop.f32.mrb[2].mxu1  ;;  %v1252_v54 = vpop.f32.mrb[3].mxu0 }
 0x17d   : > { %v1404_v53 = vadd.f32 %v1392_v43, %v1289_v47  ;;  %v1293_v55 = vpop.f32.mrb[3].mxu1 }
 0x17e   : > { %v1405_v56 = vadd.f32 %v1396_v46, %v1291_v50 }
 0x17f   : > { %v1407_v57 = vmax.f32 %v1404_v53, 0.0 }
 0x180   : > { %v1408_v58 = vmax.f32 %v1405_v56, 0.0 }
 0x181   : > { %1410 = vst [vmem:[%s544_s19] sm:$0xff] %v1407_v57 }
 0x182   : > { %1411 = vst [vmem:[%s544_s19 + $0x8] sm:$0xff] %v1408_v58 }
 0x199   : > { %v1795_v60 = vpop.f32.mrb[4].mxu0 }
 0x19a   : > { %v1817_v61 = vpop.f32.mrb[4].mxu1  ;;  %v1796_v62 = vpop.f32.mrb[5].mxu0 }
 0x19b   : > { %v1818_v63 = vpop.f32.mrb[5].mxu1  ;;  %v1797_v4 = vadd.f32 %v1796_v62, %v1795_v60  ;;  %v1798_v7 = vpop.f32.mrb[6].mxu0 }
 0x19c   : > { %v1819_v5 = vadd.f32 %v1818_v63, %v1817_v61  ;;  %v1820_v8 = vpop.f32.mrb[6].mxu1  ;;  %v1799_v9 = vpop.f32.mrb[7].mxu0 }
 0x19d   : > { %v1821_v10 = vpop.f32.mrb[7].mxu1 }
 0x19e   : > { %v1370_v11 = vadd.f32 %v1819_v5, %v1797_v4 }
 0x1a0   : > { %v1406_v12 = vadd.f32 %v1400_v6, %v1370_v11 }
 0x1a2   : > { %v1409_v13 = vmax.f32 %v1406_v12, 0.0 }
 0x1a4   : > { %1412 = vst [vmem:[%s544_s19 + $0x10] sm:$0xff] %v1409_v13 }
 0x1a5 PF: > { %s13_s16 = sadd.s32 1, %s2035_s16   ;;  %s2521_s12 = smov %s2023_s13 }
 0x1a6   : > { %p10_p10 = scmp.ge.s32.totalorder %s13_s16, 5   ;;  %s2522_s13 = smov %s2092_s20 }
 0x1a7   : > { %s2523_s14 = smov %s2031_s15  ;;  %s2524_s15 = smov %s2526_s17 }
 0x1a8   :  { %12 = sbr.rel (!%p10_p10) target bundleno = 3 (0x3), region = 113 }

// kernel: autoencoder_forward.22
= control target key start
LH: loop header
LB: loop body
LE: loop exit
PB: predicated region body
PF: predicated region fallthrough
CT: control target
= control target key end

     0   :  { %s3008_s12 = smov 0   ;;  %s3010_s13 = smov 0   ;;  %s3706_s0 = inlined_call_operand.vmem [shape: bf16[8,1152], index: 0, kind: input, shape index: {}]   ;;  %s3707_s1 = inlined_call_operand.vmem [shape: bf16[1152,4480], index: 1, kind: input, shape index: {}]   ;;  %s3708_s2 = inlined_call_operand.vmem [shape: f32[1,4480], index: 2, kind: input, shape index: {}]   ;;  %s3709_s3 = inlined_call_operand.vmem [shape: f32[8,4480], index: 3, kind: output, shape index: {}]  }
   0x1   :  { %s3012_s14 = smov 0   ;;  %s3014_s15 = smov 0  }
   0x2   :  { %s3016_s16 = smov 0   ;;  %s3018_s17 = smov 0  }
   0x3   :  { %s3020_s18 = smov 0  }
   0x4 LB: > { %s25_s19 = sadd.s32 1, %s2974_s16  ;;  %s28_s20 = sadd.s32 1, %s2978_s17  ;;  %s2982_s18 = sphi %s3020_s18, %s13_s18   ;;  %s2978_s17 = sphi %s3018_s17, %s3715_s17   ;;  %s2974_s16 = sphi %s3016_s16, %s3714_s16   ;;  %s2970_s15 = sphi %s3014_s15, %s3713_s15   ;;  %s2966_s14 = sphi %s3012_s14, %s3712_s14   ;;  %s2962_s13 = sphi %s3010_s13, %s3711_s13   ;;  %s2958_s12 = sphi %s3008_s12, %s3710_s12  }
   0x5   : > { %p26_p0 = scmp.ge.s32.totalorder %s25_s19, 3  ;;  %p76_p1 = scmp.ne.s32.totalorder %s2962_s13, %s2958_s12 }
   0x6   : > { %p77_p2 = scmp.eq.s32.totalorder %s2982_s18, 0  ;;  %s69_s24 = sadd.s32 1, %s2962_s13 }
   0x7   : > { %s3717_s19 = smov (%p26_p0, %s25_s19), 0  ;;  %s3719_s20 = smov (!%p26_p0, %s28_s20), %s2978_s17 }
   0x8   : > { %p78_p3 = por %p77_p2, %p76_p1  ;;  %p30_p4 = scmp.ge.s32.totalorder %s3719_s20, 5 }
   0x9   : > { %s64_s21 = ssub.s32 %s2974_s16, %s3717_s19  ;;  %p2294_p6 = scmp.ge.s32.totalorder %s2982_s18, 15 }
   0xa   : > { %s3721_s20 = smov (%p30_p4, %s3719_s20), 0 }
   0xb   : > { %s65_s22 = ssub.s32 %s2978_s17, %s3721_s20  ;;  %156 = sbr.rel (%p2294_p6) target bundleno = 131 (0x83), region = 16 }
   0xc   : > { %s66_s23 = sor.u32 %s65_s22, %s64_s21 }
   0xd   : > { %p67_p5 = scmp.eq.s32.totalorder %s66_s23, 0 }
   0xf   : > { %s3059_s25 = scalar_select %p67_p5, %s2962_s13, %s69_s24  }
  0x12   : > { %172 = sbr.rel (!%p78_p3) target bundleno = 131 (0x83), region = 24  ;;  %s174_s26 = sand.u32 (%p78_p3), 1, %s2962_s13  }
  0x13   : > { %s2621_s27 = smul.u32 (%p78_p3), 1344, %s174_s26 }
  0x14   : > { %s178_s28 = smul.u32 (%p78_p3), 7, %s2978_s17 }
  0x15   : > { %s2624_s29 = smul.u32 (%p78_p3), 1680, %s2974_s16  ;;  %s3073_s8 = scalar_lea.vmem (%p78_p3), [#allocation3], %s2621_s27 }
  0x17   : > { %s180_s30 = sadd.s32 (%p78_p3), %s2624_s29, %s178_s28 }
  0x18   : > { %s2295_s4 = sshll.u32 (%p78_p3), %s180_s30, 2 }
  0x19   : > { %s3068_s7 = scalar_lea.vmem %s3707_s1, %s2295_s4 }
  0x1a   : > { %v197_v0 = vld [vmem:[%s3068_s7] sm:$0xff]  ;;  %v199_v1 = vld [vmem:[%s3068_s7 + $0x8] sm:$0xff]  ;;  %v201_v2 = vld [vmem:[%s3068_s7 + $0x10] sm:$0xff] }
  0x1b   : > { %198 = vst [vmem:[%s3073_s8] sm:$0xff] %v197_v0  ;;  %200 = vst [vmem:[%s3073_s8 + $0x8] sm:$0xff] %v199_v1  ;;  %v203_v3 = vld [vmem:[%s3068_s7 + $0x8c] sm:$0xff]  ;;  %v205_v4 = vld [vmem:[%s3068_s7 + $0x94] sm:$0xff] }
  0x1c   : > { %202 = vst [vmem:[%s3073_s8 + $0x10] sm:$0xff] %v201_v2  ;;  %v207_v5 = vld [vmem:[%s3068_s7 + $0x9c] sm:$0xff]  ;;  %204 = vst [vmem:[%s3073_s8 + $0x1c] sm:$0xff] %v203_v3  ;;  %v213_v8 = vld [vmem:[%s3068_s7 + $0x128] sm:$0xff] }
  0x1d   : > { %206 = vst [vmem:[%s3073_s8 + $0x24] sm:$0xff] %v205_v4  ;;  %208 = vst [vmem:[%s3073_s8 + $0x2c] sm:$0xff] %v207_v5  ;;  %v209_v6 = vld [vmem:[%s3068_s7 + $0x118] sm:$0xff]  ;;  %v211_v7 = vld [vmem:[%s3068_s7 + $0x120] sm:$0xff] }
  0x1e   : > { %210 = vst [vmem:[%s3073_s8 + $0x38] sm:$0xff] %v209_v6  ;;  %212 = vst [vmem:[%s3073_s8 + $0x40] sm:$0xff] %v211_v7  ;;  %v215_v9 = vld [vmem:[%s3068_s7 + $0x1a4] sm:$0xff]  ;;  %v217_v10 = vld [vmem:[%s3068_s7 + $0x1ac] sm:$0xff] }
  0x1f   : > { %214 = vst [vmem:[%s3073_s8 + $0x48] sm:$0xff] %v213_v8  ;;  %v219_v11 = vld [vmem:[%s3068_s7 + $0x1b4] sm:$0xff]  ;;  %216 = vst [vmem:[%s3073_s8 + $0x54] sm:$0xff] %v215_v9  ;;  %v225_v14 = vld [vmem:[%s3068_s7 + $0x240] sm:$0xff] }
  0x20   : > { %218 = vst [vmem:[%s3073_s8 + $0x5c] sm:$0xff] %v217_v10  ;;  %220 = vst [vmem:[%s3073_s8 + $0x64] sm:$0xff] %v219_v11  ;;  %v221_v12 = vld [vmem:[%s3068_s7 + $0x230] sm:$0xff]  ;;  %v223_v13 = vld [vmem:[%s3068_s7 + $0x238] sm:$0xff] }
  0x21   : > { %222 = vst [vmem:[%s3073_s8 + $0x70] sm:$0xff] %v221_v12  ;;  %224 = vst [vmem:[%s3073_s8 + $0x78] sm:$0xff] %v223_v13  ;;  %v227_v15 = vld [vmem:[%s3068_s7 + $0x2bc] sm:$0xff]  ;;  %v229_v16 = vld [vmem:[%s3068_s7 + $0x2c4] sm:$0xff] }
  0x22   : > { %226 = vst [vmem:[%s3073_s8 + $0x80] sm:$0xff] %v225_v14  ;;  %v231_v17 = vld [vmem:[%s3068_s7 + $0x2cc] sm:$0xff]  ;;  %228 = vst [vmem:[%s3073_s8 + $0x8c] sm:$0xff] %v227_v15  ;;  %v237_v20 = vld [vmem:[%s3068_s7 + $0x358] sm:$0xff] }
  0x23   : > { %230 = vst [vmem:[%s3073_s8 + $0x94] sm:$0xff] %v229_v16  ;;  %232 = vst [vmem:[%s3073_s8 + $0x9c] sm:$0xff] %v231_v17  ;;  %v233_v18 = vld [vmem:[%s3068_s7 + $0x348] sm:$0xff]  ;;  %v235_v19 = vld [vmem:[%s3068_s7 + $0x350] sm:$0xff] }
  0x24   : > { %234 = vst [vmem:[%s3073_s8 + $0xa8] sm:$0xff] %v233_v18  ;;  %236 = vst [vmem:[%s3073_s8 + $0xb0] sm:$0xff] %v235_v19  ;;  %v239_v21 = vld [vmem:[%s3068_s7 + $0x3d4] sm:$0xff]  ;;  %v241_v22 = vld [vmem:[%s3068_s7 + $0x3dc] sm:$0xff] }
  0x25   : > { %238 = vst [vmem:[%s3073_s8 + $0xb8] sm:$0xff] %v237_v20  ;;  %v243_v23 = vld [vmem:[%s3068_s7 + $0x3e4] sm:$0xff]  ;;  %240 = vst [vmem:[%s3073_s8 + $0xc4] sm:$0xff] %v239_v21  ;;  %v249_v26 = vld [vmem:[%s3068_s7 + $0x470] sm:$0xff] }
  0x26   : > { %242 = vst [vmem:[%s3073_s8 + $0xcc] sm:$0xff] %v241_v22  ;;  %244 = vst [vmem:[%s3073_s8 + $0xd4] sm:$0xff] %v243_v23  ;;  %v245_v24 = vld [vmem:[%s3068_s7 + $0x460] sm:$0xff]  ;;  %v247_v25 = vld [vmem:[%s3068_s7 + $0x468] sm:$0xff] }
  0x27   : > { %246 = vst [vmem:[%s3073_s8 + $0xe0] sm:$0xff] %v245_v24  ;;  %248 = vst [vmem:[%s3073_s8 + $0xe8] sm:$0xff] %v247_v25  ;;  %v251_v27 = vld [vmem:[%s3068_s7 + $0x4ec] sm:$0xff]  ;;  %v253_v28 = vld [vmem:[%s3068_s7 + $0x4f4] sm:$0xff] }
  0x28   : > { %250 = vst [vmem:[%s3073_s8 + $0xf0] sm:$0xff] %v249_v26  ;;  %v255_v29 = vld [vmem:[%s3068_s7 + $0x4fc] sm:$0xff]  ;;  %252 = vst [vmem:[%s3073_s8 + $0xfc] sm:$0xff] %v251_v27  ;;  %v261_v32 = vld [vmem:[%s3068_s7 + $0x588] sm:$0xff] }
  0x29   : > { %254 = vst [vmem:[%s3073_s8 + $0x104] sm:$0xff] %v253_v28  ;;  %256 = vst [vmem:[%s3073_s8 + $0x10c] sm:$0xff] %v255_v29  ;;  %v257_v30 = vld [vmem:[%s3068_s7 + $0x578] sm:$0xff]  ;;  %v259_v31 = vld [vmem:[%s3068_s7 + $0x580] sm:$0xff] }
  0x2a   : > { %258 = vst [vmem:[%s3073_s8 + $0x118] sm:$0xff] %v257_v30  ;;  %260 = vst [vmem:[%s3073_s8 + $0x120] sm:$0xff] %v259_v31  ;;  %v263_v33 = vld [vmem:[%s3068_s7 + $0x604] sm:$0xff]  ;;  %v265_v34 = vld [vmem:[%s3068_s7 + $0x60c] sm:$0xff] }
  0x2b   : > { %262 = vst [vmem:[%s3073_s8 + $0x128] sm:$0xff] %v261_v32  ;;  %v267_v35 = vld [vmem:[%s3068_s7 + $0x614] sm:$0xff]  ;;  %264 = vst [vmem:[%s3073_s8 + $0x134] sm:$0xff] %v263_v33  ;;  %v273_v38 = vld [vmem:[%s3068_s7 + $0x6a0] sm:$0xff] }
  0x2c   : > { %266 = vst [vmem:[%s3073_s8 + $0x13c] sm:$0xff] %v265_v34  ;;  %268 = vst [vmem:[%s3073_s8 + $0x144] sm:$0xff] %v267_v35  ;;  %v269_v36 = vld [vmem:[%s3068_s7 + $0x690] sm:$0xff]  ;;  %v271_v37 = vld [vmem:[%s3068_s7 + $0x698] sm:$0xff] }
  0x2d   : > { %270 = vst [vmem:[%s3073_s8 + $0x150] sm:$0xff] %v269_v36  ;;  %272 = vst [vmem:[%s3073_s8 + $0x158] sm:$0xff] %v271_v37  ;;  %v275_v39 = vld [vmem:[%s3068_s7 + $0x71c] sm:$0xff]  ;;  %v277_v40 = vld [vmem:[%s3068_s7 + $0x724] sm:$0xff] }
  0x2e   : > { %274 = vst [vmem:[%s3073_s8 + $0x160] sm:$0xff] %v273_v38  ;;  %v279_v41 = vld [vmem:[%s3068_s7 + $0x72c] sm:$0xff]  ;;  %276 = vst [vmem:[%s3073_s8 + $0x16c] sm:$0xff] %v275_v39  ;;  %v285_v44 = vld [vmem:[%s3068_s7 + $0x7b8] sm:$0xff] }
  0x2f   : > { %278 = vst [vmem:[%s3073_s8 + $0x174] sm:$0xff] %v277_v40  ;;  %280 = vst [vmem:[%s3073_s8 + $0x17c] sm:$0xff] %v279_v41  ;;  %v281_v42 = vld [vmem:[%s3068_s7 + $0x7a8] sm:$0xff]  ;;  %v283_v43 = vld [vmem:[%s3068_s7 + $0x7b0] sm:$0xff] }
  0x30   : > { %282 = vst [vmem:[%s3073_s8 + $0x188] sm:$0xff] %v281_v42  ;;  %284 = vst [vmem:[%s3073_s8 + $0x190] sm:$0xff] %v283_v43  ;;  %v287_v45 = vld [vmem:[%s3068_s7 + $0x834] sm:$0xff]  ;;  %v289_v46 = vld [vmem:[%s3068_s7 + $0x83c] sm:$0xff] }
  0x31   : > { %286 = vst [vmem:[%s3073_s8 + $0x198] sm:$0xff] %v285_v44  ;;  %v291_v47 = vld [vmem:[%s3068_s7 + $0x844] sm:$0xff]  ;;  %288 = vst [vmem:[%s3073_s8 + $0x1a4] sm:$0xff] %v287_v45  ;;  %v297_v50 = vld [vmem:[%s3068_s7 + $0x8d0] sm:$0xff] }
  0x32   : > { %290 = vst [vmem:[%s3073_s8 + $0x1ac] sm:$0xff] %v289_v46  ;;  %292 = vst [vmem:[%s3073_s8 + $0x1b4] sm:$0xff] %v291_v47  ;;  %v293_v48 = vld [vmem:[%s3068_s7 + $0x8c0] sm:$0xff]  ;;  %v295_v49 = vld [vmem:[%s3068_s7 + $0x8c8] sm:$0xff] }
  0x33   : > { %294 = vst [vmem:[%s3073_s8 + $0x1c0] sm:$0xff] %v293_v48  ;;  %296 = vst [vmem:[%s3073_s8 + $0x1c8] sm:$0xff] %v295_v49  ;;  %v299_v51 = vld [vmem:[%s3068_s7 + $0x94c] sm:$0xff]  ;;  %v301_v52 = vld [vmem:[%s3068_s7 + $0x954] sm:$0xff] }
  0x34   : > { %298 = vst [vmem:[%s3073_s8 + $0x1d0] sm:$0xff] %v297_v50  ;;  %v303_v53 = vld [vmem:[%s3068_s7 + $0x95c] sm:$0xff]  ;;  %300 = vst [vmem:[%s3073_s8 + $0x1dc] sm:$0xff] %v299_v51  ;;  %v309_v56 = vld [vmem:[%s3068_s7 + $0x9e8] sm:$0xff] }
  0x35   : > { %302 = vst [vmem:[%s3073_s8 + $0x1e4] sm:$0xff] %v301_v52  ;;  %304 = vst [vmem:[%s3073_s8 + $0x1ec] sm:$0xff] %v303_v53  ;;  %v305_v54 = vld [vmem:[%s3068_s7 + $0x9d8] sm:$0xff]  ;;  %v307_v55 = vld [vmem:[%s3068_s7 + $0x9e0] sm:$0xff] }
  0x36   : > { %306 = vst [vmem:[%s3073_s8 + $0x1f8] sm:$0xff] %v305_v54  ;;  %308 = vst [vmem:[%s3073_s8 + $0x200] sm:$0xff] %v307_v55  ;;  %v311_v57 = vld [vmem:[%s3068_s7 + $0xa64] sm:$0xff]  ;;  %v313_v58 = vld [vmem:[%s3068_s7 + $0xa6c] sm:$0xff] }
  0x37   : > { %310 = vst [vmem:[%s3073_s8 + $0x208] sm:$0xff] %v309_v56  ;;  %v315_v59 = vld [vmem:[%s3068_s7 + $0xa74] sm:$0xff]  ;;  %312 = vst [vmem:[%s3073_s8 + $0x214] sm:$0xff] %v311_v57  ;;  %v321_v62 = vld [vmem:[%s3068_s7 + $0xb00] sm:$0xff] }
  0x38   : > { %314 = vst [vmem:[%s3073_s8 + $0x21c] sm:$0xff] %v313_v58  ;;  %316 = vst [vmem:[%s3073_s8 + $0x224] sm:$0xff] %v315_v59  ;;  %v317_v60 = vld [vmem:[%s3068_s7 + $0xaf0] sm:$0xff]  ;;  %v319_v61 = vld [vmem:[%s3068_s7 + $0xaf8] sm:$0xff] }
  0x39   : > { %318 = vst [vmem:[%s3073_s8 + $0x230] sm:$0xff] %v317_v60  ;;  %320 = vst [vmem:[%s3073_s8 + $0x238] sm:$0xff] %v319_v61  ;;  %v323_v63 = vld [vmem:[%s3068_s7 + $0xb7c] sm:$0xff]  ;;  %v325_v0 = vld [vmem:[%s3068_s7 + $0xb84] sm:$0xff] }
  0x3a   : > { %322 = vst [vmem:[%s3073_s8 + $0x240] sm:$0xff] %v321_v62  ;;  %v327_v1 = vld [vmem:[%s3068_s7 + $0xb8c] sm:$0xff]  ;;  %324 = vst [vmem:[%s3073_s8 + $0x24c] sm:$0xff] %v323_v63  ;;  %v333_v4 = vld [vmem:[%s3068_s7 + $0xc18] sm:$0xff] }
  0x3b   : > { %326 = vst [vmem:[%s3073_s8 + $0x254] sm:$0xff] %v325_v0  ;;  %328 = vst [vmem:[%s3073_s8 + $0x25c] sm:$0xff] %v327_v1  ;;  %v329_v2 = vld [vmem:[%s3068_s7 + $0xc08] sm:$0xff]  ;;  %v331_v3 = vld [vmem:[%s3068_s7 + $0xc10] sm:$0xff] }
  0x3c   : > { %330 = vst [vmem:[%s3073_s8 + $0x268] sm:$0xff] %v329_v2  ;;  %332 = vst [vmem:[%s3073_s8 + $0x270] sm:$0xff] %v331_v3  ;;  %v335_v5 = vld [vmem:[%s3068_s7 + $0xc94] sm:$0xff]  ;;  %v337_v6 = vld [vmem:[%s3068_s7 + $0xc9c] sm:$0xff] }
  0x3d   : > { %334 = vst [vmem:[%s3073_s8 + $0x278] sm:$0xff] %v333_v4  ;;  %v339_v7 = vld [vmem:[%s3068_s7 + $0xca4] sm:$0xff]  ;;  %336 = vst [vmem:[%s3073_s8 + $0x284] sm:$0xff] %v335_v5  ;;  %v345_v10 = vld [vmem:[%s3068_s7 + $0xd30] sm:$0xff] }
  0x3e   : > { %338 = vst [vmem:[%s3073_s8 + $0x28c] sm:$0xff] %v337_v6  ;;  %340 = vst [vmem:[%s3073_s8 + $0x294] sm:$0xff] %v339_v7  ;;  %v341_v8 = vld [vmem:[%s3068_s7 + $0xd20] sm:$0xff]  ;;  %v343_v9 = vld [vmem:[%s3068_s7 + $0xd28] sm:$0xff] }
  0x3f   : > { %342 = vst [vmem:[%s3073_s8 + $0x2a0] sm:$0xff] %v341_v8  ;;  %344 = vst [vmem:[%s3073_s8 + $0x2a8] sm:$0xff] %v343_v9  ;;  %v347_v11 = vld [vmem:[%s3068_s7 + $0xdac] sm:$0xff]  ;;  %v349_v12 = vld [vmem:[%s3068_s7 + $0xdb4] sm:$0xff] }
  0x40   : > { %346 = vst [vmem:[%s3073_s8 + $0x2b0] sm:$0xff] %v345_v10  ;;  %v351_v13 = vld [vmem:[%s3068_s7 + $0xdbc] sm:$0xff]  ;;  %348 = vst [vmem:[%s3073_s8 + $0x2bc] sm:$0xff] %v347_v11  ;;  %v357_v16 = vld [vmem:[%s3068_s7 + $0xe48] sm:$0xff] }
  0x41   : > { %350 = vst [vmem:[%s3073_s8 + $0x2c4] sm:$0xff] %v349_v12  ;;  %352 = vst [vmem:[%s3073_s8 + $0x2cc] sm:$0xff] %v351_v13  ;;  %v353_v14 = vld [vmem:[%s3068_s7 + $0xe38] sm:$0xff]  ;;  %v355_v15 = vld [vmem:[%s3068_s7 + $0xe40] sm:$0xff] }
  0x42   : > { %354 = vst [vmem:[%s3073_s8 + $0x2d8] sm:$0xff] %v353_v14  ;;  %356 = vst [vmem:[%s3073_s8 + $0x2e0] sm:$0xff] %v355_v15  ;;  %v359_v17 = vld [vmem:[%s3068_s7 + $0xec4] sm:$0xff]  ;;  %v361_v18 = vld [vmem:[%s3068_s7 + $0xecc] sm:$0xff] }
  0x43   : > { %358 = vst [vmem:[%s3073_s8 + $0x2e8] sm:$0xff] %v357_v16  ;;  %v363_v19 = vld [vmem:[%s3068_s7 + $0xed4] sm:$0xff]  ;;  %360 = vst [vmem:[%s3073_s8 + $0x2f4] sm:$0xff] %v359_v17  ;;  %v369_v22 = vld [vmem:[%s3068_s7 + $0xf60] sm:$0xff] }
  0x44   : > { %362 = vst [vmem:[%s3073_s8 + $0x2fc] sm:$0xff] %v361_v18  ;;  %364 = vst [vmem:[%s3073_s8 + $0x304] sm:$0xff] %v363_v19  ;;  %v365_v20 = vld [vmem:[%s3068_s7 + $0xf50] sm:$0xff]  ;;  %v367_v21 = vld [vmem:[%s3068_s7 + $0xf58] sm:$0xff] }
  0x45   : > { %366 = vst [vmem:[%s3073_s8 + $0x310] sm:$0xff] %v365_v20  ;;  %368 = vst [vmem:[%s3073_s8 + $0x318] sm:$0xff] %v367_v21  ;;  %v371_v23 = vld [vmem:[%s3068_s7 + $0xfdc] sm:$0xff]  ;;  %v373_v24 = vld [vmem:[%s3068_s7 + $0xfe4] sm:$0xff] }
  0x46   : > { %370 = vst [vmem:[%s3073_s8 + $0x320] sm:$0xff] %v369_v22  ;;  %v375_v25 = vld [vmem:[%s3068_s7 + $0xfec] sm:$0xff]  ;;  %372 = vst [vmem:[%s3073_s8 + $0x32c] sm:$0xff] %v371_v23  ;;  %v381_v28 = vld [vmem:[%s3068_s7 + $0x1078] sm:$0xff] }
  0x47   : > { %374 = vst [vmem:[%s3073_s8 + $0x334] sm:$0xff] %v373_v24  ;;  %376 = vst [vmem:[%s3073_s8 + $0x33c] sm:$0xff] %v375_v25  ;;  %v377_v26 = vld [vmem:[%s3068_s7 + $0x1068] sm:$0xff]  ;;  %v379_v27 = vld [vmem:[%s3068_s7 + $0x1070] sm:$0xff] }
  0x48   : > { %378 = vst [vmem:[%s3073_s8 + $0x348] sm:$0xff] %v377_v26  ;;  %380 = vst [vmem:[%s3073_s8 + $0x350] sm:$0xff] %v379_v27  ;;  %v383_v29 = vld [vmem:[%s3068_s7 + $0x10f4] sm:$0xff]  ;;  %v385_v30 = vld [vmem:[%s3068_s7 + $0x10fc] sm:$0xff] }
  0x49   : > { %382 = vst [vmem:[%s3073_s8 + $0x358] sm:$0xff] %v381_v28  ;;  %v387_v31 = vld [vmem:[%s3068_s7 + $0x1104] sm:$0xff]  ;;  %384 = vst [vmem:[%s3073_s8 + $0x364] sm:$0xff] %v383_v29  ;;  %v393_v34 = vld [vmem:[%s3068_s7 + $0x1190] sm:$0xff] }
  0x4a   : > { %386 = vst [vmem:[%s3073_s8 + $0x36c] sm:$0xff] %v385_v30  ;;  %388 = vst [vmem:[%s3073_s8 + $0x374] sm:$0xff] %v387_v31  ;;  %v389_v32 = vld [vmem:[%s3068_s7 + $0x1180] sm:$0xff]  ;;  %v391_v33 = vld [vmem:[%s3068_s7 + $0x1188] sm:$0xff] }
  0x4b   : > { %390 = vst [vmem:[%s3073_s8 + $0x380] sm:$0xff] %v389_v32  ;;  %392 = vst [vmem:[%s3073_s8 + $0x388] sm:$0xff] %v391_v33  ;;  %v395_v35 = vld [vmem:[%s3068_s7 + $0x120c] sm:$0xff]  ;;  %v397_v36 = vld [vmem:[%s3068_s7 + $0x1214] sm:$0xff] }
  0x4c   : > { %394 = vst [vmem:[%s3073_s8 + $0x390] sm:$0xff] %v393_v34  ;;  %v399_v37 = vld [vmem:[%s3068_s7 + $0x121c] sm:$0xff]  ;;  %396 = vst [vmem:[%s3073_s8 + $0x39c] sm:$0xff] %v395_v35  ;;  %v405_v40 = vld [vmem:[%s3068_s7 + $0x12a8] sm:$0xff] }
  0x4d   : > { %398 = vst [vmem:[%s3073_s8 + $0x3a4] sm:$0xff] %v397_v36  ;;  %400 = vst [vmem:[%s3073_s8 + $0x3ac] sm:$0xff] %v399_v37  ;;  %v401_v38 = vld [vmem:[%s3068_s7 + $0x1298] sm:$0xff]  ;;  %v403_v39 = vld [vmem:[%s3068_s7 + $0x12a0] sm:$0xff] }
  0x4e   : > { %402 = vst [vmem:[%s3073_s8 + $0x3b8] sm:$0xff] %v401_v38  ;;  %404 = vst [vmem:[%s3073_s8 + $0x3c0] sm:$0xff] %v403_v39  ;;  %v407_v41 = vld [vmem:[%s3068_s7 + $0x1324] sm:$0xff]  ;;  %v409_v42 = vld [vmem:[%s3068_s7 + $0x132c] sm:$0xff] }
  0x4f   : > { %406 = vst [vmem:[%s3073_s8 + $0x3c8] sm:$0xff] %v405_v40  ;;  %v411_v43 = vld [vmem:[%s3068_s7 + $0x1334] sm:$0xff]  ;;  %408 = vst [vmem:[%s3073_s8 + $0x3d4] sm:$0xff] %v407_v41  ;;  %v417_v46 = vld [vmem:[%s3068_s7 + $0x13c0] sm:$0xff] }
  0x50   : > { %410 = vst [vmem:[%s3073_s8 + $0x3dc] sm:$0xff] %v409_v42  ;;  %412 = vst [vmem:[%s3073_s8 + $0x3e4] sm:$0xff] %v411_v43  ;;  %v413_v44 = vld [vmem:[%s3068_s7 + $0x13b0] sm:$0xff]  ;;  %v415_v45 = vld [vmem:[%s3068_s7 + $0x13b8] sm:$0xff] }
  0x51   : > { %414 = vst [vmem:[%s3073_s8 + $0x3f0] sm:$0xff] %v413_v44  ;;  %416 = vst [vmem:[%s3073_s8 + $0x3f8] sm:$0xff] %v415_v45  ;;  %v419_v47 = vld [vmem:[%s3068_s7 + $0x143c] sm:$0xff]  ;;  %v421_v48 = vld [vmem:[%s3068_s7 + $0x1444] sm:$0xff] }
  0x52   : > { %418 = vst [vmem:[%s3073_s8 + $0x400] sm:$0xff] %v417_v46  ;;  %v423_v49 = vld [vmem:[%s3068_s7 + $0x144c] sm:$0xff]  ;;  %420 = vst [vmem:[%s3073_s8 + $0x40c] sm:$0xff] %v419_v47  ;;  %v429_v52 = vld [vmem:[%s3068_s7 + $0x14d8] sm:$0xff] }
  0x53   : > { %422 = vst [vmem:[%s3073_s8 + $0x414] sm:$0xff] %v421_v48  ;;  %424 = vst [vmem:[%s3073_s8 + $0x41c] sm:$0xff] %v423_v49  ;;  %v425_v50 = vld [vmem:[%s3068_s7 + $0x14c8] sm:$0xff]  ;;  %v427_v51 = vld [vmem:[%s3068_s7 + $0x14d0] sm:$0xff] }
  0x54   : > { %426 = vst [vmem:[%s3073_s8 + $0x428] sm:$0xff] %v425_v50  ;;  %428 = vst [vmem:[%s3073_s8 + $0x430] sm:$0xff] %v427_v51  ;;  %v431_v53 = vld [vmem:[%s3068_s7 + $0x1554] sm:$0xff]  ;;  %v433_v54 = vld [vmem:[%s3068_s7 + $0x155c] sm:$0xff] }
  0x55   : > { %430 = vst [vmem:[%s3073_s8 + $0x438] sm:$0xff] %v429_v52  ;;  %v435_v55 = vld [vmem:[%s3068_s7 + $0x1564] sm:$0xff]  ;;  %432 = vst [vmem:[%s3073_s8 + $0x444] sm:$0xff] %v431_v53  ;;  %v441_v58 = vld [vmem:[%s3068_s7 + $0x15f0] sm:$0xff] }
  0x56   : > { %434 = vst [vmem:[%s3073_s8 + $0x44c] sm:$0xff] %v433_v54  ;;  %436 = vst [vmem:[%s3073_s8 + $0x454] sm:$0xff] %v435_v55  ;;  %v437_v56 = vld [vmem:[%s3068_s7 + $0x15e0] sm:$0xff]  ;;  %v439_v57 = vld [vmem:[%s3068_s7 + $0x15e8] sm:$0xff] }
  0x57   : > { %438 = vst [vmem:[%s3073_s8 + $0x460] sm:$0xff] %v437_v56  ;;  %440 = vst [vmem:[%s3073_s8 + $0x468] sm:$0xff] %v439_v57  ;;  %v443_v59 = vld [vmem:[%s3068_s7 + $0x166c] sm:$0xff]  ;;  %v445_v60 = vld [vmem:[%s3068_s7 + $0x1674] sm:$0xff] }
  0x58   : > { %442 = vst [vmem:[%s3073_s8 + $0x470] sm:$0xff] %v441_v58  ;;  %v447_v61 = vld [vmem:[%s3068_s7 + $0x167c] sm:$0xff]  ;;  %444 = vst [vmem:[%s3073_s8 + $0x47c] sm:$0xff] %v443_v59  ;;  %v453_v0 = vld [vmem:[%s3068_s7 + $0x1708] sm:$0xff] }
  0x59   : > { %446 = vst [vmem:[%s3073_s8 + $0x484] sm:$0xff] %v445_v60  ;;  %448 = vst [vmem:[%s3073_s8 + $0x48c] sm:$0xff] %v447_v61  ;;  %v449_v62 = vld [vmem:[%s3068_s7 + $0x16f8] sm:$0xff]  ;;  %v451_v63 = vld [vmem:[%s3068_s7 + $0x1700] sm:$0xff] }
  0x5a   : > { %450 = vst [vmem:[%s3073_s8 + $0x498] sm:$0xff] %v449_v62  ;;  %452 = vst [vmem:[%s3073_s8 + $0x4a0] sm:$0xff] %v451_v63  ;;  %v455_v1 = vld [vmem:[%s3068_s7 + $0x1784] sm:$0xff]  ;;  %v457_v2 = vld [vmem:[%s3068_s7 + $0x178c] sm:$0xff] }
  0x5b   : > { %454 = vst [vmem:[%s3073_s8 + $0x4a8] sm:$0xff] %v453_v0  ;;  %v459_v3 = vld [vmem:[%s3068_s7 + $0x1794] sm:$0xff]  ;;  %456 = vst [vmem:[%s3073_s8 + $0x4b4] sm:$0xff] %v455_v1  ;;  %v465_v6 = vld [vmem:[%s3068_s7 + $0x1820] sm:$0xff] }
  0x5c   : > { %458 = vst [vmem:[%s3073_s8 + $0x4bc] sm:$0xff] %v457_v2  ;;  %460 = vst [vmem:[%s3073_s8 + $0x4c4] sm:$0xff] %v459_v3  ;;  %v461_v4 = vld [vmem:[%s3068_s7 + $0x1810] sm:$0xff]  ;;  %v463_v5 = vld [vmem:[%s3068_s7 + $0x1818] sm:$0xff] }
  0x5d   : > { %462 = vst [vmem:[%s3073_s8 + $0x4d0] sm:$0xff] %v461_v4  ;;  %464 = vst [vmem:[%s3073_s8 + $0x4d8] sm:$0xff] %v463_v5  ;;  %v467_v7 = vld [vmem:[%s3068_s7 + $0x189c] sm:$0xff]  ;;  %v469_v8 = vld [vmem:[%s3068_s7 + $0x18a4] sm:$0xff] }
  0x5e   : > { %466 = vst [vmem:[%s3073_s8 + $0x4e0] sm:$0xff] %v465_v6  ;;  %v471_v9 = vld [vmem:[%s3068_s7 + $0x18ac] sm:$0xff]  ;;  %468 = vst [vmem:[%s3073_s8 + $0x4ec] sm:$0xff] %v467_v7  ;;  %v477_v12 = vld [vmem:[%s3068_s7 + $0x1938] sm:$0xff] }
  0x5f   : > { %470 = vst [vmem:[%s3073_s8 + $0x4f4] sm:$0xff] %v469_v8  ;;  %472 = vst [vmem:[%s3073_s8 + $0x4fc] sm:$0xff] %v471_v9  ;;  %v473_v10 = vld [vmem:[%s3068_s7 + $0x1928] sm:$0xff]  ;;  %v475_v11 = vld [vmem:[%s3068_s7 + $0x1930] sm:$0xff] }
  0x60   : > { %474 = vst [vmem:[%s3073_s8 + $0x508] sm:$0xff] %v473_v10  ;;  %476 = vst [vmem:[%s3073_s8 + $0x510] sm:$0xff] %v475_v11  ;;  %v479_v13 = vld [vmem:[%s3068_s7 + $0x19b4] sm:$0xff]  ;;  %v481_v14 = vld [vmem:[%s3068_s7 + $0x19bc] sm:$0xff] }
  0x61   : > { %478 = vst [vmem:[%s3073_s8 + $0x518] sm:$0xff] %v477_v12  ;;  %v483_v15 = vld [vmem:[%s3068_s7 + $0x19c4] sm:$0xff]  ;;  %480 = vst [vmem:[%s3073_s8 + $0x524] sm:$0xff] %v479_v13  ;;  %v2296_v16 = vld [vmem:[%s3068_s7 + $0x18] sm:$0xf] }
  0x62   : > { %482 = vst [vmem:[%s3073_s8 + $0x52c] sm:$0xff] %v481_v14  ;;  %484 = vst [vmem:[%s3073_s8 + $0x534] sm:$0xff] %v483_v15  ;;  %v2298_v17 = vld [vmem:[%s3068_s7 + $0xa4] sm:$0xf]  ;;  %v2300_v18 = vld [vmem:[%s3068_s7 + $0x130] sm:$0xf] }
  0x63   : > { %2297 = vst [vmem:[%s3073_s8 + $0x18] sm:$0xf] %v2296_v16  ;;  %2299 = vst [vmem:[%s3073_s8 + $0x34] sm:$0xf] %v2298_v17  ;;  %v2302_v19 = vld [vmem:[%s3068_s7 + $0x1bc] sm:$0xf] }
  0x64   : > { %2301 = vst [vmem:[%s3073_s8 + $0x50] sm:$0xf] %v2300_v18  ;;  %v2304_v20 = vld [vmem:[%s3068_s7 + $0x248] sm:$0xf]  ;;  %v2306_v21 = vld [vmem:[%s3068_s7 + $0x2d4] sm:$0xf] }
  0x65   : > { %2303 = vst [vmem:[%s3073_s8 + $0x6c] sm:$0xf] %v2302_v19  ;;  %2305 = vst [vmem:[%s3073_s8 + $0x88] sm:$0xf] %v2304_v20  ;;  %v2308_v22 = vld [vmem:[%s3068_s7 + $0x360] sm:$0xf] }
  0x66   : > { %2307 = vst [vmem:[%s3073_s8 + $0xa4] sm:$0xf] %v2306_v21  ;;  %v2310_v23 = vld [vmem:[%s3068_s7 + $0x3ec] sm:$0xf]  ;;  %v2312_v24 = vld [vmem:[%s3068_s7 + $0x478] sm:$0xf] }
  0x67   : > { %2309 = vst [vmem:[%s3073_s8 + $0xc0] sm:$0xf] %v2308_v22  ;;  %2311 = vst [vmem:[%s3073_s8 + $0xdc] sm:$0xf] %v2310_v23  ;;  %v2314_v25 = vld [vmem:[%s3068_s7 + $0x504] sm:$0xf] }
  0x68   : > { %2313 = vst [vmem:[%s3073_s8 + $0xf8] sm:$0xf] %v2312_v24  ;;  %v2316_v26 = vld [vmem:[%s3068_s7 + $0x590] sm:$0xf]  ;;  %v2318_v27 = vld [vmem:[%s3068_s7 + $0x61c] sm:$0xf] }
  0x69   : > { %2315 = vst [vmem:[%s3073_s8 + $0x114] sm:$0xf] %v2314_v25  ;;  %2317 = vst [vmem:[%s3073_s8 + $0x130] sm:$0xf] %v2316_v26  ;;  %v2320_v28 = vld [vmem:[%s3068_s7 + $0x6a8] sm:$0xf] }
  0x6a   : > { %2319 = vst [vmem:[%s3073_s8 + $0x14c] sm:$0xf] %v2318_v27  ;;  %v2322_v29 = vld [vmem:[%s3068_s7 + $0x734] sm:$0xf]  ;;  %v2324_v30 = vld [vmem:[%s3068_s7 + $0x7c0] sm:$0xf] }
  0x6b   : > { %2321 = vst [vmem:[%s3073_s8 + $0x168] sm:$0xf] %v2320_v28  ;;  %2323 = vst [vmem:[%s3073_s8 + $0x184] sm:$0xf] %v2322_v29  ;;  %v2326_v31 = vld [vmem:[%s3068_s7 + $0x84c] sm:$0xf] }
  0x6c   : > { %2325 = vst [vmem:[%s3073_s8 + $0x1a0] sm:$0xf] %v2324_v30  ;;  %v2328_v32 = vld [vmem:[%s3068_s7 + $0x8d8] sm:$0xf]  ;;  %v2330_v33 = vld [vmem:[%s3068_s7 + $0x964] sm:$0xf] }
  0x6d   : > { %2327 = vst [vmem:[%s3073_s8 + $0x1bc] sm:$0xf] %v2326_v31  ;;  %2329 = vst [vmem:[%s3073_s8 + $0x1d8] sm:$0xf] %v2328_v32  ;;  %v2332_v34 = vld [vmem:[%s3068_s7 + $0x9f0] sm:$0xf] }
  0x6e   : > { %2331 = vst [vmem:[%s3073_s8 + $0x1f4] sm:$0xf] %v2330_v33  ;;  %v2334_v35 = vld [vmem:[%s3068_s7 + $0xa7c] sm:$0xf]  ;;  %v2336_v36 = vld [vmem:[%s3068_s7 + $0xb08] sm:$0xf] }
  0x6f   : > { %2333 = vst [vmem:[%s3073_s8 + $0x210] sm:$0xf] %v2332_v34  ;;  %2335 = vst [vmem:[%s3073_s8 + $0x22c] sm:$0xf] %v2334_v35  ;;  %v2338_v37 = vld [vmem:[%s3068_s7 + $0xb94] sm:$0xf] }
  0x70   : > { %2337 = vst [vmem:[%s3073_s8 + $0x248] sm:$0xf] %v2336_v36  ;;  %v2340_v38 = vld [vmem:[%s3068_s7 + $0xc20] sm:$0xf]  ;;  %v2342_v39 = vld [vmem:[%s3068_s7 + $0xcac] sm:$0xf] }
  0x71   : > { %2339 = vst [vmem:[%s3073_s8 + $0x264] sm:$0xf] %v2338_v37  ;;  %2341 = vst [vmem:[%s3073_s8 + $0x280] sm:$0xf] %v2340_v38  ;;  %v2344_v40 = vld [vmem:[%s3068_s7 + $0xd38] sm:$0xf] }
  0x72   : > { %2343 = vst [vmem:[%s3073_s8 + $0x29c] sm:$0xf] %v2342_v39  ;;  %v2346_v41 = vld [vmem:[%s3068_s7 + $0xdc4] sm:$0xf]  ;;  %v2348_v42 = vld [vmem:[%s3068_s7 + $0xe50] sm:$0xf] }
  0x73   : > { %2345 = vst [vmem:[%s3073_s8 + $0x2b8] sm:$0xf] %v2344_v40  ;;  %2347 = vst [vmem:[%s3073_s8 + $0x2d4] sm:$0xf] %v2346_v41  ;;  %v2350_v43 = vld [vmem:[%s3068_s7 + $0xedc] sm:$0xf] }
  0x74   : > { %2349 = vst [vmem:[%s3073_s8 + $0x2f0] sm:$0xf] %v2348_v42  ;;  %v2352_v44 = vld [vmem:[%s3068_s7 + $0xf68] sm:$0xf]  ;;  %v2354_v45 = vld [vmem:[%s3068_s7 + $0xff4] sm:$0xf] }
  0x75   : > { %2351 = vst [vmem:[%s3073_s8 + $0x30c] sm:$0xf] %v2350_v43  ;;  %2353 = vst [vmem:[%s3073_s8 + $0x328] sm:$0xf] %v2352_v44  ;;  %v2356_v46 = vld [vmem:[%s3068_s7 + $0x1080] sm:$0xf] }
  0x76   : > { %2355 = vst [vmem:[%s3073_s8 + $0x344] sm:$0xf] %v2354_v45  ;;  %v2358_v47 = vld [vmem:[%s3068_s7 + $0x110c] sm:$0xf]  ;;  %v2360_v48 = vld [vmem:[%s3068_s7 + $0x1198] sm:$0xf] }
  0x77   : > { %2357 = vst [vmem:[%s3073_s8 + $0x360] sm:$0xf] %v2356_v46  ;;  %2359 = vst [vmem:[%s3073_s8 + $0x37c] sm:$0xf] %v2358_v47  ;;  %v2362_v49 = vld [vmem:[%s3068_s7 + $0x1224] sm:$0xf] }
  0x78   : > { %2361 = vst [vmem:[%s3073_s8 + $0x398] sm:$0xf] %v2360_v48  ;;  %v2364_v50 = vld [vmem:[%s3068_s7 + $0x12b0] sm:$0xf]  ;;  %v2366_v51 = vld [vmem:[%s3068_s7 + $0x133c] sm:$0xf] }
  0x79   : > { %2363 = vst [vmem:[%s3073_s8 + $0x3b4] sm:$0xf] %v2362_v49  ;;  %2365 = vst [vmem:[%s3073_s8 + $0x3d0] sm:$0xf] %v2364_v50  ;;  %v2368_v52 = vld [vmem:[%s3068_s7 + $0x13c8] sm:$0xf] }
  0x7a   : > { %2367 = vst [vmem:[%s3073_s8 + $0x3ec] sm:$0xf] %v2366_v51  ;;  %v2370_v53 = vld [vmem:[%s3068_s7 + $0x1454] sm:$0xf]  ;;  %v2372_v54 = vld [vmem:[%s3068_s7 + $0x14e0] sm:$0xf] }
  0x7b   : > { %2369 = vst [vmem:[%s3073_s8 + $0x408] sm:$0xf] %v2368_v52  ;;  %2371 = vst [vmem:[%s3073_s8 + $0x424] sm:$0xf] %v2370_v53  ;;  %v2374_v55 = vld [vmem:[%s3068_s7 + $0x156c] sm:$0xf] }
  0x7c   : > { %2373 = vst [vmem:[%s3073_s8 + $0x440] sm:$0xf] %v2372_v54  ;;  %v2376_v56 = vld [vmem:[%s3068_s7 + $0x15f8] sm:$0xf]  ;;  %v2378_v57 = vld [vmem:[%s3068_s7 + $0x1684] sm:$0xf] }
  0x7d   : > { %2375 = vst [vmem:[%s3073_s8 + $0x45c] sm:$0xf] %v2374_v55  ;;  %2377 = vst [vmem:[%s3073_s8 + $0x478] sm:$0xf] %v2376_v56  ;;  %v2380_v58 = vld [vmem:[%s3068_s7 + $0x1710] sm:$0xf] }
  0x7e   : > { %2379 = vst [vmem:[%s3073_s8 + $0x494] sm:$0xf] %v2378_v57  ;;  %v2382_v59 = vld [vmem:[%s3068_s7 + $0x179c] sm:$0xf]  ;;  %v2384_v60 = vld [vmem:[%s3068_s7 + $0x1828] sm:$0xf] }
  0x7f   : > { %2381 = vst [vmem:[%s3073_s8 + $0x4b0] sm:$0xf] %v2380_v58  ;;  %2383 = vst [vmem:[%s3073_s8 + $0x4cc] sm:$0xf] %v2382_v59  ;;  %v2386_v61 = vld [vmem:[%s3068_s7 + $0x18b4] sm:$0xf] }
  0x80   : > { %2385 = vst [vmem:[%s3073_s8 + $0x4e8] sm:$0xf] %v2384_v60  ;;  %v2388_v62 = vld [vmem:[%s3068_s7 + $0x1940] sm:$0xf]  ;;  %v2390_v63 = vld [vmem:[%s3068_s7 + $0x19cc] sm:$0xf] }
  0x81   : > { %2387 = vst [vmem:[%s3073_s8 + $0x504] sm:$0xf] %v2386_v61  ;;  %2389 = vst [vmem:[%s3073_s8 + $0x520] sm:$0xf] %v2388_v62 }
  0x82   : > { %2391 = vst [vmem:[%s3073_s8 + $0x53c] sm:$0xf] %v2390_v63 }
  0x83 PF: > { %p2392_p7 = scmp.ge.s32.totalorder %s2982_s18, 1  ;;  %p600_p8 = scmp.lt.s32.totalorder %s2982_s18, 16 }
  0x85   : > { %p601_p9 = pnand %p2392_p7, %p600_p8 }
  0x86   : > { %s607_s9 = sand.u32 (!%p601_p9), 1, %s2958_s12   ;;  %s647_s10 = smul.u32 (!%p601_p9), 3, %s2966_s14 }
  0x87   : > { %604 = sbr.rel (%p601_p9) target bundleno = 573 (0x23d), region = 54  ;;  %p2395_p12 = scmp.ne.s32.totalorder (!%p601_p9), %s2966_s14, 0 }
  0x88   : > { %s2623_s11 = smul.u32 (!%p601_p9), 1344, %s607_s9  ;;  %p650_p10 = scmp.lt.s32.totalorder (!%p601_p9), %s647_s10, 8 }
  0x89   : > { %s659_s21 = smul.u32 (!%p601_p9), 7, %s2970_s15 }
  0x8a   : > { %s3478_s5 = scalar_lea.vmem (!%p601_p9), [#allocation3], %s2623_s11 }
  0x8b   : > { %p660_p11 = scmp.lt.s32.totalorder (!%p601_p9), %s659_s21, 34 }
  0x8e   : > { %s3723_s10 = smov (!%p650_p10, %s647_s10), 8  ;;  %s3725_s21 = smov (!%p660_p11, %s659_s21), 34 }
  0x8f   : > { %s2393_s22 = sshll.u32 %s3723_s10, 2  ;;  %s662_s12 = scalar_lea.vmem %s3708_s2, %s3725_s21  ;;  %v2984_v0 = vmov (!%p2395_p12), 0.0  }
  0x90   : > { %s3464_s26 = scalar_lea.vmem %s3706_s0, %s2393_s22  ;;  %s2394_s29 = sshll.u32 %s3725_s21, 3  ;;  %679 = vst [vmem:[#allocation2] sm:$0xff] (!%p2395_p12), %v2984_v0  ;;  %680 = vst [vmem:[#allocation2 + $0x8] sm:$0xff] (!%p2395_p12), %v2984_v0 }
  0x91   : > { %s3476_s15 = scalar_lea.vmem %s3709_s3, %s2394_s29  ;;  %678 = sbr.rel (%p2395_p12) target bundleno = 152 (0x98), region = 62  ;;  %681 = vst [vmem:[#allocation2 + $0x10] sm:$0xff] (!%p2395_p12), %v2984_v0  ;;  %682 = vst [vmem:[#allocation2 + $0x18] sm:$0xff] (!%p2395_p12), %v2984_v0 }
  0x92   : > { %683 = vst [vmem:[#allocation2 + $0x20] sm:$0xff] (!%p2395_p12), %v2984_v0  ;;  %684 = vst [vmem:[#allocation2 + $0x28] sm:$0xff] (!%p2395_p12), %v2984_v0 }
  0x93   : > { %685 = vst [vmem:[#allocation2 + $0x30] sm:$0xff] (!%p2395_p12), %v2984_v0 }
  0x98 PF: > { %v2685_v1 = vld [vmem:[%s3478_s5 + $0x4] ss:$28 sps:$4 sm:$0xff]   ;;  %v2985_v3 = vmov 0   ;;  %v2691_v6 = vld [vmem:[%s3478_s5 + $0x3c] ss:$28 sps:$4 sm:$0xff]   ;;  %v693_v50 = vld [vmem:[%s3464_s26] sm:$0xff] }
  0x99   : > { %v2687_v2 = vld [vmem:[%s3478_s5 + $0x384] ss:$28 sps:$4 sm:$0xff]   ;;  %1835 = vmatprep.mubr.bf16.mxu1 %v2985_v3  ;;  %1762 = vmatprep.subr.bf16.mxu0 %v2685_v1  ;;  %v2693_v7 = vld [vmem:[%s3478_s5 + $0x3bc] ss:$28 sps:$4 sm:$0xff]   ;;  %v2697_v10 = vld [vmem:[%s3478_s5 + $0x74] ss:$28 sps:$4 sm:$0xff]   ;;  %v3536_v53 = vcombine.high %v693_v50, %v693_v50 }
  0x9a   : > { %v2689_v4 = vld [vmem:[%s3478_s5] ss:$28 sps:$4 sm:$0xff]   ;;  %1803 = vmatprep.subr.bf16.mxu1 %v2687_v2  ;;  %v2695_v8 = vld [vmem:[%s3478_s5 + $0x38] ss:$28 sps:$4 sm:$0xff]   ;;  %v2701_v12 = vld [vmem:[%s3478_s5 + $0x70] ss:$28 sps:$4 sm:$0xff]  }
  0x9b   : > { %v2690_v5 = vld [vmem:[%s3478_s5 + $0x380] ss:$28 sps:$4 sm:$0xff]   ;;  %1763 = vmatpush1.bf16.msra.mxu0 %v2689_v4  ;;  %v2696_v9 = vld [vmem:[%s3478_s5 + $0x3b8] ss:$28 sps:$4 sm:$0xff]   ;;  %v2702_v13 = vld [vmem:[%s3478_s5 + $0x3f0] ss:$28 sps:$4 sm:$0xff]   ;;  %1794 = vmatprep.mubr.bf16.mxu0 %v3536_v53 }
  0x9c   : > { %1804 = vmatpush1.bf16.msra.mxu1 %v2690_v5  ;;  %1764 = vmatprep.subr.bf16.mxu0 %v2691_v6  ;;  %v2699_v11 = vld [vmem:[%s3478_s5 + $0x3f4] ss:$28 sps:$4 sm:$0xff]   ;;  %v2703_v14 = vld [vmem:[%s3478_s5 + $0xac] ss:$28 sps:$4 sm:$0xff]   ;;  %v2709_v18 = vld [vmem:[%s3478_s5 + $0xe4] ss:$28 sps:$4 sm:$0xff]  }
  0x9d   : > { %1805 = vmatprep.subr.bf16.mxu1 %v2693_v7  ;;  %v2705_v15 = vld [vmem:[%s3478_s5 + $0x42c] ss:$28 sps:$4 sm:$0xff]   ;;  %v2711_v19 = vld [vmem:[%s3478_s5 + $0x464] ss:$28 sps:$4 sm:$0xff]   ;;  %v2715_v22 = vld [vmem:[%s3478_s5 + $0x11c] ss:$28 sps:$4 sm:$0xff]  }
  0x9e   : > { %v2707_v16 = vld [vmem:[%s3478_s5 + $0xa8] ss:$28 sps:$4 sm:$0xff]   ;;  %v2713_v20 = vld [vmem:[%s3478_s5 + $0xe0] ss:$28 sps:$4 sm:$0xff]   ;;  %v2719_v24 = vld [vmem:[%s3478_s5 + $0x118] ss:$28 sps:$4 sm:$0xff]  }
  0x9f   : > { %1765 = vmatpush1.bf16.msra.mxu0 %v2695_v8  ;;  %v2708_v17 = vld [vmem:[%s3478_s5 + $0x428] ss:$28 sps:$4 sm:$0xff]   ;;  %v2714_v21 = vld [vmem:[%s3478_s5 + $0x460] ss:$28 sps:$4 sm:$0xff]   ;;  %v2720_v25 = vld [vmem:[%s3478_s5 + $0x498] ss:$28 sps:$4 sm:$0xff]   ;;  %v3557_v8 = vcombine.low %v693_v50, %v693_v50 }
  0xa0   : > { %1806 = vmatpush1.bf16.msra.mxu1 %v2696_v9  ;;  %1766 = vmatprep.subr.bf16.mxu0 %v2697_v10  ;;  %v2717_v23 = vld [vmem:[%s3478_s5 + $0x49c] ss:$28 sps:$4 sm:$0xff]   ;;  %v2721_v26 = vld [vmem:[%s3478_s5 + $0x154] ss:$28 sps:$4 sm:$0xff]   ;;  %v2727_v30 = vld [vmem:[%s3478_s5 + $0x18c] ss:$28 sps:$4 sm:$0xff]  }
  0xa1   : > { %1807 = vmatprep.subr.bf16.mxu1 %v2699_v11  ;;  %v2723_v27 = vld [vmem:[%s3478_s5 + $0x4d4] ss:$28 sps:$4 sm:$0xff]   ;;  %v2729_v31 = vld [vmem:[%s3478_s5 + $0x50c] ss:$28 sps:$4 sm:$0xff]   ;;  %v2733_v34 = vld [vmem:[%s3478_s5 + $0x1c4] ss:$28 sps:$4 sm:$0xff]  }
  0xa2   : > { %v2725_v28 = vld [vmem:[%s3478_s5 + $0x150] ss:$28 sps:$4 sm:$0xff]   ;;  %v2731_v32 = vld [vmem:[%s3478_s5 + $0x188] ss:$28 sps:$4 sm:$0xff]   ;;  %v2738_v38 = vld [vmem:[%s3478_s5 + $0x1c0] ss:$28 sps:$4 sm:$0xff]  }
  0xa3   : > { %1767 = vmatpush1.bf16.msra.mxu0 %v2701_v12  ;;  %v2726_v29 = vld [vmem:[%s3478_s5 + $0x4d0] ss:$28 sps:$4 sm:$0xff]   ;;  %v2732_v33 = vld [vmem:[%s3478_s5 + $0x508] ss:$28 sps:$4 sm:$0xff]   ;;  %v2740_v39 = vld [vmem:[%s3478_s5 + $0x1fc] ss:$28 sps:$4 sm:$0xff]  }
  0xa4   : > { %1808 = vmatpush1.bf16.msra.mxu1 %v2702_v13  ;;  %1768 = vmatprep.subr.bf16.mxu0 %v2703_v14  ;;  %v2737_v35 = vld [vmem:[%s3478_s5 + $0xc] ss:$28 sps:$4 sm:$0xff]   ;;  %v3518_v37 = vld [vmem:[%s3464_s26 + $0x8] ss:$0 sps:$4 sm:$0xff]   ;;  %v2744_v40 = vld [vmem:[%s3478_s5 + $0x44] ss:$28 sps:$4 sm:$0xff]  }
  0xa5   : > { %1809 = vmatprep.subr.bf16.mxu1 %v2705_v15  ;;  %v2735_v36 = vld [vmem:[%s3478_s5 + $0x8] ss:$28 sps:$4 sm:$0xff]   ;;  %v2742_v41 = vld [vmem:[%s3478_s5 + $0x40] ss:$28 sps:$4 sm:$0xff]   ;;  %v2745_v42 = vld [vmem:[%s3478_s5 + $0x1f8] ss:$28 sps:$4 sm:$0xff]  }
  0xa6   : > { %v2746_v43 = vld [vmem:[%s3478_s5 + $0x234] ss:$28 sps:$4 sm:$0xff]   ;;  %v2750_v44 = vld [vmem:[%s3478_s5 + $0x7c] ss:$28 sps:$4 sm:$0xff]   ;;  %v2752_v47 = vld [vmem:[%s3478_s5 + $0x26c] ss:$28 sps:$4 sm:$0xff]  }
  0xa7   : > { %1769 = vmatpush1.bf16.msra.mxu0 %v2707_v16  ;;  %v2748_v45 = vld [vmem:[%s3478_s5 + $0x78] ss:$28 sps:$4 sm:$0xff]   ;;  %v2751_v46 = vld [vmem:[%s3478_s5 + $0x230] ss:$28 sps:$4 sm:$0xff]   ;;  %v2757_v51 = vld [vmem:[%s3478_s5 + $0x268] ss:$28 sps:$4 sm:$0xff]  }
  0xa8   : > { %1810 = vmatpush1.bf16.msra.mxu1 %v2708_v17  ;;  %1770 = vmatprep.subr.bf16.mxu0 %v2709_v18  ;;  %v2756_v48 = vld [vmem:[%s3478_s5 + $0xb4] ss:$28 sps:$4 sm:$0xff]   ;;  %v2758_v52 = vld [vmem:[%s3478_s5 + $0x2a4] ss:$28 sps:$4 sm:$0xff]   ;;  %v2762_v54 = vld [vmem:[%s3478_s5 + $0xec] ss:$28 sps:$4 sm:$0xff]  }
  0xa9   : > { %1811 = vmatprep.subr.bf16.mxu1 %v2711_v19  ;;  %v2754_v49 = vld [vmem:[%s3478_s5 + $0xb0] ss:$28 sps:$4 sm:$0xff]   ;;  %v2760_v55 = vld [vmem:[%s3478_s5 + $0xe8] ss:$28 sps:$4 sm:$0xff]   ;;  %v2763_v56 = vld [vmem:[%s3478_s5 + $0x2a0] ss:$28 sps:$4 sm:$0xff]  }
  0xaa   : > { %v2764_v57 = vld [vmem:[%s3478_s5 + $0x2dc] ss:$28 sps:$4 sm:$0xff]   ;;  %v2768_v58 = vld [vmem:[%s3478_s5 + $0x124] ss:$28 sps:$4 sm:$0xff]   ;;  %v2770_v61 = vld [vmem:[%s3478_s5 + $0x314] ss:$28 sps:$4 sm:$0xff]  }
  0xab   : > { %1771 = vmatpush1.bf16.msra.mxu0 %v2713_v20  ;;  %v2766_v59 = vld [vmem:[%s3478_s5 + $0x120] ss:$28 sps:$4 sm:$0xff]   ;;  %v2769_v60 = vld [vmem:[%s3478_s5 + $0x2d8] ss:$28 sps:$4 sm:$0xff]   ;;  %v2775_v0 = vld [vmem:[%s3478_s5 + $0x310] ss:$28 sps:$4 sm:$0xff]  }
  0xac   : > { %1812 = vmatpush1.bf16.msra.mxu1 %v2714_v21  ;;  %1772 = vmatprep.subr.bf16.mxu0 %v2715_v22  ;;  %v2774_v62 = vld [vmem:[%s3478_s5 + $0x15c] ss:$28 sps:$4 sm:$0xff]   ;;  %v2776_v1 = vld [vmem:[%s3478_s5 + $0x34c] ss:$28 sps:$4 sm:$0xff]   ;;  %v2780_v2 = vld [vmem:[%s3478_s5 + $0x194] ss:$28 sps:$4 sm:$0xff]  }
  0xad   : > { %1813 = vmatprep.subr.bf16.mxu1 %v2717_v23  ;;  %v2772_v63 = vld [vmem:[%s3478_s5 + $0x158] ss:$28 sps:$4 sm:$0xff]   ;;  %v2778_v4 = vld [vmem:[%s3478_s5 + $0x190] ss:$28 sps:$4 sm:$0xff]   ;;  %v2781_v5 = vld [vmem:[%s3478_s5 + $0x348] ss:$28 sps:$4 sm:$0xff]  }
  0xae   : > { %v2786_v6 = vld [vmem:[%s3478_s5 + $0x1cc] ss:$28 sps:$4 sm:$0xff]   ;;  %v2792_v11 = vld [vmem:[%s3478_s5 + $0x204] ss:$28 sps:$4 sm:$0xff]   ;;  %v2798_v15 = vld [vmem:[%s3478_s5 + $0x23c] ss:$28 sps:$4 sm:$0xff]  }
  0xaf   : > { %1773 = vmatpush1.bf16.msra.mxu0 %v2719_v24  ;;  %v2789_v7 = vld [vmem:[%s3478_s5 + $0x38c] ss:$28 sps:$4 sm:$0xff]   ;;  %v2795_v12 = vld [vmem:[%s3478_s5 + $0x3c4] ss:$28 sps:$4 sm:$0xff]   ;;  %v2801_v16 = vld [vmem:[%s3478_s5 + $0x3fc] ss:$28 sps:$4 sm:$0xff]  }
  0xb0   : > { %1814 = vmatpush1.bf16.msra.mxu1 %v2720_v25  ;;  %1774 = vmatprep.subr.bf16.mxu0 %v2721_v26  ;;  %v2784_v9 = vld [vmem:[%s3478_s5 + $0x1c8] ss:$28 sps:$4 sm:$0xff]   ;;  %v2790_v13 = vld [vmem:[%s3478_s5 + $0x200] ss:$28 sps:$4 sm:$0xff]   ;;  %v2796_v17 = vld [vmem:[%s3478_s5 + $0x238] ss:$28 sps:$4 sm:$0xff]  }
  0xb1   : > { %1815 = vmatprep.subr.bf16.mxu1 %v2723_v27  ;;  %v2787_v10 = vld [vmem:[%s3478_s5 + $0x388] ss:$28 sps:$4 sm:$0xff]   ;;  %v2793_v14 = vld [vmem:[%s3478_s5 + $0x3c0] ss:$28 sps:$4 sm:$0xff]   ;;  %v2799_v18 = vld [vmem:[%s3478_s5 + $0x3f8] ss:$28 sps:$4 sm:$0xff]  }
  0xb2   : > { %v2804_v19 = vld [vmem:[%s3478_s5 + $0x274] ss:$28 sps:$4 sm:$0xff]   ;;  %v2810_v23 = vld [vmem:[%s3478_s5 + $0x2ac] ss:$28 sps:$4 sm:$0xff]   ;;  %v2816_v27 = vld [vmem:[%s3478_s5 + $0x2e4] ss:$28 sps:$4 sm:$0xff]  }
  0xb3   : > { %1775 = vmatpush1.bf16.msra.mxu0 %v2725_v28  ;;  %v2807_v20 = vld [vmem:[%s3478_s5 + $0x434] ss:$28 sps:$4 sm:$0xff]   ;;  %v2813_v24 = vld [vmem:[%s3478_s5 + $0x46c] ss:$28 sps:$4 sm:$0xff]   ;;  %v2819_v28 = vld [vmem:[%s3478_s5 + $0x4a4] ss:$28 sps:$4 sm:$0xff]  }
  0xb4   : > { %1816 = vmatpush1.bf16.msra.mxu1 %v2726_v29  ;;  %1776 = vmatprep.subr.bf16.mxu0 %v2727_v30  ;;  %v2802_v21 = vld [vmem:[%s3478_s5 + $0x270] ss:$28 sps:$4 sm:$0xff]   ;;  %v2808_v25 = vld [vmem:[%s3478_s5 + $0x2a8] ss:$28 sps:$4 sm:$0xff]   ;;  %v2814_v29 = vld [vmem:[%s3478_s5 + $0x2e0] ss:$28 sps:$4 sm:$0xff]  }
  0xb5   : > { %1817 = vmatprep.subr.bf16.mxu1 %v2729_v31  ;;  %v2805_v22 = vld [vmem:[%s3478_s5 + $0x430] ss:$28 sps:$4 sm:$0xff]   ;;  %v2811_v26 = vld [vmem:[%s3478_s5 + $0x468] ss:$28 sps:$4 sm:$0xff]   ;;  %v2817_v30 = vld [vmem:[%s3478_s5 + $0x4a0] ss:$28 sps:$4 sm:$0xff]  }
  0xb6   : > { %v2822_v31 = vld [vmem:[%s3478_s5 + $0x31c] ss:$28 sps:$4 sm:$0xff]   ;;  %vm2987_vm0 = vmmov 0   ;;  %p2567_p13 = scmp.ne.s32.totalorder %s2966_s14, 2 }
  0xb7   : > { %1777 = vmatpush1.bf16.msra.mxu0 %v2731_v32  ;;  %v2825_v32 = vld [vmem:[%s3478_s5 + $0x4dc] ss:$28 sps:$4 sm:$0xff]  }
  0xb8   : > { %1818 = vmatpush1.bf16.msra.mxu1 %v2732_v33  ;;  %1778 = vmatprep.subr.bf16.mxu0 %v2733_v34  ;;  %v2820_v33 = vld [vmem:[%s3478_s5 + $0x318] ss:$28 sps:$4 sm:$0xff]   ;;  %v2838_v50 = vld [vmem:[%s3478_s5 + $0x80] ss:$28 sps:$4 sm:$0xff]  }
  0xb9   : > { %1844 = vmatprep.subr.bf16.mxu1 %v2737_v35  ;;  %v2823_v34 = vld [vmem:[%s3478_s5 + $0x4d8] ss:$28 sps:$4 sm:$0xff]  }
  0xba   : > { %v2828_v35 = vld [vmem:[%s3478_s5 + $0x354] ss:$28 sps:$4 sm:$0xff]  }
  0xbb   : > { %1836 = vmatmul.mubr.bf16.vlgmr.msra.gmra.mrb[0].mxu1 %v3518_v37  ;;  %1779 = vmatpush1.bf16.msra.mxu0 %v2738_v38  ;;  %v2826_v38 = vld [vmem:[%s3478_s5 + $0x350] ss:$28 sps:$4 sm:$0xff]  }
  0xbc   : > { %1845 = vmatpush1.bf16.msra.mxu1 %v2735_v36  ;;  %1780 = vmatprep.subr.bf16.mxu0 %v2740_v39  ;;  %v2831_v36 = vld [vmem:[%s3478_s5 + $0x514] ss:$28 sps:$4 sm:$0xff]  }
  0xbd   : > { %1846 = vmatprep.subr.bf16.mxu1 %v2744_v40  ;;  %1876 = vmatprep.mubr.bf16.mxu1 %v3536_v53  ;;  %v2829_v39 = vld [vmem:[%s3478_s5 + $0x510] ss:$28 sps:$4 sm:$0xff]  }
  0xbe   : > { %v2834_v40 = vld [vmem:[%s3478_s5 + $0x14] ss:$28 sps:$4 sm:$0xff]  }
  0xbf   : > { %1781 = vmatpush1.bf16.msra.mxu0 %v2745_v42  ;;  %v2832_v42 = vld [vmem:[%s3478_s5 + $0x10] ss:$28 sps:$4 sm:$0xff]  }
  0xc0   : > { %1847 = vmatpush1.bf16.msra.mxu1 %v2742_v41  ;;  %1782 = vmatprep.subr.bf16.mxu0 %v2746_v43  ;;  %v2855_v41 = vld [vmem:[%s3478_s5 + $0x394] ss:$28 sps:$4 sm:$0xff]   ;;  %v2837_v43 = vld [vmem:[%s3478_s5 + $0x4c] ss:$28 sps:$4 sm:$0xff]  }
  0xc1   : > { %1848 = vmatprep.subr.bf16.mxu1 %v2750_v44  ;;  %v2853_v44 = vld [vmem:[%s3478_s5 + $0x390] ss:$28 sps:$4 sm:$0xff]  }
  0xc3   : > { %1783 = vmatpush1.bf16.msra.mxu0 %v2751_v46  ;;  %v2835_v46 = vld [vmem:[%s3478_s5 + $0x48] ss:$28 sps:$4 sm:$0xff]  }
  0xc4   : > { %1849 = vmatpush1.bf16.msra.mxu1 %v2748_v45  ;;  %1784 = vmatprep.subr.bf16.mxu0 %v2752_v47  ;;  %v2861_v45 = vld [vmem:[%s3478_s5 + $0x3cc] ss:$28 sps:$4 sm:$0xff]   ;;  %v2840_v47 = vld [vmem:[%s3478_s5 + $0x84] ss:$28 sps:$4 sm:$0xff]  }
  0xc5   : > { %1850 = vmatprep.subr.bf16.mxu1 %v2756_v48  ;;  %v2859_v48 = vld [vmem:[%s3478_s5 + $0x3c8] ss:$28 sps:$4 sm:$0xff]  }
  0xc7   : > { %1785 = vmatpush1.bf16.msra.mxu0 %v2757_v51  ;;  %v2843_v51 = vld [vmem:[%s3478_s5 + $0xbc] ss:$28 sps:$4 sm:$0xff]  }
  0xc8   : > { %1851 = vmatpush1.bf16.msra.mxu1 %v2754_v49  ;;  %1786 = vmatprep.subr.bf16.mxu0 %v2758_v52  ;;  %v2867_v49 = vld [vmem:[%s3478_s5 + $0x404] ss:$28 sps:$4 sm:$0xff]  }
  0xc9   : > { %1852 = vmatprep.subr.bf16.mxu1 %v2762_v54  ;;  %v2865_v52 = vld [vmem:[%s3478_s5 + $0x400] ss:$28 sps:$4 sm:$0xff]  }
  0xca   : > { %v2873_v54 = vld [vmem:[%s3478_s5 + $0x43c] ss:$28 sps:$4 sm:$0xff]  }
  0xcb   : > { %1787 = vmatpush1.bf16.msra.mxu0 %v2763_v56  ;;  %v2846_v56 = vld [vmem:[%s3478_s5 + $0xf4] ss:$28 sps:$4 sm:$0xff]  }
  0xcc   : > { %1853 = vmatpush1.bf16.msra.mxu1 %v2760_v55  ;;  %1788 = vmatprep.subr.bf16.mxu0 %v2764_v57  ;;  %v2841_v55 = vld [vmem:[%s3478_s5 + $0xb8] ss:$28 sps:$4 sm:$0xff]  }
  0xcd   : > { %1854 = vmatprep.subr.bf16.mxu1 %v2768_v58  ;;  %v2879_v57 = vld [vmem:[%s3478_s5 + $0x474] ss:$28 sps:$4 sm:$0xff]  }
  0xce   : > { %v2844_v58 = vld [vmem:[%s3478_s5 + $0xf0] ss:$28 sps:$4 sm:$0xff]  }
  0xcf   : > { %1789 = vmatpush1.bf16.msra.mxu0 %v2769_v60  ;;  %v2877_v60 = vld [vmem:[%s3478_s5 + $0x470] ss:$28 sps:$4 sm:$0xff]  }
  0xd0   : > { %1855 = vmatpush1.bf16.msra.mxu1 %v2766_v59  ;;  %1790 = vmatprep.subr.bf16.mxu0 %v2770_v61  ;;  %v2849_v59 = vld [vmem:[%s3478_s5 + $0x12c] ss:$28 sps:$4 sm:$0xff]  }
  0xd1   : > { %1856 = vmatprep.subr.bf16.mxu1 %v2774_v62  ;;  %v2885_v61 = vld [vmem:[%s3478_s5 + $0x4ac] ss:$28 sps:$4 sm:$0xff]  }
  0xd2   : > { %v2847_v62 = vld [vmem:[%s3478_s5 + $0x128] ss:$28 sps:$4 sm:$0xff]  }
  0xd3   : > { %1791 = vmatpush1.bf16.msra.mxu0 %v2775_v0  ;;  %v2883_v0 = vld [vmem:[%s3478_s5 + $0x4a8] ss:$28 sps:$4 sm:$0xff]  }
  0xd4   : > { %1857 = vmatpush1.bf16.msra.mxu1 %v2772_v63  ;;  %1792 = vmatprep.subr.bf16.mxu0 %v2776_v1  ;;  %v2852_v63 = vld [vmem:[%s3478_s5 + $0x164] ss:$28 sps:$4 sm:$0xff]  }
  0xd5   : > { %1858 = vmatprep.subr.bf16.mxu1 %v2780_v2  ;;  %v2891_v1 = vld [vmem:[%s3478_s5 + $0x4e4] ss:$28 sps:$4 sm:$0xff]  }
  0xd6   : > { %v2850_v2 = vld [vmem:[%s3478_s5 + $0x160] ss:$28 sps:$4 sm:$0xff]  }
  0xd7   : > { %1793 = vmatpush1.bf16.msra.mxu0 %v2781_v5  ;;  %v2858_v5 = vld [vmem:[%s3478_s5 + $0x19c] ss:$28 sps:$4 sm:$0xff]  }
  0xd8   : > { %1859 = vmatpush1.bf16.msra.mxu1 %v2778_v4  ;;  %1885 = vmatprep.subr.bf16.mxu0 %v2789_v7  ;;  %v2889_v4 = vld [vmem:[%s3478_s5 + $0x4e0] ss:$28 sps:$4 sm:$0xff]   ;;  %v2856_v7 = vld [vmem:[%s3478_s5 + $0x198] ss:$28 sps:$4 sm:$0xff]  }
  0xd9   : > { %1860 = vmatprep.subr.bf16.mxu1 %v2786_v6  ;;  %v2897_v6 = vld [vmem:[%s3478_s5 + $0x51c] ss:$28 sps:$4 sm:$0xff]  }
  0xda   : > { %1795 = vmatmul.mubr.bf16.vlgmr.msra.gmra.mrb[0].mxu0 %v3557_v8 }
  0xdb   : > { %1886 = vmatpush1.bf16.msra.mxu0 %v2787_v10  ;;  %1917 = vmatprep.mubr.bf16.mxu0 %v2985_v3  ;;  %v2864_v10 = vld [vmem:[%s3478_s5 + $0x1d4] ss:$28 sps:$4 sm:$0xff]  }
  0xdc   : > { %1861 = vmatpush1.bf16.msra.mxu1 %v2784_v9  ;;  %1887 = vmatprep.subr.bf16.mxu0 %v2795_v12  ;;  %v2895_v9 = vld [vmem:[%s3478_s5 + $0x518] ss:$28 sps:$4 sm:$0xff]   ;;  %v2862_v12 = vld [vmem:[%s3478_s5 + $0x1d0] ss:$28 sps:$4 sm:$0xff]  }
  0xdd   : > { %1862 = vmatprep.subr.bf16.mxu1 %v2792_v11  ;;  %v2901_v11 = vld [vmem:[%s3478_s5 + $0x1d8] ss:$28 sps:$4 sm:$0xff]  }
  0xdf   : > { %1888 = vmatpush1.bf16.msra.mxu0 %v2793_v14  ;;  %v2870_v14 = vld [vmem:[%s3478_s5 + $0x20c] ss:$28 sps:$4 sm:$0xff]  }
  0xe0   : > { %1863 = vmatpush1.bf16.msra.mxu1 %v2790_v13  ;;  %1889 = vmatprep.subr.bf16.mxu0 %v2801_v16  ;;  %v2902_v13 = vld [vmem:[%s3478_s5 + $0x18] ss:$28 sps:$4 sm:$0xff]   ;;  %v2868_v16 = vld [vmem:[%s3478_s5 + $0x208] ss:$28 sps:$4 sm:$0xff]  }
  0xe1   : > { %1864 = vmatprep.subr.bf16.mxu1 %v2798_v15  ;;  %v2906_v15 = vld [vmem:[%s3478_s5 + $0x210] ss:$28 sps:$4 sm:$0xff]  }
  0xe3   : > { %1890 = vmatpush1.bf16.msra.mxu0 %v2799_v18  ;;  %v2876_v18 = vld [vmem:[%s3478_s5 + $0x244] ss:$28 sps:$4 sm:$0xff]  }
  0xe4   : > { %1865 = vmatpush1.bf16.msra.mxu1 %v2796_v17  ;;  %1891 = vmatprep.subr.bf16.mxu0 %v2807_v20  ;;  %v2907_v17 = vld [vmem:[%s3478_s5 + $0x50] ss:$28 sps:$4 sm:$0xff]   ;;  %v2874_v20 = vld [vmem:[%s3478_s5 + $0x240] ss:$28 sps:$4 sm:$0xff]  }
  0xe5   : > { %1866 = vmatprep.subr.bf16.mxu1 %v2804_v19  ;;  %v2909_v19 = vld [vmem:[%s3478_s5 + $0x248] ss:$28 sps:$4 sm:$0xff]  }
  0xe7   : > { %1892 = vmatpush1.bf16.msra.mxu0 %v2805_v22  ;;  %v2882_v22 = vld [vmem:[%s3478_s5 + $0x27c] ss:$28 sps:$4 sm:$0xff]  }
  0xe8   : > { %1867 = vmatpush1.bf16.msra.mxu1 %v2802_v21  ;;  %1893 = vmatprep.subr.bf16.mxu0 %v2813_v24  ;;  %v2910_v21 = vld [vmem:[%s3478_s5 + $0x88] ss:$28 sps:$4 sm:$0xff]   ;;  %v2880_v24 = vld [vmem:[%s3478_s5 + $0x278] ss:$28 sps:$4 sm:$0xff]  }
  0xe9   : > { %1868 = vmatprep.subr.bf16.mxu1 %v2810_v23  ;;  %v2912_v23 = vld [vmem:[%s3478_s5 + $0x280] ss:$28 sps:$4 sm:$0xff]  }
  0xeb   : > { %1894 = vmatpush1.bf16.msra.mxu0 %v2811_v26  ;;  %v2915_v26 = vld [vmem:[%s3478_s5 + $0x2b8] ss:$28 sps:$4 sm:$0xff]  }
  0xec   : > { %1869 = vmatpush1.bf16.msra.mxu1 %v2808_v25  ;;  %1895 = vmatprep.subr.bf16.mxu0 %v2819_v28  ;;  %v2913_v25 = vld [vmem:[%s3478_s5 + $0xc0] ss:$28 sps:$4 sm:$0xff]   ;;  %v2916_v28 = vld [vmem:[%s3478_s5 + $0xf8] ss:$28 sps:$4 sm:$0xff]  }
  0xed   : > { %1870 = vmatprep.subr.bf16.mxu1 %v2816_v27  ;;  %v2886_v27 = vld [vmem:[%s3478_s5 + $0x2b0] ss:$28 sps:$4 sm:$0xff]  }
  0xef   : > { %1896 = vmatpush1.bf16.msra.mxu0 %v2817_v30  ;;  %v2918_v30 = vld [vmem:[%s3478_s5 + $0x2f0] ss:$28 sps:$4 sm:$0xff]  }
  0xf0   : > { %1871 = vmatpush1.bf16.msra.mxu1 %v2814_v29  ;;  %1897 = vmatprep.subr.bf16.mxu0 %v2825_v32  ;;  %v2894_v29 = vld [vmem:[%s3478_s5 + $0x2ec] ss:$28 sps:$4 sm:$0xff]  }
  0xf1   : > { %1872 = vmatprep.subr.bf16.mxu1 %v2822_v31  ;;  %v2892_v31 = vld [vmem:[%s3478_s5 + $0x2e8] ss:$28 sps:$4 sm:$0xff]   ;;  %v2919_v32 = vld [vmem:[%s3478_s5 + $0x130] ss:$28 sps:$4 sm:$0xff]  }
  0xf3   : > { %1898 = vmatpush1.bf16.msra.mxu0 %v2823_v34  ;;  %v2921_v34 = vld [vmem:[%s3478_s5 + $0x328] ss:$28 sps:$4 sm:$0xff]  }
  0xf4   : > { %1873 = vmatpush1.bf16.msra.mxu1 %v2820_v33  ;;  %1899 = vmatprep.subr.bf16.mxu0 %v2831_v36  ;;  %v2900_v33 = vld [vmem:[%s3478_s5 + $0x324] ss:$28 sps:$4 sm:$0xff]  }
  0xf5   : > { %1874 = vmatprep.subr.bf16.mxu1 %v2828_v35  ;;  %v2898_v35 = vld [vmem:[%s3478_s5 + $0x320] ss:$28 sps:$4 sm:$0xff]   ;;  %v2922_v36 = vld [vmem:[%s3478_s5 + $0x168] ss:$28 sps:$4 sm:$0xff]  }
  0xf7   : > { %1900 = vmatpush1.bf16.msra.mxu0 %v2829_v39  ;;  %v2924_v39 = vld [vmem:[%s3478_s5 + $0x360] ss:$28 sps:$4 sm:$0xff]  }
  0xf8   : > { %1875 = vmatpush1.bf16.msra.mxu1 %v2826_v38  ;;  %1926 = vmatprep.subr.bf16.mxu0 %v2834_v40  ;;  %v2905_v38 = vld [vmem:[%s3478_s5 + $0x35c] ss:$28 sps:$4 sm:$0xff]  }
  0xf9   : > { %1967 = vmatprep.subr.bf16.mxu1 %v2855_v41  ;;  %v2903_v40 = vld [vmem:[%s3478_s5 + $0x358] ss:$28 sps:$4 sm:$0xff]   ;;  %v2925_v41 = vld [vmem:[%s3478_s5 + $0x1a0] ss:$28 sps:$4 sm:$0xff]  }
  0xfa   : > { %1918 = vmatmul.mubr.bf16.vlgmr.msra.gmra.mrb[4].mxu0 %v3518_v37 }
  0xfb   : > { %1877 = vmatmul.mubr.bf16.vlgmr.msra.gmra.mrb[4].mxu1 %v3557_v8  ;;  %1927 = vmatpush1.bf16.msra.mxu0 %v2832_v42  ;;  %v2908_v42 = vld [vmem:[%s3478_s5 + $0x398] ss:$28 sps:$4 sm:$0xff]  }
  0xfc   : > { %1968 = vmatpush1.bf16.msra.mxu1 %v2853_v44  ;;  %1928 = vmatprep.subr.bf16.mxu0 %v2837_v43  ;;  %v2986_v43 = vmov 0.0   ;;  %v2911_v44 = vld [vmem:[%s3478_s5 + $0x3d0] ss:$28 sps:$4 sm:$0xff]  }
  0xfd   : > { %1969 = vmatprep.subr.bf16.mxu1 %v2861_v45  ;;  %1999 = vmatprep.mubr.bf16.mxu1 %v2985_v3  ;;  %v2871_v3 = vld [vmem:[%s3478_s5 + $0x438] ss:$28 sps:$4 sm:$0xff]   ;;  %v2914_v45 = vld [vmem:[%s3478_s5 + $0x408] ss:$28 sps:$4 sm:$0xff]  }
  0xfe   : > { %1958 = vmatprep.mubr.bf16.mxu0 %v3536_v53 }
  0xff   : > { %1929 = vmatpush1.bf16.msra.mxu0 %v2835_v46  ;;  %v2917_v46 = vld [vmem:[%s3478_s5 + $0x440] ss:$28 sps:$4 sm:$0xff]  }
 0x100   : > { %1970 = vmatpush1.bf16.msra.mxu1 %v2859_v48  ;;  %1930 = vmatprep.subr.bf16.mxu0 %v2840_v47  ;;  %v2920_v47 = vld [vmem:[%s3478_s5 + $0x478] ss:$28 sps:$4 sm:$0xff]   ;;  %v2923_v48 = vld [vmem:[%s3478_s5 + $0x4b0] ss:$28 sps:$4 sm:$0xff]  }
 0x101   : > { %1971 = vmatprep.subr.bf16.mxu1 %v2867_v49  ;;  %v2927_v49 = vld [vmem:[%s3478_s5 + $0x520] ss:$28 sps:$4 sm:$0xff]  }
 0x103   : > { %1931 = vmatpush1.bf16.msra.mxu0 %v2838_v50 }
 0x104   : > { %1972 = vmatpush1.bf16.msra.mxu1 %v2865_v52  ;;  %1932 = vmatprep.subr.bf16.mxu0 %v2843_v51 }
 0x105   : > { %1973 = vmatprep.subr.bf16.mxu1 %v2873_v54 }
 0x107   : > { %1933 = vmatpush1.bf16.msra.mxu0 %v2841_v55  ;;  %v686_v55 = vld [vmem:[#allocation2] sm:$0xff] }
 0x108   : > { %1974 = vmatpush1.bf16.msra.mxu1 %v2871_v3  ;;  %1934 = vmatprep.subr.bf16.mxu0 %v2846_v56 }
 0x109   : > { %1975 = vmatprep.subr.bf16.mxu1 %v2879_v57  ;;  %v687_v57 = vld [vmem:[#allocation2 + $0x8] sm:$0xff] }
 0x10b   : > { %1935 = vmatpush1.bf16.msra.mxu0 %v2844_v58 }
 0x10c   : > { %1976 = vmatpush1.bf16.msra.mxu1 %v2877_v60  ;;  %1936 = vmatprep.subr.bf16.mxu0 %v2849_v59 }
 0x10d   : > { %1977 = vmatprep.subr.bf16.mxu1 %v2885_v61 }
 0x10f   : > { %1937 = vmatpush1.bf16.msra.mxu0 %v2847_v62 }
 0x110   : > { %1978 = vmatpush1.bf16.msra.mxu1 %v2883_v0  ;;  %1938 = vmatprep.subr.bf16.mxu0 %v2852_v63 }
 0x111   : > { %1979 = vmatprep.subr.bf16.mxu1 %v2891_v1  ;;  %v688_v1 = vld [vmem:[#allocation2 + $0x10] sm:$0xff] }
 0x113   : > { %1939 = vmatpush1.bf16.msra.mxu0 %v2850_v2 }
 0x114   : > { %1980 = vmatpush1.bf16.msra.mxu1 %v2889_v4  ;;  %1940 = vmatprep.subr.bf16.mxu0 %v2858_v5  ;;  %v689_v5 = vld [vmem:[#allocation2 + $0x18] sm:$0xff] }
 0x115   : > { %1981 = vmatprep.subr.bf16.mxu1 %v2897_v6 }
 0x117   : > { %1941 = vmatpush1.bf16.msra.mxu0 %v2856_v7 }
 0x118   : > { %1982 = vmatpush1.bf16.msra.mxu1 %v2895_v9  ;;  %1942 = vmatprep.subr.bf16.mxu0 %v2864_v10 }
 0x119   : > { %2570 = vmatprep.subr.bf16.mxu1 %v2901_v11 }
 0x11b   : > { %2000 = vmatmul.mubr.bf16.vlgmr.msra.gmra.mrb[8].mxu1 %v3518_v37  ;;  %1943 = vmatpush1.bf16.msra.mxu0 %v2862_v12 }
 0x11c   : > { %2571 = vmatpush3.bf16.msra.mxu1 %v2902_v13  ;;  %1944 = vmatprep.subr.bf16.mxu0 %v2870_v14 }
 0x11d   : > { %2572 = vmatprep.subr.bf16.mxu1 %v2906_v15  ;;  %2040 = vmatprep.mubr.bf16.mxu1 %v3536_v53  ;;  %v2888_v53 = vld [vmem:[%s3478_s5 + $0x2b4] ss:$28 sps:$4 sm:$0xff]  }
 0x11f   : > { %1945 = vmatpush1.bf16.msra.mxu0 %v2868_v16 }
 0x120   : > { %2573 = vmatpush3.bf16.msra.mxu1 %v2907_v17  ;;  %1946 = vmatprep.subr.bf16.mxu0 %v2876_v18 }
 0x121   : > { %2574 = vmatprep.subr.bf16.mxu1 %v2909_v19  ;;  %v690_v19 = vld [vmem:[#allocation2 + $0x20] sm:$0xff] }
 0x123   : > { %1947 = vmatpush1.bf16.msra.mxu0 %v2874_v20 }
 0x124   : > { %2575 = vmatpush3.bf16.msra.mxu1 %v2910_v21  ;;  %1948 = vmatprep.subr.bf16.mxu0 %v2882_v22 }
 0x125   : > { %2576 = vmatprep.subr.bf16.mxu1 %v2912_v23  ;;  %v691_v23 = vld [vmem:[#allocation2 + $0x28] sm:$0xff] }
 0x127   : > { %1949 = vmatpush1.bf16.msra.mxu0 %v2880_v24 }
 0x128   : > { %2577 = vmatpush3.bf16.msra.mxu1 %v2913_v25  ;;  %1950 = vmatprep.subr.bf16.mxu0 %v2888_v53 }
 0x129   : > { %2578 = vmatprep.subr.bf16.mxu1 %v2915_v26 }
 0x12b   : > { %1951 = vmatpush1.bf16.msra.mxu0 %v2886_v27 }
 0x12c   : > { %2579 = vmatpush3.bf16.msra.mxu1 %v2916_v28  ;;  %1952 = vmatprep.subr.bf16.mxu0 %v2894_v29 }
 0x12d   : > { %2580 = vmatprep.subr.bf16.mxu1 %v2918_v30 }
 0x12f   : > { %1953 = vmatpush1.bf16.msra.mxu0 %v2892_v31 }
 0x130   : > { %2581 = vmatpush3.bf16.msra.mxu1 %v2919_v32  ;;  %1954 = vmatprep.subr.bf16.mxu0 %v2900_v33  ;;  %v692_v33 = vld [vmem:[#allocation2 + $0x30] sm:$0xff] }
 0x131   : > { %2582 = vmatprep.subr.bf16.mxu1 %v2921_v34 }
 0x133   : > { %1955 = vmatpush1.bf16.msra.mxu0 %v2898_v35 }
 0x134   : > { %2583 = vmatpush3.bf16.msra.mxu1 %v2922_v36  ;;  %1956 = vmatprep.subr.bf16.mxu0 %v2905_v38 }
 0x135   : > { %2584 = vmatprep.subr.bf16.mxu1 %v2924_v39 }
 0x137   : > { %1957 = vmatpush1.bf16.msra.mxu0 %v2903_v40 }
 0x138   : > { %2585 = vmatpush3.bf16.msra.mxu1 %v2925_v41  ;;  %2601 = vmatprep.subr.bf16.mxu0 %v2986_v43  ;;  %v2115_v41 = vlaneseq (!%p2567_p13) }
 0x13a   : > { %1959 = vmatmul.mubr.bf16.vlgmr.msra.gmra.mrb[8].mxu0 %v3557_v8 }
 0x13b   : > { %2041 = vmatmul.mubr.bf16.vlgmr.msra.gmra.mrb[12].mxu1 %v3557_v8  ;;  %2602 = vmatpush3.bf16.msra.mxu0 %v2908_v42  ;;  %v2926_v8 = vld [vmem:[%s3478_s5 + $0x4e8] ss:$28 sps:$4 sm:$0xff]   ;;  %v2116_v42 = vshrl.u32 (!%p2567_p13), %v2115_v41, 7 }
 0x13c   : > { %2617 = vmatprep.mubr.msk.bf16.mxu0 %vm2987_vm0, %v2986_v43  ;;  %2603 = vmatprep.subr.bf16.mxu0 %v2986_v43 }
 0x13f   : > { %2604 = vmatpush3.bf16.msra.mxu0 %v2911_v44 }
 0x140   : > { %2605 = vmatprep.subr.bf16.mxu0 %v2986_v43 }
 0x143   : > { %2606 = vmatpush3.bf16.msra.mxu0 %v2914_v45  ;;  %v2117_v45 = vsub.s32 (!%p2567_p13), 0, %v2116_v42 }
 0x144   : > { %2607 = vmatprep.subr.bf16.mxu0 %v2986_v43 }
 0x147   : > { %2608 = vmatpush3.bf16.msra.mxu0 %v2917_v46  ;;  %v2121_v46 = vsub.s32 (!%p2567_p13), 1, %v2116_v42 }
 0x148   : > { %2609 = vmatprep.subr.bf16.mxu0 %v2986_v43 }
 0x14b   : > { %2610 = vmatpush3.bf16.msra.mxu0 %v2920_v47  ;;  %v2125_v47 = vsub.s32 (!%p2567_p13), 2, %v2116_v42 }
 0x14c   : > { %2611 = vmatprep.subr.bf16.mxu0 %v2986_v43 }
 0x14f   : > { %2612 = vmatpush3.bf16.msra.mxu0 %v2923_v48  ;;  %v2129_v48 = vsub.s32 (!%p2567_p13), 3, %v2116_v42 }
 0x150   : > { %2613 = vmatprep.subr.bf16.mxu0 %v2986_v43 }
 0x153   : > { %2614 = vmatpush3.bf16.msra.mxu0 %v2926_v8 }
 0x154   : > { %2615 = vmatprep.subr.bf16.mxu0 %v2986_v43  ;;  %v2113_v43 = vld [vmem:[%s662_s12] sm:$0xff] (!%p2567_p13) }
 0x157   : > { %2616 = vmatpush3.bf16.msra.mxu0 %v2927_v49 }
 0x15a   : > { %2618 = vmatmul.mubr.bf16.vlgmr.msra.gmra.mrb[12].mxu0 %v3518_v37 }
 0x18e   : > { %v1837_v50 = vpop.f32.mrb[0].mxu1 }
 0x18f   : > { %v1839_v51 = vpop.f32.mrb[1].mxu1 }
 0x190   : > { %v1841_v52 = vpop.f32.mrb[2].mxu1 }
 0x191   : > { %v1842_v54 = vpop.f32.mrb[3].mxu1  ;;  %v2137_v52 = vsub.s32 (!%p2567_p13), 5, %v2116_v42 }
 0x192   : > { %v2141_v54 = vsub.s32 (!%p2567_p13), 6, %v2116_v42 }
 0x1ad   : > { %v1796_v56 = vpop.f32.mrb[0].mxu0 }
 0x1ae   : > { %v1838_v3 = vadd.f32 %v1837_v50, %v1796_v56  ;;  %v1798_v58 = vpop.f32.mrb[1].mxu0  ;;  %v2122_v56 = vrot.slane (!%p2567_p13), %v2113_v43, %v2121_v46 }
 0x1af   : > { %v1840_v59 = vadd.f32 %v1839_v51, %v1798_v58  ;;  %v1800_v60 = vpop.f32.mrb[2].mxu0  ;;  %v2133_v51 = vsub.s32 (!%p2567_p13), 4, %v2116_v42 }
 0x1b0   : > { %v2088_v61 = vadd.f32 %v1838_v3, %v686_v55  ;;  %v1801_v62 = vpop.f32.mrb[3].mxu0  ;;  %v2118_v55 = vrot.slane (!%p2567_p13), %v2113_v43, %v2117_v45  ;;  %v2126_v3 = vrot.slane (!%p2567_p13), %v2113_v43, %v2125_v47 }
 0x1b1   : > { %v2089_v63 = vadd.f32 %v1840_v59, %v687_v57  ;;  %v2130_v57 = vrot.slane (!%p2567_p13), %v2113_v43, %v2129_v48  ;;  %v2138_v62 = vrot.slane (!%p2567_p13), %v2113_v43, %v2137_v52 }
 0x1b2   : > { %2095 = vst [vmem:[#allocation2] sm:$0xff] %v2088_v61  ;;  %v2134_v61 = vrot.slane (!%p2567_p13), %v2113_v43, %v2133_v51 }
 0x1b3   : > { %2096 = vst [vmem:[#allocation2 + $0x8] sm:$0xff] %v2089_v63  ;;  %v2142_v63 = vrot.slane (!%p2567_p13), %v2113_v43, %v2141_v54 }
 0x1b9   : > { %v2106_v44 = vld [vmem:[#allocation2] sm:$0xff] (!%p2567_p13) }
 0x1ba   : > { %v2107_v8 = vld [vmem:[#allocation2 + $0x8] sm:$0xff] (!%p2567_p13) }
 0x1cd   : > { %v1919_v2 = vpop.f32.mrb[4].mxu0 }
 0x1ce   : > { %v1878_v0 = vpop.f32.mrb[4].mxu1  ;;  %v1921_v6 = vpop.f32.mrb[5].mxu0 }
 0x1cf   : > { %v1920_v37 = vadd.f32 %v1919_v2, %v1878_v0  ;;  %v1880_v4 = vpop.f32.mrb[5].mxu1  ;;  %v1923_v9 = vpop.f32.mrb[6].mxu0  ;;  %v2150_v0 = vadd.f32 (!%p2567_p13), %v2118_v55, %v2106_v44 }
 0x1d0   : > { %v1922_v7 = vadd.f32 %v1921_v6, %v1880_v4  ;;  %v1882_v10 = vpop.f32.mrb[6].mxu1  ;;  %v1924_v12 = vpop.f32.mrb[7].mxu0 }
 0x1d1   : > { %v2090_v11 = vadd.f32 %v1920_v37, %v688_v1  ;;  %v1883_v13 = vpop.f32.mrb[7].mxu1  ;;  %v2151_v1 = vadd.f32 (!%p2567_p13), %v2122_v56, %v2107_v8  ;;  %2157 = vst [vmem:[%s3476_s15] sm:$0xff] (!%p2567_p13), %v2150_v0 }
 0x1d2   : > { %v2091_v14 = vadd.f32 %v1922_v7, %v689_v5 }
 0x1d3   : > { %2097 = vst [vmem:[#allocation2 + $0x10] sm:$0xff] %v2090_v11  ;;  %2158 = vst [vmem:[%s3476_s15 + $0x8] sm:$0xff] (!%p2567_p13), %v2151_v1 }
 0x1d4   : > { %2098 = vst [vmem:[#allocation2 + $0x18] sm:$0xff] %v2091_v14 }
 0x1da   : > { %v2108_v49 = vld [vmem:[#allocation2 + $0x10] sm:$0xff] (!%p2567_p13) }
 0x1db   : > { %v2109_v50 = vld [vmem:[#allocation2 + $0x18] sm:$0xff] (!%p2567_p13)  ;;  %v2152_v2 = vadd.f32 (!%p2567_p13), %v2126_v3, %v2108_v49 }
 0x1dc   : > { %v2153_v37 = vadd.f32 (!%p2567_p13), %v2130_v57, %v2109_v50 }
 0x1dd   : > { %2159 = vst [vmem:[%s3476_s15 + $0x10] sm:$0xff] (!%p2567_p13), %v2152_v2 }
 0x1de   : > { %2160 = vst [vmem:[%s3476_s15 + $0x18] sm:$0xff] (!%p2567_p13), %v2153_v37 }
 0x1ee   : > { %v2001_v15 = vpop.f32.mrb[8].mxu1 }
 0x1ef   : > { %v2003_v16 = vpop.f32.mrb[9].mxu1 }
 0x1f0   : > { %v2005_v17 = vpop.f32.mrb[10].mxu1 }
 0x1f1   : > { %v2006_v18 = vpop.f32.mrb[11].mxu1 }
 0x20d   : > { %v1960_v20 = vpop.f32.mrb[8].mxu0 }
 0x20e   : > { %v2586_v21 = vpop.f32.mrb[12].mxu1  ;;  %v2002_v22 = vadd.f32 %v2001_v15, %v1960_v20  ;;  %v1962_v24 = vpop.f32.mrb[9].mxu0 }
 0x20f   : > { %v2587_v25 = vpop.f32.mrb[13].mxu1  ;;  %v2004_v53 = vadd.f32 %v2003_v16, %v1962_v24  ;;  %v1964_v26 = vpop.f32.mrb[10].mxu0 }
 0x210   : > { %v2588_v27 = vadd.f32 %v2587_v25, %v2586_v21  ;;  %v2589_v28 = vpop.f32.mrb[14].mxu1  ;;  %v2092_v29 = vadd.f32 %v2002_v22, %v690_v19  ;;  %v1965_v30 = vpop.f32.mrb[11].mxu0 }
 0x211   : > { %v2590_v31 = vpop.f32.mrb[15].mxu1  ;;  %v2093_v32 = vadd.f32 %v2004_v53, %v691_v23 }
 0x212   : > { %2099 = vst [vmem:[#allocation2 + $0x20] sm:$0xff] %v2092_v29 }
 0x213   : > { %2100 = vst [vmem:[#allocation2 + $0x28] sm:$0xff] %v2093_v32 }
 0x219   : > { %v2110_v58 = vld [vmem:[#allocation2 + $0x20] sm:$0xff] (!%p2567_p13) }
 0x21a   : > { %v2111_v59 = vld [vmem:[#allocation2 + $0x28] sm:$0xff] (!%p2567_p13)  ;;  %v2154_v4 = vadd.f32 (!%p2567_p13), %v2134_v61, %v2110_v58 }
 0x21b   : > { %v2155_v5 = vadd.f32 (!%p2567_p13), %v2138_v62, %v2111_v59 }
 0x21c   : > { %2161 = vst [vmem:[%s3476_s15 + $0x20] sm:$0xff] (!%p2567_p13), %v2154_v4 }
 0x21d   : > { %2162 = vst [vmem:[%s3476_s15 + $0x28] sm:$0xff] (!%p2567_p13), %v2155_v5 }
 0x22c   : > { %2105 = sbr.rel (%p2567_p13) target bundleno = 573 (0x23d), region = 66 }
 0x22d   : > { %v2082_v34 = vpop.f32.mrb[12].mxu0 }
 0x22e   : > { %v2083_v35 = vadd.f32 %v2588_v27, %v2082_v34  ;;  %v2619_v36 = vpop.f32.mrb[13].mxu0 }
 0x22f   : > { %v2085_v38 = vpop.f32.mrb[14].mxu0 }
 0x230   : > { %v2094_v39 = vadd.f32 %v2083_v35, %v692_v33  ;;  %v2620_v40 = vpop.f32.mrb[15].mxu0 }
 0x232   : > { %2101 = vst [vmem:[#allocation2 + $0x30] sm:$0xff] %v2094_v39 }
 0x239   : > { %v2112_v60 = vld [vmem:[#allocation2 + $0x30] sm:$0xff] }
 0x23a   : > { %v2156_v6 = vadd.f32 %v2142_v63, %v2112_v60 }
 0x23c   : > { %2163 = vst [vmem:[%s3476_s15 + $0x30] sm:$0xff] %v2156_v6 }
 0x23d PF: > { %s13_s18 = sadd.s32 1, %s2982_s18   ;;  %s3710_s12 = smov %s2962_s13 }
 0x23e   : > { %p10_p0 = scmp.ge.s32.totalorder %s13_s18, 17   ;;  %s3711_s13 = smov %s3059_s25 }
 0x23f   : > { %s3712_s14 = smov %s2974_s16  ;;  %s3713_s15 = smov %s2978_s17 }
 0x240   : > { %s3714_s16 = smov %s3717_s19  ;;  %s3715_s17 = smov %s3721_s20 }
 0x241   :  { %12 = sbr.rel (!%p10_p0) target bundleno = 4 (0x4), region = 113 }

// kernel: autoencoder_forward.23
= control target key start
LH: loop header
LB: loop body
LE: loop exit
PB: predicated region body
PF: predicated region fallthrough
CT: control target
= control target key end

     0   :  { %s2634_s12 = smov 0   ;;  %s2636_s13 = smov 0   ;;  %s3058_s0 = inlined_call_operand.vmem [shape: bf16[768,640], index: 0, kind: input, shape index: {}]   ;;  %s3059_s1 = inlined_call_operand.vmem [shape: bf16[640,128], index: 1, kind: input, shape index: {}]   ;;  %s3060_s2 = inlined_call_operand.vmem [shape: f32[1,128], index: 2, kind: input, shape index: {}]   ;;  %s3061_s3 = inlined_call_operand.vmem [shape: f32[768,128], index: 3, kind: output, shape index: {}]  }
   0x1   :  { %s2638_s14 = smov 0  }
   0x2 LB: > { %s32_s15 = sadd.s32 1, %s2608_s13  ;;  %p1973_p0 = scmp.ge.s32.totalorder %s2612_s14, 1  ;;  %s2612_s14 = sphi %s2638_s14, %s13_s14   ;;  %s2608_s13 = sphi %s2636_s13, %s3063_s13   ;;  %s2604_s12 = sphi %s2634_s12, %s3062_s12  }
   0x3   : > { %p34_p1 = scmp.ge.s32.totalorder %s32_s15, 3  ;;  %p191_p2 = scmp.lt.s32.totalorder %s2612_s14, 4 }
   0x5   : > { %s3065_s15 = smov (%p34_p1, %s32_s15), 0  ;;  %p192_p3 = pnand %p1973_p0, %p191_p2 }
   0x6   : > { %v2438_v0 = vld [vmem:[%s3059_s1 + $0x40] sm:$0xff] (!%p192_p3)   ;;  %s1974_s18 = sshll.u32 (!%p192_p3), %s2604_s12, 5  ;;  %v2440_v2 = vld [vmem:[%s3059_s1 + $0x48] sm:$0xff] (!%p192_p3)   ;;  %v2442_v4 = vld [vmem:[%s3059_s1 + $0x50] sm:$0xff] (!%p192_p3)  }
   0x7   : > { %195 = sbr.rel (%p192_p3) target bundleno = 417 (0x1a1), region = 32  ;;  %v2439_v1 = vld [vmem:[%s3059_s1] sm:$0xff] (!%p192_p3)   ;;  %2101 = vmatprep.subr.bf16.mxu0 (!%p192_p3), %v2438_v0  ;;  %2397 = vmatprep.subr.bf16.mxu1 (!%p192_p3), %v2438_v0  ;;  %p236_p4 = scmp.lt.s32.totalorder (!%p192_p3), %s1974_s18, 95  ;;  %v2441_v3 = vld [vmem:[%s3059_s1 + $0x8] sm:$0xff] (!%p192_p3)   ;;  %v2443_v5 = vld [vmem:[%s3059_s1 + $0x10] sm:$0xff] (!%p192_p3)  }
   0x8   : > { %2102 = vmatpush3.bf16.msra.mxu0 (!%p192_p3), %v2439_v1  ;;  %2405 = vmatpush3.bf16.msra.mxu1 (!%p192_p3), %v2439_v1  ;;  %v2444_v6 = vld [vmem:[%s3059_s1 + $0x58] sm:$0xff] (!%p192_p3)   ;;  %v2446_v8 = vld [vmem:[%s3059_s1 + $0x60] sm:$0xff] (!%p192_p3)   ;;  %v2448_v10 = vld [vmem:[%s3059_s1 + $0x68] sm:$0xff] (!%p192_p3)  }
   0x9   : > { %2103 = vmatprep.subr.bf16.mxu0 (!%p192_p3), %v2440_v2  ;;  %2398 = vmatprep.subr.bf16.mxu1 (!%p192_p3), %v2440_v2  ;;  %v2445_v7 = vld [vmem:[%s3059_s1 + $0x18] sm:$0xff] (!%p192_p3)   ;;  %v2447_v9 = vld [vmem:[%s3059_s1 + $0x20] sm:$0xff] (!%p192_p3)   ;;  %v2449_v13 = vld [vmem:[%s3059_s1 + $0x28] sm:$0xff] (!%p192_p3)  }
   0xa   : > { %v2450_v14 = vld [vmem:[%s3059_s1 + $0x70] sm:$0xff] (!%p192_p3)   ;;  %v2452_v16 = vld [vmem:[%s3059_s1 + $0x78] sm:$0xff] (!%p192_p3)   ;;  %v2460_v18 = vld [vmem:[%s3059_s1 + $0xc0] sm:$0xff] (!%p192_p3)  }
   0xb   : > { %v2451_v15 = vld [vmem:[%s3059_s1 + $0x30] sm:$0xff] (!%p192_p3)   ;;  %v2453_v17 = vld [vmem:[%s3059_s1 + $0x38] sm:$0xff] (!%p192_p3)   ;;  %v2463_v19 = vld [vmem:[%s3059_s1 + $0x100] sm:$0xff] (!%p192_p3)  }
   0xc   : > { %2104 = vmatpush3.bf16.msra.mxu0 (!%p192_p3), %v2441_v3  ;;  %2406 = vmatpush3.bf16.msra.mxu1 (!%p192_p3), %v2441_v3  ;;  %v2461_v22 = vld [vmem:[%s3059_s1 + $0x80] sm:$0xff] (!%p192_p3)   ;;  %v2462_v23 = vld [vmem:[%s3059_s1 + $0xc8] sm:$0xff] (!%p192_p3)   ;;  %v2471_v29 = vld [vmem:[%s3059_s1 + $0xd0] sm:$0xff] (!%p192_p3)  }
   0xd   : > { %2105 = vmatprep.subr.bf16.mxu0 (!%p192_p3), %v2442_v4  ;;  %2399 = vmatprep.subr.bf16.mxu1 (!%p192_p3), %v2442_v4  ;;  %v2482_v26 = vld [vmem:[%s3059_s1 + $0x108] sm:$0xff] (!%p192_p3)   ;;  %v2472_v31 = vld [vmem:[%s3059_s1 + $0x90] sm:$0xff] (!%p192_p3)   ;;  %v2473_v33 = vld [vmem:[%s3059_s1 + $0xd8] sm:$0xff] (!%p192_p3)  }
   0xe   : > { %s3067_s18 = smov (!%p236_p4, %s1974_s18), 95  ;;  %v2464_v27 = vld [vmem:[%s3059_s1 + $0x88] sm:$0xff]   ;;  %v2474_v35 = vld [vmem:[%s3059_s1 + $0x98] sm:$0xff]   ;;  %v2481_v36 = vld [vmem:[%s3059_s1 + $0xe0] sm:$0xff]  }
   0xf   : > { %s2413_s4 = smul.u32 20, %s3067_s18  ;;  %v2495_v38 = vld [vmem:[%s3059_s1 + $0x110] sm:$0xff]   ;;  %v2483_v40 = vld [vmem:[%s3059_s1 + $0xa0] sm:$0xff]   ;;  %v2484_v41 = vld [vmem:[%s3059_s1 + $0xe8] sm:$0xff]   ;;  %s1977_s8 = sshll.u32 %s3067_s18, 3 }
  0x10   : > { %2106 = vmatpush3.bf16.msra.mxu0 %v2443_v5  ;;  %2407 = vmatpush3.bf16.msra.mxu1 %v2443_v5  ;;  %v2485_v44 = vld [vmem:[%s3059_s1 + $0xa8] sm:$0xff]   ;;  %v2509_v45 = vld [vmem:[%s3059_s1 + $0x118] sm:$0xff]   ;;  %v2492_v48 = vld [vmem:[%s3059_s1 + $0xf0] sm:$0xff]   ;;  %s2937_s12 = scalar_lea.vmem %s3061_s3, %s1977_s8 }
  0x11   : > { %2107 = vmatprep.subr.bf16.mxu0 %v2444_v6  ;;  %2400 = vmatprep.subr.bf16.mxu1 %v2444_v6  ;;  %s2685_s11 = scalar_lea.vmem %s3058_s0, %s2413_s4  ;;  %v2493_v49 = vld [vmem:[%s3059_s1 + $0xb0] sm:$0xff]   ;;  %v2494_v50 = vld [vmem:[%s3059_s1 + $0xf8] sm:$0xff]   ;;  %v2516_v52 = vld [vmem:[%s3059_s1 + $0x120] sm:$0xff]  }
  0x12   : > { %v2456_v11 = vld [vmem:[%s2685_s11 + $0x4] ss:$20 sps:$4 sm:$0xff]   ;;  %v2454_v20 = vld [vmem:[%s2685_s11] ss:$20 sps:$4 sm:$0xff]   ;;  %v2469_v28 = vld [vmem:[%s2685_s11 + $0x28] ss:$20 sps:$4 sm:$0xff]  }
  0x13   : > { %v2459_v12 = vld [vmem:[%s2685_s11 + $0x1e4] ss:$20 sps:$4 sm:$0xff]   ;;  %1200 = vmatprep.mubr.bf16.mxu0 %v2456_v11  ;;  %v2457_v21 = vld [vmem:[%s2685_s11 + $0x1e0] ss:$20 sps:$4 sm:$0xff]   ;;  %v2470_v30 = vld [vmem:[%s2685_s11 + $0x208] ss:$20 sps:$4 sm:$0xff]  }
  0x14   : > { %2108 = vmatpush3.bf16.msra.mxu0 %v2445_v7  ;;  %2408 = vmatpush3.bf16.msra.mxu1 %v2445_v7  ;;  %v2465_v24 = vld [vmem:[%s2685_s11 + $0x2c] ss:$20 sps:$4 sm:$0xff]   ;;  %v2475_v32 = vld [vmem:[%s2685_s11 + $0x54] ss:$20 sps:$4 sm:$0xff]   ;;  %v2479_v37 = vld [vmem:[%s2685_s11 + $0x50] ss:$20 sps:$4 sm:$0xff]  }
  0x15   : > { %2109 = vmatprep.subr.bf16.mxu0 %v2446_v8  ;;  %2401 = vmatprep.subr.bf16.mxu1 %v2446_v8  ;;  %v2467_v25 = vld [vmem:[%s2685_s11 + $0x20c] ss:$20 sps:$4 sm:$0xff]   ;;  %v2477_v34 = vld [vmem:[%s2685_s11 + $0x234] ss:$20 sps:$4 sm:$0xff]   ;;  %v2480_v39 = vld [vmem:[%s2685_s11 + $0x230] ss:$20 sps:$4 sm:$0xff]  }
  0x16   : > { %1296 = vmatprep.mubr.bf16.mxu1 %v2459_v12  ;;  %v2486_v42 = vld [vmem:[%s2685_s11 + $0x7c] ss:$20 sps:$4 sm:$0xff]   ;;  %v2490_v46 = vld [vmem:[%s2685_s11 + $0x78] ss:$20 sps:$4 sm:$0xff]   ;;  %v2502_v56 = vld [vmem:[%s2685_s11 + $0xa0] ss:$20 sps:$4 sm:$0xff]  }
  0x17   : > { %v2488_v43 = vld [vmem:[%s2685_s11 + $0x25c] ss:$20 sps:$4 sm:$0xff]   ;;  %v2491_v47 = vld [vmem:[%s2685_s11 + $0x258] ss:$20 sps:$4 sm:$0xff]   ;;  %v2505_v59 = vld [vmem:[%s2685_s11 + $0x34] ss:$20 sps:$4 sm:$0xff]  }
  0x18   : > { %2110 = vmatpush3.bf16.msra.mxu0 %v2447_v9  ;;  %2409 = vmatpush3.bf16.msra.mxu1 %v2447_v9  ;;  %v2497_v51 = vld [vmem:[%s2685_s11 + $0xa4] ss:$20 sps:$4 sm:$0xff]   ;;  %v2501_v53 = vld [vmem:[%s2685_s11 + $0xc] ss:$20 sps:$4 sm:$0xff]   ;;  %v2499_v55 = vld [vmem:[%s2685_s11 + $0x8] ss:$20 sps:$4 sm:$0xff]  }
  0x19   : > { %2111 = vmatprep.subr.bf16.mxu0 %v2448_v10  ;;  %2402 = vmatprep.subr.bf16.mxu1 %v2448_v10  ;;  %v2496_v54 = vld [vmem:[%s3059_s1 + $0xb8] sm:$0xff]   ;;  %v2529_v57 = vld [vmem:[%s3059_s1 + $0x128] sm:$0xff]   ;;  %v2536_v60 = vld [vmem:[%s3059_s1 + $0x130] sm:$0xff]  }
  0x1a   : > { %v2503_v58 = vld [vmem:[%s2685_s11 + $0xcc] ss:$20 sps:$4 sm:$0xff]   ;;  %v2507_v61 = vld [vmem:[%s2685_s11 + $0xc8] ss:$20 sps:$4 sm:$0xff]   ;;  %v2508_v62 = vld [vmem:[%s2685_s11 + $0x30] ss:$20 sps:$4 sm:$0xff]  }
  0x1b   : > { %v2510_v63 = vld [vmem:[%s2685_s11 + $0xf4] ss:$20 sps:$4 sm:$0xff]   ;;  %v2512_v0 = vld [vmem:[%s2685_s11 + $0x5c] ss:$20 sps:$4 sm:$0xff]   ;;  %v2515_v3 = vld [vmem:[%s2685_s11 + $0x58] ss:$20 sps:$4 sm:$0xff]  }
  0x1c   : > { %2112 = vmatpush3.bf16.msra.mxu0 %v2449_v13  ;;  %2410 = vmatpush3.bf16.msra.mxu1 %v2449_v13  ;;  %v2549_v1 = vld [vmem:[%s3059_s1 + $0x138] sm:$0xff]   ;;  %v2514_v2 = vld [vmem:[%s2685_s11 + $0xf0] ss:$20 sps:$4 sm:$0xff]   ;;  %v2522_v7 = vld [vmem:[%s2685_s11 + $0x80] ss:$20 sps:$4 sm:$0xff]  }
  0x1d   : > { %2113 = vmatprep.subr.bf16.mxu0 %v2450_v14  ;;  %2403 = vmatprep.subr.bf16.mxu1 %v2450_v14  ;;  %v2517_v4 = vld [vmem:[%s2685_s11 + $0x11c] ss:$20 sps:$4 sm:$0xff]   ;;  %v2519_v5 = vld [vmem:[%s2685_s11 + $0x84] ss:$20 sps:$4 sm:$0xff]   ;;  %v2525_v9 = vld [vmem:[%s2685_s11 + $0xac] ss:$20 sps:$4 sm:$0xff]  }
  0x1e   : > { %v2521_v6 = vld [vmem:[%s2685_s11 + $0x118] ss:$20 sps:$4 sm:$0xff]   ;;  %v2527_v10 = vld [vmem:[%s2685_s11 + $0x140] ss:$20 sps:$4 sm:$0xff]   ;;  %v2528_v11 = vld [vmem:[%s2685_s11 + $0xa8] ss:$20 sps:$4 sm:$0xff]  }
  0x1f   : > { %v2523_v8 = vld [vmem:[%s2685_s11 + $0x144] ss:$20 sps:$4 sm:$0xff]   ;;  %v2530_v12 = vld [vmem:[%s2685_s11 + $0x16c] ss:$20 sps:$4 sm:$0xff]   ;;  %v2532_v13 = vld [vmem:[%s2685_s11 + $0xd4] ss:$20 sps:$4 sm:$0xff]  }
  0x20   : > { %2114 = vmatpush3.bf16.msra.mxu0 %v2451_v15  ;;  %2411 = vmatpush3.bf16.msra.mxu1 %v2451_v15  ;;  %v2534_v14 = vld [vmem:[%s2685_s11 + $0x168] ss:$20 sps:$4 sm:$0xff]   ;;  %v2535_v15 = vld [vmem:[%s2685_s11 + $0xd0] ss:$20 sps:$4 sm:$0xff]  }
  0x21   : > { %2115 = vmatprep.subr.bf16.mxu0 %v2452_v16  ;;  %2404 = vmatprep.subr.bf16.mxu1 %v2452_v16  ;;  %v2537_v16 = vld [vmem:[%s2685_s11 + $0x194] ss:$20 sps:$4 sm:$0xff]  }
  0x24   : > { %2116 = vmatpush3.bf16.msra.mxu0 %v2453_v17  ;;  %2412 = vmatpush3.bf16.msra.mxu1 %v2453_v17  ;;  %v2539_v17 = vld [vmem:[%s2685_s11 + $0xfc] ss:$20 sps:$4 sm:$0xff]  }
  0x25   : > { %2213 = vmatprep.subr.bf16.mxu1 %v2460_v18  ;;  %2349 = vmatprep.subr.bf16.mxu0 %v2463_v19  ;;  %v2541_v18 = vld [vmem:[%s2685_s11 + $0x190] ss:$20 sps:$4 sm:$0xff]  }
  0x27   : > { %1201 = vmatmul.mubr.bf16.vlgmr.msra.gmra.mrb[0].mxu0 %v2454_v20  ;;  %1297 = vmatmul.mubr.bf16.vlgmr.msra.gmra.mrb[0].mxu1 %v2457_v21  ;;  %v2543_v20 = vld [vmem:[%s2685_s11 + $0x1bc] ss:$20 sps:$4 sm:$0xff]   ;;  %v2545_v21 = vld [vmem:[%s2685_s11 + $0x124] ss:$20 sps:$4 sm:$0xff]  }
  0x28   : > { %2214 = vmatpush3.bf16.msra.mxu1 %v2461_v22  ;;  %2350 = vmatpush3.bf16.msra.mxu0 %v2463_v19  ;;  %v2542_v19 = vld [vmem:[%s2685_s11 + $0xf8] ss:$20 sps:$4 sm:$0xff]  }
  0x29   : > { %2215 = vmatprep.subr.bf16.mxu1 %v2462_v23  ;;  %1208 = vmatprep.mubr.bf16.mxu0 %v2465_v24  ;;  %v2547_v22 = vld [vmem:[%s2685_s11 + $0x1b8] ss:$20 sps:$4 sm:$0xff]   ;;  %v2548_v23 = vld [vmem:[%s2685_s11 + $0x120] ss:$20 sps:$4 sm:$0xff]  }
  0x2a   : > { %1304 = vmatprep.mubr.bf16.mxu1 %v2467_v25  ;;  %2351 = vmatprep.subr.bf16.mxu0 %v2482_v26  ;;  %v2550_v24 = vld [vmem:[%s2685_s11 + $0x14c] ss:$20 sps:$4 sm:$0xff]   ;;  %v2552_v25 = vld [vmem:[%s2685_s11 + $0x10] ss:$20 sps:$4 sm:$0xff]  }
  0x2c   : > { %2216 = vmatpush3.bf16.msra.mxu1 %v2464_v27  ;;  %2352 = vmatpush3.bf16.msra.mxu0 %v2482_v26  ;;  %v2553_v26 = vld [vmem:[%s2685_s11 + $0x148] ss:$20 sps:$4 sm:$0xff]   ;;  %v2554_v27 = vld [vmem:[%s2685_s11 + $0x38] ss:$20 sps:$4 sm:$0xff]  }
  0x2d   : > { %2217 = vmatprep.subr.bf16.mxu1 %v2471_v29  ;;  %2353 = vmatprep.subr.bf16.mxu0 %v2495_v38  ;;  %v2557_v29 = vld [vmem:[%s2685_s11 + $0x60] ss:$20 sps:$4 sm:$0xff]  }
  0x2f   : > { %1209 = vmatmul.mubr.bf16.gmra.mrb[4].mxu0 %v2469_v28  ;;  %1305 = vmatmul.mubr.bf16.gmra.mrb[4].mxu1 %v2470_v30  ;;  %v2555_v28 = vld [vmem:[%s2685_s11 + $0x174] ss:$20 sps:$4 sm:$0xff]   ;;  %v2558_v30 = vld [vmem:[%s2685_s11 + $0x170] ss:$20 sps:$4 sm:$0xff]  }
  0x30   : > { %2218 = vmatpush3.bf16.msra.mxu1 %v2472_v31  ;;  %1216 = vmatprep.mubr.bf16.mxu0 %v2475_v32  ;;  %v2559_v31 = vld [vmem:[%s2685_s11 + $0x88] ss:$20 sps:$4 sm:$0xff]  }
  0x31   : > { %2219 = vmatprep.subr.bf16.mxu1 %v2473_v33  ;;  %1312 = vmatprep.mubr.bf16.mxu1 %v2477_v34  ;;  %v2560_v32 = vld [vmem:[%s2685_s11 + $0x19c] ss:$20 sps:$4 sm:$0xff]   ;;  %v2563_v34 = vld [vmem:[%s2685_s11 + $0x198] ss:$20 sps:$4 sm:$0xff]  }
  0x32   : > { %2354 = vmatpush3.bf16.msra.mxu0 %v2495_v38  ;;  %v2562_v33 = vld [vmem:[%s2685_s11 + $0xb0] ss:$20 sps:$4 sm:$0xff]   ;;  %v2568_v38 = vld [vmem:[%s2685_s11 + $0x1c0] ss:$20 sps:$4 sm:$0xff]  }
  0x33   : > { %2355 = vmatprep.subr.bf16.mxu0 %v2509_v45 }
  0x34   : > { %2220 = vmatpush3.bf16.msra.mxu1 %v2474_v35  ;;  %v2564_v35 = vld [vmem:[%s2685_s11 + $0xd8] ss:$20 sps:$4 sm:$0xff]  }
  0x35   : > { %2221 = vmatprep.subr.bf16.mxu1 %v2481_v36  ;;  %v2565_v36 = vld [vmem:[%s2685_s11 + $0x1c4] ss:$20 sps:$4 sm:$0xff]  }
  0x36   : > { %2356 = vmatpush3.bf16.msra.mxu0 %v2509_v45  ;;  %v2577_v45 = vld [vmem:[%s2685_s11 + $0x1a0] ss:$20 sps:$4 sm:$0xff]  }
  0x37   : > { %1217 = vmatmul.mubr.bf16.gmra.mrb[8].mxu0 %v2479_v37  ;;  %1313 = vmatmul.mubr.bf16.gmra.mrb[8].mxu1 %v2480_v39  ;;  %v2567_v37 = vld [vmem:[%s2685_s11 + $0x100] ss:$20 sps:$4 sm:$0xff]   ;;  %v2569_v39 = vld [vmem:[%s2685_s11 + $0x128] ss:$20 sps:$4 sm:$0xff]  }
  0x38   : > { %2222 = vmatpush3.bf16.msra.mxu1 %v2483_v40  ;;  %1224 = vmatprep.mubr.bf16.mxu0 %v2486_v42  ;;  %v2570_v40 = vld [vmem:[%s2685_s11 + $0x1ec] ss:$20 sps:$4 sm:$0xff]   ;;  %v2573_v42 = vld [vmem:[%s2685_s11 + $0x1e8] ss:$20 sps:$4 sm:$0xff]  }
  0x39   : > { %2223 = vmatprep.subr.bf16.mxu1 %v2484_v41  ;;  %1320 = vmatprep.mubr.bf16.mxu1 %v2488_v43  ;;  %v2572_v41 = vld [vmem:[%s2685_s11 + $0x150] ss:$20 sps:$4 sm:$0xff]   ;;  %v2574_v43 = vld [vmem:[%s2685_s11 + $0x178] ss:$20 sps:$4 sm:$0xff]  }
  0x3a   : > { %2357 = vmatprep.subr.bf16.mxu0 %v2516_v52 }
  0x3b   : > { %2358 = vmatpush3.bf16.msra.mxu0 %v2516_v52  ;;  %v2585_v52 = vld [vmem:[%s2685_s11 + $0x264] ss:$20 sps:$4 sm:$0xff]  }
  0x3c   : > { %2224 = vmatpush3.bf16.msra.mxu1 %v2485_v44  ;;  %2359 = vmatprep.subr.bf16.mxu0 %v2529_v57  ;;  %v2575_v44 = vld [vmem:[%s2685_s11 + $0x214] ss:$20 sps:$4 sm:$0xff]  }
  0x3d   : > { %2225 = vmatprep.subr.bf16.mxu1 %v2492_v48  ;;  %v2580_v48 = vld [vmem:[%s2685_s11 + $0x23c] ss:$20 sps:$4 sm:$0xff]  }
  0x3f   : > { %1225 = vmatmul.mubr.bf16.gmra.mrb[12].mxu0 %v2490_v46  ;;  %1321 = vmatmul.mubr.bf16.gmra.mrb[12].mxu1 %v2491_v47  ;;  %v2578_v46 = vld [vmem:[%s2685_s11 + $0x210] ss:$20 sps:$4 sm:$0xff]   ;;  %v2579_v47 = vld [vmem:[%s2685_s11 + $0x1c8] ss:$20 sps:$4 sm:$0xff]  }
  0x40   : > { %2226 = vmatpush3.bf16.msra.mxu1 %v2493_v49  ;;  %1232 = vmatprep.mubr.bf16.mxu0 %v2497_v51  ;;  %v2582_v49 = vld [vmem:[%s2685_s11 + $0x1f0] ss:$20 sps:$4 sm:$0xff]   ;;  %v2584_v51 = vld [vmem:[%s2685_s11 + $0x218] ss:$20 sps:$4 sm:$0xff]  }
  0x41   : > { %2227 = vmatprep.subr.bf16.mxu1 %v2494_v50  ;;  %1361 = vmatprep.mubr.bf16.mxu1 %v2501_v53  ;;  %v2583_v50 = vld [vmem:[%s2685_s11 + $0x238] ss:$20 sps:$4 sm:$0xff]   ;;  %v2587_v53 = vld [vmem:[%s2685_s11 + $0x240] ss:$20 sps:$4 sm:$0xff]  }
  0x42   : > { %2360 = vmatpush3.bf16.msra.mxu0 %v2529_v57 }
  0x43   : > { %2361 = vmatprep.subr.bf16.mxu0 %v2536_v60 }
  0x44   : > { %2228 = vmatpush3.bf16.msra.mxu1 %v2496_v54  ;;  %v2588_v54 = vld [vmem:[%s2685_s11 + $0x260] ss:$20 sps:$4 sm:$0xff]  }
  0x46   : > { %2362 = vmatpush3.bf16.msra.mxu0 %v2536_v60 }
  0x47   : > { %1233 = vmatmul.mubr.bf16.gmra.mrb[16].mxu0 %v2502_v56  ;;  %1362 = vmatmul.mubr.bf16.vlgmr.msra.gmra.mrb[16].mxu1 %v2499_v55  ;;  %v2589_v55 = vld [vmem:[%s2685_s11 + $0x268] ss:$20 sps:$4 sm:$0xff]  }
  0x48   : > { %1240 = vmatprep.mubr.bf16.mxu0 %v2503_v58  ;;  %1369 = vmatprep.mubr.bf16.mxu1 %v2505_v59 }
  0x49   : > { %2363 = vmatprep.subr.bf16.mxu0 %v2549_v1 }
  0x4a   : > { %2364 = vmatpush3.bf16.msra.mxu0 %v2549_v1 }
  0x4f   : > { %1241 = vmatmul.mubr.bf16.gmra.mrb[20].mxu0 %v2507_v61  ;;  %1370 = vmatmul.mubr.bf16.gmra.mrb[20].mxu1 %v2508_v62 }
  0x50   : > { %1248 = vmatprep.mubr.bf16.mxu0 %v2510_v63  ;;  %1377 = vmatprep.mubr.bf16.mxu1 %v2512_v0 }
  0x57   : > { %1249 = vmatmul.mubr.bf16.gmra.mrb[24].mxu0 %v2514_v2  ;;  %1378 = vmatmul.mubr.bf16.gmra.mrb[24].mxu1 %v2515_v3 }
  0x58   : > { %1256 = vmatprep.mubr.bf16.mxu0 %v2517_v4  ;;  %1385 = vmatprep.mubr.bf16.mxu1 %v2519_v5 }
  0x5f   : > { %1257 = vmatmul.mubr.bf16.gmra.mrb[28].mxu0 %v2521_v6  ;;  %1386 = vmatmul.mubr.bf16.gmra.mrb[28].mxu1 %v2522_v7 }
  0x60   : > { %1264 = vmatprep.mubr.bf16.mxu0 %v2523_v8  ;;  %1393 = vmatprep.mubr.bf16.mxu1 %v2525_v9 }
  0x67   : > { %1265 = vmatmul.mubr.bf16.gmra.mrb[32].mxu0 %v2527_v10  ;;  %1394 = vmatmul.mubr.bf16.gmra.mrb[32].mxu1 %v2528_v11 }
  0x68   : > { %1272 = vmatprep.mubr.bf16.mxu0 %v2530_v12  ;;  %1401 = vmatprep.mubr.bf16.mxu1 %v2532_v13 }
  0x6f   : > { %1273 = vmatmul.mubr.bf16.gmra.mrb[36].mxu0 %v2534_v14  ;;  %1402 = vmatmul.mubr.bf16.gmra.mrb[36].mxu1 %v2535_v15 }
  0x70   : > { %1280 = vmatprep.mubr.bf16.mxu0 %v2537_v16  ;;  %1409 = vmatprep.mubr.bf16.mxu1 %v2539_v17 }
  0x77   : > { %1281 = vmatmul.mubr.bf16.gmra.mrb[40].mxu0 %v2541_v18  ;;  %1410 = vmatmul.mubr.bf16.gmra.mrb[40].mxu1 %v2542_v19 }
  0x78   : > { %1288 = vmatprep.mubr.bf16.mxu0 %v2543_v20  ;;  %1417 = vmatprep.mubr.bf16.mxu1 %v2545_v21 }
  0x7f   : > { %1289 = vmatmul.mubr.bf16.gmra.mrb[44].mxu0 %v2547_v22  ;;  %1418 = vmatmul.mubr.bf16.gmra.mrb[44].mxu1 %v2548_v23 }
  0x80   : > { %1425 = vmatprep.mubr.bf16.mxu1 %v2550_v24  ;;  %2365 = vmatprep.mubr.bf16.mxu0 %v2552_v25 }
  0x87   : > { %1426 = vmatmul.mubr.bf16.gmra.mrb[48].mxu1 %v2553_v26  ;;  %2366 = vmatmul.mubr.bf16.vlgmr.msra.gmra.mrb[48].mxu0 %v2554_v27 }
  0x88   : > { %1433 = vmatprep.mubr.bf16.mxu1 %v2555_v28  ;;  %2369 = vmatprep.mubr.bf16.mxu0 %v2557_v29 }
  0x8f   : > { %1434 = vmatmul.mubr.bf16.gmra.mrb[52].mxu1 %v2558_v30  ;;  %2370 = vmatmul.mubr.bf16.gmra.mrb[52].mxu0 %v2559_v31 }
  0x90   : > { %1441 = vmatprep.mubr.bf16.mxu1 %v2560_v32  ;;  %2373 = vmatprep.mubr.bf16.mxu0 %v2562_v33 }
  0x97   : > { %1442 = vmatmul.mubr.bf16.gmra.mrb[56].mxu1 %v2563_v34  ;;  %2374 = vmatmul.mubr.bf16.gmra.mrb[56].mxu0 %v2564_v35 }
  0x98   : > { %1449 = vmatprep.mubr.bf16.mxu1 %v2565_v36  ;;  %2377 = vmatprep.mubr.bf16.mxu0 %v2567_v37 }
  0x9f   : > { %1450 = vmatmul.mubr.bf16.gmra.mrb[60].mxu1 %v2568_v38  ;;  %2378 = vmatmul.mubr.bf16.gmra.mrb[60].mxu0 %v2569_v39 }
  0xa0   : > { %1457 = vmatprep.mubr.bf16.mxu1 %v2570_v40  ;;  %2381 = vmatprep.mubr.bf16.mxu0 %v2572_v41 }
  0xa7   : > { %1458 = vmatmul.mubr.bf16.gmra.mrb[64].mxu1 %v2573_v42  ;;  %2382 = vmatmul.mubr.bf16.gmra.mrb[64].mxu0 %v2574_v43 }
  0xa8   : > { %1465 = vmatprep.mubr.bf16.mxu1 %v2575_v44  ;;  %2385 = vmatprep.mubr.bf16.mxu0 %v2577_v45 }
  0xaf   : > { %1466 = vmatmul.mubr.bf16.gmra.mrb[68].mxu1 %v2578_v46  ;;  %2386 = vmatmul.mubr.bf16.gmra.mrb[68].mxu0 %v2579_v47 }
  0xb0   : > { %1473 = vmatprep.mubr.bf16.mxu1 %v2580_v48  ;;  %2389 = vmatprep.mubr.bf16.mxu0 %v2582_v49 }
  0xb7   : > { %1474 = vmatmul.mubr.bf16.gmra.mrb[72].mxu1 %v2583_v50  ;;  %2390 = vmatmul.mubr.bf16.gmra.mrb[72].mxu0 %v2584_v51 }
  0xb8   : > { %1481 = vmatprep.mubr.bf16.mxu1 %v2585_v52  ;;  %2393 = vmatprep.mubr.bf16.mxu0 %v2587_v53 }
  0xbf   : > { %1482 = vmatmul.mubr.bf16.gmra.mrb[76].mxu1 %v2588_v54  ;;  %2394 = vmatmul.mubr.bf16.gmra.mrb[76].mxu0 %v2589_v55 }
  0xfa   : > { %v2189_v56 = vpop.f32.mrb[0].mxu1  ;;  %v2117_v57 = vpop.f32.mrb[0].mxu0 }
  0xfb   : > { %v2190_v58 = vpop.f32.mrb[1].mxu1  ;;  %v2118_v59 = vpop.f32.mrb[1].mxu0 }
  0xfc   : > { %v2860_v60 = vadd.f32 %v2190_v58, %v2189_v56  ;;  %v2192_v61 = vpop.f32.mrb[2].mxu1  ;;  %v2119_v62 = vadd.f32 %v2118_v59, %v2117_v57  ;;  %v2120_v63 = vpop.f32.mrb[2].mxu0 }
  0xfd   : > { %v2193_v0 = vpop.f32.mrb[3].mxu1  ;;  %v2121_v1 = vpop.f32.mrb[3].mxu0 }
  0xfe   : > { %v2862_v2 = vadd.f32 %v2193_v0, %v2192_v61  ;;  %v2122_v3 = vadd.f32 %v2121_v1, %v2120_v63 }
 0x102   : > { %v2195_v4 = vpop.f32.mrb[4].mxu1  ;;  %v2123_v5 = vpop.f32.mrb[4].mxu0 }
 0x103   : > { %v2196_v6 = vpop.f32.mrb[5].mxu1  ;;  %v2124_v7 = vpop.f32.mrb[5].mxu0 }
 0x104   : > { %v2864_v8 = vadd.f32 %v2196_v6, %v2195_v4  ;;  %v2198_v9 = vpop.f32.mrb[6].mxu1  ;;  %v2125_v10 = vadd.f32 %v2124_v7, %v2123_v5  ;;  %v2126_v11 = vpop.f32.mrb[6].mxu0 }
 0x105   : > { %v2199_v12 = vpop.f32.mrb[7].mxu1  ;;  %v2127_v13 = vpop.f32.mrb[7].mxu0 }
 0x106   : > { %v2866_v14 = vadd.f32 %v2199_v12, %v2198_v9  ;;  %v2128_v15 = vadd.f32 %v2127_v13, %v2126_v11 }
 0x10a   : > { %v2201_v16 = vpop.f32.mrb[8].mxu1  ;;  %v2129_v17 = vpop.f32.mrb[8].mxu0 }
 0x10b   : > { %v2202_v18 = vpop.f32.mrb[9].mxu1  ;;  %v2130_v19 = vpop.f32.mrb[9].mxu0 }
 0x10c   : > { %v2868_v20 = vadd.f32 %v2202_v18, %v2201_v16  ;;  %v2204_v21 = vpop.f32.mrb[10].mxu1  ;;  %v2131_v22 = vadd.f32 %v2130_v19, %v2129_v17  ;;  %v2132_v23 = vpop.f32.mrb[10].mxu0 }
 0x10d   : > { %v2205_v24 = vpop.f32.mrb[11].mxu1  ;;  %v2133_v25 = vpop.f32.mrb[11].mxu0 }
 0x10e   : > { %v2870_v26 = vadd.f32 %v2205_v24, %v2204_v21  ;;  %v2134_v27 = vadd.f32 %v2133_v25, %v2132_v23 }
 0x112   : > { %v2207_v28 = vpop.f32.mrb[12].mxu1  ;;  %v2135_v29 = vpop.f32.mrb[12].mxu0 }
 0x113   : > { %v2208_v30 = vpop.f32.mrb[13].mxu1  ;;  %v2136_v31 = vpop.f32.mrb[13].mxu0 }
 0x114   : > { %v2872_v32 = vadd.f32 %v2208_v30, %v2207_v28  ;;  %v2210_v33 = vpop.f32.mrb[14].mxu1  ;;  %v2137_v34 = vadd.f32 %v2136_v31, %v2135_v29  ;;  %v2138_v35 = vpop.f32.mrb[14].mxu0 }
 0x115   : > { %v2211_v36 = vpop.f32.mrb[15].mxu1  ;;  %v2139_v37 = vpop.f32.mrb[15].mxu0 }
 0x116   : > { %v2874_v38 = vadd.f32 %v2211_v36, %v2210_v33  ;;  %v2140_v39 = vadd.f32 %v2139_v37, %v2138_v35 }
 0x11a   : > { %v2229_v40 = vpop.f32.mrb[16].mxu1  ;;  %v2141_v41 = vpop.f32.mrb[16].mxu0 }
 0x11b   : > { %v2230_v42 = vpop.f32.mrb[17].mxu1  ;;  %v2142_v43 = vpop.f32.mrb[17].mxu0 }
 0x11c   : > { %v2231_v44 = vadd.f32 %v2230_v42, %v2229_v40  ;;  %v2232_v45 = vpop.f32.mrb[18].mxu1  ;;  %v2143_v46 = vadd.f32 %v2142_v43, %v2141_v41  ;;  %v2144_v47 = vpop.f32.mrb[18].mxu0 }
 0x11d   : > { %v2233_v48 = vpop.f32.mrb[19].mxu1  ;;  %v2145_v49 = vpop.f32.mrb[19].mxu0 }
 0x11e   : > { %v2234_v50 = vadd.f32 %v2233_v48, %v2232_v45  ;;  %v2146_v51 = vadd.f32 %v2145_v49, %v2144_v47  ;;  %v2876_v52 = vadd.f32 %v2231_v44, %v2119_v62 }
 0x120   : > { %v2878_v53 = vadd.f32 %v2234_v50, %v2122_v3 }
 0x122   : > { %v2235_v54 = vpop.f32.mrb[20].mxu1  ;;  %v2147_v55 = vpop.f32.mrb[20].mxu0 }
 0x123   : > { %v2236_v56 = vpop.f32.mrb[21].mxu1  ;;  %v2148_v57 = vpop.f32.mrb[21].mxu0 }
 0x124   : > { %v2237_v58 = vadd.f32 %v2236_v56, %v2235_v54  ;;  %v2238_v59 = vpop.f32.mrb[22].mxu1  ;;  %v2149_v61 = vadd.f32 %v2148_v57, %v2147_v55  ;;  %v2150_v63 = vpop.f32.mrb[22].mxu0 }
 0x125   : > { %v2239_v0 = vpop.f32.mrb[23].mxu1  ;;  %v2151_v1 = vpop.f32.mrb[23].mxu0 }
 0x126   : > { %v2240_v4 = vadd.f32 %v2239_v0, %v2238_v59  ;;  %v2152_v5 = vadd.f32 %v2151_v1, %v2150_v63  ;;  %v2880_v6 = vadd.f32 %v2237_v58, %v2125_v10 }
 0x128   : > { %v2882_v7 = vadd.f32 %v2240_v4, %v2128_v15 }
 0x12a   : > { %v2241_v62 = vpop.f32.mrb[24].mxu1  ;;  %v2153_v9 = vpop.f32.mrb[24].mxu0 }
 0x12b   : > { %v2242_v3 = vpop.f32.mrb[25].mxu1  ;;  %v2154_v11 = vpop.f32.mrb[25].mxu0 }
 0x12c   : > { %v2243_v12 = vadd.f32 %v2242_v3, %v2241_v62  ;;  %v2244_v13 = vpop.f32.mrb[26].mxu1  ;;  %v2155_v16 = vadd.f32 %v2154_v11, %v2153_v9  ;;  %v2156_v17 = vpop.f32.mrb[26].mxu0 }
 0x12d   : > { %v2245_v18 = vpop.f32.mrb[27].mxu1  ;;  %v2157_v19 = vpop.f32.mrb[27].mxu0 }
 0x12e   : > { %v2246_v21 = vadd.f32 %v2245_v18, %v2244_v13  ;;  %v2158_v23 = vadd.f32 %v2157_v19, %v2156_v17  ;;  %v2884_v24 = vadd.f32 %v2243_v12, %v2131_v22 }
 0x130   : > { %v2886_v25 = vadd.f32 %v2246_v21, %v2134_v27 }
 0x132   : > { %v2247_v10 = vpop.f32.mrb[28].mxu1  ;;  %v2159_v28 = vpop.f32.mrb[28].mxu0 }
 0x133   : > { %v2248_v15 = vpop.f32.mrb[29].mxu1  ;;  %v2160_v29 = vpop.f32.mrb[29].mxu0 }
 0x134   : > { %v2249_v30 = vadd.f32 %v2248_v15, %v2247_v10  ;;  %v2250_v31 = vpop.f32.mrb[30].mxu1  ;;  %v2161_v33 = vadd.f32 %v2160_v29, %v2159_v28  ;;  %v2162_v35 = vpop.f32.mrb[30].mxu0 }
 0x135   : > { %v2251_v36 = vpop.f32.mrb[31].mxu1  ;;  %v2163_v37 = vpop.f32.mrb[31].mxu0 }
 0x136   : > { %v2252_v40 = vadd.f32 %v2251_v36, %v2250_v31  ;;  %v2164_v41 = vadd.f32 %v2163_v37, %v2162_v35  ;;  %v2888_v42 = vadd.f32 %v2249_v30, %v2137_v34 }
 0x138   : > { %v2890_v43 = vadd.f32 %v2252_v40, %v2140_v39 }
 0x13a   : > { %v2253_v22 = vpop.f32.mrb[32].mxu1  ;;  %v2165_v44 = vpop.f32.mrb[32].mxu0 }
 0x13b   : > { %v2254_v27 = vpop.f32.mrb[33].mxu1  ;;  %v2166_v45 = vpop.f32.mrb[33].mxu0 }
 0x13c   : > { %v2255_v47 = vadd.f32 %v2254_v27, %v2253_v22  ;;  %v2256_v48 = vpop.f32.mrb[34].mxu1  ;;  %v2892_v49 = vadd.f32 %v2166_v45, %v2165_v44  ;;  %v2168_v50 = vpop.f32.mrb[34].mxu0 }
 0x13d   : > { %v2257_v54 = vpop.f32.mrb[35].mxu1  ;;  %v2169_v55 = vpop.f32.mrb[35].mxu0 }
 0x13e   : > { %v2258_v56 = vadd.f32 %v2257_v54, %v2256_v48  ;;  %v2894_v57 = vadd.f32 %v2169_v55, %v2168_v50  ;;  %v2896_v58 = vadd.f32 %v2255_v47, %v2143_v46 }
 0x140   : > { %v2898_v34 = vadd.f32 %v2258_v56, %v2146_v51 }
 0x142   : > { %v2259_v39 = vpop.f32.mrb[36].mxu1  ;;  %v2171_v59 = vpop.f32.mrb[36].mxu0 }
 0x143   : > { %v2260_v63 = vpop.f32.mrb[37].mxu1  ;;  %v2172_v0 = vpop.f32.mrb[37].mxu0 }
 0x144   : > { %v2261_v1 = vadd.f32 %v2260_v63, %v2259_v39  ;;  %v2262_v4 = vpop.f32.mrb[38].mxu1  ;;  %v2900_v62 = vadd.f32 %v2172_v0, %v2171_v59  ;;  %v2174_v9 = vpop.f32.mrb[38].mxu0  ;;  %v2927_v63 = vld [vmem:[%s3060_s2] ss:$0 sm:$0xff] }
 0x145   : > { %v2263_v3 = vpop.f32.mrb[39].mxu1  ;;  %v2175_v11 = vpop.f32.mrb[39].mxu0 }
 0x146   : > { %v2264_v12 = vadd.f32 %v2263_v3, %v2262_v4  ;;  %v2902_v13 = vadd.f32 %v2175_v11, %v2174_v9  ;;  %v2904_v17 = vadd.f32 %v2261_v1, %v2149_v61 }
 0x148   : > { %v2906_v46 = vadd.f32 %v2264_v12, %v2152_v5 }
 0x14a   : > { %v2265_v51 = vpop.f32.mrb[40].mxu1  ;;  %v2177_v18 = vpop.f32.mrb[40].mxu0 }
 0x14b   : > { %v2266_v19 = vpop.f32.mrb[41].mxu1  ;;  %v2178_v21 = vpop.f32.mrb[41].mxu0 }
 0x14c   : > { %v2267_v10 = vadd.f32 %v2266_v19, %v2265_v51  ;;  %v2268_v28 = vpop.f32.mrb[42].mxu1  ;;  %v2908_v15 = vadd.f32 %v2178_v21, %v2177_v18  ;;  %v2180_v29 = vpop.f32.mrb[42].mxu0 }
 0x14d   : > { %v2269_v30 = vpop.f32.mrb[43].mxu1  ;;  %v2181_v31 = vpop.f32.mrb[43].mxu0 }
 0x14e   : > { %v2270_v35 = vadd.f32 %v2269_v30, %v2268_v28  ;;  %v2910_v36 = vadd.f32 %v2181_v31, %v2180_v29  ;;  %v2912_v37 = vadd.f32 %v2267_v10, %v2155_v16 }
 0x150   : > { %v2914_v61 = vadd.f32 %v2270_v35, %v2158_v23 }
 0x152   : > { %v2271_v5 = vpop.f32.mrb[44].mxu1  ;;  %v2183_v40 = vpop.f32.mrb[44].mxu0 }
 0x153   : > { %v2272_v22 = vpop.f32.mrb[45].mxu1  ;;  %v2184_v44 = vpop.f32.mrb[45].mxu0 }
 0x154   : > { %v2273_v27 = vadd.f32 %v2272_v22, %v2271_v5  ;;  %v2274_v45 = vpop.f32.mrb[46].mxu1  ;;  %v2916_v47 = vadd.f32 %v2184_v44, %v2183_v40  ;;  %v2186_v48 = vpop.f32.mrb[46].mxu0 }
 0x155   : > { %v2275_v50 = vpop.f32.mrb[47].mxu1  ;;  %v2187_v54 = vpop.f32.mrb[47].mxu0 }
 0x156   : > { %v2276_v55 = vadd.f32 %v2275_v50, %v2274_v45  ;;  %v2918_v56 = vadd.f32 %v2187_v54, %v2186_v48  ;;  %v2920_v39 = vadd.f32 %v2273_v27, %v2161_v33 }
 0x158   : > { %v2922_v16 = vadd.f32 %v2276_v55, %v2164_v41 }
 0x15a   : > { %v2277_v23 = vpop.f32.mrb[48].mxu1  ;;  %v2367_v59 = vpop.f32.mrb[48].mxu0 }
 0x15b   : > { %v1533_v0 = vadd.f32 %v2367_v59, %v2880_v6  ;;  %v2278_v1 = vpop.f32.mrb[49].mxu1  ;;  %v1524_v4 = vpop.f32.mrb[49].mxu0 }
 0x15c   : > { %v2279_v9 = vadd.f32 %v2278_v1, %v2277_v23  ;;  %v1525_v3 = vadd.f32 %v1524_v4, %v2876_v52  ;;  %v2280_v11 = vpop.f32.mrb[50].mxu1  ;;  %v2368_v33 = vpop.f32.mrb[50].mxu0 }
 0x15d   : > { %v1759_v41 = vadd.f32 %v2927_v63, %v1533_v0  ;;  %v1536_v12 = vadd.f32 %v2368_v33, %v2882_v7  ;;  %v2281_v51 = vpop.f32.mrb[51].mxu1  ;;  %v1527_v18 = vpop.f32.mrb[51].mxu0 }
 0x15e   : > { %v1757_v6 = vadd.f32 %v2927_v63, %v1525_v3  ;;  %v2282_v19 = vadd.f32 %v2281_v51, %v2280_v11  ;;  %v1528_v52 = vadd.f32 %v1527_v18, %v2878_v53  ;;  %v2942_v21 = vadd.f32 %v2279_v9, %v2892_v49 }
 0x15f   : > { %v1791_v7 = vmax.f32 %v1759_v41, 0.0  ;;  %v1760_v10 = vadd.f32 %v2927_v63, %v1536_v12 }
 0x160   : > { %v1789_v28 = vmax.f32 %v1757_v6, 0.0  ;;  %v1758_v29 = vadd.f32 %v2927_v63, %v1528_v52  ;;  %v2947_v30 = vadd.f32 %v2282_v19, %v2894_v57 }
 0x161   : > { %1823 = vst [vmem:[%s2937_s12 + $0x10] sm:$0xff] %v1791_v7  ;;  %v1792_v31 = vmax.f32 %v1760_v10, 0.0 }
 0x162   : > { %1821 = vst [vmem:[%s2937_s12] sm:$0xff] %v1789_v28  ;;  %v1790_v35 = vmax.f32 %v1758_v29, 0.0  ;;  %v2283_v5 = vpop.f32.mrb[52].mxu1  ;;  %v2371_v40 = vpop.f32.mrb[52].mxu0 }
 0x163   : > { %1824 = vst [vmem:[%s2937_s12 + $0x18] sm:$0xff] %v1792_v31  ;;  %v1549_v53 = vadd.f32 %v2371_v40, %v2888_v42  ;;  %v2284_v49 = vpop.f32.mrb[53].mxu1  ;;  %v1540_v22 = vpop.f32.mrb[53].mxu0 }
 0x164   : > { %1822 = vst [vmem:[%s2937_s12 + $0x8] sm:$0xff] %v1790_v35  ;;  %v2285_v44 = vadd.f32 %v2284_v49, %v2283_v5  ;;  %v1541_v27 = vadd.f32 %v1540_v22, %v2884_v24  ;;  %v2286_v45 = vpop.f32.mrb[54].mxu1  ;;  %v2372_v48 = vpop.f32.mrb[54].mxu0 }
 0x165   : > { %v1763_v57 = vadd.f32 %v2927_v63, %v1549_v53  ;;  %v1552_v50 = vadd.f32 %v2372_v48, %v2890_v43  ;;  %v2287_v54 = vpop.f32.mrb[55].mxu1  ;;  %v1543_v55 = vpop.f32.mrb[55].mxu0 }
 0x166   : > { %v1761_v23 = vadd.f32 %v2927_v63, %v1541_v27  ;;  %v2288_v42 = vadd.f32 %v2287_v54, %v2286_v45  ;;  %v1544_v59 = vadd.f32 %v1543_v55, %v2886_v25  ;;  %v2960_v0 = vadd.f32 %v2285_v44, %v2900_v62 }
 0x167   : > { %v1795_v24 = vmax.f32 %v1763_v57, 0.0  ;;  %v1764_v1 = vadd.f32 %v2927_v63, %v1552_v50 }
 0x168   : > { %v1793_v4 = vmax.f32 %v1761_v23, 0.0  ;;  %v1762_v9 = vadd.f32 %v2927_v63, %v1544_v59  ;;  %v2965_v43 = vadd.f32 %v2288_v42, %v2902_v13 }
 0x169   : > { %1827 = vst [vmem:[%s2937_s12 + $0x30] sm:$0xff] %v1795_v24  ;;  %v1796_v3 = vmax.f32 %v1764_v1, 0.0 }
 0x16a   : > { %1825 = vst [vmem:[%s2937_s12 + $0x20] sm:$0xff] %v1793_v4  ;;  %v1794_v11 = vmax.f32 %v1762_v9, 0.0  ;;  %v2289_v33 = vpop.f32.mrb[56].mxu1  ;;  %v2375_v41 = vpop.f32.mrb[56].mxu0 }
 0x16b   : > { %1828 = vst [vmem:[%s2937_s12 + $0x38] sm:$0xff] %v1796_v3  ;;  %v1565_v25 = vadd.f32 %v2375_v41, %v2904_v17  ;;  %v2290_v62 = vpop.f32.mrb[57].mxu1  ;;  %v1556_v12 = vpop.f32.mrb[57].mxu0 }
 0x16c   : > { %1826 = vst [vmem:[%s2937_s12 + $0x28] sm:$0xff] %v1794_v11  ;;  %v2291_v51 = vadd.f32 %v2290_v62, %v2289_v33  ;;  %v1557_v18 = vadd.f32 %v1556_v12, %v2896_v58  ;;  %v2292_v6 = vpop.f32.mrb[58].mxu1  ;;  %v2376_v19 = vpop.f32.mrb[58].mxu0 }
 0x16d   : > { %v1767_v13 = vadd.f32 %v2927_v63, %v1565_v25  ;;  %v1568_v52 = vadd.f32 %v2376_v19, %v2906_v46  ;;  %v2293_v7 = vpop.f32.mrb[59].mxu1  ;;  %v1559_v10 = vpop.f32.mrb[59].mxu0 }
 0x16e   : > { %v1765_v28 = vadd.f32 %v2927_v63, %v1557_v18  ;;  %v2294_v17 = vadd.f32 %v2293_v7, %v2292_v6  ;;  %v1560_v29 = vadd.f32 %v1559_v10, %v2898_v34  ;;  %v2978_v31 = vadd.f32 %v2291_v51, %v2908_v15 }
 0x16f   : > { %v1799_v58 = vmax.f32 %v1767_v13, 0.0  ;;  %v1768_v35 = vadd.f32 %v2927_v63, %v1568_v52 }
 0x170   : > { %v1797_v5 = vmax.f32 %v1765_v28, 0.0  ;;  %v1766_v40 = vadd.f32 %v2927_v63, %v1560_v29  ;;  %v2983_v46 = vadd.f32 %v2294_v17, %v2910_v36 }
 0x171   : > { %1831 = vst [vmem:[%s2937_s12 + $0x50] sm:$0xff] %v1799_v58  ;;  %v1800_v53 = vmax.f32 %v1768_v35, 0.0 }
 0x172   : > { %1829 = vst [vmem:[%s2937_s12 + $0x40] sm:$0xff] %v1797_v5  ;;  %v1798_v49 = vmax.f32 %v1766_v40, 0.0  ;;  %v2295_v22 = vpop.f32.mrb[60].mxu1  ;;  %v2379_v44 = vpop.f32.mrb[60].mxu0 }
 0x173   : > { %1832 = vst [vmem:[%s2937_s12 + $0x58] sm:$0xff] %v1800_v53  ;;  %v1581_v34 = vadd.f32 %v2379_v44, %v2920_v39  ;;  %v2296_v15 = vpop.f32.mrb[61].mxu1  ;;  %v1572_v27 = vpop.f32.mrb[61].mxu0 }
 0x174   : > { %1830 = vst [vmem:[%s2937_s12 + $0x48] sm:$0xff] %v1798_v49  ;;  %v2297_v45 = vadd.f32 %v2296_v15, %v2295_v22  ;;  %v1573_v48 = vadd.f32 %v1572_v27, %v2912_v37  ;;  %v2298_v57 = vpop.f32.mrb[62].mxu1  ;;  %v2380_v50 = vpop.f32.mrb[62].mxu0 }
 0x175   : > { %v1771_v36 = vadd.f32 %v2927_v63, %v1581_v34  ;;  %v1584_v54 = vadd.f32 %v2380_v50, %v2922_v16  ;;  %v2299_v55 = vpop.f32.mrb[63].mxu1  ;;  %v1575_v23 = vpop.f32.mrb[63].mxu0 }
 0x176   : > { %v1769_v42 = vadd.f32 %v2927_v63, %v1573_v48  ;;  %v2300_v39 = vadd.f32 %v2299_v55, %v2298_v57  ;;  %v1576_v59 = vadd.f32 %v1575_v23, %v2914_v61  ;;  %v1452_v24 = vadd.f32 %v2297_v45, %v2916_v47 }
 0x177   : > { %v1803_v37 = vmax.f32 %v1771_v36, 0.0  ;;  %v1772_v1 = vadd.f32 %v2927_v63, %v1584_v54 }
 0x178   : > { %v1801_v4 = vmax.f32 %v1769_v42, 0.0  ;;  %v1770_v9 = vadd.f32 %v2927_v63, %v1576_v59  ;;  %v1455_v3 = vadd.f32 %v2300_v39, %v2918_v56 }
 0x179   : > { %1835 = vst [vmem:[%s2937_s12 + $0x70] sm:$0xff] %v1803_v37  ;;  %v1804_v16 = vmax.f32 %v1772_v1, 0.0 }
 0x17a   : > { %1833 = vst [vmem:[%s2937_s12 + $0x60] sm:$0xff] %v1801_v4  ;;  %v1802_v11 = vmax.f32 %v1770_v9, 0.0  ;;  %v2301_v33 = vpop.f32.mrb[64].mxu1  ;;  %v2383_v41 = vpop.f32.mrb[64].mxu0 }
 0x17b   : > { %1836 = vst [vmem:[%s2937_s12 + $0x78] sm:$0xff] %v1804_v16  ;;  %v1597_v61 = vadd.f32 %v2383_v41, %v2960_v0  ;;  %v2302_v25 = vpop.f32.mrb[65].mxu1  ;;  %v1588_v47 = vpop.f32.mrb[65].mxu0 }
 0x17c   : > { %1834 = vst [vmem:[%s2937_s12 + $0x68] sm:$0xff] %v1802_v11  ;;  %v2303_v62 = vadd.f32 %v2302_v25, %v2301_v33  ;;  %v1589_v12 = vadd.f32 %v1588_v47, %v2942_v21  ;;  %v2304_v51 = vpop.f32.mrb[66].mxu1  ;;  %v2384_v18 = vpop.f32.mrb[66].mxu0 }
 0x17d   : > { %v1775_v56 = vadd.f32 %v2927_v63, %v1597_v61  ;;  %v1600_v6 = vadd.f32 %v2384_v18, %v2965_v43  ;;  %v2305_v19 = vpop.f32.mrb[67].mxu1  ;;  %v1591_v13 = vpop.f32.mrb[67].mxu0 }
 0x17e   : > { %v1773_v52 = vadd.f32 %v2927_v63, %v1589_v12  ;;  %v2306_v0 = vadd.f32 %v2305_v19, %v2304_v51  ;;  %v1592_v7 = vadd.f32 %v1591_v13, %v2947_v30  ;;  %v1460_v10 = vadd.f32 %v2303_v62, %v2860_v60 }
 0x17f   : > { %v1807_v21 = vmax.f32 %v1775_v56, 0.0  ;;  %v1776_v28 = vadd.f32 %v2927_v63, %v1600_v6 }
 0x180   : > { %v1805_v17 = vmax.f32 %v1773_v52, 0.0  ;;  %v1774_v29 = vadd.f32 %v2927_v63, %v1592_v7  ;;  %v1463_v58 = vadd.f32 %v2306_v0, %v2862_v2 }
 0x181   : > { %1839 = vst [vmem:[%s2937_s12 + $0x90] sm:$0xff] %v1807_v21  ;;  %v1808_v43 = vmax.f32 %v1776_v28, 0.0 }
 0x182   : > { %1837 = vst [vmem:[%s2937_s12 + $0x80] sm:$0xff] %v1805_v17  ;;  %v1806_v35 = vmax.f32 %v1774_v29, 0.0  ;;  %v2307_v5 = vpop.f32.mrb[68].mxu1  ;;  %v2387_v40 = vpop.f32.mrb[68].mxu0 }
 0x183   : > { %1840 = vst [vmem:[%s2937_s12 + $0x98] sm:$0xff] %v1808_v43  ;;  %v1613_v53 = vadd.f32 %v2387_v40, %v1452_v24  ;;  %v2308_v30 = vpop.f32.mrb[69].mxu1  ;;  %v1604_v49 = vpop.f32.mrb[69].mxu0 }
 0x184   : > { %1838 = vst [vmem:[%s2937_s12 + $0x88] sm:$0xff] %v1806_v35  ;;  %v2309_v60 = vadd.f32 %v2308_v30, %v2307_v5  ;;  %v1605_v22 = vadd.f32 %v1604_v49, %v2978_v31  ;;  %v2310_v44 = vpop.f32.mrb[70].mxu1  ;;  %v2388_v34 = vpop.f32.mrb[70].mxu0 }
 0x185   : > { %v1779_v2 = vadd.f32 %v2927_v63, %v1613_v53  ;;  %v1616_v15 = vadd.f32 %v2388_v34, %v1455_v3  ;;  %v2311_v27 = vpop.f32.mrb[71].mxu1  ;;  %v1607_v45 = vpop.f32.mrb[71].mxu0 }
 0x186   : > { %v1777_v48 = vadd.f32 %v2927_v63, %v1605_v22  ;;  %v2312_v57 = vadd.f32 %v2311_v27, %v2310_v44  ;;  %v1608_v50 = vadd.f32 %v1607_v45, %v2983_v46  ;;  %v1468_v36 = vadd.f32 %v2309_v60, %v2864_v8 }
 0x187   : > { %v1811_v54 = vmax.f32 %v1779_v2, 0.0  ;;  %v1780_v31 = vadd.f32 %v2927_v63, %v1616_v15 }
 0x188   : > { %v1809_v55 = vmax.f32 %v1777_v48, 0.0  ;;  %v1778_v23 = vadd.f32 %v2927_v63, %v1608_v50  ;;  %v1471_v42 = vadd.f32 %v2312_v57, %v2866_v14 }
 0x189   : > { %1843 = vst [vmem:[%s2937_s12 + $0xb0] sm:$0xff] %v1811_v54  ;;  %v1812_v39 = vmax.f32 %v1780_v31, 0.0 }
 0x18a   : > { %1841 = vst [vmem:[%s2937_s12 + $0xa0] sm:$0xff] %v1809_v55  ;;  %v1810_v59 = vmax.f32 %v1778_v23, 0.0  ;;  %v2313_v24 = vpop.f32.mrb[72].mxu1  ;;  %v2391_v37 = vpop.f32.mrb[72].mxu0 }
 0x18b   : > { %1844 = vst [vmem:[%s2937_s12 + $0xb8] sm:$0xff] %v1812_v39  ;;  %v1629_v1 = vadd.f32 %v2391_v37, %v1468_v36  ;;  %v2314_v46 = vpop.f32.mrb[73].mxu1  ;;  %v1620_v4 = vpop.f32.mrb[73].mxu0 }
 0x18c   : > { %1842 = vst [vmem:[%s2937_s12 + $0xa8] sm:$0xff] %v1810_v59  ;;  %v2315_v8 = vadd.f32 %v2314_v46, %v2313_v24  ;;  %v1621_v9 = vadd.f32 %v1620_v4, %v1460_v10  ;;  %v2316_v3 = vpop.f32.mrb[74].mxu1  ;;  %v2392_v16 = vpop.f32.mrb[74].mxu0 }
 0x18d   : > { %v1783_v11 = vadd.f32 %v2927_v63, %v1629_v1  ;;  %v1632_v14 = vadd.f32 %v2392_v16, %v1471_v42  ;;  %v2317_v33 = vpop.f32.mrb[75].mxu1  ;;  %v1623_v41 = vpop.f32.mrb[75].mxu0 }
 0x18e   : > { %v1781_v61 = vadd.f32 %v2927_v63, %v1621_v9  ;;  %v2318_v25 = vadd.f32 %v2317_v33, %v2316_v3  ;;  %v1624_v47 = vadd.f32 %v1623_v41, %v1463_v58  ;;  %v1476_v62 = vadd.f32 %v2315_v8, %v2868_v20 }
 0x18f   : > { %v1815_v12 = vmax.f32 %v1783_v11, 0.0  ;;  %v1784_v51 = vadd.f32 %v2927_v63, %v1632_v14 }
 0x190   : > { %v1813_v18 = vmax.f32 %v1781_v61, 0.0  ;;  %v1782_v56 = vadd.f32 %v2927_v63, %v1624_v47  ;;  %v1479_v6 = vadd.f32 %v2318_v25, %v2870_v26 }
 0x191   : > { %1847 = vst [vmem:[%s2937_s12 + $0xd0] sm:$0xff] %v1815_v12  ;;  %v1816_v19 = vmax.f32 %v1784_v51, 0.0 }
 0x192   : > { %1845 = vst [vmem:[%s2937_s12 + $0xc0] sm:$0xff] %v1813_v18  ;;  %v1814_v13 = vmax.f32 %v1782_v56, 0.0  ;;  %v2319_v52 = vpop.f32.mrb[76].mxu1  ;;  %v2395_v0 = vpop.f32.mrb[76].mxu0 }
 0x193   : > { %1848 = vst [vmem:[%s2937_s12 + $0xd8] sm:$0xff] %v1816_v19  ;;  %v2320_v7 = vpop.f32.mrb[77].mxu1  ;;  %v1636_v10 = vpop.f32.mrb[77].mxu0 }
 0x194   : > { %1846 = vst [vmem:[%s2937_s12 + $0xc8] sm:$0xff] %v1814_v13  ;;  %v2321_v20 = vadd.f32 %v2320_v7, %v2319_v52  ;;  %v1637_v21 = vadd.f32 %v1636_v10, %v1476_v62  ;;  %v2322_v28 = vpop.f32.mrb[78].mxu1  ;;  %v2396_v17 = vpop.f32.mrb[78].mxu0 }
 0x195   : > { %v2323_v29 = vpop.f32.mrb[79].mxu1  ;;  %v1639_v58 = vpop.f32.mrb[79].mxu0 }
 0x196   : > { %v1484_v26 = vadd.f32 %v2321_v20, %v2872_v32  ;;  %v1785_v43 = vadd.f32 %v2927_v63, %v1637_v21  ;;  %v2324_v35 = vadd.f32 %v2323_v29, %v2322_v28  ;;  %v1640_v5 = vadd.f32 %v1639_v58, %v1479_v6 }
 0x198   : > { %v1645_v40 = vadd.f32 %v2395_v0, %v1484_v26  ;;  %v1817_v53 = vmax.f32 %v1785_v43, 0.0  ;;  %v1487_v30 = vadd.f32 %v2324_v35, %v2874_v38  ;;  %v1786_v49 = vadd.f32 %v2927_v63, %v1640_v5 }
 0x19a   : > { %v1787_v60 = vadd.f32 %v2927_v63, %v1645_v40  ;;  %1849 = vst [vmem:[%s2937_s12 + $0xe0] sm:$0xff] %v1817_v53  ;;  %v1648_v22 = vadd.f32 %v2396_v17, %v1487_v30  ;;  %v1818_v44 = vmax.f32 %v1786_v49, 0.0 }
 0x19c   : > { %v1819_v34 = vmax.f32 %v1787_v60, 0.0  ;;  %v1788_v2 = vadd.f32 %v2927_v63, %v1648_v22  ;;  %1850 = vst [vmem:[%s2937_s12 + $0xe8] sm:$0xff] %v1818_v44 }
 0x19e   : > { %1851 = vst [vmem:[%s2937_s12 + $0xf0] sm:$0xff] %v1819_v34  ;;  %v1820_v32 = vmax.f32 %v1788_v2, 0.0 }
 0x1a0   : > { %1852 = vst [vmem:[%s2937_s12 + $0xf8] sm:$0xff] %v1820_v32 }
 0x1a1 PF: > { %s13_s14 = sadd.s32 1, %s2612_s14   ;;  %s3062_s12 = smov %s2608_s13 }
 0x1a2   : > { %p10_p5 = scmp.ge.s32.totalorder %s13_s14, 5   ;;  %s3063_s13 = smov %s3065_s15 }
 0x1a4   :  { %12 = sbr.rel (!%p10_p5) target bundleno = 2 (0x2), region = 76 }

// kernel: autoencoder_forward.24
= control target key start
LH: loop header
LB: loop body
LE: loop exit
PB: predicated region body
PF: predicated region fallthrough
CT: control target
= control target key end

     0   :  { %s1929_s12 = smov 0   ;;  %s1931_s13 = smov 0   ;;  %s2189_s0 = inlined_call_operand.vmem [shape: bf16[3328,384], index: 0, kind: input, shape index: {}]   ;;  %s2190_s1 = inlined_call_operand.vmem [shape: bf16[384,128], index: 1, kind: input, shape index: {}]   ;;  %s2191_s2 = inlined_call_operand.vmem [shape: f32[1,128], index: 2, kind: input, shape index: {}]   ;;  %s2192_s3 = inlined_call_operand.vmem [shape: f32[3328,128], index: 3, kind: output, shape index: {}]  }
   0x1   :  { %s1933_s14 = smov 0  }
   0x2 LB: > { %s32_s15 = sadd.s32 1, %s1903_s13  ;;  %p1492_p0 = scmp.ge.s32.totalorder %s1907_s14, 1  ;;  %s1907_s14 = sphi %s1933_s14, %s13_s14   ;;  %s1903_s13 = sphi %s1931_s13, %s2194_s13   ;;  %s1899_s12 = sphi %s1929_s12, %s2193_s12  }
   0x3   : > { %p34_p1 = scmp.ge.s32.totalorder %s32_s15, 13  ;;  %p191_p2 = scmp.lt.s32.totalorder %s1907_s14, 14 }
   0x5   : > { %s2196_s15 = smov (%p34_p1, %s32_s15), 0  ;;  %p192_p3 = pnand %p1492_p0, %p191_p2 }
   0x6   : > { %v1797_v0 = vld [vmem:[%s2190_s1 + $0x40] sm:$0xff] (!%p192_p3)   ;;  %s1493_s18 = sshll.u32 (!%p192_p3), %s1899_s12, 5  ;;  %v1799_v2 = vld [vmem:[%s2190_s1 + $0x48] sm:$0xff] (!%p192_p3)   ;;  %v1801_v4 = vld [vmem:[%s2190_s1 + $0x50] sm:$0xff] (!%p192_p3)  }
   0x7   : > { %195 = sbr.rel (%p192_p3) target bundleno = 351 (0x15f), region = 32  ;;  %v1798_v1 = vld [vmem:[%s2190_s1] sm:$0xff] (!%p192_p3)   ;;  %1572 = vmatprep.subr.bf16.mxu0 (!%p192_p3), %v1797_v0  ;;  %1756 = vmatprep.subr.bf16.mxu1 (!%p192_p3), %v1797_v0  ;;  %p236_p4 = scmp.lt.s32.totalorder (!%p192_p3), %s1493_s18, 415  ;;  %v1800_v3 = vld [vmem:[%s2190_s1 + $0x8] sm:$0xff] (!%p192_p3)   ;;  %v1802_v5 = vld [vmem:[%s2190_s1 + $0x10] sm:$0xff] (!%p192_p3)  }
   0x8   : > { %1573 = vmatpush3.bf16.msra.mxu0 (!%p192_p3), %v1798_v1  ;;  %1764 = vmatpush3.bf16.msra.mxu1 (!%p192_p3), %v1798_v1  ;;  %v1803_v6 = vld [vmem:[%s2190_s1 + $0x58] sm:$0xff] (!%p192_p3)   ;;  %v1805_v8 = vld [vmem:[%s2190_s1 + $0x60] sm:$0xff] (!%p192_p3)   ;;  %v1807_v10 = vld [vmem:[%s2190_s1 + $0x68] sm:$0xff] (!%p192_p3)  }
   0x9   : > { %1574 = vmatprep.subr.bf16.mxu0 (!%p192_p3), %v1799_v2  ;;  %1757 = vmatprep.subr.bf16.mxu1 (!%p192_p3), %v1799_v2  ;;  %v1804_v7 = vld [vmem:[%s2190_s1 + $0x18] sm:$0xff] (!%p192_p3)   ;;  %v1806_v9 = vld [vmem:[%s2190_s1 + $0x20] sm:$0xff] (!%p192_p3)   ;;  %v1808_v13 = vld [vmem:[%s2190_s1 + $0x28] sm:$0xff] (!%p192_p3)  }
   0xa   : > { %v1809_v14 = vld [vmem:[%s2190_s1 + $0x70] sm:$0xff] (!%p192_p3)   ;;  %v1811_v16 = vld [vmem:[%s2190_s1 + $0x78] sm:$0xff] (!%p192_p3)   ;;  %v1819_v18 = vld [vmem:[%s2190_s1 + $0x80] sm:$0xff] (!%p192_p3)  }
   0xb   : > { %v1810_v15 = vld [vmem:[%s2190_s1 + $0x30] sm:$0xff] (!%p192_p3)   ;;  %v1812_v17 = vld [vmem:[%s2190_s1 + $0x38] sm:$0xff] (!%p192_p3)   ;;  %v1820_v22 = vld [vmem:[%s2190_s1 + $0x88] sm:$0xff] (!%p192_p3)  }
   0xc   : > { %1575 = vmatpush3.bf16.msra.mxu0 (!%p192_p3), %v1800_v3  ;;  %1765 = vmatpush3.bf16.msra.mxu1 (!%p192_p3), %v1800_v3  ;;  %v1827_v25 = vld [vmem:[%s2190_s1 + $0x90] sm:$0xff] (!%p192_p3)   ;;  %v1828_v27 = vld [vmem:[%s2190_s1 + $0x98] sm:$0xff] (!%p192_p3)   ;;  %v1835_v30 = vld [vmem:[%s2190_s1 + $0xa0] sm:$0xff] (!%p192_p3)  }
   0xd   : > { %1576 = vmatprep.subr.bf16.mxu0 (!%p192_p3), %v1801_v4  ;;  %1758 = vmatprep.subr.bf16.mxu1 (!%p192_p3), %v1801_v4  ;;  %v1836_v33 = vld [vmem:[%s2190_s1 + $0xa8] sm:$0xff] (!%p192_p3)   ;;  %v1843_v36 = vld [vmem:[%s2190_s1 + $0xb0] sm:$0xff] (!%p192_p3)   ;;  %v1844_v40 = vld [vmem:[%s2190_s1 + $0xb8] sm:$0xff] (!%p192_p3)  }
   0xe   : > { %s2198_s18 = smov (!%p236_p4, %s1493_s18), 415 }
   0xf   : > { %s1772_s4 = smul.u32 12, %s2198_s18  ;;  %s1496_s25 = sshll.u32 %s2198_s18, 3 }
  0x10   : > { %1577 = vmatpush3.bf16.msra.mxu0 %v1802_v5  ;;  %1766 = vmatpush3.bf16.msra.mxu1 %v1802_v5  ;;  %s2101_s28 = scalar_lea.vmem %s2192_s3, %s1496_s25 }
  0x11   : > { %1578 = vmatprep.subr.bf16.mxu0 %v1803_v6  ;;  %1759 = vmatprep.subr.bf16.mxu1 %v1803_v6  ;;  %s1980_s11 = scalar_lea.vmem %s2189_s0, %s1772_s4 }
  0x12   : > { %v1815_v11 = vld [vmem:[%s1980_s11 + $0x4] ss:$12 sps:$4 sm:$0xff]   ;;  %v1813_v19 = vld [vmem:[%s1980_s11] ss:$12 sps:$4 sm:$0xff]   ;;  %v1821_v21 = vld [vmem:[%s1980_s11 + $0x1c] ss:$12 sps:$4 sm:$0xff]  }
  0x13   : > { %v1818_v12 = vld [vmem:[%s1980_s11 + $0x124] ss:$12 sps:$4 sm:$0xff]   ;;  %880 = vmatprep.mubr.bf16.mxu0 %v1815_v11  ;;  %v1816_v20 = vld [vmem:[%s1980_s11 + $0x120] ss:$12 sps:$4 sm:$0xff]   ;;  %v1823_v23 = vld [vmem:[%s1980_s11 + $0x13c] ss:$12 sps:$4 sm:$0xff]  }
  0x14   : > { %1579 = vmatpush3.bf16.msra.mxu0 %v1804_v7  ;;  %1767 = vmatpush3.bf16.msra.mxu1 %v1804_v7  ;;  %v1825_v24 = vld [vmem:[%s1980_s11 + $0x18] ss:$12 sps:$4 sm:$0xff]   ;;  %v1829_v28 = vld [vmem:[%s1980_s11 + $0x34] ss:$12 sps:$4 sm:$0xff]   ;;  %v1833_v31 = vld [vmem:[%s1980_s11 + $0x30] ss:$12 sps:$4 sm:$0xff]  }
  0x15   : > { %1580 = vmatprep.subr.bf16.mxu0 %v1805_v8  ;;  %1760 = vmatprep.subr.bf16.mxu1 %v1805_v8  ;;  %v1826_v26 = vld [vmem:[%s1980_s11 + $0x138] ss:$12 sps:$4 sm:$0xff]   ;;  %v1831_v29 = vld [vmem:[%s1980_s11 + $0x154] ss:$12 sps:$4 sm:$0xff]   ;;  %v1834_v32 = vld [vmem:[%s1980_s11 + $0x150] ss:$12 sps:$4 sm:$0xff]  }
  0x16   : > { %976 = vmatprep.mubr.bf16.mxu1 %v1818_v12  ;;  %v1837_v34 = vld [vmem:[%s1980_s11 + $0x4c] ss:$12 sps:$4 sm:$0xff]   ;;  %v1841_v37 = vld [vmem:[%s1980_s11 + $0x48] ss:$12 sps:$4 sm:$0xff]   ;;  %v1845_v39 = vld [vmem:[%s1980_s11 + $0x64] ss:$12 sps:$4 sm:$0xff]  }
  0x17   : > { %v1839_v35 = vld [vmem:[%s1980_s11 + $0x16c] ss:$12 sps:$4 sm:$0xff]   ;;  %v1842_v38 = vld [vmem:[%s1980_s11 + $0x168] ss:$12 sps:$4 sm:$0xff]   ;;  %v1854_v47 = vld [vmem:[%s1980_s11 + $0x50] ss:$12 sps:$4 sm:$0xff]  }
  0x18   : > { %1581 = vmatpush3.bf16.msra.mxu0 %v1806_v9  ;;  %1768 = vmatpush3.bf16.msra.mxu1 %v1806_v9  ;;  %v1847_v41 = vld [vmem:[%s1980_s11 + $0x8] ss:$12 sps:$4 sm:$0xff]   ;;  %v1848_v42 = vld [vmem:[%s1980_s11 + $0x60] ss:$12 sps:$4 sm:$0xff]   ;;  %v1852_v45 = vld [vmem:[%s1980_s11 + $0x38] ss:$12 sps:$4 sm:$0xff]  }
  0x19   : > { %1582 = vmatprep.subr.bf16.mxu0 %v1807_v10  ;;  %1761 = vmatprep.subr.bf16.mxu1 %v1807_v10  ;;  %v1849_v43 = vld [vmem:[%s1980_s11 + $0x20] ss:$12 sps:$4 sm:$0xff]   ;;  %v1850_v44 = vld [vmem:[%s1980_s11 + $0x7c] ss:$12 sps:$4 sm:$0xff]   ;;  %v1853_v46 = vld [vmem:[%s1980_s11 + $0x78] ss:$12 sps:$4 sm:$0xff]  }
  0x1a   : > { %v1855_v48 = vld [vmem:[%s1980_s11 + $0x94] ss:$12 sps:$4 sm:$0xff]   ;;  %v1858_v50 = vld [vmem:[%s1980_s11 + $0x90] ss:$12 sps:$4 sm:$0xff]   ;;  %v1860_v52 = vld [vmem:[%s1980_s11 + $0xac] ss:$12 sps:$4 sm:$0xff]  }
  0x1b   : > { %v1857_v49 = vld [vmem:[%s1980_s11 + $0x68] ss:$12 sps:$4 sm:$0xff]   ;;  %v1859_v51 = vld [vmem:[%s1980_s11 + $0x80] ss:$12 sps:$4 sm:$0xff]   ;;  %v1862_v53 = vld [vmem:[%s1980_s11 + $0x98] ss:$12 sps:$4 sm:$0xff]  }
  0x1c   : > { %1583 = vmatpush3.bf16.msra.mxu0 %v1808_v13  ;;  %1769 = vmatpush3.bf16.msra.mxu1 %v1808_v13  ;;  %v1863_v54 = vld [vmem:[%s1980_s11 + $0xa8] ss:$12 sps:$4 sm:$0xff]   ;;  %v1864_v55 = vld [vmem:[%s1980_s11 + $0xb0] ss:$12 sps:$4 sm:$0xff]   ;;  %v1868_v58 = vld [vmem:[%s1980_s11 + $0xc0] ss:$12 sps:$4 sm:$0xff]  }
  0x1d   : > { %1584 = vmatprep.subr.bf16.mxu0 %v1809_v14  ;;  %1762 = vmatprep.subr.bf16.mxu1 %v1809_v14  ;;  %v1865_v56 = vld [vmem:[%s1980_s11 + $0xc4] ss:$12 sps:$4 sm:$0xff]   ;;  %v1867_v57 = vld [vmem:[%s1980_s11 + $0xc8] ss:$12 sps:$4 sm:$0xff]   ;;  %v1869_v59 = vld [vmem:[%s1980_s11 + $0xe0] ss:$12 sps:$4 sm:$0xff]  }
  0x1e   : > { %v1870_v60 = vld [vmem:[%s1980_s11 + $0xdc] ss:$12 sps:$4 sm:$0xff]   ;;  %v1872_v61 = vld [vmem:[%s1980_s11 + $0xf8] ss:$12 sps:$4 sm:$0xff]   ;;  %v1875_v0 = vld [vmem:[%s1980_s11 + $0xf4] ss:$12 sps:$4 sm:$0xff]  }
  0x1f   : > { %v1873_v62 = vld [vmem:[%s1980_s11 + $0xd8] ss:$12 sps:$4 sm:$0xff]   ;;  %v1874_v63 = vld [vmem:[%s1980_s11 + $0x110] ss:$12 sps:$4 sm:$0xff]   ;;  %v1877_v1 = vld [vmem:[%s1980_s11 + $0x128] ss:$12 sps:$4 sm:$0xff]  }
  0x20   : > { %1585 = vmatpush3.bf16.msra.mxu0 %v1810_v15  ;;  %1770 = vmatpush3.bf16.msra.mxu1 %v1810_v15  ;;  %v1878_v2 = vld [vmem:[%s1980_s11 + $0xf0] ss:$12 sps:$4 sm:$0xff]   ;;  %v1879_v3 = vld [vmem:[%s1980_s11 + $0x140] ss:$12 sps:$4 sm:$0xff]   ;;  %v1882_v5 = vld [vmem:[%s1980_s11 + $0x158] ss:$12 sps:$4 sm:$0xff]  }
  0x21   : > { %1586 = vmatprep.subr.bf16.mxu0 %v1811_v16  ;;  %1763 = vmatprep.subr.bf16.mxu1 %v1811_v16  ;;  %v1880_v4 = vld [vmem:[%s1980_s11 + $0x10c] ss:$12 sps:$4 sm:$0xff]   ;;  %v1883_v6 = vld [vmem:[%s1980_s11 + $0x108] ss:$12 sps:$4 sm:$0xff]   ;;  %v1884_v7 = vld [vmem:[%s1980_s11 + $0x170] ss:$12 sps:$4 sm:$0xff]  }
  0x24   : > { %1587 = vmatpush3.bf16.msra.mxu0 %v1812_v17  ;;  %1771 = vmatpush3.bf16.msra.mxu1 %v1812_v17 }
  0x25   : > { %1708 = vmatprep.subr.bf16.mxu1 %v1819_v18 }
  0x27   : > { %881 = vmatmul.mubr.bf16.vlgmr.msra.gmra.mrb[0].mxu0 %v1813_v19  ;;  %977 = vmatmul.mubr.bf16.vlgmr.msra.gmra.mrb[0].mxu1 %v1816_v20 }
  0x28   : > { %1709 = vmatpush3.bf16.msra.mxu1 %v1819_v18  ;;  %888 = vmatprep.mubr.bf16.mxu0 %v1821_v21 }
  0x29   : > { %1710 = vmatprep.subr.bf16.mxu1 %v1820_v22  ;;  %984 = vmatprep.mubr.bf16.mxu1 %v1823_v23 }
  0x2c   : > { %1711 = vmatpush3.bf16.msra.mxu1 %v1820_v22 }
  0x2d   : > { %1712 = vmatprep.subr.bf16.mxu1 %v1827_v25 }
  0x2f   : > { %889 = vmatmul.mubr.bf16.gmra.mrb[4].mxu0 %v1825_v24  ;;  %985 = vmatmul.mubr.bf16.gmra.mrb[4].mxu1 %v1826_v26 }
  0x30   : > { %1713 = vmatpush3.bf16.msra.mxu1 %v1827_v25  ;;  %896 = vmatprep.mubr.bf16.mxu0 %v1829_v28 }
  0x31   : > { %1714 = vmatprep.subr.bf16.mxu1 %v1828_v27  ;;  %992 = vmatprep.mubr.bf16.mxu1 %v1831_v29 }
  0x34   : > { %1715 = vmatpush3.bf16.msra.mxu1 %v1828_v27 }
  0x35   : > { %1716 = vmatprep.subr.bf16.mxu1 %v1835_v30 }
  0x37   : > { %897 = vmatmul.mubr.bf16.gmra.mrb[8].mxu0 %v1833_v31  ;;  %993 = vmatmul.mubr.bf16.gmra.mrb[8].mxu1 %v1834_v32 }
  0x38   : > { %1717 = vmatpush3.bf16.msra.mxu1 %v1835_v30  ;;  %904 = vmatprep.mubr.bf16.mxu0 %v1837_v34 }
  0x39   : > { %1718 = vmatprep.subr.bf16.mxu1 %v1836_v33  ;;  %1000 = vmatprep.mubr.bf16.mxu1 %v1839_v35 }
  0x3c   : > { %1719 = vmatpush3.bf16.msra.mxu1 %v1836_v33 }
  0x3d   : > { %1720 = vmatprep.subr.bf16.mxu1 %v1843_v36 }
  0x3f   : > { %905 = vmatmul.mubr.bf16.gmra.mrb[12].mxu0 %v1841_v37  ;;  %1001 = vmatmul.mubr.bf16.gmra.mrb[12].mxu1 %v1842_v38 }
  0x40   : > { %1721 = vmatpush3.bf16.msra.mxu1 %v1843_v36  ;;  %912 = vmatprep.mubr.bf16.mxu0 %v1845_v39 }
  0x41   : > { %1722 = vmatprep.subr.bf16.mxu1 %v1844_v40  ;;  %1724 = vmatprep.mubr.bf16.mxu1 %v1847_v41 }
  0x44   : > { %1723 = vmatpush3.bf16.msra.mxu1 %v1844_v40 }
  0x47   : > { %913 = vmatmul.mubr.bf16.gmra.mrb[16].mxu0 %v1848_v42  ;;  %1725 = vmatmul.mubr.bf16.vlgmr.msra.gmra.mrb[16].mxu1 %v1849_v43 }
  0x48   : > { %920 = vmatprep.mubr.bf16.mxu0 %v1850_v44  ;;  %1728 = vmatprep.mubr.bf16.mxu1 %v1852_v45 }
  0x4f   : > { %921 = vmatmul.mubr.bf16.gmra.mrb[20].mxu0 %v1853_v46  ;;  %1729 = vmatmul.mubr.bf16.gmra.mrb[20].mxu1 %v1854_v47 }
  0x50   : > { %928 = vmatprep.mubr.bf16.mxu0 %v1855_v48  ;;  %1732 = vmatprep.mubr.bf16.mxu1 %v1857_v49 }
  0x57   : > { %929 = vmatmul.mubr.bf16.gmra.mrb[24].mxu0 %v1858_v50  ;;  %1733 = vmatmul.mubr.bf16.gmra.mrb[24].mxu1 %v1859_v51 }
  0x58   : > { %936 = vmatprep.mubr.bf16.mxu0 %v1860_v52  ;;  %1736 = vmatprep.mubr.bf16.mxu1 %v1862_v53 }
  0x5f   : > { %937 = vmatmul.mubr.bf16.gmra.mrb[28].mxu0 %v1863_v54  ;;  %1737 = vmatmul.mubr.bf16.gmra.mrb[28].mxu1 %v1864_v55 }
  0x60   : > { %944 = vmatprep.mubr.bf16.mxu0 %v1865_v56  ;;  %1740 = vmatprep.mubr.bf16.mxu1 %v1867_v57 }
  0x67   : > { %945 = vmatmul.mubr.bf16.gmra.mrb[32].mxu0 %v1868_v58  ;;  %1741 = vmatmul.mubr.bf16.gmra.mrb[32].mxu1 %v1869_v59  ;;  %v2094_v58 = vld [vmem:[%s2191_s2] ss:$0 sm:$0xff] }
  0x68   : > { %952 = vmatprep.mubr.bf16.mxu0 %v1870_v60  ;;  %1744 = vmatprep.mubr.bf16.mxu1 %v1872_v61 }
  0x6f   : > { %953 = vmatmul.mubr.bf16.gmra.mrb[36].mxu0 %v1873_v62  ;;  %1745 = vmatmul.mubr.bf16.gmra.mrb[36].mxu1 %v1874_v63 }
  0x70   : > { %960 = vmatprep.mubr.bf16.mxu0 %v1875_v0  ;;  %1748 = vmatprep.mubr.bf16.mxu1 %v1877_v1 }
  0x77   : > { %961 = vmatmul.mubr.bf16.gmra.mrb[40].mxu0 %v1878_v2  ;;  %1749 = vmatmul.mubr.bf16.gmra.mrb[40].mxu1 %v1879_v3 }
  0x78   : > { %968 = vmatprep.mubr.bf16.mxu0 %v1880_v4  ;;  %1752 = vmatprep.mubr.bf16.mxu1 %v1882_v5 }
  0x7f   : > { %969 = vmatmul.mubr.bf16.gmra.mrb[44].mxu0 %v1883_v6  ;;  %1753 = vmatmul.mubr.bf16.gmra.mrb[44].mxu1 %v1884_v7 }
  0xfa   : > { %v1588_v8 = vpop.f32.mrb[0].mxu0  ;;  %v1660_v9 = vpop.f32.mrb[0].mxu1 }
  0xfb   : > { %v1589_v10 = vpop.f32.mrb[1].mxu0  ;;  %v1661_v11 = vpop.f32.mrb[1].mxu1 }
  0xfc   : > { %v1590_v12 = vadd.f32 %v1589_v10, %v1588_v8  ;;  %v2075_v13 = vadd.f32 %v1661_v11, %v1660_v9  ;;  %v1591_v14 = vpop.f32.mrb[2].mxu0  ;;  %v1663_v15 = vpop.f32.mrb[2].mxu1 }
  0xfd   : > { %v1592_v16 = vpop.f32.mrb[3].mxu0  ;;  %v1664_v17 = vpop.f32.mrb[3].mxu1 }
  0xfe   : > { %v1593_v18 = vadd.f32 %v1592_v16, %v1591_v14  ;;  %v2077_v19 = vadd.f32 %v1664_v17, %v1663_v15 }
 0x102   : > { %v1594_v20 = vpop.f32.mrb[4].mxu0  ;;  %v1666_v21 = vpop.f32.mrb[4].mxu1 }
 0x103   : > { %v1595_v22 = vpop.f32.mrb[5].mxu0  ;;  %v1667_v23 = vpop.f32.mrb[5].mxu1 }
 0x104   : > { %v1596_v24 = vadd.f32 %v1595_v22, %v1594_v20  ;;  %v2079_v25 = vadd.f32 %v1667_v23, %v1666_v21  ;;  %v1597_v26 = vpop.f32.mrb[6].mxu0  ;;  %v1669_v27 = vpop.f32.mrb[6].mxu1 }
 0x105   : > { %v1598_v28 = vpop.f32.mrb[7].mxu0  ;;  %v1670_v29 = vpop.f32.mrb[7].mxu1 }
 0x106   : > { %v1599_v30 = vadd.f32 %v1598_v28, %v1597_v26  ;;  %v2081_v31 = vadd.f32 %v1670_v29, %v1669_v27 }
 0x10a   : > { %v1600_v32 = vpop.f32.mrb[8].mxu0  ;;  %v1672_v33 = vpop.f32.mrb[8].mxu1 }
 0x10b   : > { %v1601_v34 = vpop.f32.mrb[9].mxu0  ;;  %v1673_v35 = vpop.f32.mrb[9].mxu1 }
 0x10c   : > { %v1602_v36 = vadd.f32 %v1601_v34, %v1600_v32  ;;  %v2083_v37 = vadd.f32 %v1673_v35, %v1672_v33  ;;  %v1603_v38 = vpop.f32.mrb[10].mxu0  ;;  %v1675_v39 = vpop.f32.mrb[10].mxu1 }
 0x10d   : > { %v1604_v40 = vpop.f32.mrb[11].mxu0  ;;  %v1676_v41 = vpop.f32.mrb[11].mxu1 }
 0x10e   : > { %v1605_v42 = vadd.f32 %v1604_v40, %v1603_v38  ;;  %v2085_v43 = vadd.f32 %v1676_v41, %v1675_v39 }
 0x112   : > { %v1606_v44 = vpop.f32.mrb[12].mxu0  ;;  %v1678_v45 = vpop.f32.mrb[12].mxu1 }
 0x113   : > { %v1607_v46 = vpop.f32.mrb[13].mxu0  ;;  %v1679_v47 = vpop.f32.mrb[13].mxu1 }
 0x114   : > { %v1608_v48 = vadd.f32 %v1607_v46, %v1606_v44  ;;  %v2087_v49 = vadd.f32 %v1679_v47, %v1678_v45  ;;  %v1609_v50 = vpop.f32.mrb[14].mxu0  ;;  %v1681_v51 = vpop.f32.mrb[14].mxu1 }
 0x115   : > { %v1610_v52 = vpop.f32.mrb[15].mxu0  ;;  %v1682_v53 = vpop.f32.mrb[15].mxu1 }
 0x116   : > { %v1611_v54 = vadd.f32 %v1610_v52, %v1609_v50  ;;  %v2089_v55 = vadd.f32 %v1682_v53, %v1681_v51 }
 0x11a   : > { %v1612_v56 = vpop.f32.mrb[16].mxu0  ;;  %v1726_v57 = vpop.f32.mrb[16].mxu1 }
 0x11b   : > { %v1052_v59 = vadd.f32 %v1726_v57, %v1596_v24  ;;  %v1613_v60 = vpop.f32.mrb[17].mxu0  ;;  %v1043_v61 = vpop.f32.mrb[17].mxu1 }
 0x11c   : > { %v1614_v62 = vadd.f32 %v1613_v60, %v1612_v56  ;;  %v1044_v63 = vadd.f32 %v1590_v12, %v1043_v61  ;;  %v1615_v0 = vpop.f32.mrb[18].mxu0  ;;  %v1727_v1 = vpop.f32.mrb[18].mxu1 }
 0x11d   : > { %v1278_v2 = vadd.f32 %v2094_v58, %v1052_v59  ;;  %v1055_v3 = vadd.f32 %v1727_v1, %v1599_v30  ;;  %v1616_v4 = vpop.f32.mrb[19].mxu0  ;;  %v1046_v5 = vpop.f32.mrb[19].mxu1 }
 0x11e   : > { %v1276_v6 = vadd.f32 %v2094_v58, %v1044_v63  ;;  %v1617_v7 = vadd.f32 %v1616_v4, %v1615_v0  ;;  %v1047_v8 = vadd.f32 %v1593_v18, %v1046_v5 }
 0x11f   : > { %v1310_v9 = vmax.f32 %v1278_v2, 0.0  ;;  %v1279_v10 = vadd.f32 %v2094_v58, %v1055_v3 }
 0x120   : > { %v1308_v11 = vmax.f32 %v1276_v6, 0.0  ;;  %v1277_v12 = vadd.f32 %v2094_v58, %v1047_v8 }
 0x121   : > { %1342 = vst [vmem:[%s2101_s28 + $0x10] sm:$0xff] %v1310_v9  ;;  %v1311_v14 = vmax.f32 %v1279_v10, 0.0 }
 0x122   : > { %1340 = vst [vmem:[%s2101_s28] sm:$0xff] %v1308_v11  ;;  %v1309_v15 = vmax.f32 %v1277_v12, 0.0  ;;  %v1618_v16 = vpop.f32.mrb[20].mxu0  ;;  %v1730_v17 = vpop.f32.mrb[20].mxu1 }
 0x123   : > { %1343 = vst [vmem:[%s2101_s28 + $0x18] sm:$0xff] %v1311_v14  ;;  %v1068_v20 = vadd.f32 %v1730_v17, %v1608_v48  ;;  %v1619_v21 = vpop.f32.mrb[21].mxu0  ;;  %v1059_v22 = vpop.f32.mrb[21].mxu1 }
 0x124   : > { %1341 = vst [vmem:[%s2101_s28 + $0x8] sm:$0xff] %v1309_v15  ;;  %v1620_v23 = vadd.f32 %v1619_v21, %v1618_v16  ;;  %v1060_v18 = vadd.f32 %v1602_v36, %v1059_v22  ;;  %v1621_v24 = vpop.f32.mrb[22].mxu0  ;;  %v1731_v26 = vpop.f32.mrb[22].mxu1 }
 0x125   : > { %v1282_v27 = vadd.f32 %v2094_v58, %v1068_v20  ;;  %v1071_v28 = vadd.f32 %v1731_v26, %v1611_v54  ;;  %v1622_v29 = vpop.f32.mrb[23].mxu0  ;;  %v1062_v30 = vpop.f32.mrb[23].mxu1 }
 0x126   : > { %v1280_v32 = vadd.f32 %v2094_v58, %v1060_v18  ;;  %v1623_v33 = vadd.f32 %v1622_v29, %v1621_v24  ;;  %v1063_v34 = vadd.f32 %v1605_v42, %v1062_v30 }
 0x127   : > { %v1314_v35 = vmax.f32 %v1282_v27, 0.0  ;;  %v1283_v38 = vadd.f32 %v2094_v58, %v1071_v28 }
 0x128   : > { %v1312_v39 = vmax.f32 %v1280_v32, 0.0  ;;  %v1281_v36 = vadd.f32 %v2094_v58, %v1063_v34 }
 0x129   : > { %1346 = vst [vmem:[%s2101_s28 + $0x30] sm:$0xff] %v1314_v35  ;;  %v1315_v40 = vmax.f32 %v1283_v38, 0.0 }
 0x12a   : > { %1344 = vst [vmem:[%s2101_s28 + $0x20] sm:$0xff] %v1312_v39  ;;  %v1313_v41 = vmax.f32 %v1281_v36, 0.0  ;;  %v1624_v44 = vpop.f32.mrb[24].mxu0  ;;  %v1734_v45 = vpop.f32.mrb[24].mxu1 }
 0x12b   : > { %1347 = vst [vmem:[%s2101_s28 + $0x38] sm:$0xff] %v1315_v40  ;;  %v1084_v46 = vadd.f32 %v1734_v45, %v1620_v23  ;;  %v1625_v47 = vpop.f32.mrb[25].mxu0  ;;  %v1075_v48 = vpop.f32.mrb[25].mxu1 }
 0x12c   : > { %1345 = vst [vmem:[%s2101_s28 + $0x28] sm:$0xff] %v1313_v41  ;;  %v1626_v50 = vadd.f32 %v1625_v47, %v1624_v44  ;;  %v1076_v42 = vadd.f32 %v1614_v62, %v1075_v48  ;;  %v1627_v51 = vpop.f32.mrb[26].mxu0  ;;  %v1735_v52 = vpop.f32.mrb[26].mxu1 }
 0x12d   : > { %v1286_v53 = vadd.f32 %v2094_v58, %v1084_v46  ;;  %v1087_v54 = vadd.f32 %v1735_v52, %v1623_v33  ;;  %v1628_v56 = vpop.f32.mrb[27].mxu0  ;;  %v1078_v57 = vpop.f32.mrb[27].mxu1 }
 0x12e   : > { %v1284_v59 = vadd.f32 %v2094_v58, %v1076_v42  ;;  %v1629_v60 = vadd.f32 %v1628_v56, %v1627_v51  ;;  %v1079_v61 = vadd.f32 %v1617_v7, %v1078_v57 }
 0x12f   : > { %v1318_v63 = vmax.f32 %v1286_v53, 0.0  ;;  %v1287_v0 = vadd.f32 %v2094_v58, %v1087_v54 }
 0x130   : > { %v1316_v1 = vmax.f32 %v1284_v59, 0.0  ;;  %v1285_v62 = vadd.f32 %v2094_v58, %v1079_v61 }
 0x131   : > { %1350 = vst [vmem:[%s2101_s28 + $0x50] sm:$0xff] %v1318_v63  ;;  %v1319_v2 = vmax.f32 %v1287_v0, 0.0 }
 0x132   : > { %1348 = vst [vmem:[%s2101_s28 + $0x40] sm:$0xff] %v1316_v1  ;;  %v1317_v3 = vmax.f32 %v1285_v62, 0.0  ;;  %v1630_v4 = vpop.f32.mrb[28].mxu0  ;;  %v1738_v5 = vpop.f32.mrb[28].mxu1 }
 0x133   : > { %1351 = vst [vmem:[%s2101_s28 + $0x58] sm:$0xff] %v1319_v2  ;;  %v1631_v6 = vpop.f32.mrb[29].mxu0  ;;  %v1091_v8 = vpop.f32.mrb[29].mxu1 }
 0x134   : > { %1349 = vst [vmem:[%s2101_s28 + $0x48] sm:$0xff] %v1317_v3  ;;  %v1632_v9 = vadd.f32 %v1631_v6, %v1630_v4  ;;  %v1092_v10 = vadd.f32 %v1626_v50, %v1091_v8  ;;  %v1633_v7 = vpop.f32.mrb[30].mxu0  ;;  %v1739_v11 = vpop.f32.mrb[30].mxu1 }
 0x135   : > { %v1634_v12 = vpop.f32.mrb[31].mxu0  ;;  %v1094_v14 = vpop.f32.mrb[31].mxu1 }
 0x136   : > { %v1100_v15 = vadd.f32 %v1738_v5, %v1632_v9  ;;  %v1288_v16 = vadd.f32 %v2094_v58, %v1092_v10  ;;  %v1635_v17 = vadd.f32 %v1634_v12, %v1633_v7  ;;  %v1095_v20 = vadd.f32 %v1629_v60, %v1094_v14 }
 0x138   : > { %v1290_v21 = vadd.f32 %v2094_v58, %v1100_v15  ;;  %v1320_v22 = vmax.f32 %v1288_v16, 0.0  ;;  %v1103_v23 = vadd.f32 %v1739_v11, %v1635_v17  ;;  %v1289_v18 = vadd.f32 %v2094_v58, %v1095_v20 }
 0x13a   : > { %v1322_v24 = vmax.f32 %v1290_v21, 0.0  ;;  %1352 = vst [vmem:[%s2101_s28 + $0x60] sm:$0xff] %v1320_v22  ;;  %v1291_v26 = vadd.f32 %v2094_v58, %v1103_v23  ;;  %v1321_v27 = vmax.f32 %v1289_v18, 0.0  ;;  %v1636_v28 = vpop.f32.mrb[32].mxu0  ;;  %v1742_v29 = vpop.f32.mrb[32].mxu1 }
 0x13b   : > { %v1637_v30 = vpop.f32.mrb[33].mxu0  ;;  %v1107_v32 = vpop.f32.mrb[33].mxu1 }
 0x13c   : > { %1354 = vst [vmem:[%s2101_s28 + $0x70] sm:$0xff] %v1322_v24  ;;  %v1323_v33 = vmax.f32 %v1291_v26, 0.0  ;;  %1353 = vst [vmem:[%s2101_s28 + $0x68] sm:$0xff] %v1321_v27  ;;  %v1638_v34 = vadd.f32 %v1637_v30, %v1636_v28  ;;  %v1639_v35 = vpop.f32.mrb[34].mxu0  ;;  %v1743_v38 = vpop.f32.mrb[34].mxu1 }
 0x13d   : > { %v1640_v39 = vpop.f32.mrb[35].mxu0  ;;  %v1110_v36 = vpop.f32.mrb[35].mxu1 }
 0x13e   : > { %1355 = vst [vmem:[%s2101_s28 + $0x78] sm:$0xff] %v1323_v33  ;;  %v1108_v40 = vadd.f32 %v1638_v34, %v1107_v32  ;;  %v1641_v41 = vadd.f32 %v1640_v39, %v1639_v35 }
 0x140   : > { %v1292_v44 = vadd.f32 %v2094_v58, %v1108_v40  ;;  %v1111_v45 = vadd.f32 %v1641_v41, %v1110_v36 }
 0x142   : > { %v1324_v46 = vmax.f32 %v1292_v44, 0.0  ;;  %v1293_v47 = vadd.f32 %v2094_v58, %v1111_v45  ;;  %v1642_v48 = vpop.f32.mrb[36].mxu0  ;;  %v2136_v50 = vpop.f32.mrb[36].mxu1 }
 0x143   : > { %v1643_v42 = vpop.f32.mrb[37].mxu0  ;;  %v1123_v51 = vpop.f32.mrb[37].mxu1 }
 0x144   : > { %1356 = vst [vmem:[%s2101_s28 + $0x80] sm:$0xff] %v1324_v46  ;;  %v1325_v52 = vmax.f32 %v1293_v47, 0.0  ;;  %v1644_v53 = vadd.f32 %v1643_v42, %v1642_v48  ;;  %v1645_v54 = vpop.f32.mrb[38].mxu0  ;;  %v2139_v56 = vpop.f32.mrb[38].mxu1 }
 0x145   : > { %v1646_v57 = vpop.f32.mrb[39].mxu0  ;;  %v1126_v59 = vpop.f32.mrb[39].mxu1 }
 0x146   : > { %1357 = vst [vmem:[%s2101_s28 + $0x88] sm:$0xff] %v1325_v52  ;;  %v1116_v60 = vadd.f32 %v1742_v29, %v1644_v53  ;;  %v1647_v61 = vadd.f32 %v1646_v57, %v1645_v54 }
 0x148   : > { %v1294_v63 = vadd.f32 %v2094_v58, %v1116_v60  ;;  %v1119_v0 = vadd.f32 %v1743_v38, %v1647_v61 }
 0x14a   : > { %v1326_v1 = vmax.f32 %v1294_v63, 0.0  ;;  %v1295_v62 = vadd.f32 %v2094_v58, %v1119_v0  ;;  %v1648_v2 = vpop.f32.mrb[40].mxu0  ;;  %v1750_v3 = vpop.f32.mrb[40].mxu1 }
 0x14b   : > { %v1148_v4 = vadd.f32 %v1750_v3, %v2079_v25  ;;  %v1649_v5 = vpop.f32.mrb[41].mxu0  ;;  %v1139_v6 = vpop.f32.mrb[41].mxu1 }
 0x14c   : > { %1358 = vst [vmem:[%s2101_s28 + $0x90] sm:$0xff] %v1326_v1  ;;  %v1327_v8 = vmax.f32 %v1295_v62, 0.0  ;;  %v1650_v9 = vadd.f32 %v1649_v5, %v1648_v2  ;;  %v1140_v10 = vadd.f32 %v2075_v13, %v1139_v6  ;;  %v1651_v7 = vpop.f32.mrb[42].mxu0  ;;  %v1751_v11 = vpop.f32.mrb[42].mxu1 }
 0x14d   : > { %v1302_v12 = vadd.f32 %v2094_v58, %v1148_v4  ;;  %v1151_v14 = vadd.f32 %v1751_v11, %v2081_v31  ;;  %v1652_v15 = vpop.f32.mrb[43].mxu0  ;;  %v1142_v16 = vpop.f32.mrb[43].mxu1 }
 0x14e   : > { %1359 = vst [vmem:[%s2101_s28 + $0x98] sm:$0xff] %v1327_v8  ;;  %v1124_v17 = vadd.f32 %v1650_v9, %v1123_v51  ;;  %v1300_v25 = vadd.f32 %v2094_v58, %v1140_v10  ;;  %v1653_v20 = vadd.f32 %v1652_v15, %v1651_v7  ;;  %v1143_v21 = vadd.f32 %v2077_v19, %v1142_v16 }
 0x14f   : > { %v1334_v22 = vmax.f32 %v1302_v12, 0.0  ;;  %v1303_v13 = vadd.f32 %v2094_v58, %v1151_v14 }
 0x150   : > { %v1296_v23 = vadd.f32 %v2094_v58, %v1124_v17  ;;  %v1332_v18 = vmax.f32 %v1300_v25, 0.0  ;;  %v1127_v24 = vadd.f32 %v1653_v20, %v1126_v59  ;;  %v1301_v31 = vadd.f32 %v2094_v58, %v1143_v21 }
 0x151   : > { %1366 = vst [vmem:[%s2101_s28 + $0xd0] sm:$0xff] %v1334_v22  ;;  %v1335_v26 = vmax.f32 %v1303_v13, 0.0 }
 0x152   : > { %v1328_v27 = vmax.f32 %v1296_v23, 0.0  ;;  %1364 = vst [vmem:[%s2101_s28 + $0xc0] sm:$0xff] %v1332_v18  ;;  %v1297_v28 = vadd.f32 %v2094_v58, %v1127_v24  ;;  %v1333_v29 = vmax.f32 %v1301_v31, 0.0  ;;  %v1654_v30 = vpop.f32.mrb[44].mxu0  ;;  %v1754_v19 = vpop.f32.mrb[44].mxu1 }
 0x153   : > { %1367 = vst [vmem:[%s2101_s28 + $0xd8] sm:$0xff] %v1335_v26  ;;  %v1164_v32 = vadd.f32 %v1754_v19, %v2087_v49  ;;  %v1655_v33 = vpop.f32.mrb[45].mxu0  ;;  %v1155_v34 = vpop.f32.mrb[45].mxu1 }
 0x154   : > { %1360 = vst [vmem:[%s2101_s28 + $0xa0] sm:$0xff] %v1328_v27  ;;  %v1329_v35 = vmax.f32 %v1297_v28, 0.0  ;;  %1365 = vst [vmem:[%s2101_s28 + $0xc8] sm:$0xff] %v1333_v29  ;;  %v1656_v38 = vadd.f32 %v1655_v33, %v1654_v30  ;;  %v1156_v39 = vadd.f32 %v2083_v37, %v1155_v34  ;;  %v1657_v36 = vpop.f32.mrb[46].mxu0  ;;  %v1755_v40 = vpop.f32.mrb[46].mxu1 }
 0x155   : > { %v1306_v41 = vadd.f32 %v2094_v58, %v1164_v32  ;;  %v1167_v44 = vadd.f32 %v1755_v40, %v2089_v55  ;;  %v1658_v45 = vpop.f32.mrb[47].mxu0  ;;  %v1158_v46 = vpop.f32.mrb[47].mxu1 }
 0x156   : > { %1361 = vst [vmem:[%s2101_s28 + $0xa8] sm:$0xff] %v1329_v35  ;;  %v1132_v49 = vadd.f32 %v2136_v50, %v1656_v38  ;;  %v1304_v47 = vadd.f32 %v2094_v58, %v1156_v39  ;;  %v1659_v48 = vadd.f32 %v1658_v45, %v1657_v36  ;;  %v1159_v37 = vadd.f32 %v2085_v43, %v1158_v46 }
 0x157   : > { %v1338_v42 = vmax.f32 %v1306_v41, 0.0  ;;  %v1307_v51 = vadd.f32 %v2094_v58, %v1167_v44 }
 0x158   : > { %v1298_v55 = vadd.f32 %v2094_v58, %v1132_v49  ;;  %v1336_v52 = vmax.f32 %v1304_v47, 0.0  ;;  %v1135_v53 = vadd.f32 %v2139_v56, %v1659_v48  ;;  %v1305_v54 = vadd.f32 %v2094_v58, %v1159_v37 }
 0x159   : > { %1370 = vst [vmem:[%s2101_s28 + $0xf0] sm:$0xff] %v1338_v42  ;;  %v1339_v50 = vmax.f32 %v1307_v51, 0.0 }
 0x15a   : > { %v1330_v57 = vmax.f32 %v1298_v55, 0.0  ;;  %1368 = vst [vmem:[%s2101_s28 + $0xe0] sm:$0xff] %v1336_v52  ;;  %v1299_v59 = vadd.f32 %v2094_v58, %v1135_v53  ;;  %v1337_v60 = vmax.f32 %v1305_v54, 0.0 }
 0x15b   : > { %1371 = vst [vmem:[%s2101_s28 + $0xf8] sm:$0xff] %v1339_v50 }
 0x15c   : > { %1362 = vst [vmem:[%s2101_s28 + $0xb0] sm:$0xff] %v1330_v57  ;;  %v1331_v43 = vmax.f32 %v1299_v59, 0.0  ;;  %1369 = vst [vmem:[%s2101_s28 + $0xe8] sm:$0xff] %v1337_v60 }
 0x15e   : > { %1363 = vst [vmem:[%s2101_s28 + $0xb8] sm:$0xff] %v1331_v43 }
 0x15f PF: > { %s13_s14 = sadd.s32 1, %s1907_s14   ;;  %s2193_s12 = smov %s1903_s13 }
 0x160   : > { %p10_p5 = scmp.ge.s32.totalorder %s13_s14, 15   ;;  %s2194_s13 = smov %s2196_s15 }
 0x162   :  { %12 = sbr.rel (!%p10_p5) target bundleno = 2 (0x2), region = 76 }

// kernel: autoencoder_forward.25
= control target key start
LH: loop header
LB: loop body
LE: loop exit
PB: predicated region body
PF: predicated region fallthrough
CT: control target
= control target key end

     0   :  { %s1425_s12 = smov 0   ;;  %s1427_s13 = smov 0   ;;  %s1618_s0 = inlined_call_operand.vmem [shape: bf16[12800,256], index: 0, kind: input, shape index: {}]   ;;  %s1619_s1 = inlined_call_operand.vmem [shape: bf16[256,128], index: 1, kind: input, shape index: {}]   ;;  %s1620_s2 = inlined_call_operand.vmem [shape: f32[1,128], index: 2, kind: input, shape index: {}]   ;;  %s1621_s3 = inlined_call_operand.vmem [shape: f32[12800,128], index: 3, kind: output, shape index: {}]  }
   0x1   :  { %s1429_s14 = smov 0  }
   0x2 LB: > { %s32_s15 = sadd.s32 1, %s1399_s13  ;;  %p1107_p0 = scmp.ge.s32.totalorder %s1403_s14, 1  ;;  %s1403_s14 = sphi %s1429_s14, %s13_s14   ;;  %s1399_s13 = sphi %s1427_s13, %s1623_s13   ;;  %s1395_s12 = sphi %s1425_s12, %s1622_s12  }
   0x3   : > { %p34_p1 = scmp.ge.s32.totalorder %s32_s15, 50  ;;  %p191_p2 = scmp.lt.s32.totalorder %s1403_s14, 51 }
   0x5   : > { %s1625_s15 = smov (%p34_p1, %s32_s15), 0  ;;  %p192_p3 = pnand %p1107_p0, %p191_p2 }
   0x6   : > { %v1317_v0 = vld [vmem:[%s1619_s1 + $0x40] sm:$0xff] (!%p192_p3)   ;;  %s1108_s18 = sshll.u32 (!%p192_p3), %s1395_s12, 5  ;;  %v1319_v2 = vld [vmem:[%s1619_s1 + $0x48] sm:$0xff] (!%p192_p3)   ;;  %v1321_v4 = vld [vmem:[%s1619_s1 + $0x50] sm:$0xff] (!%p192_p3)  }
   0x7   : > { %195 = sbr.rel (%p192_p3) target bundleno = 315 (0x13b), region = 32  ;;  %v1318_v1 = vld [vmem:[%s1619_s1] sm:$0xff] (!%p192_p3)   ;;  %1165 = vmatprep.subr.bf16.mxu0 (!%p192_p3), %v1317_v0  ;;  %1277 = vmatprep.subr.bf16.mxu1 (!%p192_p3), %v1317_v0  ;;  %v1320_v3 = vld [vmem:[%s1619_s1 + $0x8] sm:$0xff] (!%p192_p3)   ;;  %p236_p4 = scmp.lt.s32.totalorder (!%p192_p3), %s1108_s18, 1599  ;;  %v1322_v5 = vld [vmem:[%s1619_s1 + $0x10] sm:$0xff] (!%p192_p3)  }
   0x8   : > { %1166 = vmatpush3.bf16.msra.mxu0 (!%p192_p3), %v1318_v1  ;;  %1285 = vmatpush3.bf16.msra.mxu1 (!%p192_p3), %v1318_v1  ;;  %v1323_v6 = vld [vmem:[%s1619_s1 + $0x58] sm:$0xff] (!%p192_p3)   ;;  %v1325_v8 = vld [vmem:[%s1619_s1 + $0x60] sm:$0xff] (!%p192_p3)   ;;  %v1327_v10 = vld [vmem:[%s1619_s1 + $0x68] sm:$0xff] (!%p192_p3)  }
   0x9   : > { %1167 = vmatprep.subr.bf16.mxu0 (!%p192_p3), %v1319_v2  ;;  %1278 = vmatprep.subr.bf16.mxu1 (!%p192_p3), %v1319_v2  ;;  %v1324_v7 = vld [vmem:[%s1619_s1 + $0x18] sm:$0xff] (!%p192_p3)   ;;  %v1326_v9 = vld [vmem:[%s1619_s1 + $0x20] sm:$0xff] (!%p192_p3)   ;;  %v1328_v13 = vld [vmem:[%s1619_s1 + $0x28] sm:$0xff] (!%p192_p3)  }
   0xa   : > { %v1329_v14 = vld [vmem:[%s1619_s1 + $0x70] sm:$0xff] (!%p192_p3)   ;;  %v1331_v16 = vld [vmem:[%s1619_s1 + $0x78] sm:$0xff] (!%p192_p3)   ;;  %v1536_v51 = vld [vmem:[%s1620_s2] ss:$0 sm:$0xff] (!%p192_p3) }
   0xb   : > { %v1330_v15 = vld [vmem:[%s1619_s1 + $0x30] sm:$0xff] (!%p192_p3)   ;;  %v1332_v17 = vld [vmem:[%s1619_s1 + $0x38] sm:$0xff] (!%p192_p3)  }
   0xc   : > { %1168 = vmatpush3.bf16.msra.mxu0 (!%p192_p3), %v1320_v3  ;;  %1286 = vmatpush3.bf16.msra.mxu1 (!%p192_p3), %v1320_v3 }
   0xd   : > { %1169 = vmatprep.subr.bf16.mxu0 (!%p192_p3), %v1321_v4  ;;  %1279 = vmatprep.subr.bf16.mxu1 (!%p192_p3), %v1321_v4 }
   0xe   : > { %s1627_s18 = smov (!%p236_p4, %s1108_s18), 1599 }
   0xf   : > { %s1164_s6 = sshll.u32 %s1627_s18, 3 }
  0x10   : > { %1170 = vmatpush3.bf16.msra.mxu0 %v1322_v5  ;;  %1287 = vmatpush3.bf16.msra.mxu1 %v1322_v5  ;;  %s1478_s11 = scalar_lea.vmem %s1618_s0, %s1164_s6  ;;  %s1543_s8 = scalar_lea.vmem %s1621_s3, %s1164_s6 }
  0x11   : > { %1171 = vmatprep.subr.bf16.mxu0 %v1323_v6  ;;  %1280 = vmatprep.subr.bf16.mxu1 %v1323_v6  ;;  %v1335_v11 = vld [vmem:[%s1478_s11 + $0x4] ss:$8 sps:$4 sm:$0xff]   ;;  %v1333_v18 = vld [vmem:[%s1478_s11] ss:$8 sps:$4 sm:$0xff]   ;;  %v1339_v20 = vld [vmem:[%s1478_s11 + $0x14] ss:$8 sps:$4 sm:$0xff]  }
  0x12   : > { %v1338_v12 = vld [vmem:[%s1478_s11 + $0x84] ss:$8 sps:$4 sm:$0xff]   ;;  %688 = vmatprep.mubr.bf16.mxu0 %v1335_v11  ;;  %v1336_v19 = vld [vmem:[%s1478_s11 + $0x80] ss:$8 sps:$4 sm:$0xff]   ;;  %v1341_v21 = vld [vmem:[%s1478_s11 + $0x94] ss:$8 sps:$4 sm:$0xff]  }
  0x13   : > { %752 = vmatprep.mubr.bf16.mxu1 %v1338_v12  ;;  %v1343_v22 = vld [vmem:[%s1478_s11 + $0x10] ss:$8 sps:$4 sm:$0xff]   ;;  %v1345_v24 = vld [vmem:[%s1478_s11 + $0x24] ss:$8 sps:$4 sm:$0xff]   ;;  %v1349_v26 = vld [vmem:[%s1478_s11 + $0x20] ss:$8 sps:$4 sm:$0xff]  }
  0x14   : > { %1172 = vmatpush3.bf16.msra.mxu0 %v1324_v7  ;;  %1288 = vmatpush3.bf16.msra.mxu1 %v1324_v7  ;;  %v1344_v23 = vld [vmem:[%s1478_s11 + $0x90] ss:$8 sps:$4 sm:$0xff]   ;;  %v1347_v25 = vld [vmem:[%s1478_s11 + $0xa4] ss:$8 sps:$4 sm:$0xff]   ;;  %v1350_v27 = vld [vmem:[%s1478_s11 + $0xa0] ss:$8 sps:$4 sm:$0xff]  }
  0x15   : > { %1173 = vmatprep.subr.bf16.mxu0 %v1325_v8  ;;  %1281 = vmatprep.subr.bf16.mxu1 %v1325_v8  ;;  %v1351_v28 = vld [vmem:[%s1478_s11 + $0x34] ss:$8 sps:$4 sm:$0xff]   ;;  %v1355_v30 = vld [vmem:[%s1478_s11 + $0x30] ss:$8 sps:$4 sm:$0xff]   ;;  %v1357_v32 = vld [vmem:[%s1478_s11 + $0x44] ss:$8 sps:$4 sm:$0xff]  }
  0x16   : > { %v1353_v29 = vld [vmem:[%s1478_s11 + $0xb4] ss:$8 sps:$4 sm:$0xff]   ;;  %v1356_v31 = vld [vmem:[%s1478_s11 + $0xb0] ss:$8 sps:$4 sm:$0xff]   ;;  %v1359_v33 = vld [vmem:[%s1478_s11 + $0xc4] ss:$8 sps:$4 sm:$0xff]  }
  0x17   : > { %v1361_v34 = vld [vmem:[%s1478_s11 + $0x40] ss:$8 sps:$4 sm:$0xff]   ;;  %v1363_v36 = vld [vmem:[%s1478_s11 + $0x54] ss:$8 sps:$4 sm:$0xff]   ;;  %v1367_v38 = vld [vmem:[%s1478_s11 + $0x50] ss:$8 sps:$4 sm:$0xff]  }
  0x18   : > { %1174 = vmatpush3.bf16.msra.mxu0 %v1326_v9  ;;  %1289 = vmatpush3.bf16.msra.mxu1 %v1326_v9  ;;  %v1362_v35 = vld [vmem:[%s1478_s11 + $0xc0] ss:$8 sps:$4 sm:$0xff]   ;;  %v1365_v37 = vld [vmem:[%s1478_s11 + $0xd4] ss:$8 sps:$4 sm:$0xff]   ;;  %v1368_v39 = vld [vmem:[%s1478_s11 + $0xd0] ss:$8 sps:$4 sm:$0xff]  }
  0x19   : > { %1175 = vmatprep.subr.bf16.mxu0 %v1327_v10  ;;  %1282 = vmatprep.subr.bf16.mxu1 %v1327_v10  ;;  %v1369_v40 = vld [vmem:[%s1478_s11 + $0x64] ss:$8 sps:$4 sm:$0xff]   ;;  %v1373_v42 = vld [vmem:[%s1478_s11 + $0x60] ss:$8 sps:$4 sm:$0xff]   ;;  %v1375_v44 = vld [vmem:[%s1478_s11 + $0x74] ss:$8 sps:$4 sm:$0xff]  }
  0x1a   : > { %v1371_v41 = vld [vmem:[%s1478_s11 + $0xe4] ss:$8 sps:$4 sm:$0xff]   ;;  %v1374_v43 = vld [vmem:[%s1478_s11 + $0xe0] ss:$8 sps:$4 sm:$0xff]   ;;  %v1377_v45 = vld [vmem:[%s1478_s11 + $0xf4] ss:$8 sps:$4 sm:$0xff]  }
  0x1b   : > { %v1379_v46 = vld [vmem:[%s1478_s11 + $0x70] ss:$8 sps:$4 sm:$0xff]  }
  0x1c   : > { %1176 = vmatpush3.bf16.msra.mxu0 %v1328_v13  ;;  %1290 = vmatpush3.bf16.msra.mxu1 %v1328_v13  ;;  %v1380_v47 = vld [vmem:[%s1478_s11 + $0xf0] ss:$8 sps:$4 sm:$0xff]  }
  0x1d   : > { %1177 = vmatprep.subr.bf16.mxu0 %v1329_v14  ;;  %1283 = vmatprep.subr.bf16.mxu1 %v1329_v14 }
  0x20   : > { %1178 = vmatpush3.bf16.msra.mxu0 %v1330_v15  ;;  %1291 = vmatpush3.bf16.msra.mxu1 %v1330_v15 }
  0x21   : > { %1179 = vmatprep.subr.bf16.mxu0 %v1331_v16  ;;  %1284 = vmatprep.subr.bf16.mxu1 %v1331_v16 }
  0x24   : > { %1180 = vmatpush3.bf16.msra.mxu0 %v1332_v17  ;;  %1292 = vmatpush3.bf16.msra.mxu1 %v1332_v17 }
  0x27   : > { %689 = vmatmul.mubr.bf16.vlgmr.msra.gmra.mrb[0].mxu0 %v1333_v18  ;;  %753 = vmatmul.mubr.bf16.vlgmr.msra.gmra.mrb[0].mxu1 %v1336_v19 }
  0x28   : > { %696 = vmatprep.mubr.bf16.mxu0 %v1339_v20  ;;  %760 = vmatprep.mubr.bf16.mxu1 %v1341_v21 }
  0x2f   : > { %697 = vmatmul.mubr.bf16.gmra.mrb[4].mxu0 %v1343_v22  ;;  %761 = vmatmul.mubr.bf16.gmra.mrb[4].mxu1 %v1344_v23 }
  0x30   : > { %704 = vmatprep.mubr.bf16.mxu0 %v1345_v24  ;;  %768 = vmatprep.mubr.bf16.mxu1 %v1347_v25 }
  0x37   : > { %705 = vmatmul.mubr.bf16.gmra.mrb[8].mxu0 %v1349_v26  ;;  %769 = vmatmul.mubr.bf16.gmra.mrb[8].mxu1 %v1350_v27 }
  0x38   : > { %712 = vmatprep.mubr.bf16.mxu0 %v1351_v28  ;;  %776 = vmatprep.mubr.bf16.mxu1 %v1353_v29 }
  0x3f   : > { %713 = vmatmul.mubr.bf16.gmra.mrb[12].mxu0 %v1355_v30  ;;  %777 = vmatmul.mubr.bf16.gmra.mrb[12].mxu1 %v1356_v31 }
  0x40   : > { %720 = vmatprep.mubr.bf16.mxu0 %v1357_v32  ;;  %784 = vmatprep.mubr.bf16.mxu1 %v1359_v33 }
  0x47   : > { %721 = vmatmul.mubr.bf16.gmra.mrb[16].mxu0 %v1361_v34  ;;  %785 = vmatmul.mubr.bf16.gmra.mrb[16].mxu1 %v1362_v35 }
  0x48   : > { %728 = vmatprep.mubr.bf16.mxu0 %v1363_v36  ;;  %792 = vmatprep.mubr.bf16.mxu1 %v1365_v37 }
  0x4f   : > { %729 = vmatmul.mubr.bf16.gmra.mrb[20].mxu0 %v1367_v38  ;;  %793 = vmatmul.mubr.bf16.gmra.mrb[20].mxu1 %v1368_v39 }
  0x50   : > { %736 = vmatprep.mubr.bf16.mxu0 %v1369_v40  ;;  %800 = vmatprep.mubr.bf16.mxu1 %v1371_v41 }
  0x57   : > { %737 = vmatmul.mubr.bf16.gmra.mrb[24].mxu0 %v1373_v42  ;;  %801 = vmatmul.mubr.bf16.gmra.mrb[24].mxu1 %v1374_v43 }
  0x58   : > { %744 = vmatprep.mubr.bf16.mxu0 %v1375_v44  ;;  %808 = vmatprep.mubr.bf16.mxu1 %v1377_v45 }
  0x5f   : > { %745 = vmatmul.mubr.bf16.gmra.mrb[28].mxu0 %v1379_v46  ;;  %809 = vmatmul.mubr.bf16.gmra.mrb[28].mxu1 %v1380_v47 }
  0xfa   : > { %v1181_v48 = vpop.f32.mrb[0].mxu0  ;;  %v1229_v49 = vpop.f32.mrb[0].mxu1 }
  0xfb   : > { %v1182_v50 = vpop.f32.mrb[1].mxu0  ;;  %v1230_v52 = vpop.f32.mrb[1].mxu1 }
  0xfc   : > { %v1183_v53 = vadd.f32 %v1182_v50, %v1181_v48  ;;  %v1231_v54 = vadd.f32 %v1230_v52, %v1229_v49  ;;  %v1184_v55 = vpop.f32.mrb[2].mxu0  ;;  %v1232_v56 = vpop.f32.mrb[2].mxu1 }
  0xfd   : > { %v1185_v57 = vpop.f32.mrb[3].mxu0  ;;  %v1233_v58 = vpop.f32.mrb[3].mxu1 }
  0xfe   : > { %v923_v59 = vadd.f32 %v1183_v53, %v1536_v51  ;;  %v939_v60 = vadd.f32 %v1231_v54, %v1536_v51  ;;  %v1186_v61 = vadd.f32 %v1185_v57, %v1184_v55  ;;  %v1234_v62 = vadd.f32 %v1233_v58, %v1232_v56 }
 0x100   : > { %955 = vst [vmem:[%s1543_s8] sm:$0xff] %v923_v59  ;;  %971 = vst [vmem:[%s1543_s8 + $0x80] sm:$0xff] %v939_v60  ;;  %v924_v63 = vadd.f32 %v1186_v61, %v1536_v51  ;;  %v940_v0 = vadd.f32 %v1234_v62, %v1536_v51 }
 0x102   : > { %956 = vst [vmem:[%s1543_s8 + $0x8] sm:$0xff] %v924_v63  ;;  %972 = vst [vmem:[%s1543_s8 + $0x88] sm:$0xff] %v940_v0  ;;  %v1187_v1 = vpop.f32.mrb[4].mxu0  ;;  %v1235_v2 = vpop.f32.mrb[4].mxu1 }
 0x103   : > { %v1188_v3 = vpop.f32.mrb[5].mxu0  ;;  %v1236_v4 = vpop.f32.mrb[5].mxu1 }
 0x104   : > { %v1189_v5 = vadd.f32 %v1188_v3, %v1187_v1  ;;  %v1237_v6 = vadd.f32 %v1236_v4, %v1235_v2  ;;  %v1190_v7 = vpop.f32.mrb[6].mxu0  ;;  %v1238_v8 = vpop.f32.mrb[6].mxu1 }
 0x105   : > { %v1191_v9 = vpop.f32.mrb[7].mxu0  ;;  %v1239_v10 = vpop.f32.mrb[7].mxu1 }
 0x106   : > { %v925_v11 = vadd.f32 %v1189_v5, %v1536_v51  ;;  %v941_v12 = vadd.f32 %v1237_v6, %v1536_v51  ;;  %v1192_v13 = vadd.f32 %v1191_v9, %v1190_v7  ;;  %v1240_v14 = vadd.f32 %v1239_v10, %v1238_v8 }
 0x108   : > { %957 = vst [vmem:[%s1543_s8 + $0x10] sm:$0xff] %v925_v11  ;;  %973 = vst [vmem:[%s1543_s8 + $0x90] sm:$0xff] %v941_v12  ;;  %v926_v15 = vadd.f32 %v1192_v13, %v1536_v51  ;;  %v942_v16 = vadd.f32 %v1240_v14, %v1536_v51 }
 0x10a   : > { %958 = vst [vmem:[%s1543_s8 + $0x18] sm:$0xff] %v926_v15  ;;  %974 = vst [vmem:[%s1543_s8 + $0x98] sm:$0xff] %v942_v16  ;;  %v1193_v17 = vpop.f32.mrb[8].mxu0  ;;  %v1241_v18 = vpop.f32.mrb[8].mxu1 }
 0x10b   : > { %v1194_v19 = vpop.f32.mrb[9].mxu0  ;;  %v1242_v20 = vpop.f32.mrb[9].mxu1 }
 0x10c   : > { %v1195_v21 = vadd.f32 %v1194_v19, %v1193_v17  ;;  %v1243_v22 = vadd.f32 %v1242_v20, %v1241_v18  ;;  %v1196_v23 = vpop.f32.mrb[10].mxu0  ;;  %v1244_v24 = vpop.f32.mrb[10].mxu1 }
 0x10d   : > { %v1197_v25 = vpop.f32.mrb[11].mxu0  ;;  %v1245_v26 = vpop.f32.mrb[11].mxu1 }
 0x10e   : > { %v927_v27 = vadd.f32 %v1195_v21, %v1536_v51  ;;  %v943_v28 = vadd.f32 %v1243_v22, %v1536_v51  ;;  %v1198_v29 = vadd.f32 %v1197_v25, %v1196_v23  ;;  %v1246_v30 = vadd.f32 %v1245_v26, %v1244_v24 }
 0x110   : > { %959 = vst [vmem:[%s1543_s8 + $0x20] sm:$0xff] %v927_v27  ;;  %975 = vst [vmem:[%s1543_s8 + $0xa0] sm:$0xff] %v943_v28  ;;  %v928_v31 = vadd.f32 %v1198_v29, %v1536_v51  ;;  %v944_v32 = vadd.f32 %v1246_v30, %v1536_v51 }
 0x112   : > { %960 = vst [vmem:[%s1543_s8 + $0x28] sm:$0xff] %v928_v31  ;;  %976 = vst [vmem:[%s1543_s8 + $0xa8] sm:$0xff] %v944_v32  ;;  %v1199_v33 = vpop.f32.mrb[12].mxu0  ;;  %v1247_v34 = vpop.f32.mrb[12].mxu1 }
 0x113   : > { %v1200_v35 = vpop.f32.mrb[13].mxu0  ;;  %v1248_v36 = vpop.f32.mrb[13].mxu1 }
 0x114   : > { %v1201_v37 = vadd.f32 %v1200_v35, %v1199_v33  ;;  %v1249_v38 = vadd.f32 %v1248_v36, %v1247_v34  ;;  %v1202_v39 = vpop.f32.mrb[14].mxu0  ;;  %v1250_v40 = vpop.f32.mrb[14].mxu1 }
 0x115   : > { %v1203_v41 = vpop.f32.mrb[15].mxu0  ;;  %v1251_v42 = vpop.f32.mrb[15].mxu1 }
 0x116   : > { %v929_v43 = vadd.f32 %v1201_v37, %v1536_v51  ;;  %v945_v44 = vadd.f32 %v1249_v38, %v1536_v51  ;;  %v1204_v45 = vadd.f32 %v1203_v41, %v1202_v39  ;;  %v1252_v46 = vadd.f32 %v1251_v42, %v1250_v40 }
 0x118   : > { %961 = vst [vmem:[%s1543_s8 + $0x30] sm:$0xff] %v929_v43  ;;  %977 = vst [vmem:[%s1543_s8 + $0xb0] sm:$0xff] %v945_v44  ;;  %v930_v47 = vadd.f32 %v1204_v45, %v1536_v51  ;;  %v946_v48 = vadd.f32 %v1252_v46, %v1536_v51 }
 0x11a   : > { %962 = vst [vmem:[%s1543_s8 + $0x38] sm:$0xff] %v930_v47  ;;  %978 = vst [vmem:[%s1543_s8 + $0xb8] sm:$0xff] %v946_v48  ;;  %v1205_v49 = vpop.f32.mrb[16].mxu0  ;;  %v1253_v50 = vpop.f32.mrb[16].mxu1 }
 0x11b   : > { %v1206_v52 = vpop.f32.mrb[17].mxu0  ;;  %v1254_v53 = vpop.f32.mrb[17].mxu1 }
 0x11c   : > { %v1207_v54 = vadd.f32 %v1206_v52, %v1205_v49  ;;  %v1255_v55 = vadd.f32 %v1254_v53, %v1253_v50  ;;  %v1208_v56 = vpop.f32.mrb[18].mxu0  ;;  %v1256_v57 = vpop.f32.mrb[18].mxu1 }
 0x11d   : > { %v1209_v58 = vpop.f32.mrb[19].mxu0  ;;  %v1257_v59 = vpop.f32.mrb[19].mxu1 }
 0x11e   : > { %v931_v60 = vadd.f32 %v1207_v54, %v1536_v51  ;;  %v947_v61 = vadd.f32 %v1255_v55, %v1536_v51  ;;  %v1210_v62 = vadd.f32 %v1209_v58, %v1208_v56  ;;  %v1258_v63 = vadd.f32 %v1257_v59, %v1256_v57 }
 0x120   : > { %963 = vst [vmem:[%s1543_s8 + $0x40] sm:$0xff] %v931_v60  ;;  %979 = vst [vmem:[%s1543_s8 + $0xc0] sm:$0xff] %v947_v61  ;;  %v932_v0 = vadd.f32 %v1210_v62, %v1536_v51  ;;  %v948_v1 = vadd.f32 %v1258_v63, %v1536_v51 }
 0x122   : > { %964 = vst [vmem:[%s1543_s8 + $0x48] sm:$0xff] %v932_v0  ;;  %980 = vst [vmem:[%s1543_s8 + $0xc8] sm:$0xff] %v948_v1  ;;  %v1211_v2 = vpop.f32.mrb[20].mxu0  ;;  %v1259_v3 = vpop.f32.mrb[20].mxu1 }
 0x123   : > { %v1212_v4 = vpop.f32.mrb[21].mxu0  ;;  %v1260_v5 = vpop.f32.mrb[21].mxu1 }
 0x124   : > { %v1213_v6 = vadd.f32 %v1212_v4, %v1211_v2  ;;  %v1261_v7 = vadd.f32 %v1260_v5, %v1259_v3  ;;  %v1214_v8 = vpop.f32.mrb[22].mxu0  ;;  %v1262_v9 = vpop.f32.mrb[22].mxu1 }
 0x125   : > { %v1215_v10 = vpop.f32.mrb[23].mxu0  ;;  %v1263_v11 = vpop.f32.mrb[23].mxu1 }
 0x126   : > { %v933_v12 = vadd.f32 %v1213_v6, %v1536_v51  ;;  %v949_v13 = vadd.f32 %v1261_v7, %v1536_v51  ;;  %v1216_v14 = vadd.f32 %v1215_v10, %v1214_v8  ;;  %v1264_v15 = vadd.f32 %v1263_v11, %v1262_v9 }
 0x128   : > { %965 = vst [vmem:[%s1543_s8 + $0x50] sm:$0xff] %v933_v12  ;;  %981 = vst [vmem:[%s1543_s8 + $0xd0] sm:$0xff] %v949_v13  ;;  %v934_v16 = vadd.f32 %v1216_v14, %v1536_v51  ;;  %v950_v17 = vadd.f32 %v1264_v15, %v1536_v51 }
 0x12a   : > { %966 = vst [vmem:[%s1543_s8 + $0x58] sm:$0xff] %v934_v16  ;;  %982 = vst [vmem:[%s1543_s8 + $0xd8] sm:$0xff] %v950_v17  ;;  %v1217_v18 = vpop.f32.mrb[24].mxu0  ;;  %v1265_v19 = vpop.f32.mrb[24].mxu1 }
 0x12b   : > { %v1218_v20 = vpop.f32.mrb[25].mxu0  ;;  %v1266_v21 = vpop.f32.mrb[25].mxu1 }
 0x12c   : > { %v1219_v22 = vadd.f32 %v1218_v20, %v1217_v18  ;;  %v1267_v23 = vadd.f32 %v1266_v21, %v1265_v19  ;;  %v1220_v24 = vpop.f32.mrb[26].mxu0  ;;  %v1268_v25 = vpop.f32.mrb[26].mxu1 }
 0x12d   : > { %v1221_v26 = vpop.f32.mrb[27].mxu0  ;;  %v1269_v27 = vpop.f32.mrb[27].mxu1 }
 0x12e   : > { %v935_v28 = vadd.f32 %v1219_v22, %v1536_v51  ;;  %v951_v29 = vadd.f32 %v1267_v23, %v1536_v51  ;;  %v1222_v30 = vadd.f32 %v1221_v26, %v1220_v24  ;;  %v1270_v31 = vadd.f32 %v1269_v27, %v1268_v25 }
 0x130   : > { %967 = vst [vmem:[%s1543_s8 + $0x60] sm:$0xff] %v935_v28  ;;  %983 = vst [vmem:[%s1543_s8 + $0xe0] sm:$0xff] %v951_v29  ;;  %v936_v32 = vadd.f32 %v1222_v30, %v1536_v51  ;;  %v952_v33 = vadd.f32 %v1270_v31, %v1536_v51 }
 0x132   : > { %968 = vst [vmem:[%s1543_s8 + $0x68] sm:$0xff] %v936_v32  ;;  %984 = vst [vmem:[%s1543_s8 + $0xe8] sm:$0xff] %v952_v33  ;;  %v1223_v34 = vpop.f32.mrb[28].mxu0  ;;  %v1271_v35 = vpop.f32.mrb[28].mxu1 }
 0x133   : > { %v1224_v36 = vpop.f32.mrb[29].mxu0  ;;  %v1272_v37 = vpop.f32.mrb[29].mxu1 }
 0x134   : > { %v1225_v38 = vadd.f32 %v1224_v36, %v1223_v34  ;;  %v1273_v39 = vadd.f32 %v1272_v37, %v1271_v35  ;;  %v1226_v40 = vpop.f32.mrb[30].mxu0  ;;  %v1274_v41 = vpop.f32.mrb[30].mxu1 }
 0x135   : > { %v1227_v42 = vpop.f32.mrb[31].mxu0  ;;  %v1275_v43 = vpop.f32.mrb[31].mxu1 }
 0x136   : > { %v937_v44 = vadd.f32 %v1225_v38, %v1536_v51  ;;  %v953_v45 = vadd.f32 %v1273_v39, %v1536_v51  ;;  %v1228_v46 = vadd.f32 %v1227_v42, %v1226_v40  ;;  %v1276_v47 = vadd.f32 %v1275_v43, %v1274_v41 }
 0x138   : > { %969 = vst [vmem:[%s1543_s8 + $0x70] sm:$0xff] %v937_v44  ;;  %985 = vst [vmem:[%s1543_s8 + $0xf0] sm:$0xff] %v953_v45  ;;  %v938_v48 = vadd.f32 %v1228_v46, %v1536_v51  ;;  %v954_v49 = vadd.f32 %v1276_v47, %v1536_v51 }
 0x13a   : > { %970 = vst [vmem:[%s1543_s8 + $0x78] sm:$0xff] %v938_v48  ;;  %986 = vst [vmem:[%s1543_s8 + $0xf8] sm:$0xff] %v954_v49 }
 0x13b PF: > { %s13_s14 = sadd.s32 1, %s1403_s14   ;;  %s1622_s12 = smov %s1399_s13 }
 0x13c   : > { %p10_p5 = scmp.ge.s32.totalorder %s13_s14, 52   ;;  %s1623_s13 = smov %s1625_s15 }
 0x13e   :  { %12 = sbr.rel (!%p10_p5) target bundleno = 2 (0x2), region = 76 }

</bundles_post_ra>
